<compile_context>
chip_gen: v5e
topology: v5e:2x2
jax: 0.10.0
libtpu: 0.0.40
codegen_flags: <defaults>
</compile_context>

<pallas_src>
import functools

import jax
import jax.numpy as jnp
from jax import lax
from jax.experimental import pallas as pl
from jax.experimental.pallas import tpu as pltpu


def _residual_block_kernel(
    x_ref,      # (1, 1, TH+4, Wp, Cin)  bf16  per-(batch, row-tile) slab incl. halo
    w1_ref,     # (9, Cin, Cout)         bf16  conv1 weights (BN1 scale folded), tap-major
    b1_ref,     # (1, 1, Cout)           f32   per-batch: folded BN1/conv1 bias + temb
    w2_ref,     # (9, Cout, Cout)        bf16  conv2 weights (BN2 scale folded)
    b2_ref,     # (1, Cout)              f32   folded BN2/conv2 bias
    wres_ref,   # (Cin, Cout)            bf16  1x1 residual conv weight (unused if identity)
    bres_ref,   # (1, Cout)              f32
    out_ref,    # (1, TH, W, Cout)       f32
    ypad_ref,   # (TH+2, Wp, Cout)       bf16  VMEM scratch: conv1 output, W-zero-padded
    *, use_res_conv: bool):
  f32 = jnp.float32
  cdt = ypad_ref.dtype                         # matmul operand dtype (bf16)
  _, _, _, Wp, Cin = x_ref.shape
  _, TH, W, Cout = out_ref.shape
  R1 = TH + 2                                  # conv1 output rows (incl. conv2 halo)

  h = pl.program_id(1)

  # ---- conv1 (+ folded BN1 + temb + SiLU): 9 accumulated dots (f32 accumulator) ----
  acc1 = jnp.zeros((R1 * W, Cout), f32)
  for k in range(9):
    dy, dx = divmod(k, 3)
    lhs = x_ref[0, 0, dy:dy + R1, dx:dx + W, :].reshape(R1 * W, Cin)
    acc1 = acc1 + jnp.dot(lhs, w1_ref[k], preferred_element_type=f32)
  y = acc1 + b1_ref[0]                         # folded bias + conv1 bias + temb[b], f32
  y = y * jax.nn.sigmoid(y)                    # SiLU in f32 (VPU math stays f32)
  y = y.reshape(R1, W, Cout).astype(cdt)

  # ---- stage conv1 output in a W-pre-padded VMEM scratch (no concatenations) ----
  ypad_ref[:, 1:W + 1, :] = y
  zcol = jnp.zeros((R1, 1, Cout), cdt)
  ypad_ref[:, 0:1, :] = zcol                   # conv2 zero padding, left column
  ypad_ref[:, W + 1:W + 2, :] = zcol           # conv2 zero padding, right column
  # conv2 zero padding in H: halo rows outside the image must be 0, not conv1
  # applied to the zero-padded input (bug fix for the top/bottom image rows).
  @pl.when(h == 0)
  def _():
    ypad_ref[0:1, :, :] = jnp.zeros((1, Wp, Cout), cdt)
  @pl.when(h == pl.num_programs(1) - 1)
  def _():
    ypad_ref[R1 - 1:R1, :, :] = jnp.zeros((1, Wp, Cout), cdt)

  # ---- conv2 (+ folded BN2): 9 accumulated dots ----
  acc2 = jnp.zeros((TH * W, Cout), f32)
  for k in range(9):
    dy, dx = divmod(k, 3)
    lhs = ypad_ref[dy:dy + TH, dx:dx + W, :].reshape(TH * W, Cout)
    acc2 = acc2 + jnp.dot(lhs, w2_ref[k], preferred_element_type=f32)
  z = acc2 + b2_ref[...]
  # Dropout is identity in eval mode.

  # ---- residual branch (1x1 conv or identity) ----
  xc = x_ref[0, 0, 2:TH + 2, 1:W + 1, :]       # (TH, W, Cin) center of the slab
  if use_res_conv:
    xr = jnp.dot(xc.reshape(TH * W, Cin), wres_ref[...],
                 preferred_element_type=f32) + bres_ref[...]
    res = (z + xr).reshape(TH, W, Cout)
  else:
    res = z.reshape(TH, W, Cout) + xc.astype(f32)   # identity: add in natural shape

  out_ref[...] = res.reshape(1, TH, W, Cout).astype(out_ref.dtype)


# ------------------------------ wrapper helpers ------------------------------

def _round_up(v, m):
  return -(-v // m) * m


def _vmem_capacity_bytes():
  try:
    info = pltpu.get_tpu_info()
    cap = getattr(info, "vmem_capacity_bytes", None)
    if cap:
      return int(cap)
  except Exception:
    pass
  return 64 << 20                # assume the smallest (v7x) if the query fails


def _padded_bytes(shape, itemsize):
  """VMEM footprint of a block: last two dims tiled to (32//itemsize, 128)."""
  shape = tuple(shape)
  if len(shape) < 2:
    shape = (1,) * (2 - len(shape)) + shape
  sub = 32 // itemsize
  lead = 1
  for d in shape[:-2]:
    lead *= d
  return lead * _round_up(shape[-2], sub) * _round_up(shape[-1], 128) * itemsize


def _tile_working_set(th, W, Wp, cin, cout):
  """Approximate per-grid-step VMEM bytes for row-tile height `th`."""
  b = 0
  b += 2 * _padded_bytes((th + 4, Wp, cin), 2)               # x block (bf16, 2 buffers)
  b += 2 * _padded_bytes((th, W, cout), 4)                   # out block (f32, 2 buffers)
  b += _padded_bytes((th + 2, Wp, cout), 2)                  # y scratch (bf16)
  b += _padded_bytes(((th + 2) * W, cout), 4)                # conv1 accumulator
  b += _padded_bytes((th * W, cout), 4)                      # conv2 accumulator
  b += 2 * _padded_bytes(((th + 2) * W, max(cin, cout)), 2)  # live tap slices
  b += 4 * _padded_bytes((9 * max(cin, cout), cout), 2)      # weights (2 buffers each)
  return b


def _pick_tile_h(H, W, Wp, cin, cout, budget_bytes):
  """Largest divisor of H whose per-tile working set fits the budget (no row cap)."""
  divisors = [d for d in range(1, H + 1) if H % d == 0]
  ok = [d for d in divisors if _tile_working_set(d, W, Wp, cin, cout) <= budget_bytes]
  return max(ok) if ok else 1


# --------------------------------- wrapper -----------------------------------

def residual_block_forward(x_nchw, t, p, eps=1e-5, tile_h=None,
                           matmul_dtype=jnp.bfloat16):
  """NCHW in / NCHW out; eval-mode ResidualBlock forward via one fused Pallas kernel."""
  B, Cin, H, W = x_nchw.shape
  Cout = p["w1"].shape[-1]
  use_res_conv = "wres" in p
  if not use_res_conv:
    assert Cin == Cout, "identity residual requires in_channels == out_channels"

  f32 = jnp.float32
  cdt = matmul_dtype

  # ---- fold eval-mode BatchNorm into conv weights/biases (f32 fold, bf16 operands) ----
  s1 = p["bn1_gamma"] / jnp.sqrt(p["bn1_var"] + eps)
  s2 = p["bn2_gamma"] / jnp.sqrt(p["bn2_var"] + eps)
  w1f = (p["w1"].astype(f32) * s1).reshape(9, Cin, Cout).astype(cdt)
  w2f = (p["w2"].astype(f32) * s2).reshape(9, Cout, Cout).astype(cdt)
  bias1 = (p["b1"] - p["bn1_mean"]) * s1 + p["bn1_beta"]
  bias2 = ((p["b2"] - p["bn2_mean"]) * s2 + p["bn2_beta"]).reshape(1, Cout).astype(f32)

  # ---- time MLP hoisted out of the spatial kernel -> per-batch bias (f32) ----
  temb = jax.nn.silu(t.astype(f32) @ p["tw1"] + p["tb1"]) @ p["tw2"] + p["tb2"]
  b1_pb = (bias1[None, :] + temb).reshape(B, 1, Cout).astype(f32)

  wres = p.get("wres", jnp.zeros((Cin, Cout), f32)).astype(cdt)
  bres = p.get("bres", jnp.zeros((Cout,), f32)).reshape(1, Cout).astype(f32)

  # ---- generation-aware tile height / VMEM budget ----
  Wp = _round_up(W + 2, 8)                 # wrapper-side W zero-pad, 8-aligned width
  vmem_cap = _vmem_capacity_bytes()
  budget = vmem_cap // 8                   # ~8 MiB on v7x, ~16 MiB on v5e/v6e
  TH = tile_h if tile_h is not None else _pick_tile_h(H, W, Wp, Cin, Cout, budget)
  assert H % TH == 0, f"tile_h={TH} must divide H={H}"
  NH = H // TH

  # ---- NCHW -> NHWC, zero-pad (2 rows each side, 1..Wp-W-1 cols), pre-gather the
  #      overlapping (TH+4)-row halo slabs so each grid step only fetches its tile.
  x_nhwc = jnp.transpose(x_nchw, (0, 2, 3, 1)).astype(cdt)
  x_pad = jnp.pad(x_nhwc, ((0, 0), (2, 2), (1, Wp - W - 1), (0, 0)))
  row_idx = jnp.arange(NH)[:, None] * TH + jnp.arange(TH + 4)[None, :]
  x_tiles = x_pad[:, row_idx]              # (B, NH, TH+4, Wp, Cin)

  est = _tile_working_set(TH, W, Wp, Cin, Cout)
  vmem_cap_limit = (48 << 20) if vmem_cap <= (64 << 20) else (96 << 20)
  vmem_limit = int(min(vmem_cap_limit, max(32 << 20, 2 * est)))

  kernel = functools.partial(_residual_block_kernel, use_res_conv=use_res_conv)

  out_nhwc = pl.pallas_call(
      kernel,
      out_shape=jax.ShapeDtypeStruct((B, H, W, Cout), f32),
      grid=(B, NH),
      in_specs=[
          # per-(batch, row-tile) halo slab: block index depends on BOTH grid axes,
          # so megacore-splitting either axis never duplicates the whole-image DMA.
          pl.BlockSpec((1, 1, TH + 4, Wp, Cin), lambda b, h: (b, h, 0, 0, 0)),
          pl.BlockSpec((9, Cin, Cout),          lambda b, h: (0, 0, 0)),   # w1 (folded)
          pl.BlockSpec((1, 1, Cout),            lambda b, h: (b, 0, 0)),   # bias1 + temb[b]
          pl.BlockSpec((9, Cout, Cout),         lambda b, h: (0, 0, 0)),   # w2 (folded)
          pl.BlockSpec((1, Cout),               lambda b, h: (0, 0)),      # bias2
          pl.BlockSpec((Cin, Cout),             lambda b, h: (0, 0)),      # wres
          pl.BlockSpec((1, Cout),               lambda b, h: (0, 0)),      # bres
      ],
      out_specs=pl.BlockSpec((1, TH, W, Cout), lambda b, h: (b, h, 0, 0)),
      scratch_shapes=[pltpu.VMEM((TH + 2, Wp, Cout), cdt)],
      compiler_params=pltpu.CompilerParams(
          dimension_semantics=("parallel", "parallel"),
          vmem_limit_bytes=vmem_limit),
  )(x_tiles, w1f, b1_pb, w2f, bias2, wres, bres)

  return jnp.transpose(out_nhwc, (0, 3, 1, 2))


# ------------------------------ reference & test ------------------------------

def ref_forward(x_nchw, t, p, eps=1e-5):
  """Pure-JAX f32 reference (same eval-mode semantics, unfused params)."""
  x = jnp.transpose(x_nchw, (0, 2, 3, 1)).astype(jnp.float32)
  h = jax.nn.silu(t @ p["tw1"] + p["tb1"]) @ p["tw2"] + p["tb2"]
  dn = ("NHWC", "HWIO", "NHWC")
  y = lax.conv_general_dilated(x, p["w1"], (1, 1), "SAME",
                               dimension_numbers=dn) + p["b1"]
  y = (y - p["bn1_mean"]) / jnp.sqrt(p["bn1_var"] + eps) * p["bn1_gamma"] + p["bn1_beta"]
  y = jax.nn.silu(y + h[:, None, None, :])
  z = lax.conv_general_dilated(y, p["w2"], (1, 1), "SAME",
                               dimension_numbers=dn) + p["b2"]
  z = (z - p["bn2_mean"]) / jnp.sqrt(p["bn2_var"] + eps) * p["bn2_gamma"] + p["bn2_beta"]
  if "wres" in p:
    xr = jnp.einsum("bhwc,cd->bhwd", x, p["wres"]) + p["bres"]
  else:
    xr = x
  return jnp.transpose(z + xr, (0, 3, 1, 2))


def init_params(key, in_c, out_c, t_dim):
  ks = jax.random.split(key, 18)
  f32 = jnp.float32
  p = {
      "tw1": 0.1 * jax.random.normal(ks[0], (t_dim, out_c), f32),
      "tb1": 0.1 * jax.random.normal(ks[1], (out_c,), f32),
      "tw2": 0.1 * jax.random.normal(ks[2], (out_c, out_c), f32),
      "tb2": 0.1 * jax.random.normal(ks[3], (out_c,), f32),
      "w1": 0.1 * jax.random.normal(ks[4], (3, 3, in_c, out_c), f32),
      "b1": 0.1 * jax.random.normal(ks[5], (out_c,), f32),
      "w2": 0.1 * jax.random.normal(ks[6], (3, 3, out_c, out_c), f32),
      "b2": 0.1 * jax.random.normal(ks[7], (out_c,), f32),
      "bn1_gamma": 1.0 + 0.1 * jax.random.normal(ks[8], (out_c,), f32),
      "bn1_beta": 0.1 * jax.random.normal(ks[9], (out_c,), f32),
      "bn1_mean": 0.1 * jax.random.normal(ks[10], (out_c,), f32),
      "bn1_var": 1.0 + 0.1 * jnp.abs(jax.random.normal(ks[11], (out_c,), f32)),
      "bn2_gamma": 1.0 + 0.1 * jax.random.normal(ks[12], (out_c,), f32),
      "bn2_beta": 0.1 * jax.random.normal(ks[13], (out_c,), f32),
      "bn2_mean": 0.1 * jax.random.normal(ks[14], (out_c,), f32),
      "bn2_var": 1.0 + 0.1 * jnp.abs(jax.random.normal(ks[15], (out_c,), f32)),
  }
  if in_c != out_c:
    p["wres"] = 0.1 * jax.random.normal(ks[16], (in_c, out_c), f32)
    p["bres"] = 0.1 * jax.random.normal(ks[17], (out_c,), f32)
  return p


if __name__ == "__main__":
  B, Cin, Cout, H, W, T = 2, 4, 8, 16, 16, 32

  key = jax.random.PRNGKey(0)
  kx, kt, kp = jax.random.split(key, 3)
  x = jax.random.normal(kx, (B, Cin, H, W), jnp.float32)   # NCHW (PyTorch convention)
  t = jax.random.normal(kt, (B, T), jnp.float32)
  params = init_params(kp, Cin, Cout, T)

  out = jax.block_until_ready(residual_block_forward(x, t, params))
  ref = ref_forward(x, t, params)
  assert out.shape == (B, Cout, H, W)
  # bf16 MXU operands with f32 accumulation -> bf16-appropriate tolerance vs f32 ref.
  err = float(jnp.max(jnp.abs(out - ref)))
  assert err < 5e-2, f"max abs err {err}"

  # identity-residual path (in_channels == out_channels)
  params_id = init_params(jax.random.PRNGKey(1), Cout, Cout, T)
  x2 = jax.random.normal(jax.random.PRNGKey(2), (B, Cout, H, W), jnp.float32)
  out2 = jax.block_until_ready(residual_block_forward(x2, t, params_id))
  ref2 = ref_forward(x2, t, params_id)
  err2 = float(jnp.max(jnp.abs(out2 - ref2)))
  assert err2 < 5e-2, f"max abs err (identity path) {err2}"

  print("KERNEL_OK")
</pallas_src>

<mosaic_0001>
module attributes {stable_mosaic.version = 11 : i64} {
  func.func @_residual_block_kernel(%arg0: i32, %arg1: i32, %arg2: memref<1x1x20x24x4xbf16, #tpu.memory_space<vmem>>, %arg3: memref<9x4x8xbf16, #tpu.memory_space<vmem>>, %arg4: memref<1x1x8xf32, #tpu.memory_space<vmem>>, %arg5: memref<9x8x8xbf16, #tpu.memory_space<vmem>>, %arg6: memref<1x8xf32, #tpu.memory_space<vmem>>, %arg7: memref<4x8xbf16, #tpu.memory_space<vmem>>, %arg8: memref<1x8xf32, #tpu.memory_space<vmem>>, %arg9: memref<1x16x16x8xf32, #tpu.memory_space<vmem>>, %arg10: memref<18x24x8xbf16, #tpu.memory_space<vmem>>) attributes {dimension_semantics = [#tpu.dimension_semantics<parallel>, #tpu.dimension_semantics<parallel>], iteration_bounds = array<i64: 2, 1>, scalar_prefetch = 0 : i64, scratch_operands = 1 : i64, tpu.core_type = #tpu.core_type<tc>, window_params = [{transform_indices = @transform_0, window_bounds = array<i64: 1, 1, 20, 24, 4>}, {pipeline_mode = #tpu.pipeline_mode<synchronous>, transform_indices = @transform_1, window_bounds = array<i64: 9, 4, 8>}, {transform_indices = @transform_2, window_bounds = array<i64: 1, 1, 8>}, {pipeline_mode = #tpu.pipeline_mode<synchronous>, transform_indices = @transform_3, window_bounds = array<i64: 9, 8, 8>}, {pipeline_mode = #tpu.pipeline_mode<synchronous>, transform_indices = @transform_4, window_bounds = array<i64: 1, 8>}, {pipeline_mode = #tpu.pipeline_mode<synchronous>, transform_indices = @transform_5, window_bounds = array<i64: 4, 8>}, {pipeline_mode = #tpu.pipeline_mode<synchronous>, transform_indices = @transform_6, window_bounds = array<i64: 1, 8>}, {transform_indices = @transform_7, window_bounds = array<i64: 1, 16, 16, 8>}]} {
    %cst = arith.constant 0.000000e+00 : f32
    %0 = vector.broadcast %cst : f32 to vector<288x8xf32>
    %c0 = arith.constant 0 : index
    %c0_0 = arith.constant 0 : index
    %c0_1 = arith.constant 0 : index
    %c0_2 = arith.constant 0 : index
    %c0_3 = arith.constant 0 : index
    %1 = vector.load %arg2[%c0, %c0_0, %c0_1, %c0_2, %c0_3] : memref<1x1x20x24x4xbf16, #tpu.memory_space<vmem>>, vector<1x1x18x16x4xbf16>
    %2 = vector.shape_cast %1 : vector<1x1x18x16x4xbf16> to vector<18x16x4xbf16>
    %3 = vector.shape_cast %2 : vector<18x16x4xbf16> to vector<288x4xbf16>
    %c0_4 = arith.constant 0 : index
    %c0_5 = arith.constant 0 : index
    %c0_6 = arith.constant 0 : index
    %4 = vector.load %arg3[%c0_4, %c0_5, %c0_6] : memref<9x4x8xbf16, #tpu.memory_space<vmem>>, vector<1x4x8xbf16>
    %5 = vector.shape_cast %4 : vector<1x4x8xbf16> to vector<4x8xbf16>
    %cst_7 = arith.constant dense<0.000000e+00> : vector<288x8xf32>
    %6 = tpu.matmul %3, %5, %cst_7 {dimension_numbers = #tpu.dot_dimension_numbers<[1], [0], [0], [1], [0, 0, 1, 1], [], []>} : vector<288x4xbf16>, vector<4x8xbf16>, vector<288x8xf32> -> vector<288x8xf32>
    %7 = arith.addf %0, %6 : vector<288x8xf32>
    %c0_8 = arith.constant 0 : index
    %c0_9 = arith.constant 0 : index
    %c0_10 = arith.constant 0 : index
    %c1 = arith.constant 1 : index
    %c0_11 = arith.constant 0 : index
    %8 = vector.load %arg2[%c0_8, %c0_9, %c0_10, %c1, %c0_11] : memref<1x1x20x24x4xbf16, #tpu.memory_space<vmem>>, vector<1x1x18x16x4xbf16>
    %9 = vector.shape_cast %8 : vector<1x1x18x16x4xbf16> to vector<18x16x4xbf16>
    %10 = vector.shape_cast %9 : vector<18x16x4xbf16> to vector<288x4xbf16>
    %c1_12 = arith.constant 1 : index
    %c0_13 = arith.constant 0 : index
    %c0_14 = arith.constant 0 : index
    %11 = vector.load %arg3[%c1_12, %c0_13, %c0_14] : memref<9x4x8xbf16, #tpu.memory_space<vmem>>, vector<1x4x8xbf16>
    %12 = vector.shape_cast %11 : vector<1x4x8xbf16> to vector<4x8xbf16>
    %cst_15 = arith.constant dense<0.000000e+00> : vector<288x8xf32>
    %13 = tpu.matmul %10, %12, %cst_15 {dimension_numbers = #tpu.dot_dimension_numbers<[1], [0], [0], [1], [0, 0, 1, 1], [], []>} : vector<288x4xbf16>, vector<4x8xbf16>, vector<288x8xf32> -> vector<288x8xf32>
    %14 = arith.addf %7, %13 : vector<288x8xf32>
    %c0_16 = arith.constant 0 : index
    %c0_17 = arith.constant 0 : index
    %c0_18 = arith.constant 0 : index
    %c2 = arith.constant 2 : index
    %c0_19 = arith.constant 0 : index
    %15 = vector.load %arg2[%c0_16, %c0_17, %c0_18, %c2, %c0_19] : memref<1x1x20x24x4xbf16, #tpu.memory_space<vmem>>, vector<1x1x18x16x4xbf16>
    %16 = vector.shape_cast %15 : vector<1x1x18x16x4xbf16> to vector<18x16x4xbf16>
    %17 = vector.shape_cast %16 : vector<18x16x4xbf16> to vector<288x4xbf16>
    %c2_20 = arith.constant 2 : index
    %c0_21 = arith.constant 0 : index
    %c0_22 = arith.constant 0 : index
    %18 = vector.load %arg3[%c2_20, %c0_21, %c0_22] : memref<9x4x8xbf16, #tpu.memory_space<vmem>>, vector<1x4x8xbf16>
    %19 = vector.shape_cast %18 : vector<1x4x8xbf16> to vector<4x8xbf16>
    %cst_23 = arith.constant dense<0.000000e+00> : vector<288x8xf32>
    %20 = tpu.matmul %17, %19, %cst_23 {dimension_numbers = #tpu.dot_dimension_numbers<[1], [0], [0], [1], [0, 0, 1, 1], [], []>} : vector<288x4xbf16>, vector<4x8xbf16>, vector<288x8xf32> -> vector<288x8xf32>
    %21 = arith.addf %14, %20 : vector<288x8xf32>
    %c0_24 = arith.constant 0 : index
    %c0_25 = arith.constant 0 : index
    %c1_26 = arith.constant 1 : index
    %c0_27 = arith.constant 0 : index
    %c0_28 = arith.constant 0 : index
    %22 = vector.load %arg2[%c0_24, %c0_25, %c1_26, %c0_27, %c0_28] : memref<1x1x20x24x4xbf16, #tpu.memory_space<vmem>>, vector<1x1x18x16x4xbf16>
    %23 = vector.shape_cast %22 : vector<1x1x18x16x4xbf16> to vector<18x16x4xbf16>
    %24 = vector.shape_cast %23 : vector<18x16x4xbf16> to vector<288x4xbf16>
    %c3 = arith.constant 3 : index
    %c0_29 = arith.constant 0 : index
    %c0_30 = arith.constant 0 : index
    %25 = vector.load %arg3[%c3, %c0_29, %c0_30] : memref<9x4x8xbf16, #tpu.memory_space<vmem>>, vector<1x4x8xbf16>
    %26 = vector.shape_cast %25 : vector<1x4x8xbf16> to vector<4x8xbf16>
    %cst_31 = arith.constant dense<0.000000e+00> : vector<288x8xf32>
    %27 = tpu.matmul %24, %26, %cst_31 {dimension_numbers = #tpu.dot_dimension_numbers<[1], [0], [0], [1], [0, 0, 1, 1], [], []>} : vector<288x4xbf16>, vector<4x8xbf16>, vector<288x8xf32> -> vector<288x8xf32>
    %28 = arith.addf %21, %27 : vector<288x8xf32>
    %c0_32 = arith.constant 0 : index
    %c0_33 = arith.constant 0 : index
    %c1_34 = arith.constant 1 : index
    %c1_35 = arith.constant 1 : index
    %c0_36 = arith.constant 0 : index
    %29 = vector.load %arg2[%c0_32, %c0_33, %c1_34, %c1_35, %c0_36] : memref<1x1x20x24x4xbf16, #tpu.memory_space<vmem>>, vector<1x1x18x16x4xbf16>
    %30 = vector.shape_cast %29 : vector<1x1x18x16x4xbf16> to vector<18x16x4xbf16>
    %31 = vector.shape_cast %30 : vector<18x16x4xbf16> to vector<288x4xbf16>
    %c4 = arith.constant 4 : index
    %c0_37 = arith.constant 0 : index
    %c0_38 = arith.constant 0 : index
    %32 = vector.load %arg3[%c4, %c0_37, %c0_38] : memref<9x4x8xbf16, #tpu.memory_space<vmem>>, vector<1x4x8xbf16>
    %33 = vector.shape_cast %32 : vector<1x4x8xbf16> to vector<4x8xbf16>
    %cst_39 = arith.constant dense<0.000000e+00> : vector<288x8xf32>
    %34 = tpu.matmul %31, %33, %cst_39 {dimension_numbers = #tpu.dot_dimension_numbers<[1], [0], [0], [1], [0, 0, 1, 1], [], []>} : vector<288x4xbf16>, vector<4x8xbf16>, vector<288x8xf32> -> vector<288x8xf32>
    %35 = arith.addf %28, %34 : vector<288x8xf32>
    %c0_40 = arith.constant 0 : index
    %c0_41 = arith.constant 0 : index
    %c1_42 = arith.constant 1 : index
    %c2_43 = arith.constant 2 : index
    %c0_44 = arith.constant 0 : index
    %36 = vector.load %arg2[%c0_40, %c0_41, %c1_42, %c2_43, %c0_44] : memref<1x1x20x24x4xbf16, #tpu.memory_space<vmem>>, vector<1x1x18x16x4xbf16>
    %37 = vector.shape_cast %36 : vector<1x1x18x16x4xbf16> to vector<18x16x4xbf16>
    %38 = vector.shape_cast %37 : vector<18x16x4xbf16> to vector<288x4xbf16>
    %c5 = arith.constant 5 : index
    %c0_45 = arith.constant 0 : index
    %c0_46 = arith.constant 0 : index
    %39 = vector.load %arg3[%c5, %c0_45, %c0_46] : memref<9x4x8xbf16, #tpu.memory_space<vmem>>, vector<1x4x8xbf16>
    %40 = vector.shape_cast %39 : vector<1x4x8xbf16> to vector<4x8xbf16>
    %cst_47 = arith.constant dense<0.000000e+00> : vector<288x8xf32>
    %41 = tpu.matmul %38, %40, %cst_47 {dimension_numbers = #tpu.dot_dimension_numbers<[1], [0], [0], [1], [0, 0, 1, 1], [], []>} : vector<288x4xbf16>, vector<4x8xbf16>, vector<288x8xf32> -> vector<288x8xf32>
    %42 = arith.addf %35, %41 : vector<288x8xf32>
    %c0_48 = arith.constant 0 : index
    %c0_49 = arith.constant 0 : index
    %c2_50 = arith.constant 2 : index
    %c0_51 = arith.constant 0 : index
    %c0_52 = arith.constant 0 : index
    %43 = vector.load %arg2[%c0_48, %c0_49, %c2_50, %c0_51, %c0_52] : memref<1x1x20x24x4xbf16, #tpu.memory_space<vmem>>, vector<1x1x18x16x4xbf16>
    %44 = vector.shape_cast %43 : vector<1x1x18x16x4xbf16> to vector<18x16x4xbf16>
    %45 = vector.shape_cast %44 : vector<18x16x4xbf16> to vector<288x4xbf16>
    %c6 = arith.constant 6 : index
    %c0_53 = arith.constant 0 : index
    %c0_54 = arith.constant 0 : index
    %46 = vector.load %arg3[%c6, %c0_53, %c0_54] : memref<9x4x8xbf16, #tpu.memory_space<vmem>>, vector<1x4x8xbf16>
    %47 = vector.shape_cast %46 : vector<1x4x8xbf16> to vector<4x8xbf16>
    %cst_55 = arith.constant dense<0.000000e+00> : vector<288x8xf32>
    %48 = tpu.matmul %45, %47, %cst_55 {dimension_numbers = #tpu.dot_dimension_numbers<[1], [0], [0], [1], [0, 0, 1, 1], [], []>} : vector<288x4xbf16>, vector<4x8xbf16>, vector<288x8xf32> -> vector<288x8xf32>
    %49 = arith.addf %42, %48 : vector<288x8xf32>
    %c0_56 = arith.constant 0 : index
    %c0_57 = arith.constant 0 : index
    %c2_58 = arith.constant 2 : index
    %c1_59 = arith.constant 1 : index
    %c0_60 = arith.constant 0 : index
    %50 = vector.load %arg2[%c0_56, %c0_57, %c2_58, %c1_59, %c0_60] : memref<1x1x20x24x4xbf16, #tpu.memory_space<vmem>>, vector<1x1x18x16x4xbf16>
    %51 = vector.shape_cast %50 : vector<1x1x18x16x4xbf16> to vector<18x16x4xbf16>
    %52 = vector.shape_cast %51 : vector<18x16x4xbf16> to vector<288x4xbf16>
    %c7 = arith.constant 7 : index
    %c0_61 = arith.constant 0 : index
    %c0_62 = arith.constant 0 : index
    %53 = vector.load %arg3[%c7, %c0_61, %c0_62] : memref<9x4x8xbf16, #tpu.memory_space<vmem>>, vector<1x4x8xbf16>
    %54 = vector.shape_cast %53 : vector<1x4x8xbf16> to vector<4x8xbf16>
    %cst_63 = arith.constant dense<0.000000e+00> : vector<288x8xf32>
    %55 = tpu.matmul %52, %54, %cst_63 {dimension_numbers = #tpu.dot_dimension_numbers<[1], [0], [0], [1], [0, 0, 1, 1], [], []>} : vector<288x4xbf16>, vector<4x8xbf16>, vector<288x8xf32> -> vector<288x8xf32>
    %56 = arith.addf %49, %55 : vector<288x8xf32>
    %c0_64 = arith.constant 0 : index
    %c0_65 = arith.constant 0 : index
    %c2_66 = arith.constant 2 : index
    %c2_67 = arith.constant 2 : index
    %c0_68 = arith.constant 0 : index
    %57 = vector.load %arg2[%c0_64, %c0_65, %c2_66, %c2_67, %c0_68] : memref<1x1x20x24x4xbf16, #tpu.memory_space<vmem>>, vector<1x1x18x16x4xbf16>
    %58 = vector.shape_cast %57 : vector<1x1x18x16x4xbf16> to vector<18x16x4xbf16>
    %59 = vector.shape_cast %58 : vector<18x16x4xbf16> to vector<288x4xbf16>
    %c8 = arith.constant 8 : index
    %c0_69 = arith.constant 0 : index
    %c0_70 = arith.constant 0 : index
    %60 = vector.load %arg3[%c8, %c0_69, %c0_70] : memref<9x4x8xbf16, #tpu.memory_space<vmem>>, vector<1x4x8xbf16>
    %61 = vector.shape_cast %60 : vector<1x4x8xbf16> to vector<4x8xbf16>
    %cst_71 = arith.constant dense<0.000000e+00> : vector<288x8xf32>
    %62 = tpu.matmul %59, %61, %cst_71 {dimension_numbers = #tpu.dot_dimension_numbers<[1], [0], [0], [1], [0, 0, 1, 1], [], []>} : vector<288x4xbf16>, vector<4x8xbf16>, vector<288x8xf32> -> vector<288x8xf32>
    %63 = arith.addf %56, %62 : vector<288x8xf32>
    %c0_72 = arith.constant 0 : index
    %c0_73 = arith.constant 0 : index
    %c0_74 = arith.constant 0 : index
    %64 = vector.load %arg4[%c0_72, %c0_73, %c0_74] : memref<1x1x8xf32, #tpu.memory_space<vmem>>, vector<1x1x8xf32>
    %65 = vector.shape_cast %64 : vector<1x1x8xf32> to vector<1x8xf32>
    %66 = vector.broadcast %65 : vector<1x8xf32> to vector<288x8xf32>
    %67 = arith.addf %63, %66 : vector<288x8xf32>
    %68 = arith.negf %67 : vector<288x8xf32>
    %69 = math.exp %68 : vector<288x8xf32>
    %cst_75 = arith.constant 1.000000e+00 : f32
    %70 = vector.broadcast %cst_75 : f32 to vector<288x8xf32>
    %71 = arith.addf %70, %69 : vector<288x8xf32>
    %72 = arith.divf %70, %71 : vector<288x8xf32>
    %73 = arith.mulf %67, %72 : vector<288x8xf32>
    %74 = vector.shape_cast %73 : vector<288x8xf32> to vector<18x16x8xf32>
    %75 = arith.truncf %74 : vector<18x16x8xf32> to vector<18x16x8xbf16>
    %c0_76 = arith.constant 0 : index
    %c1_77 = arith.constant 1 : index
    %c0_78 = arith.constant 0 : index
    %76 = vector.load %arg10[%c0_76, %c1_77, %c0_78] : memref<18x24x8xbf16, #tpu.memory_space<vmem>>, vector<18x16x8xbf16>
    tpu.vector_store %arg10[%c0_76, %c1_77, %c0_78], %75 {strides = array<i32>} : memref<18x24x8xbf16, #tpu.memory_space<vmem>>, vector<18x16x8xbf16>,
    %cst_79 = arith.constant 0.000000e+00 : bf16
    %77 = vector.broadcast %cst_79 : bf16 to vector<18x1x8xbf16>
    %c0_80 = arith.constant 0 : index
    %c0_81 = arith.constant 0 : index
    %c0_82 = arith.constant 0 : index
    %78 = vector.load %arg10[%c0_80, %c0_81, %c0_82] : memref<18x24x8xbf16, #tpu.memory_space<vmem>>, vector<18x1x8xbf16>
    tpu.vector_store %arg10[%c0_80, %c0_81, %c0_82], %77 {strides = array<i32>} : memref<18x24x8xbf16, #tpu.memory_space<vmem>>, vector<18x1x8xbf16>,
    %c0_83 = arith.constant 0 : index
    %c17 = arith.constant 17 : index
    %c0_84 = arith.constant 0 : index
    %79 = vector.load %arg10[%c0_83, %c17, %c0_84] : memref<18x24x8xbf16, #tpu.memory_space<vmem>>, vector<18x1x8xbf16>
    tpu.vector_store %arg10[%c0_83, %c17, %c0_84], %77 {strides = array<i32>} : memref<18x24x8xbf16, #tpu.memory_space<vmem>>, vector<18x1x8xbf16>,
    %c0_i32 = arith.constant 0 : i32
    %80 = arith.cmpi eq, %arg1, %c0_i32 : i32
    %81 = arith.extui %80 : i1 to i32
    %c0_i32_85 = arith.constant 0 : i32
    %82 = arith.cmpi ne, %81, %c0_i32_85 : i32
    scf.if %82 {
      %cst_168 = arith.constant 0.000000e+00 : bf16
      %156 = vector.broadcast %cst_168 : bf16 to vector<1x24x8xbf16>
      %c0_169 = arith.constant 0 : index
      %c0_170 = arith.constant 0 : index
      %c0_171 = arith.constant 0 : index
      %157 = vector.load %arg10[%c0_169, %c0_170, %c0_171] : memref<18x24x8xbf16, #tpu.memory_space<vmem>>, vector<1x24x8xbf16>
      tpu.vector_store %arg10[%c0_169, %c0_170, %c0_171], %156 {strides = array<i32>} : memref<18x24x8xbf16, #tpu.memory_space<vmem>>, vector<1x24x8xbf16>,
    } else {
    }
    %c0_i32_86 = arith.constant 0 : i32
    %83 = arith.cmpi eq, %arg1, %c0_i32_86 : i32
    %84 = arith.extui %83 : i1 to i32
    %c0_i32_87 = arith.constant 0 : i32
    %85 = arith.cmpi ne, %84, %c0_i32_87 : i32
    scf.if %85 {
      %cst_168 = arith.constant 0.000000e+00 : bf16
      %156 = vector.broadcast %cst_168 : bf16 to vector<1x24x8xbf16>
      %c17_169 = arith.constant 17 : index
      %c0_170 = arith.constant 0 : index
      %c0_171 = arith.constant 0 : index
      %157 = vector.load %arg10[%c17_169, %c0_170, %c0_171] : memref<18x24x8xbf16, #tpu.memory_space<vmem>>, vector<1x24x8xbf16>
      tpu.vector_store %arg10[%c17_169, %c0_170, %c0_171], %156 {strides = array<i32>} : memref<18x24x8xbf16, #tpu.memory_space<vmem>>, vector<1x24x8xbf16>,
    } else {
    }
    %cst_88 = arith.constant 0.000000e+00 : f32
    %86 = vector.broadcast %cst_88 : f32 to vector<256x8xf32>
    %c0_89 = arith.constant 0 : index
    %c0_90 = arith.constant 0 : index
    %c0_91 = arith.constant 0 : index
    %87 = vector.load %arg10[%c0_89, %c0_90, %c0_91] : memref<18x24x8xbf16, #tpu.memory_space<vmem>>, vector<16x16x8xbf16>
    %88 = vector.shape_cast %87 : vector<16x16x8xbf16> to vector<256x8xbf16>
    %c0_92 = arith.constant 0 : index
    %c0_93 = arith.constant 0 : index
    %c0_94 = arith.constant 0 : index
    %89 = vector.load %arg5[%c0_92, %c0_93, %c0_94] : memref<9x8x8xbf16, #tpu.memory_space<vmem>>, vector<1x8x8xbf16>
    %90 = vector.shape_cast %89 : vector<1x8x8xbf16> to vector<8x8xbf16>
    %cst_95 = arith.constant dense<0.000000e+00> : vector<256x8xf32>
    %91 = tpu.matmul %88, %90, %cst_95 {dimension_numbers = #tpu.dot_dimension_numbers<[1], [0], [0], [1], [0, 0, 1, 1], [], []>} : vector<256x8xbf16>, vector<8x8xbf16>, vector<256x8xf32> -> vector<256x8xf32>
    %92 = arith.addf %86, %91 : vector<256x8xf32>
    %c0_96 = arith.constant 0 : index
    %c1_97 = arith.constant 1 : index
    %c0_98 = arith.constant 0 : index
    %93 = vector.load %arg10[%c0_96, %c1_97, %c0_98] : memref<18x24x8xbf16, #tpu.memory_space<vmem>>, vector<16x16x8xbf16>
    %94 = vector.shape_cast %93 : vector<16x16x8xbf16> to vector<256x8xbf16>
    %c1_99 = arith.constant 1 : index
    %c0_100 = arith.constant 0 : index
    %c0_101 = arith.constant 0 : index
    %95 = vector.load %arg5[%c1_99, %c0_100, %c0_101] : memref<9x8x8xbf16, #tpu.memory_space<vmem>>, vector<1x8x8xbf16>
    %96 = vector.shape_cast %95 : vector<1x8x8xbf16> to vector<8x8xbf16>
    %cst_102 = arith.constant dense<0.000000e+00> : vector<256x8xf32>
    %97 = tpu.matmul %94, %96, %cst_102 {dimension_numbers = #tpu.dot_dimension_numbers<[1], [0], [0], [1], [0, 0, 1, 1], [], []>} : vector<256x8xbf16>, vector<8x8xbf16>, vector<256x8xf32> -> vector<256x8xf32>
    %98 = arith.addf %92, %97 : vector<256x8xf32>
    %c0_103 = arith.constant 0 : index
    %c2_104 = arith.constant 2 : index
    %c0_105 = arith.constant 0 : index
    %99 = vector.load %arg10[%c0_103, %c2_104, %c0_105] : memref<18x24x8xbf16, #tpu.memory_space<vmem>>, vector<16x16x8xbf16>
    %100 = vector.shape_cast %99 : vector<16x16x8xbf16> to vector<256x8xbf16>
    %c2_106 = arith.constant 2 : index
    %c0_107 = arith.constant 0 : index
    %c0_108 = arith.constant 0 : index
    %101 = vector.load %arg5[%c2_106, %c0_107, %c0_108] : memref<9x8x8xbf16, #tpu.memory_space<vmem>>, vector<1x8x8xbf16>
    %102 = vector.shape_cast %101 : vector<1x8x8xbf16> to vector<8x8xbf16>
    %cst_109 = arith.constant dense<0.000000e+00> : vector<256x8xf32>
    %103 = tpu.matmul %100, %102, %cst_109 {dimension_numbers = #tpu.dot_dimension_numbers<[1], [0], [0], [1], [0, 0, 1, 1], [], []>} : vector<256x8xbf16>, vector<8x8xbf16>, vector<256x8xf32> -> vector<256x8xf32>
    %104 = arith.addf %98, %103 : vector<256x8xf32>
    %c1_110 = arith.constant 1 : index
    %c0_111 = arith.constant 0 : index
    %c0_112 = arith.constant 0 : index
    %105 = vector.load %arg10[%c1_110, %c0_111, %c0_112] : memref<18x24x8xbf16, #tpu.memory_space<vmem>>, vector<16x16x8xbf16>
    %106 = vector.shape_cast %105 : vector<16x16x8xbf16> to vector<256x8xbf16>
    %c3_113 = arith.constant 3 : index
    %c0_114 = arith.constant 0 : index
    %c0_115 = arith.constant 0 : index
    %107 = vector.load %arg5[%c3_113, %c0_114, %c0_115] : memref<9x8x8xbf16, #tpu.memory_space<vmem>>, vector<1x8x8xbf16>
    %108 = vector.shape_cast %107 : vector<1x8x8xbf16> to vector<8x8xbf16>
    %cst_116 = arith.constant dense<0.000000e+00> : vector<256x8xf32>
    %109 = tpu.matmul %106, %108, %cst_116 {dimension_numbers = #tpu.dot_dimension_numbers<[1], [0], [0], [1], [0, 0, 1, 1], [], []>} : vector<256x8xbf16>, vector<8x8xbf16>, vector<256x8xf32> -> vector<256x8xf32>
    %110 = arith.addf %104, %109 : vector<256x8xf32>
    %c1_117 = arith.constant 1 : index
    %c1_118 = arith.constant 1 : index
    %c0_119 = arith.constant 0 : index
    %111 = vector.load %arg10[%c1_117, %c1_118, %c0_119] : memref<18x24x8xbf16, #tpu.memory_space<vmem>>, vector<16x16x8xbf16>
    %112 = vector.shape_cast %111 : vector<16x16x8xbf16> to vector<256x8xbf16>
    %c4_120 = arith.constant 4 : index
    %c0_121 = arith.constant 0 : index
    %c0_122 = arith.constant 0 : index
    %113 = vector.load %arg5[%c4_120, %c0_121, %c0_122] : memref<9x8x8xbf16, #tpu.memory_space<vmem>>, vector<1x8x8xbf16>
    %114 = vector.shape_cast %113 : vector<1x8x8xbf16> to vector<8x8xbf16>
    %cst_123 = arith.constant dense<0.000000e+00> : vector<256x8xf32>
    %115 = tpu.matmul %112, %114, %cst_123 {dimension_numbers = #tpu.dot_dimension_numbers<[1], [0], [0], [1], [0, 0, 1, 1], [], []>} : vector<256x8xbf16>, vector<8x8xbf16>, vector<256x8xf32> -> vector<256x8xf32>
    %116 = arith.addf %110, %115 : vector<256x8xf32>
    %c1_124 = arith.constant 1 : index
    %c2_125 = arith.constant 2 : index
    %c0_126 = arith.constant 0 : index
    %117 = vector.load %arg10[%c1_124, %c2_125, %c0_126] : memref<18x24x8xbf16, #tpu.memory_space<vmem>>, vector<16x16x8xbf16>
    %118 = vector.shape_cast %117 : vector<16x16x8xbf16> to vector<256x8xbf16>
    %c5_127 = arith.constant 5 : index
    %c0_128 = arith.constant 0 : index
    %c0_129 = arith.constant 0 : index
    %119 = vector.load %arg5[%c5_127, %c0_128, %c0_129] : memref<9x8x8xbf16, #tpu.memory_space<vmem>>, vector<1x8x8xbf16>
    %120 = vector.shape_cast %119 : vector<1x8x8xbf16> to vector<8x8xbf16>
    %cst_130 = arith.constant dense<0.000000e+00> : vector<256x8xf32>
    %121 = tpu.matmul %118, %120, %cst_130 {dimension_numbers = #tpu.dot_dimension_numbers<[1], [0], [0], [1], [0, 0, 1, 1], [], []>} : vector<256x8xbf16>, vector<8x8xbf16>, vector<256x8xf32> -> vector<256x8xf32>
    %122 = arith.addf %116, %121 : vector<256x8xf32>
    %c2_131 = arith.constant 2 : index
    %c0_132 = arith.constant 0 : index
    %c0_133 = arith.constant 0 : index
    %123 = vector.load %arg10[%c2_131, %c0_132, %c0_133] : memref<18x24x8xbf16, #tpu.memory_space<vmem>>, vector<16x16x8xbf16>
    %124 = vector.shape_cast %123 : vector<16x16x8xbf16> to vector<256x8xbf16>
    %c6_134 = arith.constant 6 : index
    %c0_135 = arith.constant 0 : index
    %c0_136 = arith.constant 0 : index
    %125 = vector.load %arg5[%c6_134, %c0_135, %c0_136] : memref<9x8x8xbf16, #tpu.memory_space<vmem>>, vector<1x8x8xbf16>
    %126 = vector.shape_cast %125 : vector<1x8x8xbf16> to vector<8x8xbf16>
    %cst_137 = arith.constant dense<0.000000e+00> : vector<256x8xf32>
    %127 = tpu.matmul %124, %126, %cst_137 {dimension_numbers = #tpu.dot_dimension_numbers<[1], [0], [0], [1], [0, 0, 1, 1], [], []>} : vector<256x8xbf16>, vector<8x8xbf16>, vector<256x8xf32> -> vector<256x8xf32>
    %128 = arith.addf %122, %127 : vector<256x8xf32>
    %c2_138 = arith.constant 2 : index
    %c1_139 = arith.constant 1 : index
    %c0_140 = arith.constant 0 : index
    %129 = vector.load %arg10[%c2_138, %c1_139, %c0_140] : memref<18x24x8xbf16, #tpu.memory_space<vmem>>, vector<16x16x8xbf16>
    %130 = vector.shape_cast %129 : vector<16x16x8xbf16> to vector<256x8xbf16>
    %c7_141 = arith.constant 7 : index
    %c0_142 = arith.constant 0 : index
    %c0_143 = arith.constant 0 : index
    %131 = vector.load %arg5[%c7_141, %c0_142, %c0_143] : memref<9x8x8xbf16, #tpu.memory_space<vmem>>, vector<1x8x8xbf16>
    %132 = vector.shape_cast %131 : vector<1x8x8xbf16> to vector<8x8xbf16>
    %cst_144 = arith.constant dense<0.000000e+00> : vector<256x8xf32>
    %133 = tpu.matmul %130, %132, %cst_144 {dimension_numbers = #tpu.dot_dimension_numbers<[1], [0], [0], [1], [0, 0, 1, 1], [], []>} : vector<256x8xbf16>, vector<8x8xbf16>, vector<256x8xf32> -> vector<256x8xf32>
    %134 = arith.addf %128, %133 : vector<256x8xf32>
    %c2_145 = arith.constant 2 : index
    %c2_146 = arith.constant 2 : index
    %c0_147 = arith.constant 0 : index
    %135 = vector.load %arg10[%c2_145, %c2_146, %c0_147] : memref<18x24x8xbf16, #tpu.memory_space<vmem>>, vector<16x16x8xbf16>
    %136 = vector.shape_cast %135 : vector<16x16x8xbf16> to vector<256x8xbf16>
    %c8_148 = arith.constant 8 : index
    %c0_149 = arith.constant 0 : index
    %c0_150 = arith.constant 0 : index
    %137 = vector.load %arg5[%c8_148, %c0_149, %c0_150] : memref<9x8x8xbf16, #tpu.memory_space<vmem>>, vector<1x8x8xbf16>
    %138 = vector.shape_cast %137 : vector<1x8x8xbf16> to vector<8x8xbf16>
    %cst_151 = arith.constant dense<0.000000e+00> : vector<256x8xf32>
    %139 = tpu.matmul %136, %138, %cst_151 {dimension_numbers = #tpu.dot_dimension_numbers<[1], [0], [0], [1], [0, 0, 1, 1], [], []>} : vector<256x8xbf16>, vector<8x8xbf16>, vector<256x8xf32> -> vector<256x8xf32>
    %140 = arith.addf %134, %139 : vector<256x8xf32>
    %c0_152 = arith.constant 0 : index
    %c0_153 = arith.constant 0 : index
    %141 = vector.load %arg6[%c0_152, %c0_153] : memref<1x8xf32, #tpu.memory_space<vmem>>, vector<1x8xf32>
    %142 = vector.broadcast %141 : vector<1x8xf32> to vector<256x8xf32>
    %143 = arith.addf %140, %142 : vector<256x8xf32>
    %c0_154 = arith.constant 0 : index
    %c0_155 = arith.constant 0 : index
    %c2_156 = arith.constant 2 : index
    %c1_157 = arith.constant 1 : index
    %c0_158 = arith.constant 0 : index
    %144 = vector.load %arg2[%c0_154, %c0_155, %c2_156, %c1_157, %c0_158] : memref<1x1x20x24x4xbf16, #tpu.memory_space<vmem>>, vector<1x1x16x16x4xbf16>
    %145 = vector.shape_cast %144 : vector<1x1x16x16x4xbf16> to vector<16x16x4xbf16>
    %146 = vector.shape_cast %145 : vector<16x16x4xbf16> to vector<256x4xbf16>
    %c0_159 = arith.constant 0 : index
    %c0_160 = arith.constant 0 : index
    %147 = vector.load %arg7[%c0_159, %c0_160] : memref<4x8xbf16, #tpu.memory_space<vmem>>, vector<4x8xbf16>
    %cst_161 = arith.constant dense<0.000000e+00> : vector<256x8xf32>
    %148 = tpu.matmul %146, %147, %cst_161 {dimension_numbers = #tpu.dot_dimension_numbers<[1], [0], [0], [1], [0, 0, 1, 1], [], []>} : vector<256x4xbf16>, vector<4x8xbf16>, vector<256x8xf32> -> vector<256x8xf32>
    %c0_162 = arith.constant 0 : index
    %c0_163 = arith.constant 0 : index
    %149 = vector.load %arg8[%c0_162, %c0_163] : memref<1x8xf32, #tpu.memory_space<vmem>>, vector<1x8xf32>
    %150 = vector.broadcast %149 : vector<1x8xf32> to vector<256x8xf32>
    %151 = arith.addf %148, %150 : vector<256x8xf32>
    %152 = arith.addf %143, %151 : vector<256x8xf32>
    %153 = vector.shape_cast %152 : vector<256x8xf32> to vector<16x16x8xf32>
    %154 = vector.shape_cast %153 : vector<16x16x8xf32> to vector<1x16x16x8xf32>
    %c0_164 = arith.constant 0 : index
    %c0_165 = arith.constant 0 : index
    %c0_166 = arith.constant 0 : index
    %c0_167 = arith.constant 0 : index
    %155 = vector.load %arg9[%c0_164, %c0_165, %c0_166, %c0_167] : memref<1x16x16x8xf32, #tpu.memory_space<vmem>>, vector<1x16x16x8xf32>
    tpu.vector_store %arg9[%c0_164, %c0_165, %c0_166, %c0_167], %154 {strides = array<i32>} : memref<1x16x16x8xf32, #tpu.memory_space<vmem>>, vector<1x16x16x8xf32>,
    return
  }
  func.func @transform_0(%arg0: i32, %arg1: i32) -> (i32, i32, i32, i32, i32) {
    %c0_i32 = arith.constant 0 : i32
    %c0_i32_0 = arith.constant 0 : i32
    %c0_i32_1 = arith.constant 0 : i32
    %c0_i32_2 = arith.constant 0 : i32
    return %arg0, %arg1, %c0_i32, %c0_i32_0, %c0_i32_1 : i32, i32, i32, i32, i32
  }
  func.func @transform_1(%arg0: i32, %arg1: i32) -> (i32, i32, i32) {
    %c0_i32 = arith.constant 0 : i32
    %c0_i32_0 = arith.constant 0 : i32
    %c0_i32_1 = arith.constant 0 : i32
    %c0_i32_2 = arith.constant 0 : i32
    return %c0_i32, %c0_i32_0, %c0_i32_1 : i32, i32, i32
  }
  func.func @transform_2(%arg0: i32, %arg1: i32) -> (i32, i32, i32) {
    %c0_i32 = arith.constant 0 : i32
    %c0_i32_0 = arith.constant 0 : i32
    %c0_i32_1 = arith.constant 0 : i32
    return %arg0, %c0_i32, %c0_i32_0 : i32, i32, i32
  }
  func.func @transform_3(%arg0: i32, %arg1: i32) -> (i32, i32, i32) {
    %c0_i32 = arith.constant 0 : i32
    %c0_i32_0 = arith.constant 0 : i32
    %c0_i32_1 = arith.constant 0 : i32
    %c0_i32_2 = arith.constant 0 : i32
    return %c0_i32, %c0_i32_0, %c0_i32_1 : i32, i32, i32
  }
  func.func @transform_4(%arg0: i32, %arg1: i32) -> (i32, i32) {
    %c0_i32 = arith.constant 0 : i32
    %c0_i32_0 = arith.constant 0 : i32
    %c0_i32_1 = arith.constant 0 : i32
    return %c0_i32, %c0_i32_0 : i32, i32
  }
  func.func @transform_5(%arg0: i32, %arg1: i32) -> (i32, i32) {
    %c0_i32 = arith.constant 0 : i32
    %c0_i32_0 = arith.constant 0 : i32
    %c0_i32_1 = arith.constant 0 : i32
    return %c0_i32, %c0_i32_0 : i32, i32
  }
  func.func @transform_6(%arg0: i32, %arg1: i32) -> (i32, i32) {
    %c0_i32 = arith.constant 0 : i32
    %c0_i32_0 = arith.constant 0 : i32
    %c0_i32_1 = arith.constant 0 : i32
    return %c0_i32, %c0_i32_0 : i32, i32
  }
  func.func @transform_7(%arg0: i32, %arg1: i32) -> (i32, i32, i32, i32) {
    %c0_i32 = arith.constant 0 : i32
    %c0_i32_0 = arith.constant 0 : i32
    %c0_i32_1 = arith.constant 0 : i32
    return %arg0, %arg1, %c0_i32, %c0_i32_0 : i32, i32, i32, i32
  }
}

</mosaic_0001>

<bundles_post_ra>
// kernel: tpu_custom_call.1
= control target key start
LH: loop header
LB: loop body
LE: loop exit
PB: predicated region body
PF: predicated region fallthrough
CT: control target
= control target key end

     0   :  { %s12409_s24 = smov 0   ;;  %s12411_s25 = smov 0   ;;  %s17405_s0 = inlined_call_operand.vmem [shape: bf16[2,1,20,24,4], index: 0, kind: input, shape index: {}]   ;;  %s17406_s1 = inlined_call_operand.vmem [shape: bf16[9,4,8], index: 1, kind: input, shape index: {}]   ;;  %s17407_s2 = inlined_call_operand.vmem [shape: f32[2,1,8], index: 2, kind: input, shape index: {}]   ;;  %s17408_s3 = inlined_call_operand.vmem [shape: bf16[9,8,8], index: 3, kind: input, shape index: {}]   ;;  %s17409_s4 = inlined_call_operand.vmem [shape: f32[1,8], index: 4, kind: input, shape index: {}]   ;;  %s17410_s5 = inlined_call_operand.vmem [shape: bf16[4,8], index: 5, kind: input, shape index: {}]   ;;  %s17411_s6 = inlined_call_operand.vmem [shape: f32[1,8], index: 6, kind: input, shape index: {}]   ;;  %s17412_s7 = inlined_call_operand.vmem [shape: f32[2,16,16,8], index: 7, kind: output, shape index: {}]  }
   0x1   :  { %s12413_s26 = smov 0  }
   0x2 LB: > { %s29_s27 = sadd.s32 1, %s12362_s25  ;;  %p10866_p0 = scmp.ge.s32.totalorder %s12366_s26, 1  ;;  %s12366_s26 = sphi %s12413_s26, %s17_s26   ;;  %s12362_s25 = sphi %s12411_s25, %s17749_s25   ;;  %s12358_s24 = sphi %s12409_s24, %s17748_s24  }
   0x3   : > { %p31_p1 = scmp.ge.s32.totalorder %s29_s27, 2  ;;  %p265_p2 = scmp.lt.s32.totalorder %s12366_s26, 3 }
   0x5   : > { %s17751_s27 = smov (%p31_p1, %s29_s27), 0  ;;  %p266_p3 = pnand %p10866_p0, %p265_p2 }
   0x7   : > { %269 = sbr.rel (%p266_p3) target bundleno = 1962 (0x7aa), region = 48 }
   0xc   : > { %v10870_v0 = vld [vmem:[%s17406_s1 + $0x2] sm:$0x3]  ;;  %vm17413_vm0 = vcmask 1041408   ;;  %p309_p4 = scmp.lt.s32.totalorder %s12358_s24, 1  ;;  %v369_v2 = vld [vmem:[%s17406_s1] sm:$0x3] }
   0xd   : > { %v936_v1 = vsel %vm17413_vm0, %v10870_v0, 0  ;;  %v1182_v3 = vsel %vm17413_vm0, %v369_v2, 0  ;;  %vm388_vm1 = vsmask.f32 3328  ;;  %vm389_vm2 = vsmask.f32 7440 }
   0xe   : > { %945 = vmatpush.bf16.msra.mxu0 %v936_v1  ;;  %s17753_s24 = smov (!%p309_p4, %s12358_s24), 1  ;;  %12123 = vmatpush.bf16.msra.mxu1 %v1182_v3  ;;  %vm1337_vm3 = vcmask 1042432   ;;  %vm1338_vm4 = vcmask 1046532   ;;  %vm12463_vm6 = vmor %vm388_vm1, %vm389_vm2  ;;  %vm17414_vm7 = vcmask 31744   ;;  %v10997_v50 = vld [vmem:[%s17406_s1 + $0x4] sm:$0x3] }
   0xf   : > { %s12126_s9 = smul.u32 240, %s17753_s24  ;;  %vm12457_vm5 = vmor %vm1337_vm3, %vm1338_vm4  ;;  %v11052_v51 = vld [vmem:[%s17406_s1 + $0x6] sm:$0x3]  ;;  %v1577_v53 = vsel %vm17413_vm0, %v10997_v50, 0  ;;  %vm17415_vm8 = vcmask 1043456   ;;  %s14009_s17 = scalar_lea.vmem %s17407_s2, %s17753_s24  ;;  %vm5875_vm14 = vcmask 60416  }
  0x10   : > { %12124 = vmatpush.bf16.msra.mxu2 %v1577_v53  ;;  %v12493_v56 = vsel %vm17413_vm0, %v11052_v51, 0  ;;  %vm5876_vm15 = vsmask.f32 7938  ;;  %vm5512_vm1 = vsmask.f32 256  ;;  %vm5883_vm4 = vcmask 57344  }
  0x11   : > { %s12441_s12 = scalar_lea.vmem %s17405_s0, %s12126_s9  ;;  %12125 = vmatpush.bf16.msra.mxu3 %v12493_v56  ;;  %vm5513_vm3 = vsmask.f32 4368  ;;  %s12020_s18 = sshll.u32 %s17753_s24, 8 }
  0x12   : > { %1191 = vmatpush.bf16.msrb.mxu0 %v1182_v3  ;;  %v333_v4 = vld [vmem:[%s12441_s12] sm:$0xf]  ;;  %v12445_v5 = vld [vmem:[%s12441_s12 + $0x4] sm:$0xf]  ;;  %v370_v6 = vld [vmem:[%s12441_s12 + $0x8] sm:$0x1]  ;;  %s16982_s20 = scalar_lea.vmem %s17412_s7, %s12020_s18 }
  0x13   : > { %v392_v7 = vshrl.u32 %v333_v4, 16  ;;  %v395_v8 = vshll.u32 %v333_v4, 16  ;;  %v401_v9 = vshll.u32 %v12445_v5, 16  ;;  %v405_v10 = vshrl.u32 %v12445_v5, 16  ;;  %v335_v11 = vld [vmem:[%s12441_s12 + $0xc] sm:$0xf] }
  0x14   : > { %v411_v12 = vshll.u32 %v370_v6, 16  ;;  %v1342_v13 = vrot.slane %v12445_v5, 5  ;;  %v1345_v14 = vrot.slane %v370_v6, 5  ;;  %v336_v15 = vld [vmem:[%s12441_s12 + $0x10] sm:$0xf]  ;;  %v416_v16 = vshrl.u32 %v335_v11, 16 }
  0x15   : > { %v394_v17 = vrot.slane %v392_v7, 4  ;;  %v397_v18 = vrot.slane %v395_v8, 5  ;;  %v403_v19 = vrot.slane %v401_v9, 5  ;;  %v407_v20 = vrot.slane %v405_v10, 4  ;;  %v371_v35 = vld [vmem:[%s12441_s12 + $0x14] sm:$0x1] }
  0x16   : > { %v413_v21 = vrot.slane %v411_v12, 5  ;;  %v1344_v22 = vrot.slane %v1342_v13, 4  ;;  %v419_v23 = vshll.u32 %v335_v11, 16  ;;  %v425_v27 = vshll.u32 %v336_v15, 16  ;;  %v337_v46 = vld [vmem:[%s12441_s12 + $0x18] sm:$0xf] }
  0x17   : > { %v398_v24 = vor.u32 %v397_v18, %v394_v17  ;;  %v408_v25 = vor.u32 %v407_v20, %v403_v19  ;;  %v429_v28 = vshrl.u32 %v336_v15, 16  ;;  %v418_v31 = vrot.slane %v416_v16, 4  ;;  %v338_v47 = vld [vmem:[%s12441_s12 + $0x1c] sm:$0xf]  ;;  %v12487_v54 = vld [vmem:[%s12441_s12 + $0x28] sm:$0xf] }
  0x18   : > { %v12469_v30 = vsel %vm12457_vm5, %v1344_v22, %v1345_v14  ;;  %v421_v32 = vrot.slane %v419_v23, 5  ;;  %v427_v36 = vrot.slane %v425_v27, 5  ;;  %v435_v43 = vshll.u32 %v371_v35, 16  ;;  %v12490_v55 = vld [vmem:[%s12441_s12 + $0x2c] sm:$0x1]  ;;  %v12042_v60 = vld [vmem:[%s12441_s12 + $0x30] sm:$0xff] }
  0x19   : > { %v399_v33 = vrot.slane %v398_v24, 4  ;;  %v409_v34 = vrot.slane %v408_v25, 4  ;;  %v431_v37 = vrot.slane %v429_v28, 4  ;;  %v1286_v57 = vld [vmem:[%s12441_s12 + $0x24] sm:$0xe]  ;;  %v1363_v58 = vrot.slane %v12487_v54, 5  ;;  %11128 = vmatmul.msk.bf16.vlgmr.msra.gmra.mxu3 %vm17414_vm7, %v12042_v60 }
  0x1a   : > { %v422_v42 = vor.u32 %v421_v32, %v418_v31  ;;  %v437_v49 = vrot.slane %v435_v43, 5  ;;  %v1366_v59 = vrot.slane %v12490_v55, 5  ;;  %v440_v61 = vshrl.u32 %v337_v46, 16  ;;  %v372_v15 = vld [vmem:[%s12441_s12 + $0x20] sm:$0x1]  ;;  %v12024_v23 = vld [vmem:[%s12441_s12 + $0x24] sm:$0xff] }
  0x1b   : > { %v404_v38 = vsel %vm12463_vm6, %v399_v33, %v403_v19  ;;  %v414_v39 = vsel %vm12463_vm6, %v409_v34, %v413_v21  ;;  %v432_v44 = vor.u32 %v431_v37, %v427_v36  ;;  %v443_v62 = vshll.u32 %v337_v46, 16  ;;  %v339_v27 = vld [vmem:[%s12441_s12 + $0x24] sm:$0xf]  ;;  %10964 = vmatmul.msk.bf16.vlgmr.msra.gmra.mxu1 %vm17414_vm7, %v12024_v23  ;;  %v12516_v28 = vld [vmem:[%s12441_s12 + $0x34] sm:$0xf]  ;;  %v12043_v37 = vld [vmem:[%s12441_s12 + $0x3c] sm:$0xff] }
  0x1c   : > { %v825_v40 = vunpack.c.l.b16 %v404_v38  ;;  %v826_v41 = vunpack.c.l.b16 %v414_v39  ;;  %v423_v48 = vrot.slane %v422_v42, 4  ;;  %v10982_v63 = vrot.slane %v1286_v57, 9  ;;  %v12519_v31 = vld [vmem:[%s12441_s12 + $0x38] sm:$0x1]  ;;  %v1287_v32 = vld [vmem:[%s12441_s12 + $0x30] sm:$0xe] }
  0x1d   : > { %v433_v52 = vrot.slane %v432_v44, 4  ;;  %v449_v0 = vshll.u32 %v338_v47, 16  ;;  %v1365_v1 = vrot.slane %v1363_v58, 4  ;;  %v453_v4 = vshrl.u32 %v338_v47, 16 }
  0x1e   : > { %v861_v45 = vpack.c.b16 %v826_v41, %v825_v40  ;;  %v428_v2 = vsel %vm12463_vm6, %v423_v48, %v427_v36  ;;  %v1364_v6 = vsel %vm12457_vm5, %v10982_v63, %v1363_v58  ;;  %v442_v9 = vrot.slane %v440_v61, 4 }
  0x1f   : > { %v438_v3 = vsel %vm12463_vm6, %v433_v52, %v437_v49  ;;  %v1367_v7 = vsel %vm12457_vm5, %v1365_v1, %v1366_v59  ;;  %v1474_v8 = vunpack.c.l.b16 %v1364_v6  ;;  %v445_v10 = vrot.slane %v443_v62, 5  ;;  %v12025_v62 = vld [vmem:[%s12441_s12 + $0x30] sm:$0xff] }
  0x20   : > { %10871 = vmatmul.msk.bf16.vlgmr.msra.gmra.mxu0 %vm17414_vm7, %v861_v45  ;;  %v1475_v11 = vunpack.c.l.b16 %v1367_v7  ;;  %v827_v12 = vunpack.c.l.b16 %v428_v2  ;;  %v828_v14 = vunpack.c.l.b16 %v438_v3  ;;  %v451_v16 = vrot.slane %v449_v0, 5  ;;  %v341_v1 = vld [vmem:[%s12441_s12 + $0x30] sm:$0xf]  ;;  %v12543_v2 = vld [vmem:[%s12441_s12 + $0x40] sm:$0xf] }
  0x21   : > { %1586 = vmatpush.bf16.msra.mxu0 %v1577_v53  ;;  %v455_v17 = vrot.slane %v453_v4, 4  ;;  %v446_v19 = vor.u32 %v445_v10, %v442_v9  ;;  %v459_v20 = vshll.u32 %v372_v15, 16  ;;  %v10983_v34 = vrot.slane %v1287_v32, 9  ;;  %v12546_v3 = vld [vmem:[%s12441_s12 + $0x44] sm:$0x1]  ;;  %v12044_v9 = vld [vmem:[%s12441_s12 + $0x48] sm:$0xff] }
  0x22   : > { %v1507_v18 = vpack.c.b16 %v1475_v11, %v1474_v8  ;;  %v862_v21 = vpack.c.b16 %v828_v14, %v827_v12  ;;  %v1370_v35 = vrot.slane %v12516_v28, 5  ;;  %v1373_v36 = vrot.slane %v12519_v31, 5  ;;  %v1288_v4 = vld [vmem:[%s12441_s12 + $0x3c] sm:$0xe] }
  0x23   : > { %v456_v22 = vor.u32 %v455_v17, %v451_v16  ;;  %v447_v24 = vrot.slane %v446_v19, 4  ;;  %v461_v25 = vrot.slane %v459_v20, 5  ;;  %v464_v38 = vshrl.u32 %v339_v27, 16 }
  0x24   : > { %11001 = vmatmul.msk.bf16.vlgmr.msra.gmra.mxu2 %vm17414_vm7, %v1507_v18  ;;  %v467_v39 = vshll.u32 %v339_v27, 16  ;;  %v1371_v40 = vsel %vm12457_vm5, %v10983_v34, %v1370_v35  ;;  %v1372_v41 = vrot.slane %v1370_v35, 4  ;;  %v473_v45 = vshll.u32 %v12487_v54, 16 }
  0x25   : > { %v457_v33 = vrot.slane %v456_v22, 4  ;;  %v452_v42 = vsel %vm12463_vm6, %v447_v24, %v451_v16  ;;  %v1476_v43 = vunpack.c.l.b16 %v1371_v40  ;;  %v477_v46 = vshrl.u32 %v12487_v54, 16  ;;  %v343_v40 = vld [vmem:[%s12441_s12 + $0x3c] sm:$0xf] }
  0x26   : > { %v1374_v47 = vsel %vm12457_vm5, %v1372_v41, %v1373_v36  ;;  %v466_v49 = vrot.slane %v464_v38, 4  ;;  %v469_v50 = vrot.slane %v467_v39, 5  ;;  %v829_v51 = vunpack.c.l.b16 %v452_v42  ;;  %v346_v41 = vld [vmem:[%s12441_s12 + $0x4c] sm:$0xf]  ;;  %v12571_v42 = vld [vmem:[%s12441_s12 + $0x50] sm:$0x1] }
  0x27   : > { %v462_v44 = vsel %vm12463_vm6, %v457_v33, %v461_v25  ;;  %v1477_v48 = vunpack.c.l.b16 %v1374_v47  ;;  %v475_v57 = vrot.slane %v473_v45, 5  ;;  %v479_v58 = vrot.slane %v477_v46, 4  ;;  %v12045_v47 = vld [vmem:[%s12441_s12 + $0x54] sm:$0xff] }
  0x28   : > { %v830_v52 = vunpack.c.l.b16 %v462_v44  ;;  %v470_v59 = vor.u32 %v469_v50, %v466_v49  ;;  %v483_v54 = vshll.u32 %v12490_v55, 16  ;;  %v10984_v55 = vrot.slane %v1288_v4, 9 }
  0x29   : > { %11129 = vmatmul.msk.bf16.gmra.mxu3 %vm17414_vm7, %v12043_v37  ;;  %v1508_v53 = vpack.c.b16 %v1477_v48, %v1476_v43  ;;  %v480_v61 = vor.u32 %v479_v58, %v475_v57  ;;  %v1377_v7 = vrot.slane %v12543_v2, 5  ;;  %v1380_v8 = vrot.slane %v12546_v3, 5  ;;  %v12026_v37 = vld [vmem:[%s12441_s12 + $0x3c] sm:$0xff]  ;;  %v1289_v43 = vld [vmem:[%s12441_s12 + $0x48] sm:$0xe] }
  0x2a   : > { %v863_v60 = vpack.c.b16 %v830_v52, %v829_v51  ;;  %v471_v63 = vrot.slane %v470_v59, 4  ;;  %v485_v0 = vrot.slane %v483_v54, 5  ;;  %v488_v10 = vshrl.u32 %v341_v1, 16 }
  0x2b   : > { %10965 = vmatmul.msk.bf16.gmra.mxu1 %vm17414_vm7, %v12025_v62  ;;  %v481_v6 = vrot.slane %v480_v61, 4  ;;  %v491_v11 = vshll.u32 %v341_v1, 16  ;;  %v1378_v12 = vsel %vm12457_vm5, %v10984_v55, %v1377_v7  ;;  %v1379_v14 = vrot.slane %v1377_v7, 4 }
  0x2c   : > { %v476_v15 = vsel %vm12463_vm6, %v471_v63, %v475_v57  ;;  %v1478_v16 = vunpack.c.l.b16 %v1378_v12  ;;  %v497_v18 = vshll.u32 %v12516_v28, 16  ;;  %v501_v19 = vshrl.u32 %v12516_v28, 16  ;;  %v345_v12 = vld [vmem:[%s12441_s12 + $0x48] sm:$0xf] }
  0x2d   : > { %v486_v17 = vsel %vm12463_vm6, %v481_v6, %v485_v0  ;;  %v1381_v20 = vsel %vm12457_vm5, %v1379_v14, %v1380_v8  ;;  %v490_v22 = vrot.slane %v488_v10, 4  ;;  %v493_v23 = vrot.slane %v491_v11, 5  ;;  %v348_v14 = vld [vmem:[%s12441_s12 + $0x58] sm:$0xf] }
  0x2e   : > { %v831_v24 = vunpack.c.l.b16 %v476_v15  ;;  %v832_v25 = vunpack.c.l.b16 %v486_v17  ;;  %v499_v32 = vrot.slane %v497_v18, 5  ;;  %v503_v33 = vrot.slane %v501_v19, 4  ;;  %v12595_v15 = vld [vmem:[%s12441_s12 + $0x5c] sm:$0x1] }
  0x2f   : > { %v494_v34 = vor.u32 %v493_v23, %v490_v22  ;;  %v507_v28 = vshll.u32 %v12519_v31, 16  ;;  %v10985_v45 = vrot.slane %v1289_v43, 9  ;;  %v1384_v31 = vrot.slane %v346_v41, 5  ;;  %v12046_v22 = vld [vmem:[%s12441_s12 + $0x60] sm:$0xff] }
  0x30   : > { %10872 = vmatmul.msk.bf16.gmra.mxu0 %vm17414_vm7, %v862_v21  ;;  %v1479_v21 = vunpack.c.l.b16 %v1381_v20  ;;  %v864_v35 = vpack.c.b16 %v832_v25, %v831_v24  ;;  %v504_v36 = vor.u32 %v503_v33, %v499_v32  ;;  %v1387_v46 = vrot.slane %v12571_v42, 5 }
  0x31   : > { %v495_v38 = vrot.slane %v494_v34, 4  ;;  %v509_v39 = vrot.slane %v507_v28, 5  ;;  %v512_v48 = vshrl.u32 %v343_v40, 16  ;;  %v515_v49 = vshll.u32 %v343_v40, 16 }
  0x32   : > { %v1509_v27 = vpack.c.b16 %v1479_v21, %v1478_v16  ;;  %v505_v44 = vrot.slane %v504_v36, 4  ;;  %v1385_v50 = vsel %vm12457_vm5, %v10985_v45, %v1384_v31  ;;  %v1386_v51 = vrot.slane %v1384_v31, 4  ;;  %v1290_v16 = vld [vmem:[%s12441_s12 + $0x54] sm:$0xe] }
  0x33   : > { %v500_v52 = vsel %vm12463_vm6, %v495_v38, %v499_v32  ;;  %v521_v58 = vshll.u32 %v12543_v2, 16  ;;  %v525_v59 = vshrl.u32 %v12543_v2, 16  ;;  %v514_v61 = vrot.slane %v512_v48, 4  ;;  %v12028_v48 = vld [vmem:[%s12441_s12 + $0x54] sm:$0xff] }
  0x34   : > { %11002 = vmatmul.msk.bf16.gmra.mxu2 %vm17414_vm7, %v1508_v53  ;;  %v1480_v53 = vunpack.c.l.b16 %v1385_v50  ;;  %v510_v57 = vsel %vm12463_vm6, %v505_v44, %v509_v39  ;;  %v1388_v54 = vsel %vm12457_vm5, %v1386_v51, %v1387_v46  ;;  %v517_v62 = vrot.slane %v515_v49, 5  ;;  %v347_v51 = vld [vmem:[%s12441_s12 + $0x54] sm:$0xf] }
  0x35   : > { %v833_v63 = vunpack.c.l.b16 %v500_v52  ;;  %v834_v0 = vunpack.c.l.b16 %v510_v57  ;;  %v523_v4 = vrot.slane %v521_v58, 5  ;;  %v527_v6 = vrot.slane %v525_v59, 4  ;;  %v350_v52 = vld [vmem:[%s12441_s12 + $0x64] sm:$0xf]  ;;  %v1291_v57 = vld [vmem:[%s12441_s12 + $0x60] sm:$0xe] }
  0x36   : > { %v518_v55 = vor.u32 %v517_v62, %v514_v61  ;;  %v531_v2 = vshll.u32 %v12546_v3, 16  ;;  %v10986_v18 = vrot.slane %v1290_v16, 9  ;;  %v1391_v3 = vrot.slane %v348_v14, 5 }
  0x37   : > { %v865_v7 = vpack.c.b16 %v834_v0, %v833_v63  ;;  %v528_v8 = vor.u32 %v527_v6, %v523_v4  ;;  %v1394_v19 = vrot.slane %v12595_v15, 5  ;;  %v536_v20 = vshrl.u32 %v345_v12, 16 }
  0x38   : > { %v519_v10 = vrot.slane %v518_v55, 4  ;;  %v533_v11 = vrot.slane %v531_v2, 5  ;;  %v539_v21 = vshll.u32 %v345_v12, 16  ;;  %v545_v23 = vshll.u32 %v346_v41, 16 }
  0x39   : > { %11130 = vmatmul.msk.bf16.gmra.mxu3 %vm17414_vm7, %v12044_v9  ;;  %v12027_v9 = vld [vmem:[%s12441_s12 + $0x48] sm:$0xff]  ;;  %v529_v17 = vrot.slane %v528_v8, 4  ;;  %v549_v24 = vshrl.u32 %v346_v41, 16  ;;  %v1392_v25 = vsel %vm12457_vm5, %v10986_v18, %v1391_v3  ;;  %v555_v31 = vshll.u32 %v12571_v42, 16 }
  0x3a   : > { %v1482_v32 = vunpack.c.l.b16 %v1392_v25  ;;  %v524_v33 = vsel %vm12463_vm6, %v519_v10, %v523_v4  ;;  %v541_v36 = vrot.slane %v539_v21, 5  ;;  %v547_v38 = vrot.slane %v545_v23, 5  ;;  %v352_v25 = vld [vmem:[%s12441_s12 + $0x70] sm:$0xf] }
  0x3b   : > { %10966 = vmatmul.msk.bf16.gmra.mxu1 %vm17414_vm7, %v12026_v37  ;;  %v534_v34 = vsel %vm12463_vm6, %v529_v17, %v533_v11  ;;  %v551_v39 = vrot.slane %v549_v24, 4  ;;  %v835_v40 = vunpack.c.l.b16 %v524_v33  ;;  %v557_v50 = vrot.slane %v555_v31, 5  ;;  %v349_v24 = vld [vmem:[%s12441_s12 + $0x60] sm:$0xf] }
  0x3c   : > { %v836_v41 = vunpack.c.l.b16 %v534_v34  ;;  %v10987_v58 = vrot.slane %v1291_v57, 9  ;;  %v1398_v59 = vrot.slane %v350_v52, 5  ;;  %v560_v61 = vshrl.u32 %v347_v51, 16 }
  0x3d   : > { %v552_v45 = vor.u32 %v551_v39, %v547_v38  ;;  %v563_v0 = vshll.u32 %v347_v51, 16  ;;  %v573_v4 = vshrl.u32 %v348_v14, 16  ;;  %v587_v34 = vshll.u32 %v349_v24, 16 }
  0x3e   : > { %v866_v46 = vpack.c.b16 %v836_v41, %v835_v40  ;;  %v1399_v62 = vsel %vm12457_vm5, %v10987_v58, %v1398_v59  ;;  %v1400_v63 = vrot.slane %v1398_v59, 4  ;;  %v12048_v58 = vld [vmem:[%s12441_s12 + $0x78] sm:$0xff] }
  0x3f   : > { %v553_v49 = vrot.slane %v552_v45, 4  ;;  %v1484_v6 = vunpack.c.l.b16 %v1399_v62  ;;  %v565_v10 = vrot.slane %v563_v0, 5  ;;  %v575_v12 = vrot.slane %v573_v4, 4  ;;  %v354_v4 = vld [vmem:[%s12441_s12 + $0x7c] sm:$0xf] }
  0x40   : > { %10873 = vmatmul.msk.bf16.gmra.mxu0 %vm17414_vm7, %v863_v60  ;;  %v1481_v60 = vunpack.c.l.b16 %v1388_v54 }
  0x42   : > { %v1510_v1 = vpack.c.b16 %v1481_v60, %v1480_v53  ;;  %v12617_v53 = vld [vmem:[%s12441_s12 + $0x68] sm:$0x1]  ;;  %v558_v60 = vsel %vm12463_vm6, %v553_v49, %v557_v50 }
  0x43   : > { %v1401_v42 = vrot.slane %v12617_v53, 5  ;;  %v838_v8 = vunpack.c.l.b16 %v558_v60  ;;  %v351_v60 = vld [vmem:[%s12441_s12 + $0x6c] sm:$0xf] }
  0x44   : > { %11003 = vmatmul.msk.bf16.gmra.mxu2 %vm17414_vm7, %v1509_v27  ;;  %v1393_v27 = vrot.slane %v1391_v3, 4  ;;  %v579_v3 = vshll.u32 %v12595_v15, 16  ;;  %v608_v0 = vshrl.u32 %v351_v60, 16 }
  0x45   : > { %v1402_v55 = vsel %vm12457_vm5, %v1400_v63, %v1401_v42  ;;  %v603_v42 = vshll.u32 %v12617_v53, 16 }
  0x46   : > { %v1395_v28 = vsel %vm12457_vm5, %v1393_v27, %v1394_v19  ;;  %v1485_v2 = vunpack.c.l.b16 %v1402_v55  ;;  %v12047_v19 = vld [vmem:[%s12441_s12 + $0x6c] sm:$0xff]  ;;  %v581_v23 = vrot.slane %v579_v3, 5  ;;  %v584_v27 = vshrl.u32 %v349_v24, 16 }
  0x47   : > { %v1483_v37 = vunpack.c.l.b16 %v1395_v28  ;;  %v593_v28 = vshll.u32 %v350_v52, 16  ;;  %v605_v63 = vrot.slane %v603_v42, 5  ;;  %v621_v55 = vshrl.u32 %v352_v25, 16 }
  0x48   : > { %v1512_v16 = vpack.c.b16 %v1485_v2, %v1484_v6  ;;  %v586_v31 = vrot.slane %v584_v27, 4  ;;  %v617_v6 = vshll.u32 %v352_v25, 16  ;;  %v1412_v2 = vrot.slane %v354_v4, 5 }
  0x49   : > { %11131 = vmatmul.msk.bf16.gmra.mxu3 %vm17414_vm7, %v12045_v47  ;;  %v1511_v43 = vpack.c.b16 %v1483_v37, %v1482_v32  ;;  %v1405_v32 = vrot.slane %v352_v25, 5  ;;  %v597_v37 = vshrl.u32 %v350_v52, 16  ;;  %v595_v49 = vrot.slane %v593_v28, 5 }
  0x4b   : > { %10967 = vmatmul.msk.bf16.gmra.mxu1 %vm17414_vm7, %v12027_v9  ;;  %v562_v9 = vrot.slane %v560_v61, 4  ;;  %v1407_v39 = vrot.slane %v1405_v32, 4  ;;  %v599_v50 = vrot.slane %v597_v37, 4 }
  0x4d   : > { %v600_v59 = vor.u32 %v599_v50, %v595_v49 }
  0x4f   : > { %v601_v62 = vrot.slane %v600_v59, 4 }
  0x50   : > { %10874 = vmatmul.msk.bf16.gmra.mxu0 %vm17414_vm7, %v864_v35  ;;  %v538_v35 = vrot.slane %v536_v20, 4  ;;  %v12029_v20 = vld [vmem:[%s12441_s12 + $0x60] sm:$0xff] }
  0x52   : > { %v542_v44 = vor.u32 %v541_v36, %v538_v35  ;;  %v12643_v35 = vld [vmem:[%s12441_s12 + $0x74] sm:$0x1]  ;;  %v1292_v36 = vld [vmem:[%s12441_s12 + $0x6c] sm:$0xe] }
  0x53   : > { %v1408_v40 = vrot.slane %v12643_v35, 5 }
  0x54   : > { %11004 = vmatmul.msk.bf16.gmra.mxu2 %vm17414_vm7, %v1510_v1  ;;  %v543_v47 = vrot.slane %v542_v44, 4  ;;  %v569_v1 = vshll.u32 %v348_v14, 16  ;;  %v566_v14 = vor.u32 %v565_v10, %v562_v9  ;;  %v606_v9 = vsel %vm12463_vm6, %v601_v62, %v605_v63 }
  0x55   : > { %v1409_v45 = vsel %vm12457_vm5, %v1407_v39, %v1408_v40  ;;  %v353_v39 = vld [vmem:[%s12441_s12 + $0x78] sm:$0xf]  ;;  %v12686_v40 = vld [vmem:[%s12441_s12 + $0x88] sm:$0xf] }
  0x56   : > { %v548_v54 = vsel %vm12463_vm6, %v543_v47, %v547_v38  ;;  %v571_v11 = vrot.slane %v569_v1, 5  ;;  %v567_v21 = vrot.slane %v566_v14, 4  ;;  %v10988_v38 = vrot.slane %v1292_v36, 9  ;;  %v12031_v36 = vld [vmem:[%s12441_s12 + $0x78] sm:$0xff] }
  0x57   : > { %v611_v1 = vshll.u32 %v351_v60, 16  ;;  %v619_v14 = vrot.slane %v617_v6, 5 }
  0x58   : > { %v576_v18 = vor.u32 %v575_v12, %v571_v11  ;;  %v572_v15 = vsel %vm12463_vm6, %v567_v21, %v571_v11  ;;  %v1406_v44 = vsel %vm12457_vm5, %v10988_v38, %v1405_v32  ;;  %v1414_v11 = vrot.slane %v1412_v2, 4 }
  0x59   : > { %11132 = vmatmul.msk.bf16.gmra.mxu3 %vm17414_vm7, %v12046_v22  ;;  %v839_v41 = vunpack.c.l.b16 %v572_v15  ;;  %v1486_v47 = vunpack.c.l.b16 %v1406_v44  ;;  %v842_v21 = vunpack.c.l.b16 %v606_v9  ;;  %v627_v32 = vshll.u32 %v12643_v35, 16 }
  0x5a   : > { %v577_v22 = vrot.slane %v576_v18, 4  ;;  %v623_v18 = vrot.slane %v621_v55, 4  ;;  %v635_v44 = vshll.u32 %v353_v39, 16 }
  0x5b   : > { %10968 = vmatmul.msk.bf16.gmra.mxu1 %vm17414_vm7, %v12028_v48  ;;  %v1487_v48 = vunpack.c.l.b16 %v1409_v45  ;;  %v629_v38 = vrot.slane %v627_v32, 5  ;;  %v1419_v45 = vrot.slane %v12686_v40, 5  ;;  %v669_v32 = vshrl.u32 %v12686_v40, 16 }
  0x5c   : > { %v582_v33 = vsel %vm12463_vm6, %v577_v22, %v581_v23  ;;  %v624_v27 = vor.u32 %v623_v18, %v619_v14  ;;  %v637_v42 = vrot.slane %v635_v44, 5  ;;  %v12719_v18 = vld [vmem:[%s12441_s12 + $0x94] sm:$0xf] }
  0x5d   : > { %v1513_v51 = vpack.c.b16 %v1487_v48, %v1486_v47  ;;  %v12692_v47 = vld [vmem:[%s12441_s12 + $0x8c] sm:$0x1]  ;;  %v1294_v48 = vld [vmem:[%s12441_s12 + $0x84] sm:$0xe] }
  0x5e   : > { %v625_v37 = vrot.slane %v624_v27, 4  ;;  %v10990_v50 = vrot.slane %v1294_v48, 9  ;;  %v671_v48 = vrot.slane %v669_v32, 4 }
  0x60   : > { %10875 = vmatmul.msk.bf16.gmra.mxu0 %vm17414_vm7, %v865_v7  ;;  %v837_v7 = vunpack.c.l.b16 %v548_v54  ;;  %v12030_v54 = vld [vmem:[%s12441_s12 + $0x6c] sm:$0xff] }
  0x62   : > { %v867_v17 = vpack.c.b16 %v838_v8, %v837_v7  ;;  %v12663_v7 = vld [vmem:[%s12441_s12 + $0x80] sm:$0x1]  ;;  %v1293_v8 = vld [vmem:[%s12441_s12 + $0x78] sm:$0xe] }
  0x63   : > { %v10989_v10 = vrot.slane %v1293_v8, 9  ;;  %v1415_v12 = vrot.slane %v12663_v7, 5 }
  0x64   : > { %11005 = vmatmul.msk.bf16.gmra.mxu2 %vm17414_vm7, %v1511_v43  ;;  %v840_v43 = vunpack.c.l.b16 %v582_v33  ;;  %v12049_v33 = vld [vmem:[%s12441_s12 + $0x84] sm:$0xff] }
  0x65   : > { %v1413_v3 = vsel %vm12457_vm5, %v10989_v10, %v1412_v2  ;;  %v651_v2 = vshll.u32 %v12663_v7, 16  ;;  %v355_v7 = vld [vmem:[%s12441_s12 + $0x84] sm:$0xf] }
  0x66   : > { %v868_v52 = vpack.c.b16 %v840_v43, %v839_v41  ;;  %v1488_v22 = vunpack.c.l.b16 %v1413_v3  ;;  %v630_v41 = vsel %vm12463_vm6, %v625_v37, %v629_v38  ;;  %v632_v43 = vshrl.u32 %v353_v39, 16 }
  0x67   : > { %v656_v3 = vshrl.u32 %v355_v7, 16 }
  0x68   : > { %v634_v59 = vrot.slane %v632_v43, 4 }
  0x69   : > { %11133 = vmatmul.msk.bf16.gmra.mxu3 %vm17414_vm7, %v12047_v19  ;;  %v1416_v19 = vsel %vm12457_vm5, %v1414_v11, %v1415_v12  ;;  %v12032_v11 = vld [vmem:[%s12441_s12 + $0x84] sm:$0xff]  ;;  %v658_v43 = vrot.slane %v656_v3, 4 }
  0x6a   : > { %v1489_v23 = vunpack.c.l.b16 %v1416_v19  ;;  %v638_v6 = vor.u32 %v637_v42, %v634_v59  ;;  %v1426_v19 = vrot.slane %v12719_v18, 5  ;;  %v675_v42 = vshll.u32 %v12692_v47, 16 }
  0x6b   : > { %10969 = vmatmul.msk.bf16.gmra.mxu1 %vm17414_vm7, %v12029_v20 }
  0x6c   : > { %v1514_v25 = vpack.c.b16 %v1489_v23, %v1488_v22  ;;  %v639_v12 = vrot.slane %v638_v6, 4  ;;  %v659_v22 = vshll.u32 %v355_v7, 16  ;;  %v665_v23 = vshll.u32 %v12686_v40, 16 }
  0x6e   : > { %v661_v44 = vrot.slane %v659_v22, 5 }
  0x70   : > { %10876 = vmatmul.msk.bf16.gmra.mxu0 %vm17414_vm7, %v866_v46  ;;  %v589_v46 = vrot.slane %v587_v34, 5 }
  0x72   : > { %v590_v57 = vor.u32 %v589_v46, %v586_v31  ;;  %v641_v31 = vshll.u32 %v354_v4, 16  ;;  %v645_v46 = vshrl.u32 %v354_v4, 16 }
  0x74   : > { %11006 = vmatmul.msk.bf16.gmra.mxu2 %vm17414_vm7, %v1512_v16  ;;  %v591_v61 = vrot.slane %v590_v57, 4  ;;  %v610_v16 = vrot.slane %v608_v0, 4  ;;  %v647_v62 = vrot.slane %v645_v46, 4  ;;  %v667_v46 = vrot.slane %v665_v23, 5 }
  0x76   : > { %v596_v53 = vsel %vm12463_vm6, %v591_v61, %v595_v49  ;;  %v643_v61 = vrot.slane %v641_v31, 5  ;;  %v672_v59 = vor.u32 %v671_v48, %v667_v46 }
  0x77   : > { %v841_v20 = vunpack.c.l.b16 %v596_v53  ;;  %v12050_v53 = vld [vmem:[%s12441_s12 + $0x90] sm:$0xff] }
  0x78   : > { %v648_v55 = vor.u32 %v647_v62, %v643_v61  ;;  %v357_v62 = vld [vmem:[%s12441_s12 + $0x90] sm:$0xf] }
  0x79   : > { %11134 = vmatmul.msk.bf16.gmra.mxu3 %vm17414_vm7, %v12048_v58  ;;  %v869_v15 = vpack.c.b16 %v842_v21, %v841_v20  ;;  %v844_v58 = vunpack.c.l.b16 %v630_v41  ;;  %v644_v20 = vsel %vm12463_vm6, %v639_v12, %v643_v61  ;;  %v12033_v61 = vld [vmem:[%s12441_s12 + $0x90] sm:$0xff]  ;;  %v683_v6 = vshll.u32 %v357_v62, 16 }
  0x7a   : > { %v845_v38 = vunpack.c.l.b16 %v644_v20 }
  0x7b   : > { %10970 = vmatmul.msk.bf16.gmra.mxu1 %vm17414_vm7, %v12030_v54  ;;  %v1420_v54 = vsel %vm12457_vm5, %v10990_v50, %v1419_v45  ;;  %v685_v23 = vrot.slane %v683_v6, 5 }
  0x7c   : > { %v1490_v63 = vunpack.c.l.b16 %v1420_v54 }
  0x80   : > { %10877 = vmatmul.msk.bf16.gmra.mxu0 %vm17414_vm7, %v867_v17  ;;  %v613_v17 = vrot.slane %v611_v1, 5 }
  0x82   : > { %v614_v24 = vor.u32 %v613_v17, %v610_v16  ;;  %v649_v16 = vrot.slane %v648_v55, 4  ;;  %v653_v17 = vrot.slane %v651_v2, 5  ;;  %v12762_v55 = vld [vmem:[%s12441_s12 + $0xa0] sm:$0xf]  ;;  %v693_v2 = vshrl.u32 %v12719_v18, 16 }
  0x83   : > { %v717_v6 = vshrl.u32 %v12762_v55, 16 }
  0x84   : > { %11007 = vmatmul.msk.bf16.gmra.mxu2 %vm17414_vm7, %v1513_v51  ;;  %v615_v28 = vrot.slane %v614_v24, 4  ;;  %v1421_v51 = vrot.slane %v1419_v45, 4  ;;  %v654_v21 = vsel %vm12463_vm6, %v649_v16, %v653_v17  ;;  %v12728_v24 = vld [vmem:[%s12441_s12 + $0x98] sm:$0x1]  ;;  %v12770_v16 = vld [vmem:[%s12441_s12 + $0xa4] sm:$0x1] }
  0x85   : > { %v846_v39 = vunpack.c.l.b16 %v654_v21  ;;  %v1296_v17 = vld [vmem:[%s12441_s12 + $0x9c] sm:$0xe]  ;;  %v1436_v22 = vrot.slane %v12770_v16, 5  ;;  %v695_v32 = vrot.slane %v693_v2, 4  ;;  %v12811_v2 = vld [vmem:[%s12441_s12 + $0xac] sm:$0xf] }
  0x86   : > { %v620_v35 = vsel %vm12463_vm6, %v615_v28, %v619_v14  ;;  %v1428_v28 = vrot.slane %v1426_v19, 4  ;;  %v10992_v20 = vrot.slane %v1296_v17, 9  ;;  %v713_v17 = vshll.u32 %v12762_v55, 16 }
  0x87   : > { %v843_v57 = vunpack.c.l.b16 %v620_v35 }
  0x89   : > { %11135 = vmatmul.msk.bf16.gmra.mxu3 %vm17414_vm7, %v12049_v33  ;;  %v870_v4 = vpack.c.b16 %v844_v58, %v843_v57  ;;  %v12051_v57 = vld [vmem:[%s12441_s12 + $0x9c] sm:$0xff] }
  0x8b   : > { %10971 = vmatmul.msk.bf16.gmra.mxu1 %vm17414_vm7, %v12031_v36  ;;  %v1429_v36 = vrot.slane %v12728_v24, 5 }
  0x8d   : > { %v1430_v41 = vsel %vm12457_vm5, %v1428_v28, %v1429_v36 }
  0x8e   : > { %v1493_v31 = vunpack.c.l.b16 %v1430_v41 }
  0x90   : > { %10878 = vmatmul.msk.bf16.gmra.mxu0 %vm17414_vm7, %v868_v52  ;;  %v1422_v52 = vrot.slane %v12692_v47, 5  ;;  %v680_v47 = vshrl.u32 %v357_v62, 16 }
  0x92   : > { %v1423_v60 = vsel %vm12457_vm5, %v1421_v51, %v1422_v52  ;;  %v871_v51 = vpack.c.b16 %v846_v39, %v845_v38  ;;  %v662_v52 = vor.u32 %v661_v44, %v658_v43 }
  0x93   : > { %v1491_v0 = vunpack.c.l.b16 %v1423_v60 }
  0x94   : > { %11008 = vmatmul.msk.bf16.gmra.mxu2 %vm17414_vm7, %v1514_v25  ;;  %v1295_v25 = vld [vmem:[%s12441_s12 + $0x90] sm:$0xe] }
  0x95   : > { %v1515_v1 = vpack.c.b16 %v1491_v0, %v1490_v63  ;;  %v10991_v33 = vrot.slane %v1295_v25, 9  ;;  %v663_v63 = vrot.slane %v662_v52, 4 }
  0x97   : > { %v1427_v35 = vsel %vm12457_vm5, %v10991_v33, %v1426_v19  ;;  %v668_v12 = vsel %vm12463_vm6, %v663_v63, %v667_v46 }
  0x98   : > { %v12707_v9 = vpop.f32.mrf.mxu1  ;;  %v1492_v45 = vunpack.c.l.b16 %v1427_v35  ;;  %v847_v38 = vunpack.c.l.b16 %v668_v12  ;;  %v1440_v12 = vrot.slane %v12811_v2, 5 }
  0x99   : > { %11136 = vmatmul.msk.bf16.gmra.mxu3 %vm17414_vm7, %v12050_v53  ;;  %v689_v53 = vshll.u32 %v12719_v18, 16  ;;  %v682_v18 = vrot.slane %v680_v47, 4 }
  0x9a   : > { %v1516_v50 = vpack.c.b16 %v1493_v31, %v1492_v45  ;;  %v699_v31 = vshll.u32 %v12728_v24, 16 }
  0x9b   : > { %10972 = vmatmul.msk.bf16.gmra.mxu1 %vm17414_vm7, %v12032_v11  ;;  %v1433_v11 = vrot.slane %v12762_v55, 5  ;;  %v691_v33 = vrot.slane %v689_v53, 5  ;;  %v686_v44 = vor.u32 %v685_v23, %v682_v18  ;;  %v1442_v18 = vrot.slane %v1440_v12, 4 }
  0x9c   : > { %v12716_v14 = vpop.f32.mrf.mxu3  ;;  %v701_v62 = vrot.slane %v699_v31, 5 }
  0x9d   : > { %v12676_v34 = vpop.f32.mrf.mxu0  ;;  %v1435_v21 = vrot.slane %v1433_v11, 4  ;;  %v1434_v28 = vsel %vm12457_vm5, %v10992_v20, %v1433_v11  ;;  %v696_v46 = vor.u32 %v695_v32, %v691_v33 }
  0x9e   : > { %v1494_v41 = vunpack.c.l.b16 %v1434_v28 }
  0x9f   : > { %v1437_v36 = vsel %vm12457_vm5, %v1435_v21, %v1436_v22  ;;  %v697_v24 = vrot.slane %v696_v46, 4 }
  0xa0   : > { %10879 = vmatmul.msk.bf16.gmra.mxu0 %vm17414_vm7, %v869_v15  ;;  %v12734_v15 = vpop.f32.mrf.mxu1  ;;  %v1495_v43 = vunpack.c.l.b16 %v1437_v36  ;;  %v719_v36 = vrot.slane %v717_v6, 4 }
  0xa2   : > { %v1517_v45 = vpack.c.b16 %v1495_v43, %v1494_v41 }
  0xa4   : > { %11009 = vmatmul.msk.bf16.gmra.mxu2 %vm17414_vm7, %v1515_v1  ;;  %v12743_v40 = vpop.f32.mrf.mxu3  ;;  %v673_v1 = vrot.slane %v672_v59, 4  ;;  %v687_v59 = vrot.slane %v686_v44, 4 }
  0xa5   : > { %v12695_v49 = vpop.f32.mrf.mxu0 }
  0xa6   : > { %v692_v47 = vsel %vm12463_vm6, %v687_v59, %v691_v33  ;;  %v723_v59 = vshll.u32 %v12770_v16, 16 }
  0xa7   : > { %v12710_v10 = vpop.f32.mrf.mxu2  ;;  %v849_v33 = vunpack.c.l.b16 %v692_v47 }
  0xa8   : > { %v12750_v54 = vpop.f32.mrf.mxu1  ;;  %v725_v16 = vrot.slane %v723_v59, 5 }
  0xa9   : > { %11137 = vmatmul.msk.bf16.gmra.mxu3 %vm17414_vm7, %v12051_v57 }
  0xab   : > { %10973 = vmatmul.msk.bf16.gmra.mxu1 %vm17414_vm7, %v12033_v61  ;;  %v12034_v61 = vld [vmem:[%s12441_s12 + $0x9c] sm:$0xff] }
  0xac   : > { %v12759_v0 = vpop.f32.mrf.mxu3 }
  0xad   : > { %v12705_v8 = vpop.f32.mrf.mxu0 }
  0xaf   : > { %v12737_v37 = vpop.f32.mrf.mxu2 }
  0xb0   : > { %10880 = vmatmul.msk.bf16.gmra.mxu0 %vm17414_vm7, %v870_v4  ;;  %v677_v4 = vrot.slane %v675_v42, 5  ;;  %v12777_v19 = vpop.f32.mrf.mxu1 }
  0xb2   : > { %v678_v3 = vsel %vm12463_vm6, %v673_v1, %v677_v4  ;;  %v359_v1 = vld [vmem:[%s12441_s12 + $0x9c] sm:$0xf] }
  0xb3   : > { %v848_v39 = vunpack.c.l.b16 %v678_v3  ;;  %v704_v53 = vshrl.u32 %v359_v1, 16  ;;  %v707_v11 = vshll.u32 %v359_v1, 16  ;;  %v12818_v3 = vld [vmem:[%s12441_s12 + $0xb0] sm:$0x1]  ;;  %v12035_v1 = vld [vmem:[%s12441_s12 + $0xa8] sm:$0xff] }
  0xb4   : > { %11010 = vmatmul.msk.bf16.gmra.mxu2 %vm17414_vm7, %v1516_v50  ;;  %v12786_v35 = vpop.f32.mrf.mxu3  ;;  %v12052_v50 = vld [vmem:[%s12441_s12 + $0xa8] sm:$0xff]  ;;  %v1443_v23 = vrot.slane %v12818_v3, 5 }
  0xb5   : > { %v12731_v27 = vpop.f32.mrf.mxu0  ;;  %v872_v48 = vpack.c.b16 %v848_v39, %v847_v38  ;;  %v706_v39 = vrot.slane %v704_v53, 4  ;;  %v709_v55 = vrot.slane %v707_v11, 5  ;;  %v361_v53 = vld [vmem:[%s12441_s12 + $0xa8] sm:$0xf] }
  0xb6   : > { %v1444_v43 = vsel %vm12457_vm5, %v1442_v18, %v1443_v23  ;;  %v741_v18 = vshrl.u32 %v12811_v2, 16  ;;  %v12866_v23 = vld [vmem:[%s12441_s12 + $0xbc] sm:$0x1] }
  0xb7   : > { %v12753_v60 = vpop.f32.mrf.mxu2  ;;  %v1497_v46 = vunpack.c.l.b16 %v1444_v43 }
  0xb8   : > { %v12791_v52 = vpop.f32.mrf.mxu1 }
  0xb9   : > { %11138 = vmatmul.msk.bf16.gmra.mxu3 %vm17414_vm7, %v12052_v50 }
  0xbb   : > { %10974 = vmatmul.msk.bf16.gmra.mxu1 %vm17414_vm7, %v12034_v61 }
  0xbc   : > { %v12802_v4 = vpop.f32.mrf.mxu3 }
  0xbd   : > { %v12747_v58 = vpop.f32.mrf.mxu0 }
  0xbf   : > { %v12780_v25 = vpop.f32.mrf.mxu2 }
  0xc0   : > { %10881 = vmatmul.msk.bf16.gmra.mxu0 %vm17414_vm7, %v871_v51  ;;  %v12821_v21 = vpop.f32.mrf.mxu1 }
  0xc4   : > { %11011 = vmatmul.msk.bf16.gmra.mxu2 %vm17414_vm7, %v1517_v45  ;;  %v715_v45 = vrot.slane %v713_v17, 5  ;;  %v12832_v31 = vpop.f32.mrf.mxu3 }
  0xc5   : > { %v12773_v7 = vpop.f32.mrf.mxu0 }
  0xc6   : > { %v720_v61 = vor.u32 %v719_v36, %v715_v45 }
  0xc7   : > { %v12795_v42 = vpop.f32.mrf.mxu2 }
  0xcb   : > { %10975 = vmatmul.msk.bf16.gmra.mxu1 %vm17414_vm7, %v12035_v1 }
  0xcc   : > { %v12851_v11 = vpop.f32.mrf.mxu3 }
  0xcd   : > { %v962_v51 = vpop.f32.mrf.mxu0 }
  0xce   : > { %v1209_v57 = vadd.f32 %v12707_v9, %v962_v51  ;;  %v710_v51 = vor.u32 %v709_v55, %v706_v39  ;;  %v1450_v55 = vrot.slane %v12866_v23, 5 }
  0xcf   : > { %v12825_v38 = vpop.f32.mrf.mxu2 }
  0xd0   : > { %v1684_v63 = vadd.f32 %v12710_v10, %v1209_v57  ;;  %10882 = vmatmul.msk.bf16.gmra.mxu0 %vm17414_vm7, %v872_v48  ;;  %v702_v10 = vsel %vm12463_vm6, %v697_v24, %v701_v62  ;;  %v12053_v62 = vld [vmem:[%s12441_s12 + $0xb4] sm:$0xff]  ;;  %v12840_v24 = vpop.f32.mrf.mxu1  ;;  %v711_v47 = vrot.slane %v710_v51, 4 }
  0xd1   : > { %v850_v28 = vunpack.c.l.b16 %v702_v10  ;;  %11139 = vmatmul.msk.bf16.gmra.mxu3 %vm17414_vm7, %v12053_v62  ;;  %v721_v10 = vrot.slane %v720_v61, 4 }
  0xd2   : > { %v12805_v9 = vadd.f32 %v12716_v14, %v1684_v63  ;;  %v1297_v14 = vld [vmem:[%s12441_s12 + $0xa8] sm:$0xe]  ;;  %v716_v17 = vsel %vm12463_vm6, %v711_v47, %v715_v45 }
  0xd3   : > { %v10993_v22 = vrot.slane %v1297_v14, 9  ;;  %v873_v57 = vpack.c.b16 %v850_v28, %v849_v33  ;;  %v728_v14 = vshrl.u32 %v361_v53, 16  ;;  %v851_v43 = vunpack.c.l.b16 %v716_v17 }
  0xd5   : > { %v964_v20 = vpop.f32.mrf.mxu0  ;;  %v1441_v41 = vsel %vm12457_vm5, %v10993_v22, %v1440_v12  ;;  %v12857_v12 = vld [vmem:[%s12441_s12 + $0xb8] sm:$0xf]  ;;  %v726_v22 = vsel %vm12463_vm6, %v721_v10, %v725_v16  ;;  %v730_v45 = vrot.slane %v728_v14, 4 }
  0xd6   : > { %v1211_v32 = vadd.f32 %v12734_v15, %v964_v20  ;;  %v1496_v15 = vunpack.c.l.b16 %v1441_v41  ;;  %v1447_v20 = vrot.slane %v12857_v12, 5  ;;  %v852_v51 = vunpack.c.l.b16 %v726_v22 }
  0xd8   : > { %v1685_v44 = vadd.f32 %v12737_v37, %v1211_v32  ;;  %v1518_v50 = vpack.c.b16 %v1497_v46, %v1496_v15  ;;  %v1298_v32 = vld [vmem:[%s12441_s12 + $0xb4] sm:$0xe]  ;;  %v12870_v28 = vpop.f32.mrf.mxu1  ;;  %v1449_v39 = vrot.slane %v1447_v20, 4  ;;  %v874_v47 = vpack.c.b16 %v852_v51, %v851_v43  ;;  %v12914_v43 = vld [vmem:[%s12441_s12 + $0xc8] sm:$0x1] }
  0xd9   : > { %v10994_v36 = vrot.slane %v1298_v32, 9  ;;  %v1457_v51 = vrot.slane %v12914_v43, 5 }
  0xda   : > { %v12835_v48 = vadd.f32 %v12743_v40, %v1685_v44  ;;  %11012 = vmatmul.msk.bf16.gmra.mxu2 %vm17414_vm7, %v1518_v50  ;;  %v12844_v40 = vpop.f32.mrf.mxu2 }
  0xdb   : > { %v1448_v46 = vsel %vm12457_vm5, %v10994_v36, %v1447_v20  ;;  %v363_v20 = vld [vmem:[%s12441_s12 + $0xb4] sm:$0xf]  ;;  %v12906_v36 = vld [vmem:[%s12441_s12 + $0xc4] sm:$0xf] }
  0xdc   : > { %v1498_v59 = vunpack.c.l.b16 %v1448_v46 }
  0xdd   : > { %v967_v37 = vpop.f32.mrf.mxu0 }
  0xde   : > { %v1214_v63 = vadd.f32 %v12750_v54, %v967_v37 }
  0xe0   : > { %v1686_v6 = vadd.f32 %v12753_v60, %v1214_v63  ;;  %10883 = vmatmul.msk.bf16.gmra.mxu0 %vm17414_vm7, %v873_v57  ;;  %v731_v60 = vshll.u32 %v361_v53, 16  ;;  %v12881_v57 = vpop.f32.mrf.mxu3  ;;  %v12889_v53 = vpop.f32.mrf.mxu1 }
  0xe2   : > { %v12854_v54 = vadd.f32 %v12759_v0, %v1686_v6  ;;  %v737_v0 = vshll.u32 %v12811_v2, 16  ;;  %v12874_v44 = vpop.f32.mrf.mxu2  ;;  %v733_v15 = vrot.slane %v731_v60, 5  ;;  %v1451_v2 = vsel %vm12457_vm5, %v1449_v39, %v1450_v55  ;;  %v12054_v6 = vld [vmem:[%s12441_s12 + $0xc0] sm:$0xff] }
  0xe3   : > { %v1499_v61 = vunpack.c.l.b16 %v1451_v2  ;;  %11140 = vmatmul.msk.bf16.gmra.mxu3 %vm17414_vm7, %v12054_v6  ;;  %v765_v55 = vshrl.u32 %v12857_v12, 16 }
  0xe4   : > { %v739_v62 = vrot.slane %v737_v0, 5  ;;  %v734_v1 = vor.u32 %v733_v15, %v730_v45  ;;  %v755_v0 = vshll.u32 %v363_v20, 16  ;;  %v1299_v45 = vld [vmem:[%s12441_s12 + $0xc0] sm:$0xe] }
  0xe5   : > { %v969_v33 = vpop.f32.mrf.mxu0  ;;  %v1519_v63 = vpack.c.b16 %v1499_v61, %v1498_v59  ;;  %v10995_v2 = vrot.slane %v1299_v45, 9 }
  0xe6   : > { %v1216_v41 = vadd.f32 %v12777_v19, %v969_v33  ;;  %v743_v19 = vrot.slane %v741_v18, 4  ;;  %v735_v60 = vrot.slane %v734_v1, 4  ;;  %v752_v33 = vshrl.u32 %v363_v20, 16 }
  0xe7   : > { %v767_v1 = vrot.slane %v765_v55, 4  ;;  %v12037_v55 = vld [vmem:[%s12441_s12 + $0xc0] sm:$0xff] }
  0xe8   : > { %v1687_v50 = vadd.f32 %v12780_v25, %v1216_v41  ;;  %v747_v25 = vshll.u32 %v12818_v3, 16  ;;  %v744_v10 = vor.u32 %v743_v19, %v739_v62  ;;  %v12900_v3 = vpop.f32.mrf.mxu3  ;;  %v740_v39 = vsel %vm12463_vm6, %v735_v60, %v739_v62  ;;  %v12919_v46 = vpop.f32.mrf.mxu1 }
  0xe9   : > { %v1454_v41 = vrot.slane %v12906_v36, 5  ;;  %v853_v61 = vunpack.c.l.b16 %v740_v39  ;;  %v754_v19 = vrot.slane %v752_v33, 4  ;;  %v12055_v33 = vld [vmem:[%s12441_s12 + $0xcc] sm:$0xff] }
  0xea   : > { %v12884_v37 = vadd.f32 %v12786_v35, %v1687_v50  ;;  %11013 = vmatmul.msk.bf16.gmra.mxu2 %vm17414_vm7, %v1519_v63  ;;  %v12893_v14 = vpop.f32.mrf.mxu2  ;;  %v12036_v35 = vld [vmem:[%s12441_s12 + $0xb4] sm:$0xff]  ;;  %v749_v18 = vrot.slane %v747_v25, 5  ;;  %v745_v32 = vrot.slane %v744_v10, 4 }
  0xeb   : > { %10976 = vmatmul.msk.bf16.gmra.mxu1 %vm17414_vm7, %v12036_v35  ;;  %v1456_v50 = vrot.slane %v1454_v41, 4 }
  0xed   : > { %v972_v16 = vpop.f32.mrf.mxu0  ;;  %v1458_v6 = vsel %vm12457_vm5, %v1456_v50, %v1457_v51  ;;  %v368_v50 = vld [vmem:[%s12441_s12 + $0xd0] sm:$0xf] }
  0xee   : > { %v1219_v17 = vadd.f32 %v12791_v52, %v972_v16 }
  0xf0   : > { %v1688_v22 = vadd.f32 %v12795_v42, %v1219_v17  ;;  %10884 = vmatmul.msk.bf16.gmra.mxu0 %vm17414_vm7, %v874_v47  ;;  %v761_v42 = vshll.u32 %v12857_v12, 16  ;;  %v757_v12 = vrot.slane %v755_v0, 5  ;;  %v1455_v47 = vsel %vm12457_vm5, %v10995_v2, %v1454_v41  ;;  %v12930_v10 = vpop.f32.mrf.mxu3  ;;  %v12938_v0 = vpop.f32.mrf.mxu1 }
  0xf1   : > { %v1501_v17 = vunpack.c.l.b16 %v1458_v6 }
  0xf2   : > { %v12903_v52 = vadd.f32 %v12802_v4, %v1688_v22  ;;  %v750_v4 = vsel %vm12463_vm6, %v745_v32, %v749_v18  ;;  %v12923_v62 = vpop.f32.mrf.mxu2  ;;  %v763_v63 = vrot.slane %v761_v42, 5  ;;  %v758_v60 = vor.u32 %v757_v12, %v754_v19 }
  0xf3   : > { %v854_v25 = vunpack.c.l.b16 %v750_v4  ;;  %v771_v18 = vshll.u32 %v12866_v23, 16  ;;  %11141 = vmatmul.msk.bf16.gmra.mxu3 %vm17414_vm7, %v12055_v33  ;;  %v785_v19 = vshll.u32 %v12906_v36, 16  ;;  %v789_v12 = vshrl.u32 %v12906_v36, 16 }
  0xf4   : > { %v768_v22 = vor.u32 %v767_v1, %v763_v63  ;;  %v759_v42 = vrot.slane %v758_v60, 4  ;;  %v12962_v1 = vld [vmem:[%s12441_s12 + $0xd4] sm:$0x1] }
  0xf5   : > { %v974_v15 = vpop.f32.mrf.mxu0  ;;  %v875_v32 = vpack.c.b16 %v854_v25, %v853_v61  ;;  %v773_v45 = vrot.slane %v771_v18, 5  ;;  %v1464_v25 = vrot.slane %v12962_v1, 5  ;;  %v791_v33 = vrot.slane %v789_v12, 4 }
  0xf6   : > { %v1221_v59 = vadd.f32 %v12821_v21, %v974_v15  ;;  %v1500_v21 = vunpack.c.l.b16 %v1455_v47  ;;  %v769_v41 = vrot.slane %v768_v22, 4  ;;  %v365_v15 = vld [vmem:[%s12441_s12 + $0xc0] sm:$0xf]  ;;  %v764_v2 = vsel %vm12463_vm6, %v759_v42, %v763_v63  ;;  %v1300_v47 = vld [vmem:[%s12441_s12 + $0xcc] sm:$0xe] }
  0xf7   : > { %v779_v61 = vshll.u32 %v365_v15, 16 }
  0xf8   : > { %v1689_v16 = vadd.f32 %v12825_v38, %v1221_v59  ;;  %v1520_v20 = vpack.c.b16 %v1501_v17, %v1500_v21  ;;  %v12949_v4 = vpop.f32.mrf.mxu3  ;;  %v774_v51 = vsel %vm12463_vm6, %v769_v41, %v773_v45  ;;  %v776_v59 = vshrl.u32 %v365_v15, 16 }
  0xf9   : > { %v855_v21 = vunpack.c.l.b16 %v764_v2  ;;  %v856_v17 = vunpack.c.l.b16 %v774_v51  ;;  %v781_v22 = vrot.slane %v779_v61, 5  ;;  %v795_v15 = vshll.u32 %v12914_v43, 16  ;;  %v12056_v2 = vld [vmem:[%s12441_s12 + $0xd8] sm:$0xff] }
  0xfa   : > { %v12933_v35 = vadd.f32 %v12832_v31, %v1689_v16  ;;  %11014 = vmatmul.msk.bf16.gmra.mxu2 %vm17414_vm7, %v1520_v20  ;;  %v12942_v31 = vpop.f32.mrf.mxu2  ;;  %v10996_v16 = vrot.slane %v1300_v47, 9  ;;  %v778_v20 = vrot.slane %v776_v59, 4 }
  0xfb   : > { %10977 = vmatmul.msk.bf16.gmra.mxu1 %vm17414_vm7, %v12037_v55  ;;  %v876_v41 = vpack.c.b16 %v856_v17, %v855_v21  ;;  %v367_v21 = vld [vmem:[%s12441_s12 + $0xcc] sm:$0xf] }
  0xfc   : > { %v782_v45 = vor.u32 %v781_v22, %v778_v20  ;;  %v803_v22 = vshll.u32 %v367_v21, 16 }
  0xfd   : > { %v977_v38 = vpop.f32.mrf.mxu0 }
  0xfe   : > { %v1224_v39 = vadd.f32 %v12840_v24, %v977_v38  ;;  %v783_v47 = vrot.slane %v782_v45, 4 }
 0x100   : > { %v1690_v23 = vadd.f32 %v12844_v40, %v1224_v39  ;;  %10885 = vmatmul.msk.bf16.gmra.mxu0 %vm17414_vm7, %v875_v32  ;;  %v1461_v40 = vrot.slane %v368_v50, 5  ;;  %v787_v32 = vrot.slane %v785_v19, 5  ;;  %v12976_v42 = vpop.f32.mrf.mxu3 }
 0x101   : > { %17423 = vst [vmem:[#allocation4_spill] sm:$0xff] %v12976_v42 }
 0x102   : > { %v12952_v24 = vadd.f32 %v12851_v11, %v1690_v23  ;;  %v12967_v11 = vpop.f32.mrf.mxu1  ;;  %v1463_v63 = vrot.slane %v1461_v40, 4  ;;  %v12970_v60 = vpop.f32.mrf.mxu2  ;;  %v1462_v36 = vsel %vm12457_vm5, %v10996_v16, %v1461_v40  ;;  %v792_v23 = vor.u32 %v791_v33, %v787_v32  ;;  %v12038_v40 = vld [vmem:[%s12441_s12 + $0xcc] sm:$0xff] }
 0x103   : > { %17422 = vst [vmem:[#allocation3_spill] sm:$0xff] %v12970_v60  ;;  %v1502_v38 = vunpack.c.l.b16 %v1462_v36  ;;  %11142 = vmatmul.msk.bf16.gmra.mxu3 %vm17414_vm7, %v12056_v2  ;;  %v809_v36 = vshll.u32 %v368_v50, 16 }
 0x104   : > { %v1465_v18 = vsel %vm12457_vm5, %v1463_v63, %v1464_v25  ;;  %v793_v16 = vrot.slane %v792_v23, 4  ;;  %v797_v63 = vrot.slane %v795_v15, 5 }
 0x105   : > { %v12965_v6 = vpop.f32.mrf.mxu0  ;;  %v1503_v39 = vunpack.c.l.b16 %v1465_v18  ;;  %v813_v18 = vshrl.u32 %v368_v50, 16  ;;  %v811_v45 = vrot.slane %v809_v36, 5 }
 0x106   : > { %v798_v17 = vsel %vm12463_vm6, %v793_v16, %v797_v63 }
 0x107   : > { %v1521_v55 = vpack.c.b16 %v1503_v39, %v1502_v38  ;;  %v815_v23 = vrot.slane %v813_v18, 4 }
 0x108   : > { %v1954_v43 = vpop.f32.mrf.mxu3 }
 0x10a   : > { %11015 = vmatmul.msk.bf16.gmra.mxu2 %vm17414_vm7, %v1521_v55  ;;  %v1238_v59 = vpop.f32.mrf.mxu1  ;;  %v1633_v19 = vpop.f32.mrf.mxu2 }
 0x10b   : > { %10978 = vmatmul.msk.bf16.gmra.mxu1 %vm17414_vm7, %v12038_v40  ;;  %v819_v40 = vshll.u32 %v12962_v1, 16 }
 0x10d   : > { %v982_v51 = vpop.f32.mrf.mxu0 }
 0x10e   : > { %v1229_v61 = vadd.f32 %v12889_v53, %v982_v51  ;;  %v788_v53 = vsel %vm12463_vm6, %v783_v47, %v787_v32 }
 0x10f   : > { %v857_v39 = vunpack.c.l.b16 %v788_v53 }
 0x110   : > { %v1692_v12 = vadd.f32 %v12893_v14, %v1229_v61  ;;  %10886 = vmatmul.msk.bf16.gmra.mxu0 %vm17414_vm7, %v876_v41  ;;  %v800_v14 = vshrl.u32 %v367_v21, 16  ;;  %v805_v41 = vrot.slane %v803_v22, 5  ;;  %v13001_v32 = vpop.f32.mrf.mxu3  ;;  %v816_v61 = vor.u32 %v815_v23, %v811_v45 }
 0x111   : > { %17426 = vst [vmem:[#allocation7_spill] sm:$0xff] %v13001_v32  ;;  %v821_v21 = vrot.slane %v819_v40, 5  ;;  %v12021_v40 = vld [vmem:[%s12441_s12] sm:$0xff] }
 0x112   : > { %v12988_v25 = vadd.f32 %v12900_v3, %v1692_v12  ;;  %v12997_v33 = vpop.f32.mrf.mxu1  ;;  %v12999_v38 = vpop.f32.mrf.mxu2  ;;  %v858_v3 = vunpack.c.l.b16 %v798_v17  ;;  %v802_v55 = vrot.slane %v800_v14, 4  ;;  %v817_v63 = vrot.slane %v816_v61, 4 }
 0x113   : > { %17424 = vst [vmem:[#allocation5_spill] sm:$0xff] %v12997_v33  ;;  %v13244_v33 = vld [vmem:[%s12441_s12 + $0x38] sm:$0x1] }
 0x114   : > { %17425 = vst [vmem:[#allocation6_spill] sm:$0xff] %v12999_v38  ;;  %v877_v15 = vpack.c.b16 %v858_v3, %v857_v39  ;;  %v806_v51 = vor.u32 %v805_v41, %v802_v55 }
 0x115   : > { %v12995_v20 = vpop.f32.mrf.mxu0 }
 0x116   : > { %v807_v16 = vrot.slane %v806_v51, 4 }
 0x118   : > { %v1959_v14 = vpop.f32.mrf.mxu3  ;;  %v812_v1 = vsel %vm12463_vm6, %v807_v16, %v811_v45 }
 0x11a   : > { %v1243_v12 = vpop.f32.mrf.mxu1  ;;  %v1638_v53 = vpop.f32.mrf.mxu2 }
 0x11d   : > { %v987_v2 = vpop.f32.mrf.mxu0 }
 0x11e   : > { %v1234_v50 = vadd.f32 %v12938_v0, %v987_v2  ;;  %v822_v0 = vsel %vm12463_vm6, %v817_v63, %v821_v21 }
 0x11f   : > { %v860_v36 = vunpack.c.l.b16 %v822_v0  ;;  %v1283_v0 = vld [vmem:[%s12441_s12] sm:$0xe] }
 0x120   : > { %v1694_v47 = vadd.f32 %v12942_v31, %v1234_v50  ;;  %10887 = vmatmul.msk.bf16.gmra.mxu0 %vm17414_vm7, %v877_v15  ;;  %v859_v31 = vunpack.c.l.b16 %v812_v1 }
 0x122   : > { %v13008_v17 = vadd.f32 %v12949_v4, %v1694_v47  ;;  %v13016_v18 = vpop.f32.mrf.mxu1  ;;  %v13018_v39 = vpop.f32.mrf.mxu2  ;;  %v878_v3 = vpack.c.b16 %v860_v36, %v859_v31  ;;  %v10979_v36 = vrot.slane %v1283_v0, 9  ;;  %v12023_v0 = vld [vmem:[%s12441_s12 + $0x18] sm:$0xff] }
 0x123   : > { %17428 = vst [vmem:[#allocation9_spill] sm:$0xff] %v13016_v18  ;;  %v13020_v4 = vpop.f32.mrf.mxu3 }
 0x124   : > { %17427 = vst [vmem:[#allocation8_spill] sm:$0xff] %v13008_v17 }
 0x125   : > { %v13010_v22 = vpop.f32.mrf.mxu0  ;;  %17429 = vst [vmem:[#allocation10_spill] sm:$0xff] %v13018_v39 }
 0x126   : > { %17430 = vst [vmem:[#allocation11_spill] sm:$0xff] %v13020_v4  ;;  %v11217_v4 = vld [vmem:[%s12441_s12 + $0x18] sm:$0xe] }
 0x12a   : > { %v1248_v45 = vpop.f32.mrf.mxu1  ;;  %v1643_v51 = vpop.f32.mrf.mxu2 }
 0x12b   : > { %v1964_v61 = vpop.f32.mrf.mxu3 }
 0x12d   : > { %v992_v55 = vpop.f32.mrf.mxu0 }
 0x12e   : > { %v1239_v41 = vadd.f32 %v1238_v59, %v992_v55  ;;  %v12022_v55 = vld [vmem:[%s12441_s12 + $0xc] sm:$0xff] }
 0x130   : > { %v1696_v23 = vadd.f32 %v1633_v19, %v1239_v41  ;;  %10888 = vmatmul.msk.bf16.gmra.mxu0 %vm17414_vm7, %v878_v3  ;;  %v1469_v3 = vunpack.c.l.b16 %v12469_v30 }
 0x132   : > { %v13023_v15 = vadd.f32 %v1954_v43, %v1696_v23  ;;  %v13028_v47 = vpop.f32.mrf.mxu1  ;;  %v13030_v63 = vpop.f32.mrf.mxu2 }
 0x133   : > { %17433 = vst [vmem:[#allocation14_spill] sm:$0xff] %v13028_v47  ;;  %v13033_v19 = vpop.f32.mrf.mxu3 }
 0x134   : > { %17431 = vst [vmem:[#allocation12_spill] sm:$0xff] %v13023_v15 }
 0x135   : > { %v13025_v2 = vpop.f32.mrf.mxu0  ;;  %17434 = vst [vmem:[#allocation15_spill] sm:$0xff] %v13030_v63  ;;  %v12057_v63 = vld [vmem:[%s12441_s12 + $0x18] sm:$0xff] }
 0x136   : > { %17432 = vst [vmem:[#allocation13_spill] sm:$0xff] %v13025_v2 }
 0x137   : > { %17435 = vst [vmem:[#allocation16_spill] sm:$0xff] %v13033_v19 }
 0x13a   : > { %v1253_v1 = vpop.f32.mrf.mxu1  ;;  %v1648_v31 = vpop.f32.mrf.mxu2 }
 0x13d   : > { %v997_v50 = vpop.f32.mrf.mxu0 }
 0x13e   : > { %v1244_v16 = vadd.f32 %v1243_v12, %v997_v50  ;;  %v1969_v12 = vpop.f32.mrf.mxu3 }
 0x140   : > { %v1698_v59 = vadd.f32 %v1638_v53, %v1244_v16  ;;  %10961 = vmatmul.msk.bf16.vlgmr.msrb.gmra.mxu0 %vm17414_vm7, %v12021_v40  ;;  %v1343_v53 = vsel %vm12457_vm5, %v10979_v36, %v1342_v13 }
 0x141   : > { %1907 = vmatpush.bf16.msrb.mxu0 %v12493_v56  ;;  %v1468_v41 = vunpack.c.l.b16 %v1343_v53 }
 0x142   : > { %v13036_v43 = vadd.f32 %v1959_v14, %v1698_v59  ;;  %v13048_v50 = vpop.f32.mrf.mxu1  ;;  %v13052_v30 = vpop.f32.mrf.mxu2 }
 0x143   : > { %v1504_v23 = vpack.c.b16 %v1469_v3, %v1468_v41  ;;  %17438 = vst [vmem:[#allocation19_spill] sm:$0xff] %v13048_v50 }
 0x144   : > { %17436 = vst [vmem:[#allocation17_spill] sm:$0xff] %v13036_v43  ;;  %v11404_v43 = vld [vmem:[%s12441_s12 + $0x30] sm:$0xf] }
 0x145   : > { %v13038_v21 = vpop.f32.mrf.mxu0  ;;  %17440 = vst [vmem:[#allocation21_spill] sm:$0xff] %v13052_v30 }
 0x146   : > { %17437 = vst [vmem:[#allocation18_spill] sm:$0xff] %v13038_v21  ;;  %v13056_v5 = vpop.f32.mrf.mxu3 }
 0x147   : > { %17442 = vst [vmem:[#allocation23_spill] sm:$0xff] %v13056_v5  ;;  %v12299_v5 = vld [vmem:[%s12441_s12 + $0x10] sm:$0xf] }
 0x148   : > { %v1349_v30 = vrot.slane %v12299_v5, 5 }
 0x14a   : > { %v1258_v13 = vpop.f32.mrf.mxu1 }
 0x14d   : > { %v1002_v56 = vpop.f32.mrf.mxu0 }
 0x14e   : > { %v1249_v14 = vadd.f32 %v1248_v45, %v1002_v56  ;;  %v1653_v45 = vpop.f32.mrf.mxu2 }
 0x150   : > { %v1700_v40 = vadd.f32 %v1643_v51, %v1249_v14  ;;  %10962 = vmatmul.msk.bf16.gmra.mxu0 %vm17414_vm7, %v12022_v55  ;;  %v1974_v51 = vpop.f32.mrf.mxu3 }
 0x152   : > { %v13050_v16 = vadd.f32 %v1964_v61, %v1700_v40  ;;  %v13064_v41 = vpop.f32.mrf.mxu1 }
 0x153   : > { %17445 = vst [vmem:[#allocation26_spill] sm:$0xff] %v13064_v41 }
 0x154   : > { %17439 = vst [vmem:[#allocation20_spill] sm:$0xff] %v13050_v16  ;;  %v13147_v16 = vld [vmem:[%s12441_s12 + $0x14] sm:$0x1] }
 0x155   : > { %v13054_v59 = vpop.f32.mrf.mxu0 }
 0x156   : > { %17441 = vst [vmem:[#allocation22_spill] sm:$0xff] %v13054_v59  ;;  %v13066_v56 = vpop.f32.mrf.mxu2 }
 0x157   : > { %17446 = vst [vmem:[#allocation27_spill] sm:$0xff] %v13066_v56 }
 0x158   : > { %v13068_v14 = vpop.f32.mrf.mxu3 }
 0x159   : > { %17447 = vst [vmem:[#allocation28_spill] sm:$0xff] %v13068_v14 }
 0x15d   : > { %v1007_v36 = vpop.f32.mrf.mxu0 }
 0x15e   : > { %v1254_v3 = vadd.f32 %v1253_v1, %v1007_v36  ;;  %v1284_v1 = vld [vmem:[%s12441_s12 + $0xc] sm:$0xe]  ;;  %v1263_v36 = vpop.f32.mrf.mxu1 }
 0x160   : > { %v1702_v53 = vadd.f32 %v1648_v31, %v1254_v3  ;;  %10963 = vmatmul.msk.bf16.gmra.mxu0 %vm17414_vm7, %v12023_v0  ;;  %v12300_v31 = vld [vmem:[%s12441_s12 + $0x14] sm:$0x1]  ;;  %v1658_v0 = vpop.f32.mrf.mxu2  ;;  %v10980_v3 = vrot.slane %v1284_v1, 9  ;;  %v1979_v56 = vpop.f32.mrf.mxu3 }
 0x162   : > { %v13060_v61 = vadd.f32 %v1969_v12, %v1702_v53  ;;  %v1352_v12 = vrot.slane %v12300_v31, 5  ;;  %v1351_v53 = vrot.slane %v1349_v30, 4  ;;  %v1350_v5 = vsel %vm12457_vm5, %v10980_v3, %v1349_v30  ;;  %v11197_v30 = vld [vmem:[%s17406_s1 + $0x8] sm:$0x3] }
 0x164   : > { %17443 = vst [vmem:[#allocation24_spill] sm:$0xff] %v13060_v61  ;;  %v1285_v61 = vld [vmem:[%s12441_s12 + $0x18] sm:$0xe] }
 0x165   : > { %v13062_v55 = vpop.f32.mrf.mxu0 }
 0x166   : > { %17444 = vst [vmem:[#allocation25_spill] sm:$0xff] %v13062_v55 }
 0x16d   : > { %v1012_v40 = vpop.f32.mrf.mxu0 }
 0x16e   : > { %v1259_v50 = vadd.f32 %v1258_v13, %v1012_v40  ;;  %v13084_v40 = vpop.f32.mrf.mxu2 }
 0x16f   : > { %17451 = vst [vmem:[#allocation32_spill] sm:$0xff] %v13084_v40 }
 0x170   : > { %v1704_v19 = vadd.f32 %v1653_v45, %v1259_v50  ;;  %10998 = vmatmul.msk.bf16.vlgmr.msra.gmra.mxu0 %vm17414_vm7, %v1504_v23  ;;  %v1353_v50 = vsel %vm12457_vm5, %v1351_v53, %v1352_v12  ;;  %v1470_v23 = vunpack.c.l.b16 %v1350_v5  ;;  %v13082_v45 = vpop.f32.mrf.mxu1  ;;  %v12302_v12 = vld [vmem:[%s12441_s12 + $0x20] sm:$0x1]  ;;  %v10981_v53 = vrot.slane %v1285_v61, 9  ;;  %v11307_v61 = vld [vmem:[%s17406_s1 + $0xc] sm:$0x3] }
 0x171   : > { %v1471_v13 = vunpack.c.l.b16 %v1353_v50  ;;  %17450 = vst [vmem:[#allocation31_spill] sm:$0xff] %v13082_v45  ;;  %v1359_v3 = vrot.slane %v12302_v12, 5  ;;  %v2632_v50 = vsel %vm17413_vm0, %v11197_v30, 0 }
 0x172   : > { %v13074_v41 = vadd.f32 %v1974_v51, %v1704_v19  ;;  %v13086_v19 = vpop.f32.mrf.mxu3  ;;  %v12301_v51 = vld [vmem:[%s12441_s12 + $0x1c] sm:$0xf]  ;;  %2641 = vmatpush.bf16.msra.mxu0 %v2632_v50 }
 0x173   : > { %v1505_v1 = vpack.c.b16 %v1471_v13, %v1470_v23  ;;  %17452 = vst [vmem:[#allocation33_spill] sm:$0xff] %v13086_v19 }
 0x174   : > { %17448 = vst [vmem:[#allocation29_spill] sm:$0xff] %v13074_v41  ;;  %v1356_v41 = vrot.slane %v12301_v51, 5 }
 0x175   : > { %v13076_v14 = vpop.f32.mrf.mxu0 }
 0x176   : > { %17449 = vst [vmem:[#allocation30_spill] sm:$0xff] %v13076_v14  ;;  %v1358_v5 = vrot.slane %v1356_v41, 4 }
 0x178   : > { %v1268_v13 = vpop.f32.mrf.mxu1 }
 0x17d   : > { %v1017_v31 = vpop.f32.mrf.mxu0 }
 0x17e   : > { %v1264_v14 = vadd.f32 %v1263_v36, %v1017_v31  ;;  %v1663_v36 = vpop.f32.mrf.mxu2 }
 0x180   : > { %v1706_v55 = vadd.f32 %v1658_v0, %v1264_v14  ;;  %10999 = vmatmul.msk.bf16.gmra.mxu0 %vm17414_vm7, %v1505_v1  ;;  %v1357_v14 = vsel %vm12457_vm5, %v10981_v53, %v1356_v41  ;;  %v1360_v0 = vsel %vm12457_vm5, %v1358_v5, %v1359_v3  ;;  %v1984_v1 = vpop.f32.mrf.mxu3  ;;  %v11252_v41 = vld [vmem:[%s17406_s1 + $0xa] sm:$0x3]  ;;  %v13116_v50 = vpop.f32.mrf.mxu1 }
 0x181   : > { %v1472_v31 = vunpack.c.l.b16 %v1357_v14  ;;  %v1473_v12 = vunpack.c.l.b16 %v1360_v0  ;;  %v3078_v3 = vsel %vm17413_vm0, %v11252_v41, 0  ;;  %17455 = vst [vmem:[#allocation36_spill] sm:$0xff] %v13116_v50 }
 0x182   : > { %v13096_v23 = vadd.f32 %v1979_v56, %v1706_v55  ;;  %v3399_v55 = vsel %vm17413_vm0, %v11307_v61, 0  ;;  %v11452_v56 = vld [vmem:[%s17406_s1 + $0xe] sm:$0x3]  ;;  %3087 = vmatpush.bf16.msrb.mxu1 %v3078_v3 }
 0x183   : > { %3408 = vmatpush.bf16.msrb.mxu2 %v3399_v55  ;;  %v4133_v30 = vsel %vm17413_vm0, %v11452_v56, 0  ;;  %v1506_v53 = vpack.c.b16 %v1473_v12, %v1472_v31  ;;  %v12039_v3 = vld [vmem:[%s12441_s12 + $0xc] sm:$0xff] }
 0x184   : > { %17453 = vst [vmem:[#allocation34_spill] sm:$0xff] %v13096_v23  ;;  %4142 = vmatpush.bf16.msrb.mxu3 %v4133_v30 }
 0x185   : > { %v13098_v51 = vpop.f32.mrf.mxu0 }
 0x186   : > { %17454 = vst [vmem:[#allocation35_spill] sm:$0xff] %v13098_v51  ;;  %v13118_v0 = vpop.f32.mrf.mxu2  ;;  %11380 = vmatmul.msk.bf16.vlgmr.msrb.gmra.mxu2 %vm17414_vm7, %v12057_v63 }
 0x187   : > { %17456 = vst [vmem:[#allocation37_spill] sm:$0xff] %v13118_v0 }
 0x188   : > { %v13121_v55 = vpop.f32.mrf.mxu3  ;;  %v1273_v31 = vpop.f32.mrf.mxu1 }
 0x189   : > { %17457 = vst [vmem:[#allocation38_spill] sm:$0xff] %v13121_v55 }
 0x18d   : > { %v1022_v5 = vpop.f32.mrf.mxu0 }
 0x18e   : > { %v1269_v14 = vadd.f32 %v1268_v13, %v1022_v5  ;;  %v1668_v12 = vpop.f32.mrf.mxu2 }
 0x190   : > { %v1708_v61 = vadd.f32 %v1663_v36, %v1269_v14  ;;  %11000 = vmatmul.msk.bf16.gmra.mxu0 %vm17414_vm7, %v1506_v53  ;;  %v1989_v30 = vpop.f32.mrf.mxu3  ;;  %v13129_v36 = vpop.f32.mrf.mxu1  ;;  %v11398_v14 = vld [vmem:[%s12441_s12 + $0x18] sm:$0xf] }
 0x191   : > { %17460 = vst [vmem:[#allocation41_spill] sm:$0xff] %v13129_v36  ;;  %v3591_v55 = vshrl.u32 %v11398_v14, 16  ;;  %v3594_v0 = vshll.u32 %v11398_v14, 16 }
 0x192   : > { %v13123_v56 = vadd.f32 %v1984_v1, %v1708_v61  ;;  %v11399_v61 = vld [vmem:[%s12441_s12 + $0x1c] sm:$0xf] }
 0x194   : > { %17458 = vst [vmem:[#allocation39_spill] sm:$0xff] %v13123_v56  ;;  %v3600_v56 = vshll.u32 %v11399_v61, 16 }
 0x195   : > { %v13125_v41 = vpop.f32.mrf.mxu0 }
 0x196   : > { %17459 = vst [vmem:[#allocation40_spill] sm:$0xff] %v13125_v41  ;;  %v13134_v1 = vpop.f32.mrf.mxu2  ;;  %v3604_v41 = vshrl.u32 %v11399_v61, 16  ;;  %v11216_v61 = vld [vmem:[%s12441_s12 + $0xc] sm:$0xe] }
 0x197   : > { %17462 = vst [vmem:[#allocation43_spill] sm:$0xff] %v13134_v1 }
 0x198   : > { %v3606_v1 = vrot.slane %v3604_v41, 4  ;;  %v1278_v45 = vpop.f32.mrf.mxu1 }
 0x19d   : > { %v1027_v50 = vpop.f32.mrf.mxu0 }
 0x19e   : > { %v1274_v13 = vadd.f32 %v1273_v31, %v1027_v50  ;;  %v13139_v50 = vpop.f32.mrf.mxu3  ;;  %v11400_v31 = vld [vmem:[%s12441_s12 + $0x20] sm:$0x1]  ;;  %v1673_v41 = vpop.f32.mrf.mxu2 }
 0x19f   : > { %17464 = vst [vmem:[#allocation45_spill] sm:$0xff] %v13139_v50  ;;  %v12040_v50 = vld [vmem:[%s12441_s12 + $0x18] sm:$0xff] }
 0x1a0   : > { %v1710_v5 = vadd.f32 %v1668_v12, %v1274_v13  ;;  %11125 = vmatmul.msk.bf16.vlgmr.msrb.gmra.mxu0 %vm17414_vm7, %v12039_v3  ;;  %v3593_v12 = vrot.slane %v3591_v55, 4  ;;  %v3596_v3 = vrot.slane %v3594_v0, 5  ;;  %v11144_v13 = vld [vmem:[%s12441_s12 + $0x10] sm:$0xf] }
 0x1a1   : > { %v2843_v36 = vrot.slane %v11144_v13, 5 }
 0x1a2   : > { %v13131_v53 = vadd.f32 %v1989_v30, %v1710_v5  ;;  %v3602_v30 = vrot.slane %v3600_v56, 5  ;;  %v3597_v5 = vor.u32 %v3596_v3, %v3593_v12 }
 0x1a3   : > { %v2845_v51 = vrot.slane %v2843_v36, 4 }
 0x1a4   : > { %17461 = vst [vmem:[#allocation42_spill] sm:$0xff] %v13131_v53  ;;  %v3610_v53 = vshll.u32 %v11400_v31, 16  ;;  %v3598_v14 = vrot.slane %v3597_v5, 4  ;;  %v3607_v40 = vor.u32 %v3606_v1, %v3602_v30 }
 0x1a5   : > { %v13137_v19 = vpop.f32.mrf.mxu0 }
 0x1a6   : > { %17463 = vst [vmem:[#allocation44_spill] sm:$0xff] %v13137_v19  ;;  %v3612_v23 = vrot.slane %v3610_v53, 5  ;;  %v11234_v19 = vrot.slane %v11216_v61, 9  ;;  %v3603_v0 = vsel %vm12463_vm6, %v3598_v14, %v3602_v30  ;;  %v3608_v55 = vrot.slane %v3607_v40, 4  ;;  %v1994_v61 = vpop.f32.mrf.mxu3 }
 0x1a7   : > { %v4024_v31 = vunpack.c.l.b16 %v3603_v0  ;;  %v2846_v53 = vrot.slane %v13147_v16, 5 }
 0x1a8   : > { %v2844_v1 = vsel %vm12457_vm5, %v11234_v19, %v2843_v36  ;;  %v3613_v3 = vsel %vm12463_vm6, %v3608_v55, %v3612_v23  ;;  %v11143_v19 = vld [vmem:[%s12441_s12 + $0xc] sm:$0xf] }
 0x1a9   : > { %v2969_v5 = vunpack.c.l.b16 %v2844_v1  ;;  %v4025_v30 = vunpack.c.l.b16 %v3613_v3  ;;  %v2847_v40 = vsel %vm12457_vm5, %v2845_v51, %v2846_v53  ;;  %v2090_v51 = vshrl.u32 %v11143_v19, 16 }
 0x1aa   : > { %v2970_v63 = vunpack.c.l.b16 %v2847_v40  ;;  %v2099_v1 = vshll.u32 %v11144_v13, 16  ;;  %v2103_v53 = vshrl.u32 %v11144_v13, 16  ;;  %v11403_v40 = vld [vmem:[%s12441_s12 + $0x2c] sm:$0x1] }
 0x1ab   : > { %v4060_v36 = vpack.c.b16 %v4025_v30, %v4024_v31 }
 0x1ac   : > { %v3005_v55 = vpack.c.b16 %v2970_v63, %v2969_v5  ;;  %v2101_v13 = vrot.slane %v2099_v1, 5  ;;  %v12058_v1 = vld [vmem:[%s12441_s12 + $0x24] sm:$0xff] }
 0x1ad   : > { %v1032_v56 = vpop.f32.mrf.mxu0  ;;  %11453 = vmatmul.msk.bf16.vlgmr.msrb.gmra.mxu3 %vm17414_vm7, %v4060_v36  ;;  %v2105_v36 = vrot.slane %v2103_v53, 4  ;;  %11381 = vmatmul.msk.bf16.gmra.mxu2 %vm17414_vm7, %v12058_v1 }
 0x1ae   : > { %v1279_v12 = vadd.f32 %v1278_v45, %v1032_v56  ;;  %v11507_v45 = vld [vmem:[%s17406_s1 + $0x10] sm:$0x3]  ;;  %v11401_v56 = vld [vmem:[%s12441_s12 + $0x24] sm:$0xf]  ;;  %11253 = vmatmul.msk.bf16.vlgmr.msrb.gmra.mxu1 %vm17414_vm7, %v3005_v55 }
 0x1af   : > { %v4579_v0 = vsel %vm17413_vm0, %v11507_v45, 0  ;;  %v3618_v31 = vshll.u32 %v11401_v56, 16  ;;  %v2092_v45 = vrot.slane %v2090_v51, 4  ;;  %v12041_v51 = vld [vmem:[%s12441_s12 + $0x24] sm:$0xff] }
 0x1b0   : > { %v1712_v14 = vadd.f32 %v1673_v41, %v1279_v12  ;;  %11126 = vmatmul.msk.bf16.gmra.mxu0 %vm17414_vm7, %v12040_v50  ;;  %v2093_v41 = vshll.u32 %v11143_v19, 16  ;;  %v11402_v50 = vld [vmem:[%s12441_s12 + $0x28] sm:$0xf]  ;;  %v3615_v12 = vshrl.u32 %v11401_v56, 16  ;;  %v3634_v56 = vshll.u32 %v11403_v40, 16 }
 0x1b1   : > { %4588 = vmatpush.bf16.msrb.mxu0 %v4579_v0  ;;  %v3624_v3 = vshll.u32 %v11402_v50, 16  ;;  %v3628_v30 = vshrl.u32 %v11402_v50, 16  ;;  %v11147_v0 = vld [vmem:[%s12441_s12 + $0x1c] sm:$0xf]  ;;  %v2109_v40 = vshll.u32 %v13147_v16, 16 }
 0x1b2   : > { %v13165_v23 = vadd.f32 %v1994_v61, %v1712_v14  ;;  %v3617_v5 = vrot.slane %v3615_v12, 4  ;;  %v3620_v14 = vrot.slane %v3618_v31, 5  ;;  %v2095_v19 = vrot.slane %v2093_v41, 5 }
 0x1b3   : > { %v3626_v63 = vrot.slane %v3624_v3, 5  ;;  %v2850_v47 = vrot.slane %v11147_v0, 5  ;;  %v11235_v12 = vrot.slane %v11217_v4, 9  ;;  %v2106_v41 = vor.u32 %v2105_v36, %v2101_v13  ;;  %v13179_v3 = vld [vmem:[%s12441_s12 + $0x20] sm:$0x1] }
 0x1b4   : > { %17465 = vst [vmem:[#allocation46_spill] sm:$0xff] %v13165_v23  ;;  %v3621_v55 = vor.u32 %v3620_v14, %v3617_v5  ;;  %v3630_v23 = vrot.slane %v3628_v30, 4  ;;  %v2096_v39 = vor.u32 %v2095_v19, %v2092_v45  ;;  %v2853_v4 = vrot.slane %v13179_v3, 5 }
 0x1b5   : > { %v13171_v61 = vpop.f32.mrf.mxu0  ;;  %v2852_v31 = vrot.slane %v2850_v47, 4  ;;  %v2851_v14 = vsel %vm12457_vm5, %v11235_v12, %v2850_v47  ;;  %v2107_v47 = vrot.slane %v2106_v41, 4 }
 0x1b6   : > { %17466 = vst [vmem:[#allocation47_spill] sm:$0xff] %v13171_v61  ;;  %v3622_v50 = vrot.slane %v3621_v55, 4  ;;  %v3631_v59 = vor.u32 %v3630_v23, %v3626_v63  ;;  %v3636_v61 = vrot.slane %v3634_v56, 5  ;;  %v2971_v19 = vunpack.c.l.b16 %v2851_v14  ;;  %v11405_v14 = vld [vmem:[%s12441_s12 + $0x34] sm:$0xf] }
 0x1b7   : > { %v2097_v36 = vrot.slane %v2096_v39, 4  ;;  %v2854_v16 = vsel %vm12457_vm5, %v2852_v31, %v2853_v4  ;;  %v2111_v56 = vrot.slane %v2109_v40, 5  ;;  %v3639_v31 = vshrl.u32 %v11404_v43, 16 }
 0x1b8   : > { %v3627_v53 = vsel %vm12463_vm6, %v3622_v50, %v3626_v63  ;;  %v3632_v5 = vrot.slane %v3631_v59, 4  ;;  %v11146_v63 = vld [vmem:[%s12441_s12 + $0x18] sm:$0xf]  ;;  %v2972_v55 = vunpack.c.l.b16 %v2854_v16  ;;  %v3648_v41 = vshll.u32 %v11405_v14, 16 }
 0x1b9   : > { %v4026_v23 = vunpack.c.l.b16 %v3627_v53  ;;  %v2114_v12 = vshrl.u32 %v11146_v63, 16  ;;  %v2117_v53 = vshll.u32 %v11146_v63, 16  ;;  %v2102_v39 = vsel %vm12463_vm6, %v2097_v36, %v2101_v13  ;;  %v11406_v13 = vld [vmem:[%s12441_s12 + $0x38] sm:$0x1] }
 0x1ba   : > { %v3637_v45 = vsel %vm12463_vm6, %v3632_v5, %v3636_v61  ;;  %v3006_v1 = vpack.c.b16 %v2972_v55, %v2971_v19  ;;  %v2123_v61 = vshll.u32 %v11147_v0, 16  ;;  %v2127_v5 = vshrl.u32 %v11147_v0, 16 }
 0x1bb   : > { %v4027_v59 = vunpack.c.l.b16 %v3637_v45  ;;  %v3652_v40 = vshrl.u32 %v11405_v14, 16  ;;  %v2112_v4 = vsel %vm12463_vm6, %v2107_v47, %v2111_v56  ;;  %v2116_v45 = vrot.slane %v2114_v12, 4 }
 0x1bc   : > { %v2119_v19 = vrot.slane %v2117_v53, 5  ;;  %v3641_v36 = vrot.slane %v3639_v31, 4  ;;  %v2523_v63 = vunpack.c.l.b16 %v2102_v39  ;;  %v2129_v16 = vrot.slane %v2127_v5, 4  ;;  %v11218_v53 = vld [vmem:[%s12441_s12 + $0x24] sm:$0xe] }
 0x1bd   : > { %v13183_v30 = vpop.f32.mrf.mxu0  ;;  %v4061_v50 = vpack.c.b16 %v4027_v59, %v4026_v23  ;;  %v2125_v59 = vrot.slane %v2123_v61, 5  ;;  %v3650_v55 = vrot.slane %v3648_v41, 5  ;;  %v3654_v14 = vrot.slane %v3652_v40, 4  ;;  %v12059_v41 = vld [vmem:[%s12441_s12 + $0x30] sm:$0xff] }
 0x1be   : > { %11254 = vmatmul.msk.bf16.gmra.mxu1 %vm17414_vm7, %v3006_v1  ;;  %v3658_v18 = vshll.u32 %v11406_v13, 16  ;;  %v2120_v32 = vor.u32 %v2119_v19, %v2116_v45  ;;  %v11236_v39 = vrot.slane %v11218_v53, 9  ;;  %11382 = vmatmul.msk.bf16.gmra.mxu2 %vm17414_vm7, %v12059_v41 }
 0x1bf   : > { %11454 = vmatmul.msk.bf16.gmra.mxu3 %vm17414_vm7, %v4061_v50  ;;  %v2524_v50 = vunpack.c.l.b16 %v2112_v4  ;;  %v3655_v56 = vor.u32 %v3654_v14, %v3650_v55  ;;  %v2130_v31 = vor.u32 %v2129_v16, %v2125_v59  ;;  %v13212_v4 = vld [vmem:[%s12441_s12 + $0x2c] sm:$0x1] }
 0x1c0   : > { %11127 = vmatmul.msk.bf16.gmra.mxu0 %vm17414_vm7, %v12041_v51  ;;  %v3642_v51 = vshll.u32 %v11404_v43, 16  ;;  %v11150_v43 = vld [vmem:[%s12441_s12 + $0x28] sm:$0xf]  ;;  %v3660_v12 = vrot.slane %v3658_v18, 5  ;;  %v2860_v19 = vrot.slane %v13212_v4, 5 }
 0x1c1   : > { %v2857_v21 = vrot.slane %v11150_v43, 5  ;;  %v2559_v5 = vpack.c.b16 %v2524_v50, %v2523_v63  ;;  %v3656_v13 = vrot.slane %v3655_v56, 4  ;;  %v2131_v16 = vrot.slane %v2130_v31, 4 }
 0x1c2   : > { %v3644_v0 = vrot.slane %v3642_v51, 5  ;;  %v2133_v51 = vshll.u32 %v13179_v3, 16  ;;  %v2121_v3 = vrot.slane %v2120_v32, 4  ;;  %v2151_v41 = vshrl.u32 %v11150_v43, 16 }
 0x1c3   : > { %v2859_v61 = vrot.slane %v2857_v21, 4  ;;  %v2858_v18 = vsel %vm12457_vm5, %v11236_v39, %v2857_v21  ;;  %v11407_v39 = vld [vmem:[%s12441_s12 + $0x3c] sm:$0xf] }
 0x1c4   : > { %v3645_v1 = vor.u32 %v3644_v0, %v3641_v36  ;;  %v3661_v0 = vsel %vm12463_vm6, %v3656_v13, %v3660_v12  ;;  %v2973_v63 = vunpack.c.l.b16 %v2858_v18  ;;  %v2135_v50 = vrot.slane %v2133_v51, 5 }
 0x1c5   : > { %v13202_v23 = vpop.f32.mrf.mxu0  ;;  %v2861_v14 = vsel %vm12457_vm5, %v2859_v61, %v2860_v19  ;;  %v2126_v12 = vsel %vm12463_vm6, %v2121_v3, %v2125_v59  ;;  %v2147_v51 = vshll.u32 %v11150_v43, 16  ;;  %v11408_v61 = vld [vmem:[%s12441_s12 + $0x40] sm:$0xf]  ;;  %v11409_v59 = vld [vmem:[%s12441_s12 + $0x44] sm:$0x1] }
 0x1c6   : > { %v3646_v47 = vrot.slane %v3645_v1, 4  ;;  %v4029_v1 = vunpack.c.l.b16 %v3661_v0  ;;  %v2974_v21 = vunpack.c.l.b16 %v2861_v14  ;;  %v2136_v31 = vsel %vm12463_vm6, %v2131_v16, %v2135_v50  ;;  %v11153_v14 = vld [vmem:[%s12441_s12 + $0x34] sm:$0xf] }
 0x1c7   : > { %v3672_v13 = vshll.u32 %v11408_v61, 16  ;;  %v2525_v16 = vunpack.c.l.b16 %v2126_v12  ;;  %v2526_v43 = vunpack.c.l.b16 %v2136_v31  ;;  %v2149_v50 = vrot.slane %v2147_v51, 5  ;;  %v12060_v51 = vld [vmem:[%s12441_s12 + $0x3c] sm:$0xff] }
 0x1c8   : > { %v3651_v40 = vsel %vm12463_vm6, %v3646_v47, %v3650_v55  ;;  %v11149_v55 = vld [vmem:[%s12441_s12 + $0x24] sm:$0xf]  ;;  %v3007_v53 = vpack.c.b16 %v2974_v21, %v2973_v63 }
 0x1c9   : > { %v4028_v45 = vunpack.c.l.b16 %v3651_v40  ;;  %v2138_v56 = vshrl.u32 %v11149_v55, 16  ;;  %v2141_v32 = vshll.u32 %v11149_v55, 16  ;;  %v3666_v40 = vshll.u32 %v11407_v39, 16 }
 0x1ca   : > { %v3674_v55 = vrot.slane %v3672_v13, 5  ;;  %v2560_v12 = vpack.c.b16 %v2526_v43, %v2525_v16  ;;  %v11152_v13 = vld [vmem:[%s12441_s12 + $0x30] sm:$0xf] }
 0x1cb   : > { %v4062_v47 = vpack.c.b16 %v4029_v1, %v4028_v45  ;;  %v3676_v45 = vshrl.u32 %v11408_v61, 16  ;;  %v2140_v19 = vrot.slane %v2138_v56, 4  ;;  %v2143_v0 = vrot.slane %v2141_v32, 5 }
 0x1cc   : > { %v3668_v63 = vrot.slane %v3666_v40, 5  ;;  %v2153_v1 = vrot.slane %v2151_v41, 4 }
 0x1cd   : > { %v13216_v36 = vpop.f32.mrf.mxu0  ;;  %v2144_v61 = vor.u32 %v2143_v0, %v2140_v19  ;;  %v2157_v19 = vshll.u32 %v13212_v4, 16 }
 0x1ce   : > { %11255 = vmatmul.msk.bf16.gmra.mxu1 %vm17414_vm7, %v3007_v53  ;;  %v3682_v53 = vshll.u32 %v11409_v59, 16  ;;  %v2154_v31 = vor.u32 %v2153_v1, %v2149_v50  ;;  %11383 = vmatmul.msk.bf16.gmra.mxu2 %vm17414_vm7, %v12060_v51  ;;  %v11410_v51 = vld [vmem:[%s12441_s12 + $0x48] sm:$0xf] }
 0x1cf   : > { %11455 = vmatmul.msk.bf16.gmra.mxu3 %vm17414_vm7, %v4062_v47  ;;  %v3678_v47 = vrot.slane %v3676_v45, 4  ;;  %v2145_v16 = vrot.slane %v2144_v61, 4  ;;  %v2171_v61 = vshll.u32 %v11153_v14, 16 }
 0x1d0   : > { %11198 = vmatmul.msk.bf16.vlgmr.msra.gmra.mxu0 %vm17414_vm7, %v2559_v5  ;;  %v3663_v5 = vshrl.u32 %v11407_v39, 16  ;;  %v2864_v39 = vrot.slane %v11153_v14, 5  ;;  %v3684_v38 = vrot.slane %v3682_v53, 5 }
 0x1d1   : > { %v3679_v32 = vor.u32 %v3678_v47, %v3674_v55 }
 0x1d2   : > { %v3665_v3 = vrot.slane %v3663_v5, 4  ;;  %v11219_v5 = vld [vmem:[%s12441_s12 + $0x30] sm:$0xe]  ;;  %v2866_v40 = vrot.slane %v2864_v39, 4 }
 0x1d3   : > { %v11237_v15 = vrot.slane %v11219_v5, 9 }
 0x1d4   : > { %v3669_v21 = vor.u32 %v3668_v63, %v3665_v3  ;;  %v3680_v3 = vrot.slane %v3679_v32, 4  ;;  %v2867_v63 = vrot.slane %v13244_v33, 5 }
 0x1d5   : > { %v13236_v18 = vpop.f32.mrf.mxu0  ;;  %v2865_v59 = vsel %vm12457_vm5, %v11237_v15, %v2864_v39  ;;  %v2155_v15 = vrot.slane %v2154_v31, 4  ;;  %v2159_v39 = vrot.slane %v2157_v19, 5 }
 0x1d6   : > { %v3670_v56 = vrot.slane %v3669_v21, 4  ;;  %v3685_v43 = vsel %vm12463_vm6, %v3680_v3, %v3684_v38  ;;  %v2975_v1 = vunpack.c.l.b16 %v2865_v59  ;;  %v2165_v21 = vshll.u32 %v11152_v13, 16  ;;  %v11411_v3 = vld [vmem:[%s12441_s12 + $0x4c] sm:$0xf] }
 0x1d7   : > { %v4031_v47 = vunpack.c.l.b16 %v3685_v43  ;;  %v2868_v4 = vsel %vm12457_vm5, %v2866_v40, %v2867_v63  ;;  %v2150_v38 = vsel %vm12463_vm6, %v2145_v16, %v2149_v50  ;;  %v3687_v40 = vshrl.u32 %v11410_v51, 16  ;;  %v11412_v63 = vld [vmem:[%s12441_s12 + $0x50] sm:$0x1] }
 0x1d8   : > { %v3675_v41 = vsel %vm12463_vm6, %v3670_v56, %v3674_v55  ;;  %v2162_v55 = vshrl.u32 %v11152_v13, 16  ;;  %v2976_v53 = vunpack.c.l.b16 %v2868_v4  ;;  %v2175_v56 = vshrl.u32 %v11153_v14, 16  ;;  %v11156_v4 = vld [vmem:[%s12441_s12 + $0x40] sm:$0xf] }
 0x1d9   : > { %v4030_v0 = vunpack.c.l.b16 %v3675_v41  ;;  %v2167_v41 = vrot.slane %v2165_v21, 5  ;;  %v3696_v31 = vshll.u32 %v11411_v3, 16  ;;  %v3700_v19 = vshrl.u32 %v11411_v3, 16 }
 0x1da   : > { %v3008_v5 = vpack.c.b16 %v2976_v53, %v2975_v1  ;;  %v2164_v13 = vrot.slane %v2162_v55, 4  ;;  %v13270_v59 = vrot.slane %v2171_v61, 5  ;;  %v2177_v50 = vrot.slane %v2175_v56, 4 }
 0x1db   : > { %v4063_v32 = vpack.c.b16 %v4031_v47, %v4030_v0  ;;  %v2160_v0 = vsel %vm12463_vm6, %v2155_v15, %v2159_v39  ;;  %v3689_v16 = vrot.slane %v3687_v40, 4  ;;  %v2527_v1 = vunpack.c.l.b16 %v2150_v38  ;;  %v11220_v40 = vld [vmem:[%s12441_s12 + $0x3c] sm:$0xe] }
 0x1dc   : > { %v2168_v55 = vor.u32 %v2167_v41, %v2164_v13  ;;  %v3698_v21 = vrot.slane %v3696_v31, 5  ;;  %v2528_v47 = vunpack.c.l.b16 %v2160_v0  ;;  %v2178_v15 = vor.u32 %v2177_v50, %v13270_v59  ;;  %v12061_v0 = vld [vmem:[%s12441_s12 + $0x48] sm:$0xff] }
 0x1dd   : > { %v13248_v45 = vpop.f32.mrf.mxu0  ;;  %v2871_v39 = vrot.slane %v11156_v4, 5  ;;  %v2181_v61 = vshll.u32 %v13244_v33, 16  ;;  %v11238_v13 = vrot.slane %v11220_v40, 9  ;;  %v2199_v40 = vshrl.u32 %v11156_v4, 16 }
 0x1de   : > { %11256 = vmatmul.msk.bf16.gmra.mxu1 %vm17414_vm7, %v3008_v5  ;;  %v3706_v5 = vshll.u32 %v11412_v63, 16  ;;  %v2169_v38 = vrot.slane %v2168_v55, 4  ;;  %v2561_v31 = vpack.c.b16 %v2528_v47, %v2527_v1  ;;  %11384 = vmatmul.msk.bf16.gmra.mxu2 %vm17414_vm7, %v12061_v0  ;;  %v11413_v0 = vld [vmem:[%s12441_s12 + $0x54] sm:$0xf] }
 0x1df   : > { %11456 = vmatmul.msk.bf16.gmra.mxu3 %vm17414_vm7, %v4063_v32  ;;  %v3702_v32 = vrot.slane %v3700_v19, 4  ;;  %v2873_v41 = vrot.slane %v2871_v39, 4  ;;  %v11155_v19 = vld [vmem:[%s12441_s12 + $0x3c] sm:$0xf]  ;;  %v2872_v55 = vsel %vm12457_vm5, %v11238_v13, %v2871_v39 }
 0x1e0   : > { %11199 = vmatmul.msk.bf16.gmra.mxu0 %vm17414_vm7, %v2560_v12  ;;  %v3690_v12 = vshll.u32 %v11410_v51, 16  ;;  %v3708_v3 = vrot.slane %v3706_v5, 5  ;;  %v2977_v1 = vunpack.c.l.b16 %v2872_v55  ;;  %v2189_v47 = vshll.u32 %v11155_v19, 16 }
 0x1e1   : > { %v3703_v51 = vor.u32 %v3702_v32, %v3698_v21  ;;  %v2201_v55 = vrot.slane %v2199_v40, 4 }
 0x1e2   : > { %v3692_v43 = vrot.slane %v3690_v12, 5  ;;  %v1194_v12 = vadd.f32 %v13183_v30, %v12676_v34  ;;  %v2183_v34 = vrot.slane %v2181_v61, 5  ;;  %v1196_v61 = vadd.f32 %v13202_v23, %v12695_v49 }
 0x1e3   : > { %v3704_v63 = vrot.slane %v3703_v51, 4  ;;  %v2195_v51 = vshll.u32 %v11156_v4, 16  ;;  %v3711_v4 = vshrl.u32 %v11413_v0, 16  ;;  %v3714_v49 = vshll.u32 %v11413_v0, 16 }
 0x1e4   : > { %v3693_v53 = vor.u32 %v3692_v43, %v3689_v16  ;;  %v13282_v16 = vld [vmem:[%s12441_s12 + $0x44] sm:$0x1]  ;;  %v2179_v43 = vrot.slane %v2178_v15, 4 }
 0x1e5   : > { %v13266_v14 = vpop.f32.mrf.mxu0  ;;  %v2874_v32 = vrot.slane %v13282_v16, 5  ;;  %v3709_v30 = vsel %vm12463_vm6, %v3704_v63, %v3708_v3  ;;  %v2174_v3 = vsel %vm12463_vm6, %v2169_v38, %v13270_v59  ;;  %v11415_v38 = vld [vmem:[%s12441_s12 + $0x5c] sm:$0x1] }
 0x1e6   : > { %v3694_v56 = vrot.slane %v3693_v53, 4  ;;  %v4033_v15 = vunpack.c.l.b16 %v3709_v30 }
 0x1e8   : > { %v3699_v50 = vsel %vm12463_vm6, %v3694_v56, %v3698_v21  ;;  %v2186_v21 = vshrl.u32 %v11155_v19, 16  ;;  %v2875_v56 = vsel %vm12457_vm5, %v2873_v41, %v2874_v32  ;;  %v2184_v19 = vsel %vm12463_vm6, %v2179_v43, %v2183_v34 }
 0x1e9   : > { %v4032_v53 = vunpack.c.l.b16 %v3699_v50  ;;  %v2978_v39 = vunpack.c.l.b16 %v2875_v56  ;;  %v2191_v50 = vrot.slane %v2189_v47, 5  ;;  %v3713_v43 = vrot.slane %v3711_v4, 4  ;;  %v13314_v47 = vld [vmem:[%s12441_s12 + $0x4c] sm:$0xf] }
 0x1ea   : > { %v2188_v41 = vrot.slane %v2186_v21, 4  ;;  %v3716_v32 = vrot.slane %v3714_v49, 5  ;;  %v2529_v34 = vunpack.c.l.b16 %v2174_v3  ;;  %v2530_v30 = vunpack.c.l.b16 %v2184_v19  ;;  %v11221_v3 = vld [vmem:[%s12441_s12 + $0x48] sm:$0xe]  ;;  %v12062_v49 = vld [vmem:[%s12441_s12 + $0x54] sm:$0xff] }
 0x1eb   : > { %v4064_v13 = vpack.c.b16 %v4033_v15, %v4032_v53  ;;  %v13308_v53 = vrot.slane %v2195_v51, 5  ;;  %v2878_v40 = vrot.slane %v13314_v47, 5  ;;  %v1199_v19 = vadd.f32 %v13216_v36, %v12705_v8 }
 0x1ec   : > { %v2192_v21 = vor.u32 %v2191_v50, %v2188_v41  ;;  %v3717_v15 = vor.u32 %v3716_v32, %v3713_v43  ;;  %v11239_v41 = vrot.slane %v11221_v3, 9 }
 0x1ed   : > { %v1588_v33 = vpop.f32.mrf.mxu0  ;;  %v2202_v51 = vor.u32 %v2201_v55, %v13308_v53  ;;  %v2880_v50 = vrot.slane %v2878_v40, 4 }
 0x1ee   : > { %v13289_v5 = vadd.f32 %v1588_v33, %v1194_v12  ;;  %v3009_v12 = vpack.c.b16 %v2978_v39, %v2977_v1  ;;  %v3730_v39 = vshll.u32 %v11415_v38, 16  ;;  %v2193_v4 = vrot.slane %v2192_v21, 4  ;;  %11385 = vmatmul.msk.bf16.gmra.mxu2 %vm17414_vm7, %v12062_v49 }
 0x1ef   : > { %11457 = vmatmul.msk.bf16.gmra.mxu3 %vm17414_vm7, %v4064_v13  ;;  %v2205_v13 = vshll.u32 %v13282_v16, 16  ;;  %v2203_v55 = vrot.slane %v2202_v51, 4  ;;  %v2879_v43 = vsel %vm12457_vm5, %v11239_v41, %v2878_v40  ;;  %v1201_v51 = vadd.f32 %v13236_v18, %v12731_v27 }
 0x1f0   : > { %11200 = vmatmul.msk.bf16.gmra.mxu0 %vm17414_vm7, %v2561_v31  ;;  %v11414_v31 = vld [vmem:[%s12441_s12 + $0x58] sm:$0xf]  ;;  %11257 = vmatmul.msk.bf16.gmra.mxu1 %vm17414_vm7, %v3009_v12  ;;  %v3732_v0 = vrot.slane %v3730_v39, 5  ;;  %v2198_v40 = vsel %vm12463_vm6, %v2193_v4, %v13308_v53  ;;  %v2223_v41 = vshrl.u32 %v13314_v47, 16 }
 0x1f1   : > { %v3720_v23 = vshll.u32 %v11414_v31, 16  ;;  %v3724_v63 = vshrl.u32 %v11414_v31, 16  ;;  %v2562_v31 = vpack.c.b16 %v2530_v30, %v2529_v34  ;;  %v2207_v32 = vrot.slane %v2205_v13, 5 }
 0x1f2   : > { %v2979_v30 = vunpack.c.l.b16 %v2879_v43  ;;  %v2531_v49 = vunpack.c.l.b16 %v2198_v40 }
 0x1f3   : > { %v3722_v1 = vrot.slane %v3720_v23, 5  ;;  %v3726_v56 = vrot.slane %v3724_v63, 4  ;;  %v13324_v23 = vld [vmem:[%s12441_s12 + $0x50] sm:$0x1]  ;;  %v2208_v13 = vsel %vm12463_vm6, %v2203_v55, %v2207_v32 }
 0x1f4   : > { %v2881_v8 = vrot.slane %v13324_v23, 5 }
 0x1f5   : > { %v1590_v33 = vpop.f32.mrf.mxu0  ;;  %v3727_v12 = vor.u32 %v3726_v56, %v3722_v1 }
 0x1f6   : > { %v13310_v59 = vadd.f32 %v1590_v33, %v1196_v61  ;;  %v3718_v61 = vrot.slane %v3717_v15, 4  ;;  %v2882_v21 = vsel %vm12457_vm5, %v2880_v50, %v2881_v8  ;;  %v11158_v15 = vld [vmem:[%s12441_s12 + $0x48] sm:$0xf]  ;;  %v11417_v50 = vld [vmem:[%s12441_s12 + $0x64] sm:$0xf] }
 0x1f7   : > { %v3728_v33 = vrot.slane %v3727_v12, 4  ;;  %v2980_v56 = vunpack.c.l.b16 %v2882_v21  ;;  %v11416_v12 = vld [vmem:[%s12441_s12 + $0x60] sm:$0xf]  ;;  %v2213_v3 = vshll.u32 %v11158_v15, 16  ;;  %v3744_v53 = vshll.u32 %v11417_v50, 16 }
 0x1f8   : > { %v3723_v63 = vsel %vm12463_vm6, %v3718_v61, %v3722_v1  ;;  %v3735_v27 = vshrl.u32 %v11416_v12, 16  ;;  %v3738_v18 = vshll.u32 %v11416_v12, 16 }
 0x1f9   : > { %v4034_v38 = vunpack.c.l.b16 %v3723_v63  ;;  %v3733_v34 = vsel %vm12463_vm6, %v3728_v33, %v3732_v0  ;;  %v3010_v61 = vpack.c.b16 %v2980_v56, %v2979_v30  ;;  %v2210_v0 = vshrl.u32 %v11158_v15, 16  ;;  %v11162_v30 = vld [vmem:[%s12441_s12 + $0x58] sm:$0xf] }
 0x1fa   : > { %v4035_v1 = vunpack.c.l.b16 %v3733_v34  ;;  %v2532_v33 = vunpack.c.l.b16 %v2208_v13  ;;  %v3737_v55 = vrot.slane %v3735_v27, 4  ;;  %v2215_v43 = vrot.slane %v2213_v3, 5  ;;  %v11222_v13 = vld [vmem:[%s12441_s12 + $0x54] sm:$0xe]  ;;  %v13365_v27 = vld [vmem:[%s12441_s12 + $0x5c] sm:$0x1] }
 0x1fb   : > { %v3746_v32 = vrot.slane %v3744_v53, 5  ;;  %v2225_v34 = vrot.slane %v2223_v41, 4  ;;  %v2885_v56 = vrot.slane %v11162_v30, 5 }
 0x1fc   : > { %v4065_v39 = vpack.c.b16 %v4035_v1, %v4034_v38  ;;  %v3740_v38 = vrot.slane %v3738_v18, 5 }
 0x1fd   : > { %v1593_v16 = vpop.f32.mrf.mxu0  ;;  %v2887_v3 = vrot.slane %v2885_v56, 4 }
 0x1fe   : > { %v13331_v36 = vadd.f32 %v1593_v16, %v1199_v19  ;;  %v2219_v19 = vshll.u32 %v13314_v47, 16  ;;  %v11418_v16 = vld [vmem:[%s12441_s12 + $0x68] sm:$0x1]  ;;  %v2212_v47 = vrot.slane %v2210_v0, 4  ;;  %v3741_v1 = vor.u32 %v3740_v38, %v3737_v55 }
 0x1ff   : > { %11458 = vmatmul.msk.bf16.gmra.mxu3 %vm17414_vm7, %v4065_v39  ;;  %v3754_v15 = vshll.u32 %v11418_v16, 16  ;;  %v11240_v0 = vrot.slane %v11222_v13, 9 }
 0x200   : > { %11201 = vmatmul.msk.bf16.gmra.mxu0 %vm17414_vm7, %v2562_v31  ;;  %11258 = vmatmul.msk.bf16.gmra.mxu1 %vm17414_vm7, %v3010_v61  ;;  %v3748_v31 = vshrl.u32 %v11417_v50, 16  ;;  %v13356_v8 = vrot.slane %v2219_v19, 5  ;;  %v3742_v39 = vrot.slane %v3741_v1, 4  ;;  %v1204_v61 = vadd.f32 %v13248_v45, %v12747_v58  ;;  %v12063_v50 = vld [vmem:[%s12441_s12 + $0x60] sm:$0xff] }
 0x201   : > { %v3756_v40 = vrot.slane %v3754_v15, 5  ;;  %v2216_v12 = vor.u32 %v2215_v43, %v2212_v47  ;;  %v2563_v19 = vpack.c.b16 %v2532_v33, %v2531_v49  ;;  %v2886_v58 = vsel %vm12457_vm5, %v11240_v0, %v2885_v56  ;;  %11386 = vmatmul.msk.bf16.gmra.mxu2 %vm17414_vm7, %v12063_v50  ;;  %v11161_v49 = vld [vmem:[%s12441_s12 + $0x54] sm:$0xf]  ;;  %v11420_v0 = vld [vmem:[%s12441_s12 + $0x70] sm:$0xf] }
 0x202   : > { %v3750_v21 = vrot.slane %v3748_v31, 4  ;;  %v2226_v41 = vor.u32 %v2225_v34, %v13356_v8  ;;  %v3747_v18 = vsel %vm12463_vm6, %v3742_v39, %v3746_v32  ;;  %v2888_v45 = vrot.slane %v13365_v27, 5 }
 0x203   : > { %v4036_v16 = vunpack.c.l.b16 %v3747_v18  ;;  %v2981_v38 = vunpack.c.l.b16 %v2886_v58  ;;  %v2217_v47 = vrot.slane %v2216_v12, 4  ;;  %v2237_v56 = vshll.u32 %v11161_v49, 16 }
 0x204   : > { %v2227_v34 = vrot.slane %v2226_v41, 4  ;;  %v2247_v12 = vshrl.u32 %v11162_v30, 16  ;;  %v3768_v41 = vshll.u32 %v11420_v0, 16  ;;  %v3772_v50 = vshrl.u32 %v11420_v0, 16  ;;  %v13401_v0 = vld [vmem:[%s12441_s12 + $0x68] sm:$0x1] }
 0x205   : > { %v1595_v4 = vpop.f32.mrf.mxu0  ;;  %v2222_v13 = vsel %vm12463_vm6, %v2217_v47, %v13356_v8  ;;  %v2239_v8 = vrot.slane %v2237_v56, 5  ;;  %v11223_v56 = vld [vmem:[%s12441_s12 + $0x60] sm:$0xe] }
 0x206   : > { %v13353_v63 = vadd.f32 %v1595_v4, %v1201_v51  ;;  %v3751_v51 = vor.u32 %v3750_v21, %v3746_v32  ;;  %v2229_v4 = vshll.u32 %v13324_v23, 16  ;;  %v2889_v23 = vsel %vm12457_vm5, %v2887_v3, %v2888_v45 }
 0x207   : > { %v2982_v32 = vunpack.c.l.b16 %v2889_v23  ;;  %v2234_v21 = vshrl.u32 %v11161_v49, 16  ;;  %v2249_v45 = vrot.slane %v2247_v12, 4  ;;  %v3770_v49 = vrot.slane %v3768_v41, 5  ;;  %v12064_v12 = vld [vmem:[%s12441_s12 + $0x6c] sm:$0xff] }
 0x208   : > { %v3752_v53 = vrot.slane %v3751_v51, 4  ;;  %v2231_v1 = vrot.slane %v2229_v4, 5  ;;  %v11419_v51 = vld [vmem:[%s12441_s12 + $0x6c] sm:$0xf] }
 0x209   : > { %v3011_v39 = vpack.c.b16 %v2982_v32, %v2981_v38  ;;  %v3759_v3 = vshrl.u32 %v11419_v51, 16  ;;  %v11165_v38 = vld [vmem:[%s12441_s12 + $0x64] sm:$0xf] }
 0x20a   : > { %v3757_v33 = vsel %vm12463_vm6, %v3752_v53, %v3756_v40  ;;  %v1206_v40 = vadd.f32 %v13266_v14, %v12773_v7  ;;  %v2232_v7 = vsel %vm12463_vm6, %v2227_v34, %v2231_v1  ;;  %v2236_v14 = vrot.slane %v2234_v21, 4 }
 0x20b   : > { %v4037_v43 = vunpack.c.l.b16 %v3757_v33  ;;  %v2534_v33 = vunpack.c.l.b16 %v2232_v7  ;;  %v2892_v32 = vrot.slane %v11165_v38, 5  ;;  %v2895_v7 = vrot.slane %v13401_v0, 5 }
 0x20c   : > { %v2240_v34 = vor.u32 %v2239_v8, %v2236_v14  ;;  %v11164_v8 = vld [vmem:[%s12441_s12 + $0x60] sm:$0xf] }
 0x20d   : > { %v1598_v31 = vpop.f32.mrf.mxu0  ;;  %v4066_v15 = vpack.c.b16 %v4037_v43, %v4036_v16  ;;  %v2533_v16 = vunpack.c.l.b16 %v2222_v13  ;;  %v3774_v43 = vrot.slane %v3772_v50, 4  ;;  %v2894_v13 = vrot.slane %v2892_v32, 4 }
 0x20e   : > { %v13373_v55 = vadd.f32 %v1598_v31, %v1204_v61  ;;  %v2243_v61 = vshll.u32 %v11162_v30, 16  ;;  %v11421_v31 = vld [vmem:[%s12441_s12 + $0x74] sm:$0x1]  ;;  %v3761_v30 = vrot.slane %v3759_v3, 4 }
 0x20f   : > { %11459 = vmatmul.msk.bf16.gmra.mxu3 %vm17414_vm7, %v4066_v15  ;;  %v3778_v23 = vshll.u32 %v11421_v31, 16  ;;  %v3775_v21 = vor.u32 %v3774_v43, %v3770_v49  ;;  %v2261_v43 = vshll.u32 %v11164_v8, 16 }
 0x210   : > { %11202 = vmatmul.msk.bf16.gmra.mxu0 %vm17414_vm7, %v2563_v19  ;;  %11259 = vmatmul.msk.bf16.gmra.mxu1 %vm17414_vm7, %v3011_v39  ;;  %v3762_v19 = vshll.u32 %v11419_v51, 16  ;;  %v2245_v58 = vrot.slane %v2243_v61, 5  ;;  %v2253_v51 = vshll.u32 %v13365_v27, 16  ;;  %v2564_v61 = vpack.c.b16 %v2534_v33, %v2533_v16 }
 0x211   : > { %v3780_v15 = vrot.slane %v3778_v23, 5  ;;  %v2241_v27 = vrot.slane %v2240_v34, 4  ;;  %11387 = vmatmul.msk.bf16.gmra.mxu2 %vm17414_vm7, %v12064_v12  ;;  %v2258_v33 = vshrl.u32 %v11164_v8, 16 }
 0x212   : > { %v3764_v4 = vrot.slane %v3762_v19, 5  ;;  %v2250_v39 = vor.u32 %v2249_v45, %v2245_v58  ;;  %v3776_v19 = vrot.slane %v3775_v21, 4  ;;  %v2255_v16 = vrot.slane %v2253_v51, 5 }
 0x213   : > { %v2246_v34 = vsel %vm12463_vm6, %v2241_v27, %v2245_v58  ;;  %v2267_v21 = vshll.u32 %v11165_v38, 16  ;;  %v2260_v12 = vrot.slane %v2258_v33, 4  ;;  %v2263_v58 = vrot.slane %v2261_v43, 5 }
 0x214   : > { %v3765_v47 = vor.u32 %v3764_v4, %v3761_v30  ;;  %v3781_v31 = vsel %vm12463_vm6, %v3776_v19, %v3780_v15  ;;  %v2251_v4 = vrot.slane %v2250_v39, 4  ;;  %v2271_v15 = vshrl.u32 %v11165_v38, 16  ;;  %v11424_v19 = vld [vmem:[%s12441_s12 + $0x80] sm:$0x1] }
 0x215   : > { %v1600_v18 = vpop.f32.mrf.mxu0  ;;  %v4039_v45 = vunpack.c.l.b16 %v3781_v31  ;;  %v2535_v38 = vunpack.c.l.b16 %v2246_v34  ;;  %v11168_v31 = vld [vmem:[%s12441_s12 + $0x70] sm:$0xf] }
 0x216   : > { %v13393_v53 = vadd.f32 %v1600_v18, %v1206_v40  ;;  %v3766_v1 = vrot.slane %v3765_v47, 4  ;;  %v11241_v40 = vrot.slane %v11223_v56, 9  ;;  %v11423_v56 = vld [vmem:[%s12441_s12 + $0x7c] sm:$0xf]  ;;  %v2273_v8 = vrot.slane %v2271_v15, 4 }
 0x217   : > { %v12065_v15 = vld [vmem:[%s12441_s12 + $0x78] sm:$0xff] }
 0x218   : > { %v3771_v3 = vsel %vm12463_vm6, %v3766_v1, %v3770_v49  ;;  %v2893_v18 = vsel %vm12457_vm5, %v11241_v40, %v2892_v32  ;;  %v2896_v49 = vsel %vm12457_vm5, %v2894_v13, %v2895_v7  ;;  %v11422_v32 = vld [vmem:[%s12441_s12 + $0x78] sm:$0xf]  ;;  %v2256_v1 = vsel %vm12463_vm6, %v2251_v4, %v2255_v16 }
 0x219   : > { %v4038_v50 = vunpack.c.l.b16 %v3771_v3  ;;  %v2983_v30 = vunpack.c.l.b16 %v2893_v18  ;;  %v3783_v39 = vshrl.u32 %v11422_v32, 16  ;;  %v3786_v51 = vshll.u32 %v11422_v32, 16 }
 0x21a   : > { %v3792_v40 = vshll.u32 %v11423_v56, 16  ;;  %v3796_v13 = vshrl.u32 %v11423_v56, 16  ;;  %v2536_v18 = vunpack.c.l.b16 %v2256_v1  ;;  %v13430_v7 = vrot.slane %v2267_v21, 5  ;;  %v11167_v56 = vld [vmem:[%s12441_s12 + $0x6c] sm:$0xf] }
 0x21b   : > { %v4067_v47 = vpack.c.b16 %v4039_v45, %v4038_v50  ;;  %v3788_v50 = vrot.slane %v3786_v51, 5  ;;  %v3802_v16 = vshll.u32 %v11424_v19, 16  ;;  %v13435_v45 = vpop.f32.mrf.mxu2 }
 0x21c   : > { %v3794_v27 = vrot.slane %v3792_v40, 5  ;;  %v3798_v4 = vrot.slane %v3796_v13, 4  ;;  %17468 = vst [vmem:[#allocation49_spill] sm:$0xff] %v13435_v45  ;;  %v2565_v1 = vpack.c.b16 %v2536_v18, %v2535_v38  ;;  %v2274_v21 = vor.u32 %v2273_v8, %v13430_v7 }
 0x21d   : > { %v1909_v41 = vpop.f32.mrf.mxu0  ;;  %v3804_v43 = vrot.slane %v3802_v16, 5  ;;  %v2285_v8 = vshll.u32 %v11167_v56, 16 }
 0x21e   : > { %v13409_v14 = vadd.f32 %v1909_v41, %v13289_v5  ;;  %v2984_v5 = vunpack.c.l.b16 %v2896_v49  ;;  %v3785_v41 = vrot.slane %v3783_v39, 4  ;;  %v2899_v49 = vrot.slane %v11168_v31, 5  ;;  %v13442_v39 = vld [vmem:[%s12441_s12 + $0x74] sm:$0x1] }
 0x21f   : > { %11460 = vmatmul.msk.bf16.gmra.mxu3 %vm17414_vm7, %v4067_v47  ;;  %v3799_v47 = vor.u32 %v3798_v4, %v3794_v27  ;;  %v2902_v19 = vrot.slane %v13442_v39, 5  ;;  %v2275_v4 = vrot.slane %v2274_v21, 4  ;;  %v2287_v21 = vrot.slane %v2285_v8, 5 }
 0x220   : > { %11203 = vmatmul.msk.bf16.gmra.mxu0 %vm17414_vm7, %v2564_v61  ;;  %v3012_v23 = vpack.c.b16 %v2984_v5, %v2983_v30  ;;  %v3789_v30 = vor.u32 %v3788_v50, %v3785_v41  ;;  %v2264_v5 = vor.u32 %v2263_v58, %v2260_v12  ;;  %v2901_v34 = vrot.slane %v2899_v49, 4 }
 0x221   : > { %v3800_v40 = vrot.slane %v3799_v47, 4  ;;  %11388 = vmatmul.msk.bf16.gmra.mxu2 %vm17414_vm7, %v12065_v15  ;;  %v11425_v15 = vld [vmem:[%s12441_s12 + $0x84] sm:$0xf] }
 0x222   : > { %11260 = vmatmul.msk.bf16.gmra.mxu1 %vm17414_vm7, %v3012_v23  ;;  %v3790_v33 = vrot.slane %v3789_v30, 4  ;;  %v11224_v23 = vld [vmem:[%s12441_s12 + $0x6c] sm:$0xe]  ;;  %v2265_v50 = vrot.slane %v2264_v5, 4  ;;  %v2903_v30 = vsel %vm12457_vm5, %v2901_v34, %v2902_v19  ;;  %v2291_v5 = vshll.u32 %v11168_v31, 16 }
 0x223   : > { %v11242_v32 = vrot.slane %v11224_v23, 9  ;;  %v3805_v38 = vsel %vm12463_vm6, %v3800_v40, %v3804_v43  ;;  %v13461_v43 = vpop.f32.mrf.mxu2  ;;  %v13463_v23 = vpop.f32.mrf.mxu3 }
 0x224   : > { %v3795_v51 = vsel %vm12463_vm6, %v3790_v33, %v3794_v27  ;;  %v2282_v27 = vshrl.u32 %v11167_v56, 16  ;;  %v2295_v33 = vshrl.u32 %v11168_v31, 16  ;;  %17469 = vst [vmem:[#allocation50_spill] sm:$0xff] %v13463_v23  ;;  %v2270_v34 = vsel %vm12463_vm6, %v2265_v50, %v13430_v7  ;;  %v11426_v56 = vld [vmem:[%s12441_s12 + $0x88] sm:$0xf] }
 0x225   : > { %v1911_v61 = vpop.f32.mrf.mxu0  ;;  %v4040_v12 = vunpack.c.l.b16 %v3795_v51  ;;  %v2900_v58 = vsel %vm12457_vm5, %v11242_v32, %v2899_v49  ;;  %v3807_v31 = vshrl.u32 %v11425_v15, 16  ;;  %v3810_v51 = vshll.u32 %v11425_v15, 16  ;;  %v11427_v50 = vld [vmem:[%s12441_s12 + $0x8c] sm:$0x1] }
 0x226   : > { %v13427_v3 = vadd.f32 %v1911_v61, %v13310_v59  ;;  %v13433_v59 = vpop.f32.mrf.mxu1  ;;  %v2277_v61 = vshll.u32 %v13401_v0, 16  ;;  %v2985_v18 = vunpack.c.l.b16 %v2900_v58  ;;  %v4041_v0 = vunpack.c.l.b16 %v3805_v38 }
 0x227   : > { %17467 = vst [vmem:[#allocation48_spill] sm:$0xff] %v13433_v59  ;;  %v3816_v40 = vshll.u32 %v11426_v56, 16  ;;  %v13474_v58 = vrot.slane %v2291_v5, 5  ;;  %v2297_v19 = vrot.slane %v2295_v33, 4  ;;  %v3809_v38 = vrot.slane %v3807_v31, 4 }
 0x228   : > { %v2279_v16 = vrot.slane %v2277_v61, 5  ;;  %v4068_v47 = vpack.c.b16 %v4041_v0, %v4040_v12  ;;  %v2301_v15 = vshll.u32 %v13442_v39, 16  ;;  %v11225_v31 = vld [vmem:[%s12441_s12 + $0x78] sm:$0xe] }
 0x229   : > { %v3818_v0 = vrot.slane %v3816_v40, 5  ;;  %v11243_v40 = vrot.slane %v11225_v31, 9 }
 0x22a   : > { %v2280_v12 = vsel %vm12463_vm6, %v2275_v4, %v2279_v16  ;;  %v3826_v4 = vshll.u32 %v11427_v50, 16  ;;  %v2298_v16 = vor.u32 %v2297_v19, %v13474_v58  ;;  %v11170_v19 = vld [vmem:[%s12441_s12 + $0x78] sm:$0xf]  ;;  %v13496_v50 = vld [vmem:[%s12441_s12 + $0x80] sm:$0x1] }
 0x22b   : > { %v13486_v5 = vpop.f32.mrf.mxu2 }
 0x22c   : > { %v2299_v39 = vrot.slane %v2298_v16, 4 }
 0x22d   : > { %v1914_v13 = vpop.f32.mrf.mxu0 }
 0x22e   : > { %v13451_v41 = vadd.f32 %v1914_v13, %v13331_v36  ;;  %v2986_v36 = vunpack.c.l.b16 %v2903_v30  ;;  %v13459_v49 = vpop.f32.mrf.mxu1  ;;  %v3820_v13 = vshrl.u32 %v11426_v56, 16  ;;  %v2538_v30 = vunpack.c.l.b16 %v2280_v12  ;;  %v12066_v12 = vld [vmem:[%s12441_s12 + $0x84] sm:$0xff] }
 0x22f   : > { %11461 = vmatmul.msk.bf16.gmra.mxu3 %vm17414_vm7, %v4068_v47  ;;  %v3828_v56 = vrot.slane %v3826_v4, 5  ;;  %v2306_v4 = vshrl.u32 %v11170_v19, 16 }
 0x230   : > { %11204 = vmatmul.msk.bf16.gmra.mxu0 %vm17414_vm7, %v2565_v1  ;;  %v3013_v32 = vpack.c.b16 %v2986_v36, %v2985_v18  ;;  %v2284_v1 = vrot.slane %v2282_v27, 4  ;;  %v3812_v18 = vrot.slane %v3810_v51, 5  ;;  %v2537_v27 = vunpack.c.l.b16 %v2270_v34  ;;  %v13481_v36 = vld [vmem:[%s12441_s12 + $0x7c] sm:$0xf]  ;;  %v13490_v34 = vpop.f32.mrf.mxu3 }
 0x231   : > { %v2906_v33 = vrot.slane %v13481_v36, 5  ;;  %11389 = vmatmul.msk.bf16.gmra.mxu2 %vm17414_vm7, %v12066_v12  ;;  %v11428_v12 = vld [vmem:[%s12441_s12 + $0x90] sm:$0xf] }
 0x232   : > { %11261 = vmatmul.msk.bf16.gmra.mxu1 %vm17414_vm7, %v3013_v32  ;;  %v2288_v8 = vor.u32 %v2287_v21, %v2284_v1  ;;  %v3813_v47 = vor.u32 %v3812_v18, %v3809_v38  ;;  %v3822_v32 = vrot.slane %v3820_v13, 4 }
 0x233   : > { %v2908_v13 = vrot.slane %v2906_v33, 4 }
 0x234   : > { %v3814_v1 = vrot.slane %v3813_v47, 4  ;;  %v3823_v21 = vor.u32 %v3822_v32, %v3818_v0  ;;  %v2289_v51 = vrot.slane %v2288_v8, 4  ;;  %v2907_v47 = vsel %vm12457_vm5, %v11243_v40, %v2906_v33 }
 0x235   : > { %v1916_v61 = vpop.f32.mrf.mxu0  ;;  %v2909_v32 = vrot.slane %v13496_v50, 5 }
 0x236   : > { %v13477_v7 = vadd.f32 %v1916_v61, %v13353_v63  ;;  %v13484_v63 = vpop.f32.mrf.mxu1  ;;  %v2566_v61 = vpack.c.b16 %v2538_v30, %v2537_v27  ;;  %v3819_v38 = vsel %vm12463_vm6, %v3814_v1, %v3818_v0  ;;  %v3824_v18 = vrot.slane %v3823_v21, 4 }
 0x237   : > { %v4042_v45 = vunpack.c.l.b16 %v3819_v38  ;;  %v2303_v27 = vrot.slane %v2301_v15, 5  ;;  %v2987_v0 = vunpack.c.l.b16 %v2907_v47  ;;  %v2309_v1 = vshll.u32 %v11170_v19, 16  ;;  %v13514_v15 = vpop.f32.mrf.mxu2 }
 0x238   : > { %v3829_v30 = vsel %vm12463_vm6, %v3824_v18, %v3828_v56  ;;  %v2910_v33 = vsel %vm12457_vm5, %v2908_v13, %v2909_v32  ;;  %v2294_v56 = vsel %vm12463_vm6, %v2289_v51, %v13474_v58  ;;  %v2308_v19 = vrot.slane %v2306_v4, 4  ;;  %v13526_v18 = vpop.f32.mrf.mxu3 }
 0x239   : > { %v4043_v16 = vunpack.c.l.b16 %v3829_v30  ;;  %v2988_v21 = vunpack.c.l.b16 %v2910_v33  ;;  %v2304_v31 = vsel %vm12463_vm6, %v2299_v39, %v2303_v27  ;;  %v2311_v13 = vrot.slane %v2309_v1, 5 }
 0x23a   : > { %v2319_v38 = vshrl.u32 %v13481_v36, 16  ;;  %v3831_v58 = vshrl.u32 %v11428_v12, 16  ;;  %v3834_v51 = vshll.u32 %v11428_v12, 16  ;;  %v2539_v30 = vunpack.c.l.b16 %v2294_v56 }
 0x23b   : > { %v3014_v40 = vpack.c.b16 %v2988_v21, %v2987_v0  ;;  %v11430_v0 = vld [vmem:[%s12441_s12 + $0x98] sm:$0x1]  ;;  %v2540_v1 = vunpack.c.l.b16 %v2304_v31 }
 0x23c   : > { %v3836_v4 = vrot.slane %v3834_v51, 5  ;;  %v2321_v33 = vrot.slane %v2319_v38, 4 }
 0x23d   : > { %v1919_v23 = vpop.f32.mrf.mxu0  ;;  %v2567_v42 = vpack.c.b16 %v2540_v1, %v2539_v30 }
 0x23e   : > { %v13504_v8 = vadd.f32 %v1919_v23, %v13373_v55  ;;  %v13512_v55 = vpop.f32.mrf.mxu1  ;;  %v4069_v23 = vpack.c.b16 %v4043_v16, %v4042_v45  ;;  %v11429_v45 = vld [vmem:[%s12441_s12 + $0x94] sm:$0xf] }
 0x23f   : > { %v3840_v39 = vshll.u32 %v11429_v45, 16  ;;  %v3844_v47 = vshrl.u32 %v11429_v45, 16  ;;  %v3850_v45 = vshll.u32 %v11430_v0, 16  ;;  %v13538_v56 = vpop.f32.mrf.mxu2  ;;  %v12067_v0 = vld [vmem:[%s12441_s12 + $0x90] sm:$0xff] }
 0x240   : > { %11205 = vmatmul.msk.bf16.gmra.mxu0 %vm17414_vm7, %v2566_v61  ;;  %v2315_v61 = vshll.u32 %v13481_v36, 16  ;;  %11462 = vmatmul.msk.bf16.gmra.mxu3 %vm17414_vm7, %v4069_v23  ;;  %v3833_v36 = vrot.slane %v3831_v58, 4  ;;  %v2312_v23 = vor.u32 %v2311_v13, %v2308_v19  ;;  %v11173_v58 = vld [vmem:[%s12441_s12 + $0x84] sm:$0xf] }
 0x241   : > { %v3842_v21 = vrot.slane %v3840_v39, 5  ;;  %v3846_v59 = vrot.slane %v3844_v47, 4  ;;  %v3852_v2 = vrot.slane %v3850_v45, 5  ;;  %v2325_v47 = vshll.u32 %v13496_v50, 16  ;;  %11390 = vmatmul.msk.bf16.gmra.mxu2 %vm17414_vm7, %v12067_v0 }
 0x242   : > { %11262 = vmatmul.msk.bf16.gmra.mxu1 %vm17414_vm7, %v3014_v40  ;;  %v13533_v16 = vrot.slane %v2315_v61, 5  ;;  %v11174_v40 = vld [vmem:[%s12441_s12 + $0x88] sm:$0xf]  ;;  %v3837_v12 = vor.u32 %v3836_v4, %v3833_v36  ;;  %v11226_v61 = vld [vmem:[%s12441_s12 + $0x84] sm:$0xe]  ;;  %v2313_v39 = vrot.slane %v2312_v23, 4  ;;  %v13554_v23 = vpop.f32.mrf.mxu3 }
 0x243   : > { %v3847_v31 = vor.u32 %v3846_v59, %v3842_v21  ;;  %v11244_v19 = vrot.slane %v11226_v61, 9  ;;  %v13546_v36 = vld [vmem:[%s12441_s12 + $0x8c] sm:$0x1]  ;;  %v2333_v50 = vshll.u32 %v11173_v58, 16 }
 0x244   : > { %v3838_v51 = vrot.slane %v3837_v12, 4  ;;  %v2322_v38 = vor.u32 %v2321_v33, %v13533_v16  ;;  %v2330_v12 = vshrl.u32 %v11173_v58, 16  ;;  %v2916_v1 = vrot.slane %v13546_v36, 5 }
 0x245   : > { %v1921_v32 = vpop.f32.mrf.mxu0  ;;  %v3848_v60 = vrot.slane %v3847_v31, 4  ;;  %v2343_v31 = vshrl.u32 %v11174_v40, 16 }
 0x246   : > { %v13530_v27 = vadd.f32 %v1921_v32, %v13393_v53  ;;  %v13536_v53 = vpop.f32.mrf.mxu1  ;;  %v2913_v32 = vrot.slane %v11174_v40, 5  ;;  %v3843_v4 = vsel %vm12463_vm6, %v3838_v51, %v3842_v21  ;;  %v2339_v51 = vshll.u32 %v11174_v40, 16 }
 0x247   : > { %v4044_v59 = vunpack.c.l.b16 %v3843_v4  ;;  %v3853_v45 = vsel %vm12463_vm6, %v3848_v60, %v3852_v2  ;;  %v13565_v60 = vpop.f32.mrf.mxu2  ;;  %v2318_v40 = vsel %vm12463_vm6, %v2313_v39, %v13533_v16 }
 0x248   : > { %v2915_v13 = vrot.slane %v2913_v32, 4  ;;  %v2914_v30 = vsel %vm12457_vm5, %v11244_v19, %v2913_v32  ;;  %v4045_v61 = vunpack.c.l.b16 %v3853_v45  ;;  %v2541_v45 = vunpack.c.l.b16 %v2318_v40 }
 0x249   : > { %v2989_v21 = vunpack.c.l.b16 %v2914_v30  ;;  %v11431_v30 = vld [vmem:[%s12441_s12 + $0x9c] sm:$0xf] }
 0x24a   : > { %v2917_v32 = vsel %vm12457_vm5, %v2915_v13, %v2916_v1  ;;  %v4070_v4 = vpack.c.b16 %v4045_v61, %v4044_v59  ;;  %v13572_v1 = vrot.slane %v2339_v51, 5  ;;  %v3855_v16 = vshrl.u32 %v11431_v30, 16 }
 0x24b   : > { %v2990_v0 = vunpack.c.l.b16 %v2917_v32  ;;  %v3858_v39 = vshll.u32 %v11431_v30, 16 }
 0x24c   : > { %v3857_v51 = vrot.slane %v3855_v16, 4 }
 0x24d   : > { %v2643_v17 = vpop.f32.mrf.mxu0  ;;  %v3015_v13 = vpack.c.b16 %v2990_v0, %v2989_v21  ;;  %v11433_v21 = vld [vmem:[%s12441_s12 + $0xa4] sm:$0x1]  ;;  %v13590_v0 = vld [vmem:[%s12441_s12 + $0x94] sm:$0xf] }
 0x24e   : > { %v2733_v33 = vadd.f32 %v2643_v17, %v13409_v14  ;;  %v2323_v17 = vrot.slane %v2322_v38, 4  ;;  %v2327_v14 = vrot.slane %v2325_v47, 5  ;;  %v13563_v58 = vpop.f32.mrf.mxu1  ;;  %v2345_v38 = vrot.slane %v2343_v31, 4  ;;  %v11432_v47 = vld [vmem:[%s12441_s12 + $0xa0] sm:$0xf] }
 0x24f   : > { %v3860_v31 = vrot.slane %v3858_v39, 5 }
 0x250   : > { %v3179_v19 = vadd.f32 %v13459_v49, %v2733_v33  ;;  %11206 = vmatmul.msk.bf16.gmra.mxu0 %vm17414_vm7, %v2567_v42  ;;  %v2332_v49 = vrot.slane %v2330_v12, 4  ;;  %v2335_v42 = vrot.slane %v2333_v50, 5  ;;  %11463 = vmatmul.msk.bf16.gmra.mxu3 %vm17414_vm7, %v4070_v4  ;;  %v3864_v12 = vshll.u32 %v11432_v47, 16 }
 0x251   : > { %v3861_v4 = vor.u32 %v3860_v31, %v3857_v51  ;;  %v12068_v51 = vld [vmem:[%s12441_s12 + $0x9c] sm:$0xff]  ;;  %v13604_v31 = vld [vmem:[%s12441_s12 + $0x98] sm:$0x1] }
 0x252   : > { %v3500_v2 = vadd.f32 %v13461_v43, %v3179_v19  ;;  %v2328_v43 = vsel %vm12463_vm6, %v2323_v17, %v2327_v14  ;;  %11263 = vmatmul.msk.bf16.gmra.mxu1 %vm17414_vm7, %v3015_v13  ;;  %v2336_v32 = vor.u32 %v2335_v42, %v2332_v49  ;;  %v2349_v19 = vshll.u32 %v13546_v36, 16  ;;  %v13587_v14 = vpop.f32.mrf.mxu3  ;;  %v13594_v13 = vpop.f32.mrf.mxu2  ;;  %11391 = vmatmul.msk.bf16.gmra.mxu2 %vm17414_vm7, %v12068_v51 }
 0x253   : > { %v2542_v61 = vunpack.c.l.b16 %v2328_v43  ;;  %v3866_v30 = vrot.slane %v3864_v12, 5  ;;  %v2920_v49 = vrot.slane %v13590_v0, 5  ;;  %v3862_v42 = vrot.slane %v3861_v4, 4 }
 0x254   : > { %v13577_v59 = vadd.f32 %v13490_v34, %v3500_v2  ;;  %v2346_v34 = vor.u32 %v2345_v38, %v13572_v1  ;;  %v3868_v2 = vshrl.u32 %v11432_v47, 16  ;;  %v11227_v38 = vld [vmem:[%s12441_s12 + $0x90] sm:$0xe]  ;;  %v2337_v16 = vrot.slane %v2336_v32, 4 }
 0x255   : > { %v2645_v33 = vpop.f32.mrf.mxu0  ;;  %v2568_v43 = vpack.c.b16 %v2542_v61, %v2541_v45  ;;  %v11245_v39 = vrot.slane %v11227_v38, 9  ;;  %v2922_v47 = vrot.slane %v2920_v49, 4  ;;  %v2923_v61 = vrot.slane %v13604_v31, 5 }
 0x256   : > { %17470 = vst [vmem:[#allocation51_spill] sm:$0xff] %v13577_v59  ;;  %v2734_v50 = vadd.f32 %v2645_v33, %v13427_v3  ;;  %v3874_v3 = vshll.u32 %v11433_v21, 16  ;;  %v13592_v40 = vpop.f32.mrf.mxu1  ;;  %v2351_v21 = vrot.slane %v2349_v19, 5 }
 0x257   : > { %v2921_v45 = vsel %vm12457_vm5, %v11245_v39, %v2920_v49  ;;  %v2924_v4 = vsel %vm12457_vm5, %v2922_v47, %v2923_v61  ;;  %v2342_v49 = vsel %vm12463_vm6, %v2337_v16, %v13572_v1  ;;  %v11434_v47 = vld [vmem:[%s12441_s12 + $0xa8] sm:$0xf]  ;;  %v2363_v16 = vshll.u32 %v13590_v0, 16 }
 0x258   : > { %v3180_v17 = vadd.f32 %v13484_v63, %v2734_v50  ;;  %v3870_v63 = vrot.slane %v3868_v2, 4  ;;  %v2347_v50 = vrot.slane %v2346_v34, 4  ;;  %v3876_v12 = vrot.slane %v3874_v3, 5  ;;  %v11176_v34 = vld [vmem:[%s12441_s12 + $0x90] sm:$0xf] }
 0x259   : > { %v2354_v38 = vshrl.u32 %v11176_v34, 16  ;;  %v2357_v1 = vshll.u32 %v11176_v34, 16  ;;  %v11436_v34 = vld [vmem:[%s12441_s12 + $0xb0] sm:$0x1] }
 0x25a   : > { %v3501_v36 = vadd.f32 %v13486_v5, %v3180_v17  ;;  %v3867_v5 = vsel %vm12463_vm6, %v3862_v42, %v3866_v30  ;;  %v3871_v17 = vor.u32 %v3870_v63, %v3866_v30  ;;  %v2992_v30 = vunpack.c.l.b16 %v2924_v4  ;;  %v13627_v42 = vpop.f32.mrf.mxu2  ;;  %v13630_v63 = vpop.f32.mrf.mxu3 }
 0x25b   : > { %v4046_v3 = vunpack.c.l.b16 %v3867_v5  ;;  %v3882_v5 = vshll.u32 %v11434_v47, 16  ;;  %v13643_v4 = vrot.slane %v2363_v16, 5  ;;  %v11228_v16 = vld [vmem:[%s12441_s12 + $0x9c] sm:$0xe] }
 0x25c   : > { %v13600_v33 = vadd.f32 %v13526_v18, %v3501_v36  ;;  %v2991_v18 = vunpack.c.l.b16 %v2921_v45  ;;  %v3872_v19 = vrot.slane %v3871_v17, 4  ;;  %v2543_v45 = vunpack.c.l.b16 %v2342_v49 }
 0x25d   : > { %v2648_v59 = vpop.f32.mrf.mxu0 }
 0x25e   : > { %v2735_v32 = vadd.f32 %v2648_v59, %v13451_v41  ;;  %v2352_v41 = vsel %vm12463_vm6, %v2347_v50, %v2351_v21  ;;  %v13623_v59 = vpop.f32.mrf.mxu1  ;;  %v3877_v36 = vsel %vm12463_vm6, %v3872_v19, %v3876_v12  ;;  %v3016_v39 = vpack.c.b16 %v2992_v30, %v2991_v18  ;;  %v11435_v12 = vld [vmem:[%s12441_s12 + $0xac] sm:$0xf] }
 0x25f   : > { %v2367_v50 = vshrl.u32 %v13590_v0, 16  ;;  %v2544_v61 = vunpack.c.l.b16 %v2352_v41  ;;  %v2356_v18 = vrot.slane %v2354_v38, 4  ;;  %v3884_v19 = vrot.slane %v3882_v5, 5 }
 0x260   : > { %v3181_v2 = vadd.f32 %v13512_v55, %v2735_v32  ;;  %11207 = vmatmul.msk.bf16.gmra.mxu0 %vm17414_vm7, %v2568_v43  ;;  %v4047_v43 = vunpack.c.l.b16 %v3877_v36  ;;  %v3892_v49 = vshrl.u32 %v11435_v12, 16  ;;  %v3898_v41 = vshll.u32 %v11436_v34, 16 }
 0x261   : > { %v2569_v5 = vpack.c.b16 %v2544_v61, %v2543_v45  ;;  %v11179_v45 = vld [vmem:[%s12441_s12 + $0x9c] sm:$0xf] }
 0x262   : > { %v3502_v55 = vadd.f32 %v13514_v15, %v3181_v2  ;;  %v4071_v51 = vpack.c.b16 %v4047_v43, %v4046_v3  ;;  %11264 = vmatmul.msk.bf16.gmra.mxu1 %vm17414_vm7, %v3016_v39  ;;  %v3879_v15 = vshrl.u32 %v11434_v47, 16  ;;  %v2369_v2 = vrot.slane %v2367_v50, 4  ;;  %v11180_v39 = vld [vmem:[%s12441_s12 + $0xa0] sm:$0xf] }
 0x263   : > { %v3888_v3 = vshll.u32 %v11435_v12, 16  ;;  %v2927_v12 = vrot.slane %v11180_v39, 5  ;;  %v3900_v34 = vrot.slane %v3898_v41, 5 }
 0x264   : > { %v13636_v21 = vadd.f32 %v13554_v23, %v3502_v55  ;;  %11464 = vmatmul.msk.bf16.gmra.mxu3 %vm17414_vm7, %v4071_v51  ;;  %v3881_v0 = vrot.slane %v3879_v15, 4  ;;  %v2359_v23 = vrot.slane %v2357_v1, 5  ;;  %v3894_v1 = vrot.slane %v3892_v49, 4 }
 0x265   : > { %v2650_v17 = vpop.f32.mrf.mxu0  ;;  %v3890_v38 = vrot.slane %v3888_v3, 5  ;;  %v2370_v51 = vor.u32 %v2369_v2, %v13643_v4  ;;  %v2929_v3 = vrot.slane %v2927_v12, 4 }
 0x266   : > { %v2736_v32 = vadd.f32 %v2650_v17, %v13477_v7  ;;  %v3885_v36 = vor.u32 %v3884_v19, %v3881_v0  ;;  %v13646_v55 = vpop.f32.mrf.mxu1  ;;  %v13648_v7 = vpop.f32.mrf.mxu2  ;;  %v2360_v50 = vor.u32 %v2359_v23, %v2356_v18  ;;  %v13662_v19 = vld [vmem:[%s12441_s12 + $0xa4] sm:$0x1] }
 0x267   : > { %v13657_v17 = vpop.f32.mrf.mxu3  ;;  %v3895_v23 = vor.u32 %v3894_v1, %v3890_v38  ;;  %v2378_v1 = vshrl.u32 %v11179_v45, 16 }
 0x268   : > { %v3182_v30 = vadd.f32 %v13536_v53, %v2736_v32  ;;  %v3886_v47 = vrot.slane %v3885_v36, 4  ;;  %v11246_v53 = vrot.slane %v11228_v16, 9  ;;  %v2373_v32 = vshll.u32 %v13604_v31, 16 }
 0x269   : > { %v2930_v31 = vrot.slane %v13662_v19, 5  ;;  %v2361_v61 = vrot.slane %v2360_v50, 4  ;;  %v3896_v36 = vrot.slane %v3895_v23, 4  ;;  %v2381_v16 = vshll.u32 %v11179_v45, 16 }
 0x26a   : > { %v3503_v43 = vadd.f32 %v13538_v56, %v3182_v30  ;;  %v12069_v56 = vld [vmem:[%s12441_s12 + $0xa8] sm:$0xff]  ;;  %v3891_v18 = vsel %vm12463_vm6, %v3886_v47, %v3890_v38  ;;  %v2928_v2 = vsel %vm12457_vm5, %v11246_v53, %v2927_v12  ;;  %v2371_v30 = vrot.slane %v2370_v51, 4 }
 0x26b   : > { %11392 = vmatmul.msk.bf16.gmra.mxu2 %vm17414_vm7, %v12069_v56  ;;  %v2993_v49 = vunpack.c.l.b16 %v2928_v2  ;;  %v2375_v38 = vrot.slane %v2373_v32, 5  ;;  %v2931_v47 = vsel %vm12457_vm5, %v2929_v3, %v2930_v31  ;;  %v3901_v50 = vsel %vm12463_vm6, %v3896_v36, %v3900_v34  ;;  %v11438_v3 = vld [vmem:[%s12441_s12 + $0xb8] sm:$0xf] }
 0x26c   : > { %v13655_v15 = vadd.f32 %v13587_v14, %v3503_v43  ;;  %v4048_v43 = vunpack.c.l.b16 %v3891_v18  ;;  %v2994_v53 = vunpack.c.l.b16 %v2931_v47  ;;  %v4049_v12 = vunpack.c.l.b16 %v3901_v50 }
 0x26d   : > { %v2653_v0 = vpop.f32.mrf.mxu0  ;;  %v2366_v32 = vsel %vm12463_vm6, %v2361_v61, %v13643_v4  ;;  %v2387_v56 = vshll.u32 %v11180_v39, 16  ;;  %v2376_v45 = vsel %vm12463_vm6, %v2371_v30, %v2375_v38  ;;  %v2383_v31 = vrot.slane %v2381_v16, 5 }
 0x26e   : > { %v2737_v14 = vadd.f32 %v2653_v0, %v13504_v8  ;;  %v13676_v8 = vpop.f32.mrf.mxu1  ;;  %v13680_v51 = vpop.f32.mrf.mxu2  ;;  %v2391_v0 = vshrl.u32 %v11180_v39, 16  ;;  %v3017_v18 = vpack.c.b16 %v2994_v53, %v2993_v49  ;;  %v4072_v2 = vpack.c.b16 %v4049_v12, %v4048_v43 }
 0x26f   : > { %v2545_v39 = vunpack.c.l.b16 %v2366_v32  ;;  %v13695_v61 = vpop.f32.mrf.mxu3  ;;  %v13698_v49 = vrot.slane %v2387_v56, 5  ;;  %v3912_v47 = vshll.u32 %v11438_v3, 16  ;;  %v2546_v38 = vunpack.c.l.b16 %v2376_v45  ;;  %v11675_v32 = vld [vmem:[%s17408_s3 + $0x8] sm:$0xf] }
 0x270   : > { %v3183_v41 = vadd.f32 %v13563_v58, %v2737_v14  ;;  %11208 = vmatmul.msk.bf16.gmra.mxu0 %vm17414_vm7, %v2569_v5  ;;  %v11437_v5 = vld [vmem:[%s12441_s12 + $0xb4] sm:$0xf]  ;;  %v3916_v16 = vshrl.u32 %v11438_v3, 16 }
 0x271   : > { %v3903_v34 = vshrl.u32 %v11437_v5, 16  ;;  %v3906_v36 = vshll.u32 %v11437_v5, 16  ;;  %v3914_v56 = vrot.slane %v3912_v47, 5  ;;  %v11182_v47 = vld [vmem:[%s12441_s12 + $0xa8] sm:$0xf] }
 0x272   : > { %v3504_v58 = vadd.f32 %v13565_v60, %v3183_v41  ;;  %v2380_v60 = vrot.slane %v2378_v1, 4  ;;  %11265 = vmatmul.msk.bf16.gmra.mxu1 %vm17414_vm7, %v3017_v18  ;;  %v2393_v41 = vrot.slane %v2391_v0, 4  ;;  %v6159_v1 = vld [vmem:[%s17408_s3] sm:$0xf]  ;;  %v3918_v0 = vrot.slane %v3916_v16, 4 }
 0x273   : > { %v3908_v43 = vrot.slane %v3906_v36, 5  ;;  %v12070_v36 = vld [vmem:[%s12441_s12 + $0xb4] sm:$0xff] }
 0x274   : > { %v13688_v23 = vadd.f32 %v13630_v63, %v3504_v58  ;;  %11465 = vmatmul.msk.bf16.gmra.mxu3 %vm17414_vm7, %v4072_v2  ;;  %v3905_v63 = vrot.slane %v3903_v34, 4  ;;  %v2384_v50 = vor.u32 %v2383_v31, %v2380_v60  ;;  %v6881_v58 = vsel %vm17415_vm8, %v6159_v1, 0  ;;  %v11562_v31 = vld [vmem:[%s17408_s3 + $0x4] sm:$0xf] }
 0x275   : > { %v2655_v14 = vpop.f32.mrf.mxu0  ;;  %6890 = vmatpush.bf16.msra.mxu2 %v6881_v58  ;;  %v2394_v18 = vor.u32 %v2393_v41, %v13698_v49  ;;  %v7231_v2 = vsel %vm17415_vm8, %v11675_v32, 0  ;;  %v2397_v60 = vshll.u32 %v13662_v19, 16  ;;  %v11183_v19 = vld [vmem:[%s12441_s12 + $0xac] sm:$0xf] }
 0x276   : > { %v2738_v4 = vadd.f32 %v2655_v14, %v13530_v27  ;;  %v11439_v27 = vld [vmem:[%s12441_s12 + $0xbc] sm:$0x1]  ;;  %v13705_v53 = vpop.f32.mrf.mxu1  ;;  %v13708_v12 = vpop.f32.mrf.mxu2  ;;  %v3909_v5 = vor.u32 %v3908_v43, %v3905_v63  ;;  %v11229_v14 = vld [vmem:[%s12441_s12 + $0xa8] sm:$0xe]  ;;  %7240 = vmatpush.bf16.msra.mxu3 %v7231_v2  ;;  %v2385_v41 = vrot.slane %v2384_v50, 4  ;;  %v6661_v43 = vsel %vm17415_vm8, %v11562_v31, 0 }
 0x277   : > { %v3922_v34 = vshll.u32 %v11439_v27, 16  ;;  %6670 = vmatpush.bf16.msra.mxu1 %v6661_v43  ;;  %v11247_v27 = vrot.slane %v11229_v14, 9  ;;  %v2395_v16 = vrot.slane %v2394_v18, 4  ;;  %v2934_v50 = vrot.slane %v11183_v19, 5  ;;  %v4161_v32 = vpop.f32.mrf.mxu3 }
 0x278   : > { %v3184_v30 = vadd.f32 %v13592_v40, %v2738_v4  ;;  %v3910_v3 = vrot.slane %v3909_v5, 4  ;;  %v3919_v4 = vor.u32 %v3918_v0, %v3914_v56 }
 0x279   : > { %v2935_v14 = vsel %vm12457_vm5, %v11247_v27, %v2934_v50  ;;  %v2936_v31 = vrot.slane %v2934_v50, 4 }
 0x27a   : > { %v3505_v40 = vadd.f32 %v13594_v13, %v3184_v30  ;;  %v2570_v13 = vpack.c.b16 %v2546_v38, %v2545_v39  ;;  %v3924_v30 = vrot.slane %v3922_v34, 5  ;;  %v13733_v38 = vld [vmem:[%s12441_s12 + $0xb0] sm:$0x1]  ;;  %v3920_v1 = vrot.slane %v3919_v4, 4 }
 0x27b   : > { %11393 = vmatmul.msk.bf16.gmra.mxu2 %vm17414_vm7, %v12070_v36  ;;  %v2937_v5 = vrot.slane %v13733_v38, 5  ;;  %v11440_v36 = vld [vmem:[%s12441_s12 + $0xc0] sm:$0xf]  ;;  %v2411_v4 = vshll.u32 %v11183_v19, 16 }
 0x27c   : > { %v13718_v45 = vadd.f32 %v13657_v17, %v3505_v40  ;;  %v3915_v17 = vsel %vm12463_vm6, %v3910_v3, %v3914_v56  ;;  %v2402_v56 = vshrl.u32 %v11182_v47, 16  ;;  %v3925_v0 = vsel %vm12463_vm6, %v3920_v1, %v3924_v30 }
 0x27d   : > { %v2658_v63 = vpop.f32.mrf.mxu0  ;;  %v4050_v58 = vunpack.c.l.b16 %v3915_v17  ;;  %v2405_v3 = vshll.u32 %v11182_v47, 16  ;;  %v4051_v34 = vunpack.c.l.b16 %v3925_v0  ;;  %v2938_v47 = vsel %vm12457_vm5, %v2936_v31, %v2937_v5  ;;  %v11442_v5 = vld [vmem:[%s12441_s12 + $0xc8] sm:$0x1] }
 0x27e   : > { %v2739_v39 = vadd.f32 %v2658_v63, %v12805_v9  ;;  %v2399_v9 = vrot.slane %v2397_v60, 5  ;;  %v13740_v2 = vpop.f32.mrf.mxu1  ;;  %v13742_v18 = vpop.f32.mrf.mxu2  ;;  %v2995_v60 = vunpack.c.l.b16 %v2935_v14  ;;  %v2415_v63 = vshrl.u32 %v11183_v19, 16 }
 0x27f   : > { %v4073_v43 = vpack.c.b16 %v4051_v34, %v4050_v58  ;;  %v2404_v1 = vrot.slane %v2402_v56, 4  ;;  %v2407_v27 = vrot.slane %v2405_v3, 5  ;;  %v3930_v50 = vshll.u32 %v11440_v36, 16 }
 0x280   : > { %v3185_v40 = vadd.f32 %v13623_v59, %v2739_v39  ;;  %11209 = vmatmul.msk.bf16.gmra.mxu0 %vm17414_vm7, %v2570_v13  ;;  %v2390_v13 = vsel %vm12463_vm6, %v2385_v41, %v13698_v49  ;;  %v2400_v30 = vsel %vm12463_vm6, %v2395_v16, %v2399_v9  ;;  %v11441_v49 = vld [vmem:[%s12441_s12 + $0xc4] sm:$0xf]  ;;  %v3927_v41 = vshrl.u32 %v11440_v36, 16 }
 0x281   : > { %v13762_v0 = vrot.slane %v2411_v4, 5  ;;  %v3932_v14 = vrot.slane %v3930_v50, 5  ;;  %v2548_v9 = vunpack.c.l.b16 %v2400_v30  ;;  %v3936_v56 = vshll.u32 %v11441_v49, 16  ;;  %v4164_v4 = vpop.f32.mrf.mxu3  ;;  %v13779_v50 = vld [vmem:[%s12441_s12 + $0xbc] sm:$0x1] }
 0x282   : > { %v3506_v59 = vadd.f32 %v13627_v42, %v3185_v40  ;;  %v2996_v42 = vunpack.c.l.b16 %v2938_v47  ;;  %v2547_v40 = vunpack.c.l.b16 %v2390_v13  ;;  %v3929_v34 = vrot.slane %v3927_v41, 4  ;;  %v11230_v47 = vld [vmem:[%s12441_s12 + $0xb4] sm:$0xe]  ;;  %v11186_v41 = vld [vmem:[%s12441_s12 + $0xb8] sm:$0xf] }
 0x283   : > { %v3940_v3 = vshrl.u32 %v11441_v49, 16  ;;  %v2408_v31 = vor.u32 %v2407_v27, %v2404_v1  ;;  %v12071_v49 = vld [vmem:[%s12441_s12 + $0xc0] sm:$0xff] }
 0x284   : > { %v13754_v17 = vadd.f32 %v13695_v61, %v3506_v59  ;;  %11466 = vmatmul.msk.bf16.gmra.mxu3 %vm17414_vm7, %v4073_v43  ;;  %v3018_v58 = vpack.c.b16 %v2996_v42, %v2995_v60  ;;  %v2417_v61 = vrot.slane %v2415_v63, 4  ;;  %v3933_v13 = vor.u32 %v3932_v14, %v3929_v34 }
 0x285   : > { %v2660_v39 = vpop.f32.mrf.mxu0  ;;  %v3946_v60 = vshll.u32 %v11442_v5, 16  ;;  %v3938_v63 = vrot.slane %v3936_v56, 5  ;;  %v3942_v43 = vrot.slane %v3940_v3, 4  ;;  %v2571_v27 = vpack.c.b16 %v2548_v9, %v2547_v40 }
 0x286   : > { %v2740_v19 = vadd.f32 %v2660_v39, %v12835_v48  ;;  %11266 = vmatmul.msk.bf16.gmra.mxu1 %vm17414_vm7, %v3018_v58  ;;  %v13766_v48 = vpop.f32.mrf.mxu1  ;;  %v13768_v59 = vpop.f32.mrf.mxu2  ;;  %v2418_v30 = vor.u32 %v2417_v61, %v13762_v0  ;;  %v3934_v42 = vrot.slane %v3933_v13, 4  ;;  %v11248_v39 = vrot.slane %v11230_v47, 9 }
 0x287   : > { %v3948_v58 = vrot.slane %v3946_v60, 5  ;;  %v2941_v5 = vrot.slane %v11186_v41, 5  ;;  %v2944_v34 = vrot.slane %v13779_v50, 5  ;;  %v2409_v14 = vrot.slane %v2408_v31, 4  ;;  %v11185_v60 = vld [vmem:[%s12441_s12 + $0xb4] sm:$0xf] }
 0x288   : > { %v3186_v16 = vadd.f32 %v13646_v55, %v2740_v19  ;;  %v2421_v55 = vshll.u32 %v13733_v38, 16  ;;  %v3943_v19 = vor.u32 %v3942_v43, %v3938_v63  ;;  %v3939_v38 = vsel %vm12463_vm6, %v3934_v42, %v3938_v63  ;;  %v11443_v42 = vld [vmem:[%s12441_s12 + $0xcc] sm:$0xf] }
 0x289   : > { %v4052_v9 = vunpack.c.l.b16 %v3939_v38  ;;  %v2942_v56 = vsel %vm12457_vm5, %v11248_v39, %v2941_v5  ;;  %v2943_v3 = vrot.slane %v2941_v5, 4  ;;  %v11444_v5 = vld [vmem:[%s12441_s12 + $0xd0] sm:$0xf] }
 0x28a   : > { %v3507_v36 = vadd.f32 %v13648_v7, %v3186_v16  ;;  %v3944_v40 = vrot.slane %v3943_v19, 4  ;;  %v2419_v16 = vrot.slane %v2418_v30, 4  ;;  %v2997_v31 = vunpack.c.l.b16 %v2942_v56 }
 0x28b   : > { %11394 = vmatmul.msk.bf16.gmra.mxu2 %vm17414_vm7, %v12071_v49  ;;  %v2945_v43 = vsel %vm12457_vm5, %v2943_v3, %v2944_v34  ;;  %v2429_v49 = vshll.u32 %v11185_v60, 16  ;;  %v3951_v34 = vshrl.u32 %v11443_v42, 16  ;;  %v3954_v56 = vshll.u32 %v11443_v42, 16 }
 0x28c   : > { %v13774_v1 = vadd.f32 %v4161_v32, %v3507_v36  ;;  %v2423_v32 = vrot.slane %v2421_v55, 5  ;;  %v2998_v30 = vunpack.c.l.b16 %v2945_v43 }
 0x28d   : > { %v2663_v7 = vpop.f32.mrf.mxu0 }
 0x28e   : > { %v2741_v61 = vadd.f32 %v2663_v7, %v12854_v54  ;;  %v3949_v54 = vsel %vm12463_vm6, %v3944_v40, %v3948_v58  ;;  %v13793_v36 = vpop.f32.mrf.mxu1  ;;  %v13795_v63 = vpop.f32.mrf.mxu2  ;;  %v2424_v39 = vsel %vm12463_vm6, %v2419_v16, %v2423_v32  ;;  %v3019_v38 = vpack.c.b16 %v2998_v30, %v2997_v31  ;;  %v11445_v32 = vld [vmem:[%s12441_s12 + $0xd4] sm:$0x1] }
 0x28f   : > { %v4053_v55 = vunpack.c.l.b16 %v3949_v54  ;;  %v4166_v7 = vpop.f32.mrf.mxu3  ;;  %v2439_v40 = vshrl.u32 %v11186_v41, 16  ;;  %v2550_v3 = vunpack.c.l.b16 %v2424_v39  ;;  %v3953_v16 = vrot.slane %v3951_v34, 4 }
 0x290   : > { %v3187_v13 = vadd.f32 %v13676_v8, %v2741_v61  ;;  %11210 = vmatmul.msk.bf16.gmra.mxu0 %vm17414_vm7, %v2571_v27  ;;  %v2414_v8 = vsel %vm12463_vm6, %v2409_v14, %v13762_v0  ;;  %v2426_v27 = vshrl.u32 %v11185_v60, 16  ;;  %v2435_v61 = vshll.u32 %v11186_v41, 16 }
 0x291   : > { %v4074_v19 = vpack.c.b16 %v4053_v55, %v4052_v9  ;;  %v2549_v14 = vunpack.c.l.b16 %v2414_v8  ;;  %v3956_v9 = vrot.slane %v3954_v56, 5  ;;  %v3960_v60 = vshll.u32 %v11444_v5, 16 }
 0x292   : > { %v3508_v47 = vadd.f32 %v13680_v51, %v3187_v13  ;;  %v2428_v13 = vrot.slane %v2426_v27, 4  ;;  %v3964_v41 = vshrl.u32 %v11444_v5, 16  ;;  %v3970_v31 = vshll.u32 %v11445_v32, 16  ;;  %v11189_v27 = vld [vmem:[%s12441_s12 + $0xc4] sm:$0xf] }
 0x293   : > { %v2437_v55 = vrot.slane %v2435_v61, 5  ;;  %v3957_v8 = vor.u32 %v3956_v9, %v3953_v16  ;;  %v3962_v30 = vrot.slane %v3960_v60, 5  ;;  %v2572_v39 = vpack.c.b16 %v2550_v3, %v2549_v14 }
 0x294   : > { %v13806_v58 = vadd.f32 %v4164_v4, %v3508_v47  ;;  %11467 = vmatmul.msk.bf16.gmra.mxu3 %vm17414_vm7, %v4074_v19  ;;  %v2431_v4 = vrot.slane %v2429_v49, 5  ;;  %v3966_v49 = vrot.slane %v3964_v41, 4  ;;  %v2948_v34 = vrot.slane %v11189_v27, 5 }
 0x295   : > { %v2665_v51 = vpop.f32.mrf.mxu0  ;;  %v2445_v61 = vshll.u32 %v13779_v50, 16 }
 0x296   : > { %v2742_v0 = vadd.f32 %v2665_v51, %v12884_v37  ;;  %11267 = vmatmul.msk.bf16.gmra.mxu1 %vm17414_vm7, %v3019_v38  ;;  %v2441_v37 = vrot.slane %v2439_v40, 4  ;;  %v13814_v43 = vpop.f32.mrf.mxu1  ;;  %v13816_v47 = vpop.f32.mrf.mxu2  ;;  %v2432_v19 = vor.u32 %v2431_v4, %v2428_v13  ;;  %v3958_v38 = vrot.slane %v3957_v8, 4  ;;  %v12072_v40 = vld [vmem:[%s12441_s12 + $0xcc] sm:$0xff] }
 0x297   : > { %v3967_v56 = vor.u32 %v3966_v49, %v3962_v30  ;;  %v2950_v13 = vrot.slane %v2948_v34, 4  ;;  %v4169_v4 = vpop.f32.mrf.mxu3 }
 0x298   : > { %v3188_v54 = vadd.f32 %v13705_v53, %v2742_v0  ;;  %v11231_v53 = vld [vmem:[%s12441_s12 + $0xc0] sm:$0xe]  ;;  %v3972_v0 = vrot.slane %v3970_v31, 5  ;;  %v2442_v16 = vor.u32 %v2441_v37, %v2437_v55  ;;  %v3963_v14 = vsel %vm12463_vm6, %v3958_v38, %v3962_v30 }
 0x299   : > { %v11249_v5 = vrot.slane %v11231_v53, 9  ;;  %v3968_v50 = vrot.slane %v3967_v56, 4  ;;  %v2433_v60 = vrot.slane %v2432_v19, 4  ;;  %v4054_v41 = vunpack.c.l.b16 %v3963_v14 }
 0x29a   : > { %v3509_v42 = vadd.f32 %v13708_v12, %v3188_v54  ;;  %v13826_v12 = vld [vmem:[%s12441_s12 + $0xc8] sm:$0x1]  ;;  %v11188_v54 = vld [vmem:[%s12441_s12 + $0xc0] sm:$0xf]  ;;  %v2443_v30 = vrot.slane %v2442_v16, 4  ;;  %v2459_v56 = vshll.u32 %v11189_v27, 16 }
 0x29b   : > { %v2949_v3 = vsel %vm12457_vm5, %v11249_v5, %v2948_v34  ;;  %11395 = vmatmul.msk.bf16.gmra.mxu2 %vm17414_vm7, %v12072_v40  ;;  %v2951_v9 = vrot.slane %v13826_v12, 5  ;;  %v3973_v37 = vsel %vm12463_vm6, %v3968_v50, %v3972_v0  ;;  %v2450_v5 = vshrl.u32 %v11188_v54, 16  ;;  %v11446_v34 = vld [vmem:[%s12441_s12 + $0xd8] sm:$0xf]  ;;  %v11447_v16 = vld [vmem:[%s12441_s12 + $0xdc] sm:$0xf] }
 0x29c   : > { %v13821_v51 = vadd.f32 %v4166_v7, %v3509_v42  ;;  %v2999_v8 = vunpack.c.l.b16 %v2949_v3  ;;  %v2447_v42 = vrot.slane %v2445_v61, 5  ;;  %v4055_v53 = vunpack.c.l.b16 %v3973_v37 }
 0x29d   : > { %v2668_v32 = vpop.f32.mrf.mxu0  ;;  %v2438_v40 = vsel %vm12463_vm6, %v2433_v60, %v2437_v55  ;;  %v2463_v0 = vshrl.u32 %v11189_v27, 16  ;;  %v3975_v3 = vshrl.u32 %v11446_v34, 16  ;;  %v3984_v50 = vshll.u32 %v11447_v16, 16  ;;  %v11448_v27 = vld [vmem:[%s12441_s12 + $0xe0] sm:$0x1] }
 0x29e   : > { %v2743_v7 = vadd.f32 %v2668_v32, %v12903_v52  ;;  %v2952_v52 = vsel %vm12457_vm5, %v2950_v13, %v2951_v9  ;;  %v13844_v19 = vpop.f32.mrf.mxu2  ;;  %v4075_v32 = vpack.c.b16 %v4055_v53, %v4054_v41  ;;  %v13858_v60 = vrot.slane %v2459_v56, 5 }
 0x29f   : > { %v13842_v49 = vpop.f32.mrf.mxu1  ;;  %v3000_v38 = vunpack.c.l.b16 %v2952_v52  ;;  %v3977_v41 = vrot.slane %v3975_v3, 4  ;;  %v1226_v53 = vadd.f32 %v12870_v28, %v12965_v6  ;;  %v2469_v28 = vshll.u32 %v13826_v12, 16 }
 0x2a0   : > { %v3189_v31 = vadd.f32 %v13740_v2, %v2743_v7  ;;  %11211 = vmatmul.msk.bf16.gmra.mxu0 %vm17414_vm7, %v2572_v39  ;;  %v2453_v39 = vshll.u32 %v11188_v54, 16  ;;  %v2448_v7 = vsel %vm12463_vm6, %v2443_v30, %v2447_v42  ;;  %v2551_v54 = vunpack.c.l.b16 %v2438_v40 }
 0x2a1   : > { %v3020_v14 = vpack.c.b16 %v3000_v38, %v2999_v8  ;;  %v4171_v8 = vpop.f32.mrf.mxu3  ;;  %v2552_v30 = vunpack.c.l.b16 %v2448_v7  ;;  %v3988_v42 = vshrl.u32 %v11447_v16, 16  ;;  %v12073_v7 = vld [vmem:[%s12441_s12 + $0xd8] sm:$0xff]  ;;  %v1691_v12 = vadd.f32 %v12874_v44, %v1226_v53  ;;  %v11191_v53 = vld [vmem:[%s12441_s12 + $0xcc] sm:$0xf] }
 0x2a2   : > { %v3510_v2 = vadd.f32 %v13742_v18, %v3189_v31  ;;  %v3978_v18 = vshll.u32 %v11446_v34, 16  ;;  %v2452_v31 = vrot.slane %v2450_v5, 4  ;;  %v2455_v55 = vrot.slane %v2453_v39, 5  ;;  %v13869_v5 = vld [vmem:[%s12441_s12 + $0xd0] sm:$0xf] }
 0x2a3   : > { %v3994_v34 = vshll.u32 %v11448_v27, 16  ;;  %v3990_v56 = vrot.slane %v3988_v42, 4  ;;  %v13880_v27 = vld [vmem:[%s12441_s12 + $0xd4] sm:$0x1] }
 0x2a4   : > { %v13851_v61 = vadd.f32 %v4169_v4, %v3510_v2  ;;  %11468 = vmatmul.msk.bf16.gmra.mxu3 %vm17414_vm7, %v4075_v32  ;;  %v2465_v4 = vrot.slane %v2463_v0, 4  ;;  %v3980_v37 = vrot.slane %v3978_v18, 5  ;;  %v2456_v40 = vor.u32 %v2455_v55, %v2452_v31  ;;  %v11232_v0 = vld [vmem:[%s12441_s12 + $0xcc] sm:$0xe] }
 0x2a5   : > { %v2670_v13 = vpop.f32.mrf.mxu0  ;;  %v2955_v32 = vrot.slane %v13869_v5, 5 }
 0x2a6   : > { %v2744_v9 = vadd.f32 %v2670_v13, %v12933_v35  ;;  %11268 = vmatmul.msk.bf16.gmra.mxu1 %vm17414_vm7, %v3020_v14  ;;  %v3986_v35 = vrot.slane %v3984_v50, 5  ;;  %v13866_v2 = vpop.f32.mrf.mxu2  ;;  %v3981_v39 = vor.u32 %v3980_v37, %v3977_v41  ;;  %v2466_v16 = vor.u32 %v2465_v4, %v13858_v60 }
 0x2a7   : > { %v13864_v38 = vpop.f32.mrf.mxu1  ;;  %v11250_v14 = vrot.slane %v11232_v0, 9  ;;  %v2573_v13 = vpack.c.b16 %v2552_v30, %v2551_v54  ;;  %v3996_v50 = vrot.slane %v3994_v34, 5  ;;  %v2957_v55 = vrot.slane %v2955_v32, 4 }
 0x2a8   : > { %v3190_v52 = vadd.f32 %v13766_v48, %v2744_v9  ;;  %v3982_v6 = vrot.slane %v3981_v39, 4  ;;  %v3991_v18 = vor.u32 %v3990_v56, %v3986_v35  ;;  %v2958_v41 = vrot.slane %v13880_v27, 5 }
 0x2a9   : > { %v2956_v31 = vsel %vm12457_vm5, %v11250_v14, %v2955_v32  ;;  %v2457_v37 = vrot.slane %v2456_v40, 4  ;;  %v11449_v40 = vld [vmem:[%s12441_s12 + $0xe4] sm:$0xf]  ;;  %v2012_v56 = vadd.f32 %v12881_v57, %v1691_v12  ;;  %v2477_v14 = vshll.u32 %v11191_v53, 16 }
 0x2aa   : > { %v3511_v48 = vadd.f32 %v13768_v59, %v3190_v52  ;;  %v3987_v59 = vsel %vm12463_vm6, %v3982_v6, %v3986_v35  ;;  %v3992_v54 = vrot.slane %v3991_v18, 4  ;;  %v2467_v52 = vrot.slane %v2466_v16, 4 }
 0x2ab   : > { %11396 = vmatmul.msk.bf16.gmra.mxu2 %vm17414_vm7, %v12073_v7  ;;  %v4056_v30 = vunpack.c.l.b16 %v3987_v59  ;;  %v2959_v44 = vsel %vm12457_vm5, %v2957_v55, %v2958_v41  ;;  %v2462_v0 = vsel %vm12463_vm6, %v2457_v37, %v13858_v60  ;;  %v2474_v6 = vshrl.u32 %v11191_v53, 16  ;;  %v11451_v60 = vld [vmem:[%s12441_s12 + $0xec] sm:$0x1]  ;;  %v11195_v53 = vld [vmem:[%s12441_s12 + $0xdc] sm:$0xf] }
 0x2ac   : > { %v13876_v3 = vadd.f32 %v4171_v8, %v3511_v48  ;;  %v2471_v8 = vrot.slane %v2469_v28, 5  ;;  %v3997_v35 = vsel %vm12463_vm6, %v3992_v54, %v3996_v50  ;;  %v3002_v48 = vunpack.c.l.b16 %v2959_v44  ;;  %v11450_v28 = vld [vmem:[%s12441_s12 + $0xe8] sm:$0xf] }
 0x2ad   : > { %v2673_v9 = vpop.f32.mrf.mxu0  ;;  %v4057_v39 = vunpack.c.l.b16 %v3997_v35  ;;  %v3999_v7 = vshrl.u32 %v11449_v40, 16  ;;  %v2483_v50 = vshll.u32 %v13869_v5, 16  ;;  %v4002_v57 = vshll.u32 %v11449_v40, 16 }
 0x2ae   : > { %v13888_v4 = vadd.f32 %v2673_v9, %v12952_v24  ;;  %v3001_v24 = vunpack.c.l.b16 %v2956_v31  ;;  %v13900_v34 = vpop.f32.mrf.mxu2  ;;  %v2472_v32 = vsel %vm12463_vm6, %v2467_v52, %v2471_v8  ;;  %v2487_v9 = vshrl.u32 %v13869_v5, 16 }
 0x2af   : > { %v13897_v42 = vpop.f32.mrf.mxu1  ;;  %v4076_v16 = vpack.c.b16 %v4057_v39, %v4056_v30  ;;  %v4008_v59 = vshll.u32 %v11450_v28, 16  ;;  %v2553_v55 = vunpack.c.l.b16 %v2462_v0  ;;  %v2554_v12 = vunpack.c.l.b16 %v2472_v32 }
 0x2b0   : > { %11212 = vmatmul.msk.bf16.gmra.mxu0 %vm17414_vm7, %v2573_v13  ;;  %v3021_v13 = vpack.c.b16 %v3002_v48, %v3001_v24  ;;  %v4001_v54 = vrot.slane %v3999_v7, 4  ;;  %v4004_v41 = vrot.slane %v4002_v57, 5  ;;  %v2476_v37 = vrot.slane %v2474_v6, 4  ;;  %v12074_v7 = vld [vmem:[%s12441_s12 + $0xe4] sm:$0xff] }
 0x2b1   : > { %v2479_v52 = vrot.slane %v2477_v14, 5  ;;  %v4010_v8 = vrot.slane %v4008_v59, 5  ;;  %v4012_v30 = vshrl.u32 %v11450_v28, 16  ;;  %v2485_v5 = vrot.slane %v2483_v50, 5  ;;  %v13928_v59 = vld [vmem:[%s12441_s12 + $0xe0] sm:$0x1] }
 0x2b2   : > { %v2489_v35 = vrot.slane %v2487_v9, 4  ;;  %v4005_v39 = vor.u32 %v4004_v41, %v4001_v54  ;;  %v4018_v48 = vshll.u32 %v11451_v60, 16  ;;  %v2962_v0 = vrot.slane %v11195_v53, 5 }
 0x2b3   : > { %v4014_v40 = vrot.slane %v4012_v30, 4  ;;  %v1231_v32 = vadd.f32 %v12919_v46, %v12995_v20  ;;  %v2480_v14 = vor.u32 %v2479_v52, %v2476_v37 }
 0x2b4   : > { %11469 = vmatmul.msk.bf16.gmra.mxu3 %vm17414_vm7, %v4076_v16  ;;  %v2574_v16 = vpack.c.b16 %v2554_v12, %v2553_v55  ;;  %v4006_v6 = vrot.slane %v4005_v39, 4  ;;  %v4020_v50 = vrot.slane %v4018_v48, 5  ;;  %v2490_v57 = vor.u32 %v2489_v35, %v2485_v5  ;;  %v11194_v48 = vld [vmem:[%s12441_s12 + $0xd8] sm:$0xf] }
 0x2b5   : > { %v2675_v18 = vpop.f32.mrf.mxu0  ;;  %v2964_v46 = vrot.slane %v2962_v0, 4  ;;  %v2965_v55 = vrot.slane %v13928_v59, 5  ;;  %v1693_v12 = vadd.f32 %v12923_v62, %v1231_v32  ;;  %v2481_v37 = vrot.slane %v2480_v14, 4 }
 0x2b6   : > { %v13912_v31 = vadd.f32 %v2675_v18, %v2012_v56  ;;  %11269 = vmatmul.msk.bf16.gmra.mxu1 %vm17414_vm7, %v3021_v13  ;;  %v13919_v24 = vpop.f32.mrf.mxu2  ;;  %v11233_v56 = vld [vmem:[%s12441_s12 + $0xd8] sm:$0xe]  ;;  %v2493_v13 = vshll.u32 %v13880_v27, 16  ;;  %v4015_v18 = vor.u32 %v4014_v40, %v4010_v8  ;;  %v4011_v60 = vsel %vm12463_vm6, %v4006_v6, %v4010_v8 }
 0x2b7   : > { %v13917_v44 = vpop.f32.mrf.mxu1  ;;  %v11251_v28 = vrot.slane %v11233_v56, 9  ;;  %v4058_v41 = vunpack.c.l.b16 %v4011_v60  ;;  %v2966_v8 = vsel %vm12457_vm5, %v2964_v46, %v2965_v55  ;;  %v2491_v30 = vrot.slane %v2490_v57, 4 }
 0x2b8   : > { %v4016_v27 = vrot.slane %v4015_v18, 4  ;;  %v2495_v35 = vrot.slane %v2493_v13, 5  ;;  %v3004_v62 = vunpack.c.l.b16 %v2966_v8  ;;  %v2501_v14 = vshll.u32 %v11194_v48, 16 }
 0x2b9   : > { %v2963_v54 = vsel %vm12457_vm5, %v11251_v28, %v2962_v0  ;;  %v2014_v0 = vadd.f32 %v12930_v10, %v1693_v12  ;;  %v2498_v28 = vshrl.u32 %v11194_v48, 16  ;;  %v2486_v13 = vsel %vm12463_vm6, %v2481_v37, %v2485_v5  ;;  %v12304_v10 = vld [vmem:[%s12441_s12 + $0x20] sm:$0x1] }
 0x2ba   : > { %v4021_v52 = vsel %vm12463_vm6, %v4016_v27, %v4020_v50  ;;  %v2496_v50 = vsel %vm12463_vm6, %v2491_v30, %v2495_v35  ;;  %v2511_v57 = vshrl.u32 %v11195_v53, 16  ;;  %v2555_v46 = vunpack.c.l.b16 %v2486_v13 }
 0x2bb   : > { %11397 = vmatmul.msk.bf16.gmra.mxu2 %vm17414_vm7, %v12074_v7  ;;  %v4059_v40 = vunpack.c.l.b16 %v4021_v52  ;;  %v2556_v27 = vunpack.c.l.b16 %v2496_v50  ;;  %v2500_v55 = vrot.slane %v2498_v28, 4  ;;  %v2503_v12 = vrot.slane %v2501_v14, 5  ;;  %v17472_v50 = vld [vmem:[#allocation3_spill] sm:$0xff] }
 0x2bc   : > { %v2513_v5 = vrot.slane %v2511_v57, 4  ;;  %v1236_v48 = vadd.f32 %v12967_v11, %v13010_v22  ;;  %v2517_v14 = vshll.u32 %v13928_v59, 16 }
 0x2bd   : > { %v2678_v9 = vpop.f32.mrf.mxu0  ;;  %v4077_v32 = vpack.c.b16 %v4059_v40, %v4058_v41  ;;  %v11471_v41 = vld [vmem:[%s12441_s12 + $0x18] sm:$0xe]  ;;  %v2575_v40 = vpack.c.b16 %v2556_v27, %v2555_v46  ;;  %v17473_v27 = vld [vmem:[#allocation4_spill] sm:$0xff] }
 0x2be   : > { %v13935_v20 = vadd.f32 %v2678_v9, %v12988_v25  ;;  %v3003_v25 = vunpack.c.l.b16 %v2963_v54  ;;  %v13948_v56 = vpop.f32.mrf.mxu2  ;;  %v2507_v9 = vshll.u32 %v11195_v53, 16  ;;  %v4347_v54 = vrot.slane %v12304_v10, 5 }
 0x2bf   : > { %v13945_v39 = vpop.f32.mrf.mxu1  ;;  %v11489_v53 = vrot.slane %v11471_v41, 9  ;;  %v2519_v11 = vrot.slane %v2517_v14, 5 }
 0x2c0   : > { %11213 = vmatmul.msk.bf16.gmra.mxu0 %vm17414_vm7, %v2574_v16  ;;  %v12303_v16 = vld [vmem:[%s12441_s12 + $0x1c] sm:$0xf]  ;;  %v3022_v7 = vpack.c.b16 %v3004_v62, %v3003_v25  ;;  %v2509_v52 = vrot.slane %v2507_v9, 5  ;;  %v1695_v9 = vadd.f32 %v17472_v50, %v1236_v48 }
 0x2c1   : > { %v4344_v6 = vrot.slane %v12303_v16, 5  ;;  %v2504_v16 = vor.u32 %v2503_v12, %v2500_v55 }
 0x2c2   : > { %v2514_v28 = vor.u32 %v2513_v5, %v2509_v52  ;;  %v2016_v55 = vadd.f32 %v17473_v27, %v1695_v9 }
 0x2c3   : > { %v4346_v25 = vrot.slane %v4344_v6, 4  ;;  %v4345_v30 = vsel %vm12457_vm5, %v11489_v53, %v4344_v6  ;;  %v2505_v57 = vrot.slane %v2504_v16, 4 }
 0x2c4   : > { %11470 = vmatmul.msk.bf16.gmra.mxu3 %vm17414_vm7, %v4077_v32  ;;  %v4470_v62 = vunpack.c.l.b16 %v4345_v30  ;;  %v2515_v10 = vrot.slane %v2514_v28, 4  ;;  %v17474_v30 = vld [vmem:[#allocation13_spill] sm:$0xff] }
 0x2c5   : > { %v2680_v18 = vpop.f32.mrf.mxu0  ;;  %v4348_v35 = vsel %vm12457_vm5, %v4346_v25, %v4347_v54  ;;  %v2510_v12 = vsel %vm12463_vm6, %v2505_v57, %v2509_v52 }
 0x2c6   : > { %v13956_v60 = vadd.f32 %v2680_v18, %v2014_v0  ;;  %11270 = vmatmul.msk.bf16.gmra.mxu1 %vm17414_vm7, %v3022_v7  ;;  %v13964_v8 = vpop.f32.mrf.mxu2  ;;  %v4471_v0 = vunpack.c.l.b16 %v4348_v35  ;;  %v17471_v7 = vld [vmem:[#allocation8_spill] sm:$0xff]  ;;  %v2520_v41 = vsel %vm12463_vm6, %v2515_v10, %v2519_v11  ;;  %v2557_v5 = vunpack.c.l.b16 %v2510_v12  ;;  %v17475_v35 = vld [vmem:[#allocation5_spill] sm:$0xff]  ;;  %v17479_v10 = vld [vmem:[#allocation18_spill] sm:$0xff] }
 0x2c7   : > { %v13962_v37 = vpop.f32.mrf.mxu1  ;;  %v2558_v53 = vunpack.c.l.b16 %v2520_v41  ;;  %v17480_v11 = vld [vmem:[#allocation9_spill] sm:$0xff]  ;;  %v11472_v41 = vld [vmem:[%s12441_s12 + $0x24] sm:$0xe] }
 0x2c8   : > { %v4506_v13 = vpack.c.b16 %v4471_v0, %v4470_v62  ;;  %v17476_v0 = vld [vmem:[#allocation12_spill] sm:$0xff]  ;;  %v1246_v27 = vadd.f32 %v17480_v11, %v17479_v10 }
 0x2c9   : > { %v2576_v48 = vpack.c.b16 %v2558_v53, %v2557_v5  ;;  %v17482_v53 = vld [vmem:[#allocation10_spill] sm:$0xff] }
 0x2cd   : > { %v2683_v32 = vpop.f32.mrf.mxu0 }
 0x2ce   : > { %v2749_v18 = vadd.f32 %v2683_v32, %v17471_v7  ;;  %v3460_v46 = vpop.f32.mrf.mxu2  ;;  %v17477_v32 = vld [vmem:[#allocation6_spill] sm:$0xff]  ;;  %v17478_v7 = vld [vmem:[#allocation7_spill] sm:$0xff] }
 0x2cf   : > { %v3139_v22 = vpop.f32.mrf.mxu1 }
 0x2d0   : > { %v3195_v6 = vadd.f32 %v13897_v42, %v2749_v18  ;;  %11214 = vmatmul.msk.bf16.gmra.mxu0 %vm17414_vm7, %v2575_v40 }
 0x2d2   : > { %v13978_v54 = vadd.f32 %v13900_v34, %v3195_v6  ;;  %v1241_v34 = vadd.f32 %v17475_v35, %v17474_v30  ;;  %v1699_v30 = vadd.f32 %v17482_v53, %v1246_v27 }
 0x2d4   : > { %v1697_v16 = vadd.f32 %v17477_v32, %v1241_v34  ;;  %v11490_v34 = vrot.slane %v11472_v41, 9  ;;  %v12307_v41 = vld [vmem:[%s12441_s12 + $0x34] sm:$0xf] }
 0x2d5   : > { %v2685_v59 = vpop.f32.mrf.mxu0  ;;  %v4358_v53 = vrot.slane %v12307_v41, 5  ;;  %v17493_v41 = vld [vmem:[#allocation25_spill] sm:$0xff] }
 0x2d6   : > { %v13985_v42 = vadd.f32 %v2685_v59, %v2016_v55  ;;  %v13991_v62 = vpop.f32.mrf.mxu2  ;;  %v2018_v18 = vadd.f32 %v17478_v7, %v1697_v16  ;;  %v12305_v55 = vld [vmem:[%s12441_s12 + $0x28] sm:$0xf]  ;;  %v17483_v16 = vld [vmem:[#allocation11_spill] sm:$0xff] }
 0x2d7   : > { %v13987_v25 = vpop.f32.mrf.mxu1  ;;  %v17481_v59 = vld [vmem:[#allocation17_spill] sm:$0xff] }
 0x2dd   : > { %v2688_v40 = vpop.f32.mrf.mxu0 }
 0x2de   : > { %v2751_v52 = vadd.f32 %v2688_v40, %v17476_v0  ;;  %v3465_v57 = vpop.f32.mrf.mxu2  ;;  %v12306_v40 = vld [vmem:[%s12441_s12 + $0x2c] sm:$0x1] }
 0x2df   : > { %v3144_v9 = vpop.f32.mrf.mxu1  ;;  %v4354_v0 = vrot.slane %v12306_v40, 5 }
 0x2e0   : > { %v3197_v28 = vadd.f32 %v13945_v39, %v2751_v52  ;;  %11215 = vmatmul.msk.bf16.gmra.mxu0 %vm17414_vm7, %v2576_v48 }
 0x2e2   : > { %v13998_v14 = vadd.f32 %v13948_v56, %v3197_v28  ;;  %v4351_v56 = vrot.slane %v12305_v55, 5  ;;  %v2020_v28 = vadd.f32 %v17483_v16, %v1699_v30  ;;  %v4360_v16 = vrot.slane %v4358_v53, 4 }
 0x2e4   : > { %v4353_v48 = vrot.slane %v4351_v56, 4 }
 0x2e5   : > { %v2690_v50 = vpop.f32.mrf.mxu0 }
 0x2e6   : > { %v14001_v6 = vadd.f32 %v2690_v50, %v2018_v18  ;;  %v14019_v52 = vpop.f32.mrf.mxu2  ;;  %v4352_v18 = vsel %vm12457_vm5, %v11490_v34, %v4351_v56  ;;  %v17488_v56 = vld [vmem:[#allocation20_spill] sm:$0xff]  ;;  %v17489_v34 = vld [vmem:[#allocation15_spill] sm:$0xff] }
 0x2e7   : > { %v14014_v5 = vpop.f32.mrf.mxu1  ;;  %v4472_v50 = vunpack.c.l.b16 %v4352_v18 }
 0x2ed   : > { %v2693_v39 = vpop.f32.mrf.mxu0 }
 0x2ee   : > { %v2753_v12 = vadd.f32 %v2693_v39, %v17481_v59  ;;  %v14032_v27 = vpop.f32.mrf.mxu2  ;;  %v17487_v39 = vld [vmem:[#allocation14_spill] sm:$0xff] }
 0x2ef   : > { %v14030_v11 = vpop.f32.mrf.mxu1  ;;  %17485 = vst [vmem:[#allocation3_spill] sm:$0xff] %v14032_v27 }
 0x2f0   : > { %v3199_v35 = vadd.f32 %v3139_v22, %v2753_v12  ;;  %11508 = vmatmul.msk.bf16.vlgmr.msrb.gmra.mxu0 %vm17414_vm7, %v4506_v13  ;;  %v4355_v22 = vsel %vm12457_vm5, %v4353_v48, %v4354_v0  ;;  %17484 = vst [vmem:[#allocation8_spill] sm:$0xff] %v14030_v11 }
 0x2f1   : > { %v4473_v10 = vunpack.c.l.b16 %v4355_v22 }
 0x2f2   : > { %v14021_v32 = vadd.f32 %v3460_v46, %v3199_v35  ;;  %v17486_v46 = vld [vmem:[#allocation22_spill] sm:$0xff] }
 0x2f3   : > { %v1251_v55 = vadd.f32 %v17487_v39, %v17486_v46  ;;  %v4507_v59 = vpack.c.b16 %v4473_v10, %v4472_v50  ;;  %v11473_v35 = vld [vmem:[%s12441_s12 + $0x30] sm:$0xe]  ;;  %v17491_v50 = vld [vmem:[#allocation16_spill] sm:$0xff] }
 0x2f4   : > { %v11491_v0 = vrot.slane %v11473_v35, 9 }
 0x2f5   : > { %v2695_v7 = vpop.f32.mrf.mxu0  ;;  %v1701_v48 = vadd.f32 %v17489_v34, %v1251_v55 }
 0x2f6   : > { %v14028_v13 = vadd.f32 %v2695_v7, %v2020_v28  ;;  %v12308_v28 = vld [vmem:[%s12441_s12 + $0x38] sm:$0x1]  ;;  %v4359_v39 = vsel %vm12457_vm5, %v11491_v0, %v4358_v53  ;;  %v14051_v55 = vpop.f32.mrf.mxu2  ;;  %v11474_v0 = vld [vmem:[%s12441_s12 + $0x3c] sm:$0xe] }
 0x2f7   : > { %v4361_v7 = vrot.slane %v12308_v28, 5  ;;  %v14044_v22 = vpop.f32.mrf.mxu1  ;;  %v2022_v10 = vadd.f32 %v17491_v50, %v1701_v48  ;;  %17492 = vst [vmem:[#allocation13_spill] sm:$0xff] %v14051_v55  ;;  %v17495_v50 = vld [vmem:[#allocation24_spill] sm:$0xff] }
 0x2f8   : > { %17490 = vst [vmem:[#allocation4_spill] sm:$0xff] %v14044_v22  ;;  %v12311_v22 = vld [vmem:[%s12441_s12 + $0x4c] sm:$0xf] }
 0x2f9   : > { %v4372_v11 = vrot.slane %v12311_v22, 5  ;;  %v17509_v22 = vld [vmem:[#allocation28_spill] sm:$0xff] }
 0x2fd   : > { %v2698_v12 = vpop.f32.mrf.mxu0 }
 0x2fe   : > { %v2755_v30 = vadd.f32 %v2698_v12, %v17488_v56  ;;  %v4474_v12 = vunpack.c.l.b16 %v4359_v39  ;;  %v17494_v56 = vld [vmem:[#allocation19_spill] sm:$0xff]  ;;  %v12310_v39 = vld [vmem:[%s12441_s12 + $0x44] sm:$0x1] }
 0x300   : > { %v3201_v40 = vadd.f32 %v3144_v9, %v2755_v30  ;;  %11509 = vmatmul.msk.bf16.gmra.mxu0 %vm17414_vm7, %v4507_v59  ;;  %v4362_v9 = vsel %vm12457_vm5, %v4360_v16, %v4361_v7  ;;  %v1256_v30 = vadd.f32 %v17494_v56, %v17493_v41  ;;  %v3475_v16 = vpop.f32.mrf.mxu2  ;;  %v17497_v7 = vld [vmem:[#allocation21_spill] sm:$0xff]  ;;  %v17498_v41 = vld [vmem:[#allocation23_spill] sm:$0xff] }
 0x302   : > { %v14042_v18 = vadd.f32 %v3465_v57, %v3201_v40  ;;  %v4475_v57 = vunpack.c.l.b16 %v4362_v9  ;;  %v12309_v40 = vld [vmem:[%s12441_s12 + $0x40] sm:$0xf]  ;;  %v1703_v55 = vadd.f32 %v17497_v7, %v1256_v30  ;;  %v4368_v9 = vrot.slane %v12310_v39, 5  ;;  %v17502_v7 = vld [vmem:[#allocation30_spill] sm:$0xff] }
 0x303   : > { %v3154_v48 = vpop.f32.mrf.mxu1  ;;  %v4365_v28 = vrot.slane %v12309_v40, 5  ;;  %v17503_v39 = vld [vmem:[#allocation26_spill] sm:$0xff] }
 0x304   : > { %v4508_v35 = vpack.c.b16 %v4475_v57, %v4474_v12  ;;  %v2024_v12 = vadd.f32 %v17498_v41, %v1703_v55  ;;  %v1261_v27 = vadd.f32 %v17503_v39, %v17502_v7 }
 0x305   : > { %v2700_v46 = vpop.f32.mrf.mxu0 }
 0x306   : > { %v14053_v59 = vadd.f32 %v2700_v46, %v2022_v10  ;;  %v11492_v10 = vrot.slane %v11474_v0, 9  ;;  %v4367_v46 = vrot.slane %v4365_v28, 4 }
 0x308   : > { %v4366_v56 = vsel %vm12457_vm5, %v11492_v10, %v4365_v28  ;;  %v14074_v0 = vpop.f32.mrf.mxu2  ;;  %v17504_v28 = vld [vmem:[#allocation29_spill] sm:$0xff] }
 0x309   : > { %17501 = vst [vmem:[#allocation7_spill] sm:$0xff] %v14074_v0  ;;  %v12312_v0 = vld [vmem:[%s12441_s12 + $0x50] sm:$0x1] }
 0x30b   : > { %v14072_v30 = vpop.f32.mrf.mxu1 }
 0x30c   : > { %17500 = vst [vmem:[#allocation6_spill] sm:$0xff] %v14072_v30  ;;  %v4375_v30 = vrot.slane %v12312_v0, 5 }
 0x30d   : > { %v2703_v34 = vpop.f32.mrf.mxu0 }
 0x30e   : > { %v14059_v53 = vadd.f32 %v2703_v34, %v17495_v50  ;;  %v4369_v34 = vsel %vm12457_vm5, %v4367_v46, %v4368_v9  ;;  %v17505_v46 = vld [vmem:[#allocation27_spill] sm:$0xff] }
 0x30f   : > { %v4477_v50 = vunpack.c.l.b16 %v4369_v34  ;;  %v1705_v9 = vadd.f32 %v17505_v46, %v1261_v27  ;;  %v4374_v34 = vrot.slane %v4372_v11, 4 }
 0x310   : > { %17496 = vst [vmem:[#allocation5_spill] sm:$0xff] %v14059_v53  ;;  %11510 = vmatmul.msk.bf16.gmra.mxu0 %vm17414_vm7, %v4508_v35  ;;  %v4476_v35 = vunpack.c.l.b16 %v4366_v56  ;;  %v11475_v53 = vld [vmem:[%s12441_s12 + $0x48] sm:$0xe] }
 0x311   : > { %v11493_v56 = vrot.slane %v11475_v53, 9 }
 0x312   : > { %v4509_v55 = vpack.c.b16 %v4477_v50, %v4476_v35  ;;  %v14088_v35 = vpop.f32.mrf.mxu2  ;;  %v2026_v50 = vadd.f32 %v17509_v22, %v1705_v9  ;;  %v12313_v22 = vld [vmem:[%s12441_s12 + $0x58] sm:$0xf] }
 0x313   : > { %17508 = vst [vmem:[#allocation17_spill] sm:$0xff] %v14088_v35  ;;  %v4373_v27 = vsel %vm12457_vm5, %v11493_v56, %v4372_v11  ;;  %v17515_v11 = vld [vmem:[#allocation34_spill] sm:$0xff] }
 0x314   : > { %v4478_v53 = vunpack.c.l.b16 %v4373_v27 }
 0x315   : > { %v2705_v57 = vpop.f32.mrf.mxu0 }
 0x316   : > { %v14070_v40 = vadd.f32 %v2705_v57, %v2024_v12  ;;  %v14083_v57 = vpop.f32.mrf.mxu1 }
 0x317   : > { %17506 = vst [vmem:[#allocation18_spill] sm:$0xff] %v14083_v57 }
 0x318   : > { %17499 = vst [vmem:[#allocation12_spill] sm:$0xff] %v14070_v40  ;;  %v11477_v40 = vld [vmem:[%s12441_s12 + $0x60] sm:$0xe] }
 0x31a   : > { %v14101_v9 = vpop.f32.mrf.mxu2 }
 0x31b   : > { %17514 = vst [vmem:[#allocation22_spill] sm:$0xff] %v14101_v9  ;;  %v17520_v9 = vld [vmem:[#allocation36_spill] sm:$0xff] }
 0x31d   : > { %v2708_v41 = vpop.f32.mrf.mxu0 }
 0x31e   : > { %v2759_v10 = vadd.f32 %v2708_v41, %v17504_v28  ;;  %v14097_v0 = vpop.f32.mrf.mxu1  ;;  %v17513_v28 = vld [vmem:[#allocation31_spill] sm:$0xff] }
 0x31f   : > { %17511 = vst [vmem:[#allocation11_spill] sm:$0xff] %v14097_v0 }
 0x320   : > { %v3205_v12 = vadd.f32 %v3154_v48, %v2759_v10  ;;  %11511 = vmatmul.msk.bf16.gmra.mxu0 %vm17414_vm7, %v4509_v55  ;;  %v4376_v48 = vsel %vm12457_vm5, %v4374_v34, %v4375_v30  ;;  %v11476_v30 = vld [vmem:[%s12441_s12 + $0x54] sm:$0xe]  ;;  %v17517_v34 = vld [vmem:[#allocation32_spill] sm:$0xff] }
 0x321   : > { %v4479_v41 = vunpack.c.l.b16 %v4376_v48  ;;  %v12314_v48 = vld [vmem:[%s12441_s12 + $0x5c] sm:$0x1] }
 0x322   : > { %v14086_v7 = vadd.f32 %v3475_v16, %v3205_v12  ;;  %v17512_v16 = vld [vmem:[#allocation35_spill] sm:$0xff]  ;;  %v4382_v0 = vrot.slane %v12314_v48, 5 }
 0x323   : > { %v1266_v10 = vadd.f32 %v17513_v28, %v17512_v16  ;;  %v4510_v46 = vpack.c.b16 %v4479_v41, %v4478_v53  ;;  %v17518_v16 = vld [vmem:[#allocation33_spill] sm:$0xff] }
 0x324   : > { %17507 = vst [vmem:[#allocation9_spill] sm:$0xff] %v14086_v7  ;;  %v4379_v7 = vrot.slane %v12313_v22, 5 }
 0x325   : > { %v2710_v39 = vpop.f32.mrf.mxu0 }
 0x326   : > { %v14095_v55 = vadd.f32 %v2710_v39, %v2026_v50  ;;  %v1707_v50 = vadd.f32 %v17517_v34, %v1266_v10  ;;  %v11494_v39 = vrot.slane %v11476_v30, 9  ;;  %v4381_v27 = vrot.slane %v4379_v7, 4  ;;  %v3164_v28 = vpop.f32.mrf.mxu1  ;;  %v3485_v10 = vpop.f32.mrf.mxu2  ;;  %v17519_v34 = vld [vmem:[#allocation40_spill] sm:$0xff] }
 0x327   : > { %v1271_v48 = vadd.f32 %v17520_v9, %v17519_v34  ;;  %v12316_v9 = vld [vmem:[%s12441_s12 + $0x68] sm:$0x1] }
 0x328   : > { %17510 = vst [vmem:[#allocation10_spill] sm:$0xff] %v14095_v55  ;;  %v2028_v53 = vadd.f32 %v17518_v16, %v1707_v50  ;;  %v4380_v22 = vsel %vm12457_vm5, %v11494_v39, %v4379_v7  ;;  %v12315_v50 = vld [vmem:[%s12441_s12 + $0x64] sm:$0xf]  ;;  %v17523_v39 = vld [vmem:[#allocation37_spill] sm:$0xff] }
 0x329   : > { %v4386_v16 = vrot.slane %v12315_v50, 5 }
 0x32d   : > { %v2713_v12 = vpop.f32.mrf.mxu0 }
 0x32e   : > { %v14105_v56 = vadd.f32 %v2713_v12, %v17515_v11  ;;  %v4383_v12 = vsel %vm12457_vm5, %v4381_v27, %v4382_v0  ;;  %v14123_v7 = vpop.f32.mrf.mxu1  ;;  %v1709_v0 = vadd.f32 %v17523_v39, %v1271_v48  ;;  %v17531_v39 = vld [vmem:[#allocation41_spill] sm:$0xff] }
 0x32f   : > { %v4481_v30 = vunpack.c.l.b16 %v4383_v12  ;;  %17522 = vst [vmem:[#allocation20_spill] sm:$0xff] %v14123_v7  ;;  %v4389_v12 = vrot.slane %v12316_v9, 5 }
 0x330   : > { %17516 = vst [vmem:[#allocation14_spill] sm:$0xff] %v14105_v56  ;;  %11512 = vmatmul.msk.bf16.gmra.mxu0 %vm17414_vm7, %v4510_v46  ;;  %v4480_v46 = vunpack.c.l.b16 %v4380_v22  ;;  %v17521_v56 = vld [vmem:[#allocation39_spill] sm:$0xff]  ;;  %v4388_v22 = vrot.slane %v4386_v16, 4 }
 0x332   : > { %v4511_v35 = vpack.c.b16 %v4481_v30, %v4480_v46  ;;  %v17526_v30 = vld [vmem:[#allocation38_spill] sm:$0xff] }
 0x335   : > { %v2715_v41 = vpop.f32.mrf.mxu0 }
 0x336   : > { %v14116_v11 = vadd.f32 %v2715_v41, %v2028_v53  ;;  %v14127_v53 = vpop.f32.mrf.mxu2  ;;  %v11495_v41 = vrot.slane %v11477_v40, 9  ;;  %v14139_v48 = vpop.f32.mrf.mxu1 }
 0x337   : > { %17524 = vst [vmem:[#allocation15_spill] sm:$0xff] %v14127_v53 }
 0x338   : > { %v4387_v34 = vsel %vm12457_vm5, %v11495_v41, %v4386_v16  ;;  %17528 = vst [vmem:[#allocation19_spill] sm:$0xff] %v14139_v48  ;;  %v17532_v16 = vld [vmem:[#allocation42_spill] sm:$0xff] }
 0x339   : > { %v4482_v40 = vunpack.c.l.b16 %v4387_v34 }
 0x33d   : > { %v2718_v57 = vpop.f32.mrf.mxu0 }
 0x33e   : > { %v2763_v55 = vadd.f32 %v2718_v57, %v17521_v56  ;;  %v2030_v57 = vadd.f32 %v17526_v30, %v1709_v0  ;;  %v14141_v50 = vpop.f32.mrf.mxu2  ;;  %v12317_v30 = vld [vmem:[%s12441_s12 + $0x70] sm:$0xf]  ;;  %v14153_v48 = vpop.f32.mrf.mxu1 }
 0x33f   : > { %17529 = vst [vmem:[#allocation24_spill] sm:$0xff] %v14141_v50 }
 0x340   : > { %v3209_v27 = vadd.f32 %v3164_v28, %v2763_v55  ;;  %11513 = vmatmul.msk.bf16.gmra.mxu0 %vm17414_vm7, %v4511_v35  ;;  %v4390_v55 = vsel %vm12457_vm5, %v4388_v22, %v4389_v12  ;;  %v11478_v22 = vld [vmem:[%s12441_s12 + $0x6c] sm:$0xe]  ;;  %v17534_v12 = vld [vmem:[#allocation43_spill] sm:$0xff]  ;;  %17535 = vst [vmem:[#allocation23_spill] sm:$0xff] %v14153_v48 }
 0x341   : > { %v4483_v28 = vunpack.c.l.b16 %v4390_v55  ;;  %v12318_v55 = vld [vmem:[%s12441_s12 + $0x74] sm:$0x1] }
 0x342   : > { %v14130_v46 = vadd.f32 %v3485_v10, %v3209_v27  ;;  %v17530_v10 = vld [vmem:[#allocation44_spill] sm:$0xff]  ;;  %v4396_v50 = vrot.slane %v12318_v55, 5 }
 0x343   : > { %v1276_v27 = vadd.f32 %v17531_v39, %v17530_v10  ;;  %v4512_v0 = vpack.c.b16 %v4483_v28, %v4482_v40  ;;  %v17536_v10 = vld [vmem:[#allocation45_spill] sm:$0xff] }
 0x344   : > { %17525 = vst [vmem:[#allocation16_spill] sm:$0xff] %v14130_v46  ;;  %v4393_v46 = vrot.slane %v12317_v30, 5 }
 0x345   : > { %v2720_v56 = vpop.f32.mrf.mxu0 }
 0x346   : > { %v14137_v35 = vadd.f32 %v2720_v56, %v2030_v57  ;;  %v1711_v57 = vadd.f32 %v17534_v12, %v1276_v27  ;;  %v11496_v56 = vrot.slane %v11478_v22, 9  ;;  %v4395_v34 = vrot.slane %v4393_v46, 4  ;;  %v14156_v39 = vpop.f32.mrf.mxu2  ;;  %v17538_v22 = vld [vmem:[#allocation47_spill] sm:$0xff]  ;;  %v17539_v12 = vld [vmem:[#allocation48_spill] sm:$0xff] }
 0x347   : > { %17537 = vst [vmem:[#allocation30_spill] sm:$0xff] %v14156_v39  ;;  %v1281_v55 = vadd.f32 %v17539_v12, %v17538_v22  ;;  %v17540_v39 = vld [vmem:[#allocation46_spill] sm:$0xff] }
 0x348   : > { %17527 = vst [vmem:[#allocation25_spill] sm:$0xff] %v14137_v35  ;;  %v2032_v40 = vadd.f32 %v17536_v10, %v1711_v57  ;;  %v4397_v27 = vsel %vm12457_vm5, %v4395_v34, %v4396_v50  ;;  %v3174_v57 = vpop.f32.mrf.mxu1  ;;  %v12319_v10 = vld [vmem:[%s12441_s12 + $0x7c] sm:$0xf]  ;;  %v11479_v35 = vld [vmem:[%s12441_s12 + $0x78] sm:$0xe]  ;;  %v17541_v50 = vld [vmem:[#allocation49_spill] sm:$0xff] }
 0x349   : > { %v4400_v53 = vrot.slane %v12319_v10, 5  ;;  %v1713_v34 = vadd.f32 %v17541_v50, %v1281_v55  ;;  %v17543_v22 = vld [vmem:[#allocation50_spill] sm:$0xff]  ;;  %v14186_v10 = vld [vmem:[%s14009_s17] ss:$0 sm:$0xff] }
 0x34d   : > { %v2723_v9 = vpop.f32.mrf.mxu0 }
 0x34e   : > { %v14147_v41 = vadd.f32 %v2723_v9, %v17532_v16  ;;  %v4394_v9 = vsel %vm12457_vm5, %v11496_v56, %v4393_v46  ;;  %v4485_v16 = vunpack.c.l.b16 %v4397_v27  ;;  %v14169_v46 = vpop.f32.mrf.mxu3  ;;  %v3495_v56 = vpop.f32.mrf.mxu2  ;;  %v12320_v27 = vld [vmem:[%s12441_s12 + $0x80] sm:$0x1] }
 0x34f   : > { %v4484_v30 = vunpack.c.l.b16 %v4394_v9  ;;  %v4402_v9 = vrot.slane %v4400_v53, 4 }
 0x350   : > { %17533 = vst [vmem:[#allocation21_spill] sm:$0xff] %v14147_v41  ;;  %11514 = vmatmul.msk.bf16.gmra.mxu0 %vm17414_vm7, %v4512_v0 }
 0x351   : > { %v4513_v48 = vpack.c.b16 %v4485_v16, %v4484_v30  ;;  %v4403_v30 = vrot.slane %v12320_v27, 5  ;;  %v17545_v27 = vld [vmem:[#allocation51_spill] sm:$0xff] }
 0x353   : > { %v4404_v55 = vsel %vm12457_vm5, %v4402_v9, %v4403_v30  ;;  %v12322_v30 = vld [vmem:[%s12441_s12 + $0x8c] sm:$0x1] }
 0x355   : > { %v2725_v28 = vpop.f32.mrf.mxu0 }
 0x356   : > { %v14162_v0 = vadd.f32 %v2725_v28, %v2032_v40  ;;  %v11497_v28 = vrot.slane %v11479_v35, 9 }
 0x358   : > { %v4401_v12 = vsel %vm12457_vm5, %v11497_v28, %v4400_v53 }
 0x359   : > { %v4486_v35 = vunpack.c.l.b16 %v4401_v12 }
 0x35d   : > { %v2728_v41 = vpop.f32.mrf.mxu0 }
 0x35e   : > { %v2767_v7 = vadd.f32 %v2728_v41, %v17540_v39  ;;  %v2034_v41 = vadd.f32 %v17543_v22, %v1713_v34 }
 0x360   : > { %v3213_v40 = vadd.f32 %v3174_v57, %v2767_v7  ;;  %11515 = vmatmul.msk.bf16.gmra.mxu0 %vm17414_vm7, %v4513_v48  ;;  %v4487_v48 = vunpack.c.l.b16 %v4404_v55  ;;  %v14183_v57 = vpop.f32.mrf.mxu3 }
 0x362   : > { %v14174_v16 = vadd.f32 %v3495_v56, %v3213_v40  ;;  %v4514_v56 = vpack.c.b16 %v4487_v48, %v4486_v35  ;;  %v12321_v40 = vld [vmem:[%s12441_s12 + $0x88] sm:$0xf] }
 0x363   : > { %v4407_v34 = vrot.slane %v12321_v40, 5 }
 0x364   : > { %17542 = vst [vmem:[#allocation26_spill] sm:$0xff] %v14174_v16  ;;  %v11480_v16 = vld [vmem:[%s12441_s12 + $0x84] sm:$0xe] }
 0x365   : > { %v2730_v39 = vpop.f32.mrf.mxu0  ;;  %v11498_v28 = vrot.slane %v11480_v16, 9  ;;  %v4409_v9 = vrot.slane %v4407_v34, 4 }
 0x366   : > { %v14181_v7 = vadd.f32 %v2730_v39, %v2034_v41  ;;  %v4410_v41 = vrot.slane %v12322_v30, 5 }
 0x367   : > { %v4408_v35 = vsel %vm12457_vm5, %v11498_v28, %v4407_v34 }
 0x368   : > { %17544 = vst [vmem:[#allocation29_spill] sm:$0xff] %v14181_v7  ;;  %v4179_v12 = vpop.f32.mrf.mxu3  ;;  %v4411_v48 = vsel %vm12457_vm5, %v4409_v9, %v4410_v41  ;;  %v12323_v7 = vld [vmem:[%s12441_s12 + $0x94] sm:$0xf]  ;;  %v11481_v41 = vld [vmem:[%s12441_s12 + $0x90] sm:$0xe] }
 0x369   : > { %v4489_v40 = vunpack.c.l.b16 %v4411_v48  ;;  %v4414_v34 = vrot.slane %v12323_v7, 5  ;;  %v3192_v7 = vadd.f32 %v13814_v43, %v13912_v31 }
 0x36b   : > { %v4416_v48 = vrot.slane %v4414_v34, 4  ;;  %v3513_v43 = vadd.f32 %v13816_v47, %v3192_v7 }
 0x36d   : > { %v4590_v50 = vpop.f32.mrf.mxu0 }
 0x36e   : > { %v4680_v22 = vadd.f32 %v4590_v50, %v17545_v27 }
 0x370   : > { %v14192_v53 = vadd.f32 %v14186_v10, %v4680_v22  ;;  %11516 = vmatmul.msk.bf16.gmra.mxu0 %vm17414_vm7, %v4514_v56  ;;  %v4488_v56 = vunpack.c.l.b16 %v4408_v35  ;;  %v14207_v28 = vpop.f32.mrf.mxu3  ;;  %v11499_v35 = vrot.slane %v11481_v41, 9 }
 0x372   : > { %v11526_v39 = vmul.f32 -1.442695, %v14192_v53  ;;  %v4415_v41 = vsel %vm12457_vm5, %v11499_v35, %v4414_v34 }
 0x374   : > { %12155 = vpow2.f32 %v11526_v39  ;;  %v4515_v39 = vpack.c.b16 %v4489_v40, %v4488_v56  ;;  %v3191_v56 = vadd.f32 %v13793_v36, %v13888_v4  ;;  %v3193_v40 = vadd.f32 %v13842_v49, %v13935_v20 }
 0x375   : > { %v4592_v55 = vpop.f32.mrf.mxu0  ;;  %v3194_v20 = vadd.f32 %v13864_v38, %v13956_v60  ;;  %v14245_v38 = vadd.f32 %v14183_v57, %v3513_v43 }
 0x376   : > { %v4681_v50 = vadd.f32 %v4592_v55, %v13600_v33  ;;  %v3512_v4 = vadd.f32 %v13795_v63, %v3191_v56  ;;  %v3514_v49 = vadd.f32 %v13844_v19, %v3193_v40 }
 0x378   : > { %v14203_v16 = vadd.f32 %v14186_v10, %v4681_v50  ;;  %v12324_v50 = vld [vmem:[%s12441_s12 + $0x98] sm:$0x1]  ;;  %v14236_v34 = vpop.f32.mrf.mxu3  ;;  %v14242_v56 = vadd.f32 %v14169_v46, %v3512_v4  ;;  %v14247_v60 = vadd.f32 %v4179_v12, %v3514_v49  ;;  %v3196_v46 = vadd.f32 %v13917_v44, %v13985_v42 }
 0x37a   : > { %v12156_v27 = vpop.eup %12155  ;;  %v11527_v22 = vmul.f32 -1.442695, %v14203_v16 }
 0x37b   : > { %v4864_v30 = vadd.f32 1.0, %v12156_v27  ;;  %v4417_v27 = vrot.slane %v12324_v50, 5 }
 0x37c   : > { %12157 = vpow2.f32 %v11527_v22 }
 0x37d   : > { %12159 = vrcp.f32 %v4864_v30  ;;  %v4595_v9 = vpop.f32.mrf.mxu0  ;;  %v4418_v36 = vsel %vm12457_vm5, %v4416_v48, %v4417_v27  ;;  %v4911_v35 = vand.u32 2147483648, %v4864_v30  ;;  %v4490_v48 = vunpack.c.l.b16 %v4415_v41 }
 0x37e   : > { %v4682_v33 = vadd.f32 %v4595_v9, %v13636_v21  ;;  %v4491_v63 = vunpack.c.l.b16 %v4418_v36  ;;  %v4909_v47 = vand.u32 2147483647, %v4864_v30  ;;  %vm4905_vm10 = vweird.f32 %v4864_v30  ;;  %v11482_v36 = vld [vmem:[%s12441_s12 + $0x9c] sm:$0xe] }
 0x37f   : > { %v4912_v57 = vor.u32 1.1754944e-38, %v4911_v35  ;;  %v12326_v35 = vld [vmem:[%s12441_s12 + $0xa4] sm:$0x1] }
 0x380   : > { %v14212_v55 = vadd.f32 %v14186_v10, %v4682_v33  ;;  %11517 = vmatmul.msk.bf16.gmra.mxu0 %vm17414_vm7, %v4515_v39  ;;  %v4516_v4 = vpack.c.b16 %v4491_v63, %v4490_v48  ;;  %vm4910_vm12 = vcmp.eq.f32.partialorder %v4909_v47, 8.507059e+37 }
 0x382   : > { %v12158_v22 = vpop.eup %12157  ;;  %v11528_v21 = vmul.f32 -1.442695, %v14212_v55 }
 0x383   : > { %v12160_v9 = vpop.eup %12159  ;;  %v14223_v33 = vadd.f32 1.0, %v12158_v22 }
 0x384   : > { %v4901_v39 = vmul.f32 %v12160_v9, %v4864_v30  ;;  %12161 = vpow2.f32 %v11528_v21  ;;  %vm4906_vm9 = vweird.f32 %v12160_v9  ;;  %v3515_v21 = vadd.f32 %v13866_v2, %v3194_v20 }
 0x385   : > { %12163 = vrcp.f32 %v14223_v33  ;;  %v4597_v31 = vpop.f32.mrf.mxu0  ;;  %vm4907_vm11 = vmor %vm4905_vm10, %vm4906_vm9  ;;  %v11500_v20 = vrot.slane %v11482_v36, 9  ;;  %v4924_v63 = vand.u32 2147483647, %v14223_v33  ;;  %v4926_v47 = vand.u32 2147483648, %v14223_v33 }
 0x386   : > { %v4902_v50 = vsub.f32 1.0, %v4901_v39  ;;  %v4683_v22 = vadd.f32 %v4597_v31, %v13655_v15  ;;  %v12325_v15 = vld [vmem:[%s12441_s12 + $0xa0] sm:$0xf]  ;;  %v14264_v48 = vadd.f32 %v14207_v28, %v3515_v21  ;;  %v14279_v28 = vadd.f32 %v13962_v37, %v14001_v6 }
 0x387   : > { %v4421_v7 = vrot.slane %v12325_v15, 5  ;;  %vm4920_vm2 = vweird.f32 %v14223_v33  ;;  %vm4925_vm10 = vcmp.eq.f32.partialorder %v4924_v63, 8.507059e+37  ;;  %v4927_v37 = vor.u32 1.1754944e-38, %v4926_v47 }
 0x388   : > { %v4903_v27 = vmul.f32 %v12160_v9, %v4902_v50  ;;  %v14239_v19 = vadd.f32 %v14186_v10, %v4683_v22 }
 0x389   : > { %v4423_v50 = vrot.slane %v4421_v7, 4 }
 0x38a   : > { %v12162_v40 = vpop.eup %12161  ;;  %v4904_v39 = vadd.f32 %v12160_v9, %v4903_v27  ;;  %v11529_v41 = vmul.f32 -1.442695, %v14239_v19  ;;  %v4424_v27 = vrot.slane %v12326_v35, 5 }
 0x38b   : > { %v12164_v31 = vpop.eup %12163  ;;  %v14256_v12 = vadd.f32 1.0, %v12162_v40 }
 0x38c   : > { %v4908_v43 = vsel %vm4907_vm11, %v12160_v9, %v4904_v39  ;;  %v4916_v2 = vmul.f32 %v12164_v31, %v14223_v33  ;;  %12165 = vpow2.f32 %v11529_v41  ;;  %v14267_v9 = vadd.f32 %v13919_v24, %v3196_v46  ;;  %vm14296_vm11 = vmand %vm5875_vm14, %vm5876_vm15 }
 0x38d   : > { %v4913_v30 = vsel %vm4910_vm12, %v4912_v57, %v4908_v43  ;;  %12167 = vrcp.f32 %v14256_v12  ;;  %v4600_v49 = vpop.f32.mrf.mxu0  ;;  %vm4921_vm13 = vweird.f32 %v12164_v31  ;;  %v4422_v24 = vsel %vm12457_vm5, %v11500_v20, %v4421_v7 }
 0x38e   : > { %v5440_v44 = vmul.f32 %v4913_v30, %v14192_v53  ;;  %v4917_v42 = vsub.f32 1.0, %v4916_v2  ;;  %v4684_v22 = vadd.f32 %v4600_v49, %v13688_v23  ;;  %v14275_v23 = vpop.f32.mrf.mxu3  ;;  %v4425_v36 = vsel %vm12457_vm5, %v4423_v50, %v4424_v27  ;;  %vm4922_vm9 = vmor %vm4920_vm2, %vm4921_vm13  ;;  %v11483_v2 = vld [vmem:[%s12441_s12 + $0xa8] sm:$0xe]  ;;  %v5878_v49 = vld [vmem:[#allocation2] sm:$0xf] }
 0x38f   : > { %v4939_v27 = vand.u32 2147483647, %v14256_v12  ;;  %v4941_v63 = vand.u32 2147483648, %v14256_v12  ;;  %vm4935_vm13 = vweird.f32 %v14256_v12 }
 0x390   : > { %v5476_v15 = vpack.c.bf16 %v5440_v44, %v5440_v44  ;;  %v4918_v40 = vmul.f32 %v12164_v31, %v4917_v42  ;;  %v14272_v53 = vadd.f32 %v14186_v10, %v4684_v22  ;;  %11518 = vmatmul.msk.bf16.gmra.mxu0 %vm17414_vm7, %v4516_v4  ;;  %v4492_v44 = vunpack.c.l.b16 %v4422_v24 }
 0x391   : > { %v4493_v42 = vunpack.c.l.b16 %v4425_v36  ;;  %vm14313_vm2 = vcmp.eq.f32.partialorder %v4939_v27, 8.507059e+37 }
 0x392   : > { %v12166_v21 = vpop.eup %12165  ;;  %v5516_v39 = vshrl.u32 %v5476_v15, 16  ;;  %v4919_v41 = vadd.f32 %v12164_v31, %v4918_v40  ;;  %v11530_v7 = vmul.f32 -1.442695, %v14272_v53  ;;  %v5519_v4 = vshll.u32 %v5476_v15, 16 }
 0x393   : > { %v12168_v46 = vpop.eup %12167  ;;  %v14287_v6 = vadd.f32 1.0, %v12166_v21  ;;  %v11501_v15 = vrot.slane %v11483_v2, 9 }
 0x394   : > { %v14290_v57 = vrot.slane %v5516_v39, 7  ;;  %v4923_v43 = vsel %vm4922_vm9, %v12164_v31, %v4919_v41  ;;  %v4931_v33 = vmul.f32 %v12168_v46, %v14256_v12  ;;  %vm4936_vm12 = vweird.f32 %v12168_v46  ;;  %v12327_v41 = vld [vmem:[%s12441_s12 + $0xac] sm:$0xf] }
 0x395   : > { %v4928_v20 = vsel %vm4925_vm10, %v4927_v37, %v4923_v43  ;;  %12169 = vrcp.f32 %v14287_v6  ;;  %v4602_v50 = vpop.f32.mrf.mxu0  ;;  %v4428_v36 = vrot.slane %v12327_v41, 5  ;;  %vm4937_vm9 = vmor %vm4935_vm13, %vm4936_vm12 }
 0x396   : > { %v5521_v22 = vor.u32 %v5519_v4, %v14290_v57  ;;  %v5441_v31 = vmul.f32 %v4928_v20, %v14203_v16  ;;  %v4932_v35 = vsub.f32 1.0, %v4931_v33  ;;  %12171 = vpow2.f32 %v11530_v7  ;;  %v14319_v43 = vpop.f32.mrf.mxu3  ;;  %v12328_v20 = vld [vmem:[%s12441_s12 + $0xb0] sm:$0x1]  ;;  %vm14332_vm10 = vmor %vm5512_vm1, %vm5513_vm3 }
 0x397   : > { %v4685_v47 = vadd.f32 %v4602_v50, %v13718_v45  ;;  %v4517_v16 = vpack.c.b16 %v4493_v42, %v4492_v44  ;;  %v4942_v33 = vor.u32 1.1754944e-38, %v4941_v63  ;;  %v4431_v50 = vrot.slane %v12328_v20, 5  ;;  %vm14340_vm12 = vmand %vm5883_vm4, %vm5512_vm1 }
 0x398   : > { %v5879_v40 = vsel %vm14296_vm11, %v5521_v22, %v5878_v49  ;;  %v5477_v21 = vpack.c.bf16 %v5441_v31, %v5441_v31  ;;  %v4933_v24 = vmul.f32 %v12168_v46, %v4932_v35  ;;  %v14324_v49 = vsel %vm12457_vm5, %v11501_v15, %v4428_v36 }
 0x399   : > { %5880 = vst [vmem:[#allocation2] sm:$0xf] %v5879_v40  ;;  %v14309_v39 = vadd.f32 %v14186_v10, %v4685_v47  ;;  %v5522_v35 = vrot.slane %v14290_v57, 4  ;;  %v4430_v15 = vrot.slane %v4428_v36, 4  ;;  %vm4950_vm3 = vweird.f32 %v14287_v6 }
 0x39a   : > { %v5524_v37 = vshrl.u32 %v5477_v21, 16  ;;  %v4934_v4 = vadd.f32 %v12168_v46, %v4933_v24  ;;  %v5527_v12 = vshll.u32 %v5477_v21, 16  ;;  %v5885_v21 = vld [vmem:[#allocation2 + $0x8] sm:$0x1] }
 0x39b   : > { %v14317_v7 = vpop.eup %12169  ;;  %v11531_v2 = vmul.f32 -1.442695, %v14309_v39 }
 0x39c   : > { %v5526_v44 = vrot.slane %v5524_v37, 7  ;;  %v4938_v42 = vsel %vm4937_vm9, %v12168_v46, %v4934_v4  ;;  %v4946_v22 = vmul.f32 %v14317_v7, %v14287_v6  ;;  %v12172_v31 = vpop.eup %12171  ;;  %v4954_v37 = vand.u32 2147483647, %v14287_v6  ;;  %vm14410_vm9 = vmand %vm5883_vm4, %vm5876_vm15 }
 0x39d   : > { %v4943_v63 = vsel %vm14313_vm2, %v4942_v33, %v4938_v42  ;;  %12173 = vpow2.f32 %v11531_v2  ;;  %v4605_v47 = vpop.f32.mrf.mxu0  ;;  %v4956_v4 = vand.u32 2147483648, %v14287_v6  ;;  %v14347_v45 = vadd.f32 1.0, %v12172_v31  ;;  %v5888_v31 = vld [vmem:[#allocation2 + $0xc] sm:$0xf] }
 0x39e   : > { %v5529_v40 = vor.u32 %v5527_v12, %v5526_v44  ;;  %v5531_v57 = vrot.slane %v5526_v44, 4  ;;  %v5442_v24 = vmul.f32 %v4943_v63, %v14212_v55  ;;  %v4947_v41 = vsub.f32 1.0, %v4946_v22 }
 0x39f   : > { %v4686_v36 = vadd.f32 %v4605_v47, %v13754_v17  ;;  %vm4951_vm1 = vweird.f32 %v14317_v7  ;;  %v3519_v55 = vadd.f32 %v13964_v8, %v14279_v28  ;;  %12175 = vrcp.f32 %v14347_v45 }
 0x3a0   : > { %v6007_v33 = vld [vmem:[#allocation2] sm:$0x1]  ;;  %v5530_v2 = vsel %vm14332_vm10, %v5522_v35, %v5529_v40  ;;  %v5478_v20 = vpack.c.bf16 %v5442_v24, %v5442_v24  ;;  %v4948_v12 = vmul.f32 %v14317_v7, %v4947_v41  ;;  %11519 = vmatmul.msk.bf16.gmra.mxu0 %vm17414_vm7, %v4517_v16  ;;  %v5886_v17 = vsel %vm14340_vm12, %v5531_v57, %v5885_v21  ;;  %vm4952_vm13 = vmor %vm4950_vm3, %vm4951_vm1  ;;  %v4191_v57 = vpop.f32.mrf.mxu3 }
 0x3a1   : > { %v6008_v44 = vsel %vm14340_vm12, 0, %v6007_v33  ;;  %5882 = vst.msk [vmem:[#allocation2 + $0x4] sm:$0xf] %vm5875_vm14, %v5530_v2  ;;  %v4432_v16 = vsel %vm12457_vm5, %v4430_v15, %v4431_v50  ;;  %v17416_v28 = vmov 0   ;;  %vm4955_vm2 = vcmp.eq.f32.partialorder %v4954_v37, 8.507059e+37 }
 0x3a2   : > { %6009 = vst [vmem:[#allocation2] sm:$0x1] %v6008_v44  ;;  %v5533_v42 = vshrl.u32 %v5478_v20, 16  ;;  %v4949_v22 = vadd.f32 %v14317_v7, %v4948_v12  ;;  %v4957_v35 = vor.u32 1.1754944e-38, %v4956_v4  ;;  %v14372_v63 = vadd.f32 %v14186_v10, %v4686_v36 }
 0x3a3   : > { %v12174_v8 = vpop.eup %12173  ;;  %6120 = vst.msk [vmem:[#allocation2] sm:$0xf] %vm5875_vm14, %v17416_v28  ;;  %v4494_v47 = vunpack.c.l.b16 %v14324_v49  ;;  %v5536_v50 = vshll.u32 %v5478_v20, 16  ;;  %v4969_v24 = vand.u32 2147483647, %v14347_v45  ;;  %v4495_v4 = vunpack.c.l.b16 %v4432_v16 }
 0x3a4   : > { %5887 = vst [vmem:[#allocation2 + $0x8] sm:$0x1] %v5886_v17  ;;  %v14375_v6 = vrot.slane %v5533_v42, 7  ;;  %v4953_v15 = vsel %vm4952_vm13, %v14317_v7, %v4949_v22  ;;  %v14378_v40 = vadd.f32 1.0, %v12174_v8  ;;  %v11532_v41 = vmul.f32 -1.442695, %v14372_v63 }
 0x3a5   : > { %6121 = vst.msk [vmem:[#allocation2 + $0x4] sm:$0xf] %vm5875_vm14, %v17416_v28  ;;  %v4958_v21 = vsel %vm4955_vm2, %v4957_v35, %v4953_v15  ;;  %v4607_v37 = vpop.f32.mrf.mxu0  ;;  %v4971_v33 = vand.u32 2147483648, %v14347_v45  ;;  %v14388_v7 = vpop.eup %12175  ;;  %v14392_v2 = vadd.f32 %v14236_v34, %v13978_v54  ;;  %v14396_v20 = vadd.f32 %v14275_v23, %v14267_v9 }
 0x3a6   : > { %v5538_v49 = vor.u32 %v5536_v50, %v14375_v6  ;;  %v5443_v36 = vmul.f32 %v4958_v21, %v14239_v19  ;;  %12177 = vrcp.f32 %v14378_v40  ;;  %v14400_v12 = vadd.f32 %v14319_v43, %v13998_v14 }
 0x3a7   : > { %12179 = vpow2.f32 %v11532_v41  ;;  %v14402_v19 = vadd.f32 %v4191_v57, %v3519_v55  ;;  %v4961_v42 = vmul.f32 %v14388_v7, %v14347_v45  ;;  %vm4965_vm1 = vweird.f32 %v14347_v45  ;;  %v5892_v57 = vld [vmem:[#allocation2 + $0x14] sm:$0x1] }
 0x3a8   : > { %v5889_v44 = vsel %vm14296_vm11, %v5538_v49, %v5888_v31  ;;  %v5479_v17 = vpack.c.bf16 %v5443_v36, %v5443_v36  ;;  %v4687_v14 = vadd.f32 %v4607_v37, %v13774_v1  ;;  %vm6610_vm3 = vcmask 64512  }
 0x3a9   : > { %5890 = vst [vmem:[#allocation2 + $0xc] sm:$0xf] %v5889_v44  ;;  %v4518_v34 = vpack.c.b16 %v4495_v4, %v4494_v47  ;;  %v4962_v23 = vsub.f32 1.0, %v4961_v42  ;;  %vm14416_vm13 = vcmp.eq.f32.partialorder %v4969_v24, 8.507059e+37  ;;  %v4972_v55 = vor.u32 1.1754944e-38, %v4971_v33 }
 0x3aa   : > { %v5541_v9 = vshrl.u32 %v5479_v17, 16  ;;  %v14420_v22 = vld [vmem:[#allocation2] sm:$0xe]  ;;  %v5539_v8 = vrot.slane %v14375_v6, 4  ;;  %vm4966_vm15 = vweird.f32 %v14388_v7  ;;  %v4984_v31 = vand.u32 2147483647, %v14378_v40 }
 0x3ab   : > { %v6062_v16 = vld [vmem:[#allocation2 + $0x8] sm:$0x1]  ;;  %v14426_v1 = vadd.f32 %v14186_v10, %v4687_v14  ;;  %v5544_v15 = vshll.u32 %v5479_v17, 16  ;;  %v4963_v21 = vmul.f32 %v14388_v7, %v4962_v23  ;;  %v4986_v37 = vand.u32 2147483648, %v14378_v40  ;;  %v4194_v14 = vpop.f32.mrf.mxu3  ;;  %vm14448_vm4 = vmor %vm4965_vm1, %vm4966_vm15 }
 0x3ac   : > { %v14428_v35 = vpop.eup %12177  ;;  %v6063_v47 = vsel %vm14410_vm9, 0, %v6062_v16  ;;  %v5543_v50 = vrot.slane %v5541_v9, 7  ;;  %v12075_v24 = vld [vmem:[#allocation2] sm:$0xff]  ;;  %v11659_v36 = vrot.slane %v14420_v22, 9  ;;  %vm4980_vm1 = vweird.f32 %v14378_v40 }
 0x3ad   : > { %v12180_v41 = vpop.eup %12179  ;;  %6064 = vst [vmem:[#allocation2 + $0x8] sm:$0x1] %v6063_v47  ;;  %v4976_v6 = vmul.f32 %v14428_v35, %v14378_v40  ;;  %v11533_v4 = vmul.f32 -1.442695, %v14426_v1  ;;  %v4610_v49 = vpop.f32.mrf.mxu0  ;;  %v4964_v17 = vadd.f32 %v14388_v7, %v4963_v21  ;;  %11643 = vmatmul.msk.bf16.vlgmr.msra.gmra.mxu2 %vm6610_vm3, %v12075_v24  ;;  %vm4981_vm2 = vweird.f32 %v14428_v35  ;;  %v14454_v16 = vld [vmem:[#allocation2] sm:$0xf] }
 0x3ae   : > { %6122 = vst.msk [vmem:[#allocation2 + $0x8] sm:$0xf] %vm5875_vm14, %v17416_v28  ;;  %v5546_v33 = vor.u32 %v5544_v15, %v5543_v50  ;;  %v5548_v44 = vrot.slane %v5543_v50, 4  ;;  %v14441_v42 = vadd.f32 1.0, %v12180_v41  ;;  %v4688_v22 = vadd.f32 %v4610_v49, %v13806_v58  ;;  %v14465_v21 = vld [vmem:[#allocation2 + $0x4] sm:$0xf] }
 0x3af   : > { %v4977_v23 = vsub.f32 1.0, %v4976_v6  ;;  %12181 = vpow2.f32 %v11533_v4  ;;  %v4968_v45 = vsel %vm14448_vm4, %v14388_v7, %v4964_v17  ;;  %v7022_v24 = vrot.slane %v14465_v21, 5 }
 0x3b0   : > { %v6010_v47 = vld [vmem:[#allocation2 + $0xc] sm:$0x1]  ;;  %v5547_v50 = vsel %vm14332_vm10, %v5539_v8, %v5546_v33  ;;  %v5893_v15 = vsel %vm14340_vm12, %v5548_v44, %v5892_v57  ;;  %12183 = vrcp.f32 %v14441_v42  ;;  %11520 = vmatmul.msk.bf16.gmra.mxu0 %vm17414_vm7, %v4518_v34  ;;  %v4973_v8 = vsel %vm14416_vm13, %v4972_v55, %v4968_v45  ;;  %vm4982_vm13 = vmor %vm4980_vm1, %vm4981_vm2 }
 0x3b1   : > { %v6011_v58 = vsel %vm14340_vm12, 0, %v6010_v47  ;;  %5891 = vst.msk [vmem:[#allocation2 + $0x10] sm:$0xf] %vm5875_vm14, %v5547_v50  ;;  %v4978_v57 = vmul.f32 %v14428_v35, %v4977_v23  ;;  %v14475_v7 = vadd.f32 %v4194_v14, %v14021_v32  ;;  %v5444_v34 = vmul.f32 %v4973_v8, %v14272_v53 }
 0x3b2   : > { %6012 = vst [vmem:[#allocation2 + $0xc] sm:$0x1] %v6011_v58  ;;  %v14479_v41 = vadd.f32 %v14186_v10, %v4688_v22  ;;  %v6177_v6 = vshrl.u32 %v14454_v16, 16  ;;  %v4999_v43 = vand.u32 2147483647, %v14441_v42  ;;  %v5001_v55 = vand.u32 2147483648, %v14441_v42 }
 0x3b3   : > { %5894 = vst [vmem:[#allocation2 + $0x14] sm:$0x1] %v5893_v15  ;;  %v4979_v4 = vadd.f32 %v14428_v35, %v4978_v57  ;;  %v5480_v49 = vpack.c.bf16 %v5444_v34, %v5444_v34  ;;  %vm4985_vm15 = vcmp.eq.f32.partialorder %v4984_v31, 8.507059e+37  ;;  %v4987_v32 = vor.u32 1.1754944e-38, %v4986_v37  ;;  %v5895_v57 = vld [vmem:[#allocation2 + $0x18] sm:$0xf] }
 0x3b4   : > { %v11534_v53 = vmul.f32 -1.442695, %v14479_v41  ;;  %vm4995_vm4 = vweird.f32 %v14441_v42  ;;  %v14493_v40 = vsel %vm12457_vm5, %v11659_v36, %v7022_v24  ;;  %v7024_v17 = vrot.slane %v7022_v24, 4 }
 0x3b5   : > { %v12182_v33 = vpop.eup %12181  ;;  %v4983_v44 = vsel %vm4982_vm13, %v14428_v35, %v4979_v4  ;;  %v5550_v9 = vshrl.u32 %v5480_v49, 16  ;;  %v4612_v47 = vpop.f32.mrf.mxu0  ;;  %v14497_v31 = vrot.slane %v6177_v6, 4  ;;  %vm14501_vm2 = vcmp.eq.f32.partialorder %v4999_v43, 8.507059e+37  ;;  %v14505_v36 = vld [vmem:[#allocation2 + $0x8] sm:$0x1] }
 0x3b6   : > { %v12184_v14 = vpop.eup %12183  ;;  %v4988_v23 = vsel %vm4985_vm15, %v4987_v32, %v4983_v44  ;;  %v14495_v22 = vadd.f32 1.0, %v12182_v33  ;;  %v5002_v15 = vor.u32 1.1754944e-38, %v5001_v55  ;;  %12185 = vpow2.f32 %v11534_v53 }
 0x3b7   : > { %v5445_v37 = vmul.f32 %v4988_v23, %v14309_v39  ;;  %v4991_v50 = vmul.f32 %v12184_v14, %v14441_v42  ;;  %v5552_v45 = vrot.slane %v5550_v9, 7  ;;  %v5553_v58 = vshll.u32 %v5480_v49, 16 }
 0x3b8   : > { %12187 = vrcp.f32 %v14495_v22  ;;  %v7134_v8 = vunpack.c.l.b16 %v14493_v40  ;;  %v4689_v39 = vadd.f32 %v4612_v47, %v13821_v51  ;;  %v6180_v6 = vshll.u32 %v14454_v16, 16 }
 0x3b9   : > { %v5481_v24 = vpack.c.bf16 %v5445_v37, %v5445_v37  ;;  %v4992_v34 = vsub.f32 1.0, %v4991_v50  ;;  %v5555_v43 = vor.u32 %v5553_v58, %v5552_v45  ;;  %vm4996_vm1 = vweird.f32 %v12184_v14  ;;  %v12076_v53 = vld [vmem:[#allocation2 + $0xc] sm:$0xff]  ;;  %v5899_v58 = vld [vmem:[#allocation2 + $0x20] sm:$0x1] }
 0x3ba   : > { %v6065_v4 = vld [vmem:[#allocation2 + $0x14] sm:$0x1]  ;;  %v7025_v55 = vrot.slane %v14505_v36, 5  ;;  %v6186_v32 = vshll.u32 %v14465_v21, 16  ;;  %v5014_v40 = vand.u32 2147483647, %v14495_v22  ;;  %v14519_v16 = vadd.f32 %v14186_v10, %v4689_v39  ;;  %vm4997_vm15 = vmor %vm4995_vm4, %vm4996_vm1 }
 0x3bb   : > { %v6066_v49 = vsel %vm14410_vm9, 0, %v6065_v4  ;;  %v5558_v33 = vshrl.u32 %v5481_v24, 16  ;;  %v4993_v44 = vmul.f32 %v12184_v14, %v4992_v34  ;;  %v5556_v9 = vrot.slane %v5552_v45, 4 }
 0x3bc   : > { %6067 = vst [vmem:[#allocation2 + $0x14] sm:$0x1] %v6066_v49  ;;  %v5896_v51 = vsel %vm14296_vm11, %v5555_v43, %v5895_v57  ;;  %v7026_v23 = vsel %vm12457_vm5, %v7024_v17, %v7025_v55  ;;  %v12186_v47 = vpop.eup %12185  ;;  %v5561_v50 = vshll.u32 %v5481_v24, 16  ;;  %vm5010_vm13 = vweird.f32 %v14495_v22 }
 0x3bd   : > { %5897 = vst [vmem:[#allocation2 + $0x18] sm:$0xf] %v5896_v51  ;;  %v5560_v37 = vrot.slane %v5558_v33, 7  ;;  %v4994_v4 = vadd.f32 %v12184_v14, %v4993_v44  ;;  %v7135_v34 = vunpack.c.l.b16 %v7026_v23  ;;  %v14527_v45 = vadd.f32 1.0, %v12186_v47  ;;  %11644 = vmatmul.msk.bf16.gmra.mxu2 %vm6610_vm3, %v12076_v53  ;;  %v4615_v23 = vpop.f32.mrf.mxu0 }
 0x3be   : > { %v12188_v49 = vpop.eup %12187  ;;  %v11535_v57 = vmul.f32 -1.442695, %v14519_v16  ;;  %v6182_v39 = vrot.slane %v6180_v6, 5  ;;  %v6190_v17 = vshrl.u32 %v14465_v21, 16  ;;  %vm14535_vm0 = vcmp.eq.f32.partialorder %v5014_v40, 8.507059e+37 }
 0x3bf   : > { %v5563_v24 = vor.u32 %v5561_v50, %v5560_v37  ;;  %v5565_v43 = vrot.slane %v5560_v37, 4  ;;  %v4998_v55 = vsel %vm4997_vm15, %v12184_v14, %v4994_v4  ;;  %v5006_v33 = vmul.f32 %v12188_v49, %v14495_v22 }
 0x3c0   : > { %v5003_v44 = vsel %vm14501_vm2, %v5002_v15, %v4998_v55  ;;  %v5016_v51 = vand.u32 2147483648, %v14495_v22  ;;  %12189 = vrcp.f32 %v14527_v45  ;;  %vm5011_vm4 = vweird.f32 %v12188_v49 }
 0x3c1   : > { %v5564_v21 = vsel %vm14332_vm10, %v5556_v9, %v5563_v24  ;;  %v5900_v6 = vsel %vm14340_vm12, %v5565_v43, %v5899_v58  ;;  %v5446_v14 = vmul.f32 %v5003_v44, %v14372_v63  ;;  %v5007_v53 = vsub.f32 1.0, %v5006_v33  ;;  %vm5012_vm2 = vmor %vm5010_vm13, %vm5011_vm4 }
 0x3c2   : > { %5898 = vst.msk [vmem:[#allocation2 + $0x1c] sm:$0xf] %vm5875_vm14, %v5564_v21  ;;  %12191 = vpow2.f32 %v11535_v57  ;;  %v7166_v35 = vpack.c.b16 %v7135_v34, %v7134_v8  ;;  %v6188_v15 = vrot.slane %v6186_v32, 5  ;;  %v6183_v37 = vor.u32 %v6182_v39, %v14497_v31  ;;  %v5902_v21 = vld [vmem:[#allocation2 + $0x24] sm:$0xf] }
 0x3c3   : > { %5901 = vst [vmem:[#allocation2 + $0x20] sm:$0x1] %v5900_v6  ;;  %v5482_v40 = vpack.c.bf16 %v5446_v14, %v5446_v14  ;;  %v5008_v47 = vmul.f32 %v12188_v49, %v5007_v53  ;;  %v6192_v50 = vrot.slane %v6190_v17, 4  ;;  %v5017_v4 = vor.u32 1.1754944e-38, %v5016_v51 }
 0x3c4   : > { %v6013_v9 = vld [vmem:[#allocation2 + $0x18] sm:$0x1]  ;;  %v5029_v58 = vand.u32 2147483647, %v14527_v45  ;;  %11676 = vmatmul.msk.bf16.vlgmr.msra.gmra.mxu3 %vm6610_vm3, %v7166_v35  ;;  %v6196_v63 = vshll.u32 %v14505_v36, 16  ;;  %v4690_v24 = vadd.f32 %v4615_v23, %v13851_v61  ;;  %v5031_v57 = vand.u32 2147483648, %v14527_v45 }
 0x3c5   : > { %v6014_v8 = vsel %vm14340_vm12, 0, %v6013_v9  ;;  %v5567_v32 = vshrl.u32 %v5482_v40, 16  ;;  %v5009_v34 = vadd.f32 %v12188_v49, %v5008_v47  ;;  %v6184_v31 = vrot.slane %v6183_v37, 4 }
 0x3c6   : > { %v12190_v43 = vpop.eup %12189  ;;  %6015 = vst [vmem:[#allocation2 + $0x18] sm:$0x1] %v6014_v8  ;;  %v6193_v39 = vor.u32 %v6192_v50, %v6188_v15  ;;  %v6198_v17 = vrot.slane %v6196_v63, 5  ;;  %v14559_v36 = vadd.f32 %v14186_v10, %v4690_v24  ;;  %v5570_v55 = vshll.u32 %v5482_v40, 16  ;;  %v11484_v63 = vld [vmem:[%s12441_s12 + $0xb4] sm:$0xe] }
 0x3c7   : > { %v14561_v61 = vrot.slane %v5567_v32, 7  ;;  %v5013_v33 = vsel %vm5012_vm2, %v12188_v49, %v5009_v34  ;;  %v5021_v44 = vmul.f32 %v12190_v43, %v14527_v45  ;;  %v6189_v22 = vsel %vm12463_vm6, %v6184_v31, %v6188_v15 }
 0x3c8   : > { %v12192_v51 = vpop.eup %12191  ;;  %v5018_v6 = vsel %vm14535_vm0, %v5017_v4, %v5013_v33  ;;  %v6194_v14 = vrot.slane %v6193_v39, 4  ;;  %v11536_v53 = vmul.f32 -1.442695, %v14559_v36  ;;  %vm5026_vm1 = vweird.f32 %v12190_v43  ;;  %v4617_v39 = vpop.f32.mrf.mxu0 }
 0x3c9   : > { %v5572_v23 = vor.u32 %v5570_v55, %v14561_v61  ;;  %v5447_v35 = vmul.f32 %v5018_v6, %v14426_v1  ;;  %v5022_v40 = vsub.f32 1.0, %v5021_v44  ;;  %v14571_v47 = vadd.f32 1.0, %v12192_v51  ;;  %v5906_v6 = vld [vmem:[#allocation2 + $0x2c] sm:$0x1] }
 0x3ca   : > { %v6068_v49 = vld [vmem:[#allocation2 + $0x20] sm:$0x1]  ;;  %v6199_v42 = vsel %vm12463_vm6, %v6194_v14, %v6198_v17  ;;  %v6562_v37 = vunpack.c.l.b16 %v6189_v22  ;;  %12193 = vpow2.f32 %v11536_v53  ;;  %v14582_v1 = vadd.f32 %v13987_v25, %v14028_v13  ;;  %v12330_v14 = vld [vmem:[%s12441_s12 + $0xbc] sm:$0x1] }
 0x3cb   : > { %v6069_v15 = vsel %vm14410_vm9, 0, %v6068_v49  ;;  %v5903_v50 = vsel %vm14296_vm11, %v5572_v23, %v5902_v21  ;;  %v5483_v9 = vpack.c.bf16 %v5447_v35, %v5447_v35  ;;  %v5023_v4 = vmul.f32 %v12190_v43, %v5022_v40 }
 0x3cc   : > { %6070 = vst [vmem:[#allocation2 + $0x20] sm:$0x1] %v6069_v15  ;;  %vm5025_vm0 = vweird.f32 %v14527_v45  ;;  %vm14585_vm13 = vcmp.eq.f32.partialorder %v5029_v58, 8.507059e+37  ;;  %12195 = vrcp.f32 %v14571_v47  ;;  %v5032_v34 = vor.u32 1.1754944e-38, %v5031_v57  ;;  %v12329_v45 = vld [vmem:[%s12441_s12 + $0xb8] sm:$0xf] }
 0x3cd   : > { %5904 = vst [vmem:[#allocation2 + $0x24] sm:$0xf] %v5903_v50  ;;  %v5575_v8 = vshrl.u32 %v5483_v9, 16  ;;  %v5024_v32 = vadd.f32 %v12190_v43, %v5023_v4  ;;  %v6563_v31 = vunpack.c.l.b16 %v6199_v42  ;;  %v5573_v17 = vrot.slane %v14561_v61, 4  ;;  %vm5027_vm15 = vmor %vm5025_vm0, %vm5026_vm1  ;;  %v12077_v23 = vld [vmem:[#allocation2 + $0x18] sm:$0xff] }
 0x3ce   : > { %v5044_v25 = vand.u32 2147483647, %v14571_v47  ;;  %v11502_v13 = vrot.slane %v11484_v63, 9  ;;  %v4435_v58 = vrot.slane %v12329_v45, 5  ;;  %v5578_v33 = vshll.u32 %v5483_v9, 16  ;;  %11645 = vmatmul.msk.bf16.gmra.mxu2 %vm6610_vm3, %v12077_v23 }
 0x3cf   : > { %v5577_v55 = vrot.slane %v5575_v8, 7  ;;  %v5028_v44 = vsel %vm5027_vm15, %v12190_v43, %v5024_v32  ;;  %v6594_v51 = vpack.c.b16 %v6563_v31, %v6562_v37  ;;  %v4438_v53 = vrot.slane %v12330_v14, 5  ;;  %v11773_v15 = vld [vmem:[%s17408_s3 + $0x10] sm:$0xf]  ;;  %v11692_v8 = vld [vmem:[%s17408_s3 + $0xc] sm:$0xf] }
 0x3d0   : > { %v12194_v21 = vpop.eup %12193  ;;  %v5033_v57 = vsel %vm14585_vm13, %v5032_v34, %v5028_v44  ;;  %v4437_v22 = vrot.slane %v4435_v58, 4  ;;  %v4691_v61 = vadd.f32 %v4617_v39, %v13876_v3  ;;  %vm5040_vm4 = vweird.f32 %v14571_v47  ;;  %v11806_v3 = vld [vmem:[%s17408_s3 + $0x14] sm:$0xf]  ;;  %v14627_v32 = vld [vmem:[#allocation2 + $0x10] sm:$0xf] }
 0x3d1   : > { %v5580_v35 = vor.u32 %v5578_v33, %v5577_v55  ;;  %v5582_v40 = vrot.slane %v5577_v55, 4  ;;  %v5448_v49 = vmul.f32 %v5033_v57, %v14479_v41  ;;  %11563 = vmatmul.msk.bf16.vlgmr.msra.gmra.mxu1 %vm6610_vm3, %v6594_v51  ;;  %v14600_v42 = vadd.f32 1.0, %v12194_v21  ;;  %v5909_v44 = vld [vmem:[#allocation2 + $0x30] sm:$0xf] }
 0x3d2   : > { %v14602_v43 = vpop.eup %12195  ;;  %v5046_v37 = vand.u32 2147483648, %v14571_v47  ;;  %v4436_v41 = vsel %vm12457_vm5, %v11502_v13, %v4435_v58  ;;  %v14615_v50 = vadd.f32 %v14186_v10, %v4691_v61  ;;  %v6973_v10 = vld [vmem:[#allocation2 + $0xc] sm:$0xe]  ;;  %v8172_v31 = vsel %vm17415_vm8, %v11773_v15, 0 }
 0x3d3   : > { %v5581_v9 = vsel %vm14332_vm10, %v5573_v17, %v5580_v35  ;;  %v5907_v4 = vsel %vm14340_vm12, %v5582_v40, %v5906_v6  ;;  %v5484_v63 = vpack.c.bf16 %v5448_v49, %v5448_v49  ;;  %v5036_v24 = vmul.f32 %v14602_v43, %v14571_v47  ;;  %8181 = vmatpush.bf16.msrb.mxu2 %v8172_v31 }
 0x3d4   : > { %v6016_v34 = vld [vmem:[#allocation2 + $0x24] sm:$0x1]  ;;  %5905 = vst.msk [vmem:[#allocation2 + $0x28] sm:$0xf] %vm5875_vm14, %v5581_v9  ;;  %v8570_v39 = vsel %vm17415_vm8, %v11806_v3, 0  ;;  %12197 = vrcp.f32 %v14600_v42  ;;  %v4439_v17 = vsel %vm12457_vm5, %v4437_v22, %v4438_v53  ;;  %v4496_v55 = vunpack.c.l.b16 %v4436_v41 }
 0x3d5   : > { %v6017_v13 = vsel %vm14340_vm12, 0, %v6016_v34  ;;  %5908 = vst [vmem:[#allocation2 + $0x2c] sm:$0x1] %v5907_v4  ;;  %v5584_v45 = vshrl.u32 %v5484_v63, 16  ;;  %v5037_v58 = vsub.f32 1.0, %v5036_v24  ;;  %8579 = vmatpush.bf16.msrb.mxu3 %v8570_v39  ;;  %v5587_v33 = vshll.u32 %v5484_v63, 16 }
 0x3d6   : > { %6018 = vst [vmem:[#allocation2 + $0x24] sm:$0x1] %v6017_v13  ;;  %vm5041_vm2 = vweird.f32 %v14602_v43  ;;  %vm14638_vm1 = vcmp.eq.f32.partialorder %v5044_v25, 8.507059e+37  ;;  %v7518_v21 = vsel %vm17415_vm8, %v11692_v8, 0  ;;  %v4497_v22 = vunpack.c.l.b16 %v4439_v17  ;;  %v14647_v53 = vld [vmem:[#allocation2 + $0x14] sm:$0x1] }
 0x3d7   : > { %v14643_v6 = vrot.slane %v5584_v45, 7  ;;  %v5038_v57 = vmul.f32 %v14602_v43, %v5037_v58  ;;  %7527 = vmatpush.bf16.msrb.mxu1 %v7518_v21  ;;  %v11537_v14 = vmul.f32 -1.442695, %v14615_v50  ;;  %v5047_v61 = vor.u32 1.1754944e-38, %v5046_v37  ;;  %v6129_v41 = vld [vmem:[#allocation2 + $0xc] sm:$0xf]  ;;  %vm5042_vm13 = vmor %vm5040_vm4, %vm5041_vm2 }
 0x3d8   : > { %v5059_v23 = vand.u32 2147483647, %v14600_v42  ;;  %v11660_v35 = vrot.slane %v6973_v10, 9  ;;  %v7029_v25 = vrot.slane %v14627_v32, 5  ;;  %vm5055_vm0 = vweird.f32 %v14600_v42 }
 0x3d9   : > { %v5589_v40 = vor.u32 %v5587_v33, %v14643_v6  ;;  %v5039_v49 = vadd.f32 %v14602_v43, %v5038_v57  ;;  %v5061_v15 = vand.u32 2147483648, %v14600_v42  ;;  %v4519_v3 = vpack.c.b16 %v4497_v22, %v4496_v55  ;;  %v4620_v55 = vpop.f32.mrf.mxu0 }
 0x3da   : > { %v12198_v9 = vpop.eup %12197  ;;  %12199 = vpow2.f32 %v11537_v14  ;;  %v7030_v37 = vsel %vm12457_vm5, %v11660_v35, %v7029_v25  ;;  %v7031_v4 = vrot.slane %v7029_v25, 4  ;;  %v7032_v63 = vrot.slane %v14647_v53, 5 }
 0x3db   : > { %v5910_v24 = vsel %vm14296_vm11, %v5589_v40, %v5909_v44  ;;  %v5043_v8 = vsel %vm5042_vm13, %v14602_v43, %v5039_v49  ;;  %v5051_v10 = vmul.f32 %v12198_v9, %v14600_v42  ;;  %vm5056_vm15 = vweird.f32 %v12198_v9  ;;  %11521 = vmatmul.msk.bf16.gmra.mxu0 %vm17414_vm7, %v4519_v3  ;;  %v14701_v42 = vpop.f32.mrf.mxu3 }
 0x3dc   : > { %v6071_v34 = vld [vmem:[#allocation2 + $0x2c] sm:$0x1]  ;;  %5911 = vst [vmem:[#allocation2 + $0x30] sm:$0xf] %v5910_v24  ;;  %v5048_v47 = vsel %vm14638_vm1, %v5047_v61, %v5043_v8  ;;  %v7033_v31 = vsel %vm12457_vm5, %v7031_v4, %v7032_v63  ;;  %v7136_v39 = vunpack.c.l.b16 %v7030_v37  ;;  %v6201_v17 = vshrl.u32 %v6129_v41, 16  ;;  %vm14688_vm2 = vmor %vm5055_vm0, %vm5056_vm15 }
 0x3dd   : > { %v6072_v13 = vsel %vm14410_vm9, 0, %v6071_v34  ;;  %v5449_v43 = vmul.f32 %v5048_v47, %v14519_v16  ;;  %v5052_v45 = vsub.f32 1.0, %v5051_v10  ;;  %v7137_v58 = vunpack.c.l.b16 %v7033_v31  ;;  %v14693_v24 = vld [vmem:[%s14009_s17] ss:$0 sm:$0xff] }
 0x3de   : > { %6073 = vst [vmem:[#allocation2 + $0x2c] sm:$0x1] %v6072_v13  ;;  %v6203_v33 = vrot.slane %v6201_v17, 4  ;;  %v6204_v44 = vshll.u32 %v6129_v41, 16  ;;  %v6210_v21 = vshll.u32 %v14627_v32, 16  ;;  %v6214_v51 = vshrl.u32 %v14627_v32, 16 }
 0x3df   : > { %v5485_v57 = vpack.c.bf16 %v5449_v43, %v5449_v43  ;;  %v5053_v22 = vmul.f32 %v12198_v9, %v5052_v45  ;;  %v7167_v14 = vpack.c.b16 %v7137_v58, %v7136_v39  ;;  %v6220_v61 = vshll.u32 %v14647_v53, 16  ;;  %v5913_v39 = vld [vmem:[#allocation2 + $0x38] sm:$0x1] }
 0x3e0   : > { %v12200_v35 = vpop.eup %12199  ;;  %v6206_v25 = vrot.slane %v6204_v44, 5  ;;  %v6212_v40 = vrot.slane %v6210_v21, 5  ;;  %v6216_v16 = vrot.slane %v6214_v51, 4  ;;  %v4692_v49 = vadd.f32 %v4620_v55, %v14242_v56  ;;  %v11485_v55 = vld [vmem:[%s12441_s12 + $0xc0] sm:$0xe] }
 0x3e1   : > { %v5592_v3 = vshrl.u32 %v5485_v57, 16  ;;  %v5054_v37 = vadd.f32 %v12198_v9, %v5053_v22  ;;  %vm14678_vm4 = vcmp.eq.f32.partialorder %v5059_v23, 8.507059e+37  ;;  %v14682_v4 = vadd.f32 1.0, %v12200_v35  ;;  %11677 = vmatmul.msk.bf16.gmra.mxu3 %vm6610_vm3, %v7167_v14  ;;  %v4622_v14 = vpop.f32.mrf.mxu0 }
 0x3e2   : > { %v5062_v53 = vor.u32 1.1754944e-38, %v5061_v15  ;;  %v6207_v63 = vor.u32 %v6206_v25, %v6203_v33  ;;  %v6217_v56 = vor.u32 %v6216_v16, %v6212_v40  ;;  %v14696_v23 = vadd.f32 %v14693_v24, %v4692_v49 }
 0x3e3   : > { %v6019_v8 = vld [vmem:[#allocation2 + $0x30] sm:$0x1]  ;;  %v5594_v10 = vrot.slane %v5592_v3, 7  ;;  %v5595_v34 = vshll.u32 %v5485_v57, 16  ;;  %v5058_v47 = vsel %vm14688_vm2, %v12198_v9, %v5054_v37  ;;  %12201 = vrcp.f32 %v14682_v4  ;;  %v12332_v37 = vld [vmem:[%s12441_s12 + $0xc4] sm:$0xf] }
 0x3e4   : > { %v5590_v15 = vrot.slane %v14643_v6, 4  ;;  %v6020_v31 = vsel %vm14340_vm12, 0, %v6019_v8  ;;  %v5063_v17 = vsel %vm14678_vm4, %v5062_v53, %v5058_v47  ;;  %v6222_v13 = vrot.slane %v6220_v61, 5  ;;  %v12078_v61 = vld [vmem:[#allocation2 + $0x24] sm:$0xff]  ;;  %v14731_v8 = vld [vmem:[#allocation2 + $0x1c] sm:$0xf] }
 0x3e5   : > { %6021 = vst [vmem:[#allocation2 + $0x30] sm:$0x1] %v6020_v31  ;;  %v5597_v43 = vor.u32 %v5595_v34, %v5594_v10  ;;  %v5599_v45 = vrot.slane %v5594_v10, 4  ;;  %v5450_v58 = vmul.f32 %v5063_v17, %v14559_v36  ;;  %v6208_v9 = vrot.slane %v6207_v63, 4  ;;  %11646 = vmatmul.msk.bf16.gmra.mxu2 %vm6610_vm3, %v12078_v61  ;;  %v12333_v53 = vld [vmem:[%s12441_s12 + $0xc8] sm:$0x1] }
 0x3e6   : > { %v14712_v33 = vadd.f32 %v13991_v62, %v14582_v1  ;;  %v5074_v6 = vand.u32 2147483647, %v14682_v4  ;;  %v6218_v44 = vrot.slane %v6217_v56, 4  ;;  %v11538_v21 = vmul.f32 -1.442695, %v14696_v23 }
 0x3e7   : > { %v5598_v51 = vsel %vm14332_vm10, %v5590_v15, %v5597_v43  ;;  %v5914_v57 = vsel %vm14340_vm12, %v5599_v45, %v5913_v39  ;;  %v5486_v22 = vpack.c.bf16 %v5450_v58, %v5450_v58  ;;  %v6213_v36 = vsel %vm12463_vm6, %v6208_v9, %v6212_v40  ;;  %v6974_v10 = vld [vmem:[#allocation2 + $0x18] sm:$0xe]  ;;  %v14737_v39 = vld [vmem:[#allocation2 + $0x20] sm:$0x1]  ;;  %v5916_v17 = vld [vmem:[#allocation2 + $0x3c] sm:$0xf] }
 0x3e8   : > { %5912 = vst.msk [vmem:[#allocation2 + $0x34] sm:$0xf] %vm5875_vm14, %v5598_v51  ;;  %v5076_v62 = vand.u32 2147483648, %v14682_v4  ;;  %v6223_v1 = vsel %vm12463_vm6, %v6218_v44, %v6222_v13  ;;  %12203 = vpow2.f32 %v11538_v21  ;;  %v11503_v35 = vrot.slane %v11485_v55, 9  ;;  %v14747_v21 = vpop.f32.mrf.mxu3 }
 0x3e9   : > { %v12202_v25 = vpop.eup %12201  ;;  %5915 = vst [vmem:[#allocation2 + $0x38] sm:$0x1] %v5914_v57  ;;  %v5601_v16 = vshrl.u32 %v5486_v22, 16  ;;  %v6564_v49 = vunpack.c.l.b16 %v6213_v36  ;;  %v6565_v3 = vunpack.c.l.b16 %v6223_v1  ;;  %v4442_v41 = vrot.slane %v12332_v37, 5 }
 0x3ea   : > { %v5604_v40 = vshll.u32 %v5486_v22, 16  ;;  %v5066_v32 = vmul.f32 %v12202_v25, %v14682_v4  ;;  %v4445_v63 = vrot.slane %v12333_v53, 5  ;;  %v4693_v56 = vadd.f32 %v4622_v14, %v14245_v38 }
 0x3eb   : > { %v14733_v34 = vrot.slane %v5601_v16, 7  ;;  %v6595_v47 = vpack.c.b16 %v6565_v3, %v6564_v49  ;;  %v4443_v15 = vsel %vm12457_vm5, %v11503_v35, %v4442_v41  ;;  %v4444_v31 = vrot.slane %v4442_v41, 4  ;;  %v6131_v35 = vld [vmem:[#allocation2 + $0x18] sm:$0xf] }
 0x3ec   : > { %v5067_v13 = vsub.f32 1.0, %v5066_v32  ;;  %vm5071_vm1 = vweird.f32 %v12202_v25  ;;  %v4498_v43 = vunpack.c.l.b16 %v4443_v15  ;;  %v14740_v45 = vadd.f32 %v14693_v24, %v4693_v56 }
 0x3ed   : > { %v5606_v38 = vor.u32 %v5604_v40, %v14733_v34  ;;  %11564 = vmatmul.msk.bf16.gmra.mxu1 %vm6610_vm3, %v6595_v47  ;;  %v4446_v58 = vsel %vm12457_vm5, %v4444_v31, %v4445_v63  ;;  %v11661_v9 = vrot.slane %v6974_v10, 9  ;;  %v7036_v55 = vrot.slane %v14731_v8, 5 }
 0x3ee   : > { %v12204_v44 = vpop.eup %12203  ;;  %v5068_v51 = vmul.f32 %v12202_v25, %v5067_v13  ;;  %v4499_v57 = vunpack.c.l.b16 %v4446_v58  ;;  %v11539_v22 = vmul.f32 -1.442695, %v14740_v45  ;;  %v7039_v36 = vrot.slane %v14737_v39, 5 }
 0x3ef   : > { %v5917_v14 = vsel %vm14296_vm11, %v5606_v38, %v5916_v17  ;;  %vm5070_vm0 = vweird.f32 %v14682_v4  ;;  %v14754_v61 = vadd.f32 1.0, %v12204_v44  ;;  %v7037_v1 = vsel %vm12457_vm5, %v11661_v9, %v7036_v55  ;;  %v4625_v17 = vpop.f32.mrf.mxu0 }
 0x3f0   : > { %v6074_v16 = vld [vmem:[#allocation2 + $0x38] sm:$0x1]  ;;  %5918 = vst [vmem:[#allocation2 + $0x3c] sm:$0xf] %v5917_v14  ;;  %v5069_v49 = vadd.f32 %v12202_v25, %v5068_v51  ;;  %v4520_v3 = vpack.c.b16 %v4499_v57, %v4498_v43  ;;  %12205 = vpow2.f32 %v11539_v22  ;;  %v7038_v37 = vrot.slane %v7036_v55, 4  ;;  %vm5072_vm13 = vmor %vm5070_vm0, %vm5071_vm1 }
 0x3f1   : > { %v6075_v41 = vsel %vm14410_vm9, 0, %v6074_v16  ;;  %vm5075_vm15 = vcmp.eq.f32.partialorder %v5074_v6, 8.507059e+37  ;;  %v5077_v40 = vor.u32 1.1754944e-38, %v5076_v62  ;;  %12207 = vrcp.f32 %v14754_v61 }
 0x3f2   : > { %6076 = vst [vmem:[#allocation2 + $0x38] sm:$0x1] %v6075_v41  ;;  %v5073_v4 = vsel %vm5072_vm13, %v12202_v25, %v5069_v49  ;;  %11522 = vmatmul.msk.bf16.gmra.mxu0 %vm17414_vm7, %v4520_v3  ;;  %v7040_v32 = vsel %vm12457_vm5, %v7038_v37, %v7039_v36  ;;  %v7138_v53 = vunpack.c.l.b16 %v7037_v1  ;;  %v6225_v63 = vshrl.u32 %v6131_v35, 16 }
 0x3f3   : > { %v5078_v56 = vsel %vm5075_vm15, %v5077_v40, %v5073_v4  ;;  %v5089_v10 = vand.u32 2147483647, %v14754_v61  ;;  %v7139_v47 = vunpack.c.l.b16 %v7040_v32  ;;  %v6228_v15 = vshll.u32 %v6131_v35, 16  ;;  %v14778_v35 = vpop.f32.mrf.mxu3 }
 0x3f4   : > { %v5451_v6 = vmul.f32 %v5078_v56, %v14615_v50  ;;  %v5091_v62 = vand.u32 2147483648, %v14754_v61  ;;  %v6227_v31 = vrot.slane %v6225_v63, 4  ;;  %v6234_v25 = vshll.u32 %v14731_v8, 16  ;;  %v11486_v50 = vld [vmem:[%s12441_s12 + $0xcc] sm:$0xe] }
 0x3f5   : > { %v7168_v13 = vpack.c.b16 %v7139_v47, %v7138_v53  ;;  %v6230_v43 = vrot.slane %v6228_v15, 5  ;;  %v6238_v38 = vshrl.u32 %v14731_v8, 16  ;;  %v6244_v58 = vshll.u32 %v14737_v39, 16  ;;  %v5920_v53 = vld [vmem:[#allocation2 + $0x44] sm:$0x1] }
 0x3f6   : > { %v12206_v9 = vpop.eup %12205  ;;  %v5607_v55 = vrot.slane %v14733_v34, 4  ;;  %v5487_v44 = vpack.c.bf16 %v5451_v6, %v5451_v6  ;;  %vm5085_vm4 = vweird.f32 %v14754_v61  ;;  %v6236_v51 = vrot.slane %v6234_v25, 5 }
 0x3f7   : > { %v12208_v57 = vpop.eup %12207  ;;  %v6022_v22 = vld [vmem:[#allocation2 + $0x3c] sm:$0x1]  ;;  %v14774_v36 = vadd.f32 1.0, %v12206_v9  ;;  %11678 = vmatmul.msk.bf16.gmra.mxu3 %vm6610_vm3, %v7168_v13  ;;  %v6231_v14 = vor.u32 %v6230_v43, %v6227_v31  ;;  %v6240_v1 = vrot.slane %v6238_v38, 4  ;;  %v4694_v8 = vadd.f32 %v4625_v17, %v14247_v60  ;;  %v12079_v38 = vld [vmem:[#allocation2 + $0x30] sm:$0xff] }
 0x3f8   : > { %v6023_v34 = vsel %vm14340_vm12, 0, %v6022_v22  ;;  %v5609_v39 = vshrl.u32 %v5487_v44, 16  ;;  %v5081_v16 = vmul.f32 %v12208_v57, %v14754_v61  ;;  %vm14783_vm2 = vcmp.eq.f32.partialorder %v5089_v10, 8.507059e+37  ;;  %v12334_v10 = vld [vmem:[%s12441_s12 + $0xd0] sm:$0xf]  ;;  %v4627_v22 = vpop.f32.mrf.mxu0  ;;  %11647 = vmatmul.msk.bf16.gmra.mxu2 %vm6610_vm3, %v12079_v38 }
 0x3f9   : > { %6024 = vst [vmem:[#allocation2 + $0x3c] sm:$0x1] %v6023_v34  ;;  %v5092_v3 = vor.u32 1.1754944e-38, %v5091_v62  ;;  %12209 = vrcp.f32 %v14774_v36  ;;  %v6246_v37 = vrot.slane %v6244_v58, 5  ;;  %v11504_v41 = vrot.slane %v11486_v50, 9 }
 0x3fa   : > { %v5611_v60 = vrot.slane %v5609_v39, 7  ;;  %v5612_v40 = vshll.u32 %v5487_v44, 16  ;;  %v5082_v4 = vsub.f32 1.0, %v5081_v16  ;;  %v6232_v32 = vrot.slane %v6231_v14, 4 }
 0x3fb   : > { %vm5086_vm1 = vweird.f32 %v12208_v57  ;;  %v6241_v63 = vor.u32 %v6240_v1, %v6236_v51  ;;  %v14789_v56 = vadd.f32 %v14693_v24, %v4694_v8  ;;  %v4449_v47 = vrot.slane %v12334_v10, 5  ;;  %v12335_v8 = vld [vmem:[%s12441_s12 + $0xd4] sm:$0x1]  ;;  %v14835_v10 = vpop.f32.mrf.mxu3 }
 0x3fc   : > { %v5614_v15 = vor.u32 %v5612_v40, %v5611_v60  ;;  %v5616_v6 = vrot.slane %v5611_v60, 4  ;;  %v5083_v31 = vmul.f32 %v12208_v57, %v5082_v4  ;;  %v5104_v62 = vand.u32 2147483647, %v14774_v36  ;;  %vm14810_vm13 = vmor %vm5085_vm4, %vm5086_vm1  ;;  %v14828_v40 = vld [vmem:[#allocation2 + $0x2c] sm:$0x1] }
 0x3fd   : > { %v5106_v25 = vand.u32 2147483648, %v14774_v36  ;;  %v6237_v17 = vsel %vm12463_vm6, %v6232_v32, %v6236_v51  ;;  %v6242_v13 = vrot.slane %v6241_v63, 4  ;;  %v11540_v43 = vmul.f32 -1.442695, %v14789_v56  ;;  %v6975_v63 = vld [vmem:[#allocation2 + $0x24] sm:$0xe] }
 0x3fe   : > { %v5615_v58 = vsel %vm14332_vm10, %v5607_v55, %v5614_v15  ;;  %v5921_v9 = vsel %vm14340_vm12, %v5616_v6, %v5920_v53  ;;  %v5084_v44 = vadd.f32 %v12208_v57, %v5083_v31  ;;  %vm5100_vm0 = vweird.f32 %v14774_v36 }
 0x3ff   : > { %v4450_v50 = vsel %vm12457_vm5, %v11504_v41, %v4449_v47  ;;  %v14804_v14 = vpop.eup %12209  ;;  %5919 = vst.msk [vmem:[#allocation2 + $0x40] sm:$0xf] %vm5875_vm14, %v5615_v58  ;;  %v6247_v55 = vsel %vm12463_vm6, %v6242_v13, %v6246_v37  ;;  %12211 = vpow2.f32 %v11540_v43  ;;  %v4451_v1 = vrot.slane %v4449_v47, 4  ;;  %v14826_v37 = vld [vmem:[#allocation2 + $0x28] sm:$0xf] }
 0x400   : > { %v4452_v34 = vrot.slane %v12335_v8, 5  ;;  %5922 = vst [vmem:[#allocation2 + $0x44] sm:$0x1] %v5921_v9  ;;  %v5088_v39 = vsel %vm14810_vm13, %v12208_v57, %v5084_v44  ;;  %v5096_v61 = vmul.f32 %v14804_v14, %v14774_v36  ;;  %vm14822_vm15 = vcmp.eq.f32.partialorder %v5104_v62, 8.507059e+37  ;;  %v6133_v62 = vld [vmem:[#allocation2 + $0x24] sm:$0xf] }
 0x401   : > { %v6566_v41 = vunpack.c.l.b16 %v6237_v17  ;;  %v6567_v60 = vunpack.c.l.b16 %v6247_v55  ;;  %v5093_v4 = vsel %vm14783_vm2, %v5092_v3, %v5088_v39  ;;  %v4500_v57 = vunpack.c.l.b16 %v4450_v50 }
 0x402   : > { %v4453_v32 = vsel %vm12457_vm5, %v4451_v1, %v4452_v34  ;;  %v4695_v53 = vadd.f32 %v4627_v22, %v14264_v48  ;;  %v5452_v47 = vmul.f32 %v5093_v4, %v14696_v23  ;;  %v5097_v15 = vsub.f32 1.0, %v5096_v61 }
 0x403   : > { %v6596_v6 = vpack.c.b16 %v6567_v60, %v6566_v41  ;;  %v4501_v31 = vunpack.c.l.b16 %v4453_v32  ;;  %vm5101_vm4 = vweird.f32 %v14804_v14  ;;  %v7043_v3 = vrot.slane %v14826_v37, 5  ;;  %v5923_v32 = vld [vmem:[#allocation2 + $0x48] sm:$0xf] }
 0x404   : > { %v14840_v49 = vadd.f32 %v14693_v24, %v4695_v53  ;;  %v7046_v17 = vrot.slane %v14828_v40, 5  ;;  %v5488_v13 = vpack.c.bf16 %v5452_v47, %v5452_v47  ;;  %v5098_v48 = vmul.f32 %v14804_v14, %v5097_v15  ;;  %vm5102_vm2 = vmor %vm5100_vm0, %vm5101_vm4 }
 0x405   : > { %11565 = vmatmul.msk.bf16.gmra.mxu1 %vm6610_vm3, %v6596_v6  ;;  %v4521_v43 = vpack.c.b16 %v4501_v31, %v4500_v57  ;;  %v11662_v23 = vrot.slane %v6975_v63, 9  ;;  %v12212_v38 = vpop.eup %12211  ;;  %v5107_v58 = vor.u32 1.1754944e-38, %v5106_v25  ;;  %v7045_v44 = vrot.slane %v7043_v3, 4  ;;  %v4630_v63 = vpop.f32.mrf.mxu0 }
 0x406   : > { %v11541_v9 = vmul.f32 -1.442695, %v14840_v49  ;;  %v6249_v50 = vshrl.u32 %v6133_v62, 16  ;;  %v5618_v22 = vshrl.u32 %v5488_v13, 16  ;;  %v5099_v51 = vadd.f32 %v14804_v14, %v5098_v48 }
 0x407   : > { %v14848_v55 = vadd.f32 1.0, %v12212_v38  ;;  %11523 = vmatmul.msk.bf16.gmra.mxu0 %vm17414_vm7, %v4521_v43  ;;  %v7044_v1 = vsel %vm12457_vm5, %v11662_v23, %v7043_v3  ;;  %v6077_v8 = vld [vmem:[#allocation2 + $0x44] sm:$0x1]  ;;  %v5621_v34 = vshll.u32 %v5488_v13, 16  ;;  %v7047_v25 = vsel %vm12457_vm5, %v7045_v44, %v7046_v17 }
 0x408   : > { %12213 = vpow2.f32 %v11541_v9  ;;  %v6252_v39 = vshll.u32 %v6133_v62, 16  ;;  %v6078_v61 = vsel %vm14410_vm9, 0, %v6077_v8  ;;  %v14861_v41 = vrot.slane %v5618_v22, 7 }
 0x409   : > { %v5103_v60 = vsel %vm5102_vm2, %v14804_v14, %v5099_v51  ;;  %12215 = vrcp.f32 %v14848_v55  ;;  %v14867_v4 = vadd.f32 %v14701_v42, %v14712_v33  ;;  %v14871_v36 = vadd.f32 %v14014_v5, %v14053_v59  ;;  %6079 = vst [vmem:[#allocation2 + $0x44] sm:$0x1] %v6078_v61  ;;  %v14880_v59 = vpop.f32.mrf.mxu3 }
 0x40a   : > { %v5108_v57 = vsel %vm14822_vm15, %v5107_v58, %v5103_v60  ;;  %v6251_v53 = vrot.slane %v6249_v50, 4  ;;  %v5623_v47 = vor.u32 %v5621_v34, %v14861_v41  ;;  %v7140_v15 = vunpack.c.l.b16 %v7044_v1  ;;  %v5927_v34 = vld [vmem:[#allocation2 + $0x50] sm:$0x1]  ;;  %v11487_v60 = vld [vmem:[%s12441_s12 + $0xd8] sm:$0xe] }
 0x40b   : > { %v5453_v14 = vmul.f32 %v5108_v57, %v14740_v45  ;;  %v7141_v6 = vunpack.c.l.b16 %v7047_v25  ;;  %v5119_v42 = vand.u32 2147483647, %v14848_v55  ;;  %v5121_v33 = vand.u32 2147483648, %v14848_v55 }
 0x40c   : > { %v6254_v31 = vrot.slane %v6252_v39, 5  ;;  %v6258_v5 = vshll.u32 %v14826_v37, 16  ;;  %v5924_v16 = vsel %vm14296_vm11, %v5623_v47, %v5923_v32  ;;  %v6262_v17 = vshrl.u32 %v14826_v37, 16 }
 0x40d   : > { %v5489_v62 = vpack.c.bf16 %v5453_v14, %v5453_v14  ;;  %v7169_v3 = vpack.c.b16 %v7141_v6, %v7140_v15  ;;  %5925 = vst [vmem:[#allocation2 + $0x48] sm:$0xf] %v5924_v16  ;;  %vm5115_vm1 = vweird.f32 %v14848_v55  ;;  %v6268_v43 = vshll.u32 %v14828_v40, 16  ;;  %v4632_v6 = vpop.f32.mrf.mxu0 }
 0x40e   : > { %v12214_v13 = vpop.eup %12213  ;;  %v6255_v45 = vor.u32 %v6254_v31, %v6251_v53  ;;  %v6260_v48 = vrot.slane %v6258_v5, 5  ;;  %v5624_v38 = vrot.slane %v14861_v41, 4  ;;  %v6264_v44 = vrot.slane %v6262_v17, 4 }
 0x40f   : > { %v14887_v23 = vpop.eup %12215  ;;  %v5626_v58 = vshrl.u32 %v5489_v62, 16  ;;  %v14890_v9 = vadd.f32 1.0, %v12214_v13  ;;  %11679 = vmatmul.msk.bf16.gmra.mxu3 %vm6610_vm3, %v7169_v3  ;;  %vm14895_vm0 = vcmp.eq.f32.partialorder %v5119_v42, 8.507059e+37  ;;  %v5122_v22 = vor.u32 1.1754944e-38, %v5121_v33  ;;  %v12080_v42 = vld [vmem:[#allocation2 + $0x3c] sm:$0xff] }
 0x410   : > { %v5111_v37 = vmul.f32 %v14887_v23, %v14848_v55  ;;  %v6256_v40 = vrot.slane %v6255_v45, 4  ;;  %v4696_v51 = vadd.f32 %v4630_v63, %v14392_v2  ;;  %v5629_v8 = vshll.u32 %v5489_v62, 16  ;;  %v12336_v62 = vld [vmem:[%s12441_s12 + $0xdc] sm:$0xf]  ;;  %11648 = vmatmul.msk.bf16.gmra.mxu2 %vm6610_vm3, %v12080_v42 }
 0x411   : > { %v5628_v1 = vrot.slane %v5626_v58, 7  ;;  %vm5116_vm13 = vweird.f32 %v14887_v23  ;;  %12217 = vrcp.f32 %v14890_v9  ;;  %v6265_v61 = vor.u32 %v6264_v44, %v6260_v48  ;;  %v14927_v58 = vpop.f32.mrf.mxu3 }
 0x412   : > { %v5112_v25 = vsub.f32 1.0, %v5111_v37  ;;  %v6261_v39 = vsel %vm12463_vm6, %v6256_v40, %v6260_v48  ;;  %v6270_v41 = vrot.slane %v6268_v43, 5  ;;  %v5134_v53 = vand.u32 2147483647, %v14890_v9  ;;  %v6976_v43 = vld [vmem:[#allocation2 + $0x30] sm:$0xe]  ;;  %vm14933_vm4 = vmor %vm5115_vm1, %vm5116_vm13 }
 0x413   : > { %v5631_v32 = vor.u32 %v5629_v8, %v5628_v1  ;;  %v5633_v57 = vrot.slane %v5628_v1, 4  ;;  %v5136_v2 = vand.u32 2147483648, %v14890_v9  ;;  %v6266_v47 = vrot.slane %v6265_v61, 4  ;;  %v12337_v1 = vld [vmem:[%s12441_s12 + $0xe0] sm:$0x1] }
 0x414   : > { %v5113_v63 = vmul.f32 %v14887_v23, %v5112_v25  ;;  %v6568_v14 = vunpack.c.l.b16 %v6261_v39  ;;  %v14909_v15 = vadd.f32 %v14693_v24, %v4696_v51  ;;  %v6025_v33 = vld [vmem:[#allocation2 + $0x48] sm:$0x1]  ;;  %v11505_v16 = vrot.slane %v11487_v60, 9  ;;  %v14952_v61 = vld [vmem:[#allocation2 + $0x38] sm:$0x1] }
 0x415   : > { %v5632_v31 = vsel %vm14332_vm10, %v5624_v38, %v5631_v32  ;;  %v5928_v5 = vsel %vm14340_vm12, %v5633_v57, %v5927_v34  ;;  %v4456_v3 = vrot.slane %v12336_v62, 5  ;;  %v6026_v17 = vsel %vm14340_vm12, 0, %v6025_v33  ;;  %v14940_v34 = vld [vmem:[#allocation2 + $0x34] sm:$0xf]  ;;  %v4635_v44 = vpop.f32.mrf.mxu0 }
 0x416   : > { %5926 = vst.msk [vmem:[#allocation2 + $0x4c] sm:$0xf] %vm5875_vm14, %v5632_v31  ;;  %v5114_v13 = vadd.f32 %v14887_v23, %v5113_v63  ;;  %vm5130_vm15 = vweird.f32 %v14890_v9  ;;  %v6271_v45 = vsel %vm12463_vm6, %v6266_v47, %v6270_v41  ;;  %v11542_v48 = vmul.f32 -1.442695, %v14909_v15  ;;  %v6135_v41 = vld [vmem:[#allocation2 + $0x30] sm:$0xf] }
 0x417   : > { %v14925_v38 = vpop.eup %12217  ;;  %6027 = vst [vmem:[#allocation2 + $0x48] sm:$0x1] %v6026_v17  ;;  %v6569_v37 = vunpack.c.l.b16 %v6271_v45  ;;  %v4457_v40 = vsel %vm12457_vm5, %v11505_v16, %v4456_v3  ;;  %v4458_v51 = vrot.slane %v4456_v3, 4  ;;  %v4459_v8 = vrot.slane %v12337_v1, 5 }
 0x418   : > { %5929 = vst [vmem:[#allocation2 + $0x50] sm:$0x1] %v5928_v5  ;;  %v5118_v25 = vsel %vm14933_vm4, %v14887_v23, %v5114_v13  ;;  %v5126_v55 = vmul.f32 %v14925_v38, %v14890_v9  ;;  %vm5131_vm2 = vweird.f32 %v14925_v38  ;;  %vm14948_vm1 = vcmp.eq.f32.partialorder %v5134_v53, 8.507059e+37 }
 0x419   : > { %12219 = vpow2.f32 %v11542_v48  ;;  %v5123_v60 = vsel %vm14895_vm0, %v5122_v22, %v5118_v25  ;;  %v6597_v32 = vpack.c.b16 %v6569_v37, %v6568_v14  ;;  %v4460_v23 = vsel %vm12457_vm5, %v4458_v51, %v4459_v8  ;;  %vm5132_vm0 = vmor %vm5130_vm15, %vm5131_vm2 }
 0x41a   : > { %v4502_v57 = vunpack.c.l.b16 %v4457_v40  ;;  %v5454_v63 = vmul.f32 %v5123_v60, %v14789_v56  ;;  %v5127_v47 = vsub.f32 1.0, %v5126_v55  ;;  %v4503_v42 = vunpack.c.l.b16 %v4460_v23  ;;  %v14991_v60 = vpop.f32.mrf.mxu3 }
 0x41b   : > { %v4697_v53 = vadd.f32 %v4632_v6, %v14396_v20  ;;  %11566 = vmatmul.msk.bf16.gmra.mxu1 %vm6610_vm3, %v6597_v32  ;;  %v11663_v33 = vrot.slane %v6976_v43, 9  ;;  %v7050_v31 = vrot.slane %v14940_v34, 5  ;;  %v7053_v5 = vrot.slane %v14952_v61, 5  ;;  %v5930_v32 = vld [vmem:[#allocation2 + $0x54] sm:$0xf] }
 0x41c   : > { %v6273_v50 = vshrl.u32 %v6135_v41, 16  ;;  %v5490_v22 = vpack.c.bf16 %v5454_v63, %v5454_v63  ;;  %v5128_v14 = vmul.f32 %v14925_v38, %v5127_v47  ;;  %v4522_v16 = vpack.c.b16 %v4503_v42, %v4502_v57  ;;  %v17584_v57 = vld [vmem:[#allocation5_spill] sm:$0xff] }
 0x41d   : > { %v14965_v62 = vadd.f32 %v14693_v24, %v4697_v53  ;;  %v5137_v56 = vor.u32 1.1754944e-38, %v5136_v2  ;;  %v7051_v3 = vsel %vm12457_vm5, %v11663_v33, %v7050_v31  ;;  %v7052_v20 = vrot.slane %v7050_v31, 4 }
 0x41e   : > { %v6276_v6 = vshll.u32 %v6135_v41, 16  ;;  %v5635_v13 = vshrl.u32 %v5490_v22, 16  ;;  %v5129_v45 = vadd.f32 %v14925_v38, %v5128_v14  ;;  %11524 = vmatmul.msk.bf16.gmra.mxu0 %vm17414_vm7, %v4522_v16  ;;  %v6275_v43 = vrot.slane %v6273_v50, 4 }
 0x41f   : > { %v12220_v17 = vpop.eup %12219  ;;  %v11543_v48 = vmul.f32 -1.442695, %v14965_v62  ;;  %v6080_v37 = vld [vmem:[#allocation2 + $0x50] sm:$0x1]  ;;  %v5638_v40 = vshll.u32 %v5490_v22, 16  ;;  %v7054_v51 = vsel %vm12457_vm5, %v7052_v20, %v7053_v5  ;;  %v14985_v41 = vadd.f32 %v14747_v21, %v14042_v18 }
 0x420   : > { %v14976_v2 = vadd.f32 1.0, %v12220_v17  ;;  %v6278_v1 = vrot.slane %v6276_v6, 5  ;;  %v6081_v8 = vsel %vm14410_vm9, 0, %v6080_v37  ;;  %v5637_v25 = vrot.slane %v5635_v13, 7  ;;  %v11488_v6 = vld [vmem:[%s12441_s12 + $0xe4] sm:$0xe] }
 0x421   : > { %v5133_v55 = vsel %vm5132_vm0, %v14925_v38, %v5129_v45  ;;  %12221 = vpow2.f32 %v11543_v48  ;;  %v14989_v9 = vadd.f32 %v14019_v52, %v14871_v36  ;;  %6082 = vst [vmem:[#allocation2 + $0x50] sm:$0x1] %v6081_v8  ;;  %v17585_v38 = vld [vmem:[#allocation8_spill] sm:$0xff]  ;;  %v7142_v21 = vunpack.c.l.b16 %v7051_v3  ;;  %v5934_v8 = vld [vmem:[#allocation2 + $0x5c] sm:$0x1] }
 0x422   : > { %v5138_v23 = vsel %vm14948_vm1, %v5137_v56, %v5133_v55  ;;  %12223 = vrcp.f32 %v14976_v2  ;;  %v14998_v63 = vadd.f32 %v17585_v38, %v17584_v57  ;;  %v5640_v47 = vor.u32 %v5638_v40, %v5637_v25  ;;  %v15026_v38 = vpop.f32.mrf.mxu3 }
 0x423   : > { %v5455_v18 = vmul.f32 %v5138_v23, %v14840_v49  ;;  %v5149_v52 = vand.u32 2147483647, %v14976_v2  ;;  %v7143_v36 = vunpack.c.l.b16 %v7054_v51  ;;  %v6279_v42 = vor.u32 %v6278_v1, %v6275_v43  ;;  %v4637_v1 = vpop.f32.mrf.mxu0 }
 0x424   : > { %v6282_v53 = vshll.u32 %v14940_v34, 16  ;;  %v5931_v39 = vsel %vm14296_vm11, %v5640_v47, %v5930_v32  ;;  %v5151_v31 = vand.u32 2147483648, %v14976_v2  ;;  %v6286_v5 = vshrl.u32 %v14940_v34, 16 }
 0x425   : > { %v5491_v33 = vpack.c.bf16 %v5455_v18, %v5455_v18  ;;  %5932 = vst [vmem:[#allocation2 + $0x54] sm:$0xf] %v5931_v39  ;;  %v7170_v50 = vpack.c.b16 %v7143_v36, %v7142_v21  ;;  %v6280_v22 = vrot.slane %v6279_v42, 4  ;;  %v6292_v14 = vshll.u32 %v14952_v61, 16 }
 0x426   : > { %v6284_v49 = vrot.slane %v6282_v53, 5  ;;  %v5641_v56 = vrot.slane %v5637_v25, 4  ;;  %vm5145_vm13 = vweird.f32 %v14976_v2  ;;  %v6288_v20 = vrot.slane %v6286_v5, 4 }
 0x427   : > { %v12222_v16 = vpop.eup %12221  ;;  %v5643_v3 = vshrl.u32 %v5491_v33, 16  ;;  %v5646_v13 = vshll.u32 %v5491_v33, 16  ;;  %11680 = vmatmul.msk.bf16.gmra.mxu3 %vm6610_vm3, %v7170_v50  ;;  %v4698_v48 = vadd.f32 %v4635_v44, %v14400_v12  ;;  %vm15020_vm15 = vcmp.eq.f32.partialorder %v5149_v52, 8.507059e+37  ;;  %v6977_v33 = vld [vmem:[#allocation2 + $0x3c] sm:$0xe] }
 0x428   : > { %v15010_v17 = vpop.eup %12223  ;;  %v15012_v45 = vadd.f32 1.0, %v12222_v16  ;;  %v6285_v34 = vsel %vm12463_vm6, %v6280_v22, %v6284_v49  ;;  %v6289_v40 = vor.u32 %v6288_v20, %v6284_v49  ;;  %v6294_v51 = vrot.slane %v6292_v14, 5  ;;  %v12338_v49 = vld [vmem:[%s12441_s12 + $0xe8] sm:$0xf] }
 0x429   : > { %v5645_v61 = vrot.slane %v5643_v3, 7  ;;  %v5141_v43 = vmul.f32 %v15010_v17, %v14976_v2  ;;  %v5152_v25 = vor.u32 1.1754944e-38, %v5151_v31  ;;  %v11506_v32 = vrot.slane %v11488_v6, 9  ;;  %v12081_v31 = vld [vmem:[#allocation2 + $0x48] sm:$0xff]  ;;  %v6137_v2 = vld [vmem:[#allocation2 + $0x3c] sm:$0xf] }
 0x42a   : > { %12225 = vrcp.f32 %v15012_v45  ;;  %v5166_v55 = vand.u32 2147483648, %v15012_v45  ;;  %v6290_v57 = vrot.slane %v6289_v40, 4  ;;  %vm5146_vm4 = vweird.f32 %v15010_v17  ;;  %v12339_v3 = vld [vmem:[%s12441_s12 + $0xec] sm:$0x1]  ;;  %11649 = vmatmul.msk.bf16.gmra.mxu2 %vm6610_vm3, %v12081_v31  ;;  %v15060_v40 = vld [vmem:[#allocation2 + $0x44] sm:$0x1] }
 0x42b   : > { %v5648_v23 = vor.u32 %v5646_v13, %v5645_v61  ;;  %v5650_v12 = vrot.slane %v5645_v61, 4  ;;  %v5142_v44 = vsub.f32 1.0, %v5141_v43  ;;  %v5164_v47 = vand.u32 2147483647, %v15012_v45  ;;  %v15051_v13 = vld [vmem:[#allocation2 + $0x40] sm:$0xf]  ;;  %vm5147_vm1 = vmor %vm5145_vm13, %vm5146_vm4 }
 0x42c   : > { %v6570_v18 = vunpack.c.l.b16 %v6285_v34  ;;  %v15031_v21 = vadd.f32 %v14693_v24, %v4698_v48  ;;  %v6028_v52 = vld [vmem:[#allocation2 + $0x54] sm:$0x1]  ;;  %v6295_v39 = vsel %vm12463_vm6, %v6290_v57, %v6294_v51  ;;  %v4463_v14 = vrot.slane %v12338_v49, 5 }
 0x42d   : > { %v5649_v36 = vsel %vm14332_vm10, %v5641_v56, %v5648_v23  ;;  %v5935_v42 = vsel %vm14340_vm12, %v5650_v12, %v5934_v8  ;;  %v5143_v53 = vmul.f32 %v15010_v17, %v5142_v44  ;;  %v6029_v5 = vsel %vm14340_vm12, 0, %v6028_v52  ;;  %v4640_v52 = vpop.f32.mrf.mxu0 }
 0x42e   : > { %5933 = vst.msk [vmem:[#allocation2 + $0x58] sm:$0xf] %vm5875_vm14, %v5649_v36  ;;  %v6571_v50 = vunpack.c.l.b16 %v6295_v39  ;;  %v11544_v22 = vmul.f32 -1.442695, %v15031_v21  ;;  %vm5160_vm2 = vweird.f32 %v15012_v45  ;;  %v15047_v56 = vor.u32 1.1754944e-38, %v5166_v55 }
 0x42f   : > { %6030 = vst [vmem:[#allocation2 + $0x54] sm:$0x1] %v6029_v5  ;;  %v5144_v16 = vadd.f32 %v15010_v17, %v5143_v53  ;;  %v4466_v20 = vrot.slane %v12339_v3, 5  ;;  %v4699_v6 = vadd.f32 %v4637_v1, %v14402_v19  ;;  %v4464_v61 = vsel %vm12457_vm5, %v11506_v32, %v4463_v14  ;;  %v15082_v5 = vpop.f32.mrf.mxu3 }
 0x430   : > { %v12226_v34 = vpop.eup %12225  ;;  %5936 = vst [vmem:[#allocation2 + $0x5c] sm:$0x1] %v5935_v42  ;;  %v6598_v48 = vpack.c.b16 %v6571_v50, %v6570_v18  ;;  %12227 = vpow2.f32 %v11544_v22  ;;  %v4465_v43 = vrot.slane %v4463_v14, 4  ;;  %vm15064_vm0 = vcmp.eq.f32.partialorder %v5164_v47, 8.507059e+37 }
 0x431   : > { %v5148_v19 = vsel %vm5147_vm1, %v15010_v17, %v5144_v16  ;;  %v5156_v51 = vmul.f32 %v12226_v34, %v15012_v45  ;;  %v4504_v8 = vunpack.c.l.b16 %v4464_v61  ;;  %v11664_v55 = vrot.slane %v6977_v33, 9  ;;  %v5937_v45 = vld [vmem:[#allocation2 + $0x60] sm:$0xf] }
 0x432   : > { %v5153_v23 = vsel %vm15020_vm15, %v5152_v25, %v5148_v19  ;;  %11567 = vmatmul.msk.bf16.gmra.mxu1 %vm6610_vm3, %v6598_v48  ;;  %v4467_v32 = vsel %vm12457_vm5, %v4465_v43, %v4466_v20  ;;  %v15074_v12 = vadd.f32 %v14693_v24, %v4699_v6  ;;  %v7057_v17 = vrot.slane %v15051_v13, 5 }
 0x433   : > { %v5456_v44 = vmul.f32 %v5153_v23, %v14909_v15  ;;  %v5157_v57 = vsub.f32 1.0, %v5156_v51  ;;  %v4505_v47 = vunpack.c.l.b16 %v4467_v32  ;;  %v7060_v18 = vrot.slane %v15060_v40, 5  ;;  %v17591_v23 = vld [vmem:[#allocation4_spill] sm:$0xff] }
 0x434   : > { %v11545_v37 = vmul.f32 -1.442695, %v15074_v12  ;;  %v7058_v25 = vsel %vm12457_vm5, %v11664_v55, %v7057_v17  ;;  %v7059_v36 = vrot.slane %v7057_v17, 4  ;;  %v6297_v42 = vshrl.u32 %v6137_v2, 16 }
 0x435   : > { %v5492_v53 = vpack.c.bf16 %v5456_v44, %v5456_v44  ;;  %v5158_v39 = vmul.f32 %v12226_v34, %v5157_v57  ;;  %vm5161_vm13 = vweird.f32 %v12226_v34  ;;  %v4523_v33 = vpack.c.b16 %v4505_v47, %v4504_v8  ;;  %v17592_v57 = vld [vmem:[#allocation3_spill] sm:$0xff] }
 0x436   : > { %v12228_v31 = vpop.eup %12227  ;;  %12229 = vpow2.f32 %v11545_v37  ;;  %v7061_v15 = vsel %vm12457_vm5, %v7059_v36, %v7060_v18  ;;  %v7144_v50 = vunpack.c.l.b16 %v7058_v25  ;;  %v6300_v22 = vshll.u32 %v6137_v2, 16  ;;  %vm5162_vm15 = vmor %vm5160_vm2, %vm5161_vm13  ;;  %v17590_v2 = vld [vmem:[#allocation12_spill] sm:$0xff] }
 0x437   : > { %v6083_v49 = vld [vmem:[#allocation2 + $0x5c] sm:$0x1]  ;;  %v5652_v14 = vshrl.u32 %v5492_v53, 16  ;;  %v5159_v16 = vadd.f32 %v12226_v34, %v5158_v39  ;;  %v15086_v3 = vadd.f32 1.0, %v12228_v31  ;;  %11525 = vmatmul.msk.bf16.gmra.mxu0 %vm17414_vm7, %v4523_v33  ;;  %v6299_v20 = vrot.slane %v6297_v42, 4  ;;  %v4642_v39 = vpop.f32.mrf.mxu0 }
 0x438   : > { %v6084_v6 = vsel %vm14410_vm9, 0, %v6083_v49  ;;  %v7145_v48 = vunpack.c.l.b16 %v7061_v15  ;;  %v6302_v61 = vrot.slane %v6300_v22, 5  ;;  %v6306_v43 = vshll.u32 %v15051_v13, 16 }
 0x439   : > { %6085 = vst [vmem:[#allocation2 + $0x5c] sm:$0x1] %v6084_v6  ;;  %v15095_v19 = vrot.slane %v5652_v14, 7  ;;  %v5655_v51 = vshll.u32 %v5492_v53, 16  ;;  %v5163_v8 = vsel %vm5162_vm15, %v12226_v34, %v5159_v16  ;;  %12231 = vrcp.f32 %v15086_v3  ;;  %v12082_v14 = vld [vmem:[#allocation2 + $0x54] sm:$0xff]  ;;  %v15131_v16 = vpop.f32.mrf.mxu3 }
 0x43a   : > { %v15100_v55 = vadd.f32 %v14778_v35, %v14989_v9  ;;  %v3204_v32 = vadd.f32 %v17591_v23, %v17590_v2  ;;  %v5168_v17 = vsel %vm15064_vm0, %v15047_v56, %v5163_v8  ;;  %v7171_v44 = vpack.c.b16 %v7145_v48, %v7144_v50  ;;  %11650 = vmatmul.msk.bf16.gmra.mxu2 %vm6610_vm3, %v12082_v14  ;;  %v5941_v8 = vld [vmem:[#allocation2 + $0x68] sm:$0x1] }
 0x43b   : > { %v15109_v47 = vadd.f32 %v17592_v57, %v14998_v63  ;;  %v5657_v34 = vor.u32 %v5655_v51, %v15095_v19  ;;  %v5457_v18 = vmul.f32 %v5168_v17, %v14965_v62  ;;  %v6303_v37 = vor.u32 %v6302_v61, %v6299_v20  ;;  %v17593_v62 = vld [vmem:[#allocation13_spill] sm:$0xff] }
 0x43c   : > { %v12230_v35 = vpop.eup %12229  ;;  %v5179_v9 = vand.u32 2147483647, %v15086_v3  ;;  %v5181_v25 = vand.u32 2147483648, %v15086_v3  ;;  %11681 = vmatmul.msk.bf16.gmra.mxu3 %vm6610_vm3, %v7171_v44  ;;  %v6308_v36 = vrot.slane %v6306_v43, 5  ;;  %v6310_v56 = vshrl.u32 %v15051_v13, 16 }
 0x43d   : > { %v5938_v1 = vsel %vm14296_vm11, %v5657_v34, %v5937_v45  ;;  %v5493_v63 = vpack.c.bf16 %v5457_v18, %v5457_v18  ;;  %v15119_v42 = vadd.f32 1.0, %v12230_v35  ;;  %v6304_v53 = vrot.slane %v6303_v37, 4  ;;  %v6978_v57 = vld [vmem:[#allocation2 + $0x48] sm:$0xe]  ;;  %v15156_v35 = vld [vmem:[%s14009_s17] ss:$0 sm:$0xff] }
 0x43e   : > { %v15122_v33 = vadd.f32 %v17593_v62, %v3204_v32  ;;  %5939 = vst [vmem:[#allocation2 + $0x60] sm:$0xf] %v5938_v1  ;;  %vm5175_vm4 = vweird.f32 %v15086_v3  ;;  %v6312_v31 = vrot.slane %v6310_v56, 4  ;;  %v6316_v15 = vshll.u32 %v15060_v40, 16  ;;  %v15168_v62 = vld [vmem:[#allocation2 + $0x50] sm:$0x1] }
 0x43f   : > { %v15126_v50 = vpop.eup %12231  ;;  %v5658_v13 = vrot.slane %v15095_v19, 4  ;;  %v5660_v22 = vshrl.u32 %v5493_v63, 16  ;;  %12233 = vrcp.f32 %v15119_v42  ;;  %v4700_v49 = vadd.f32 %v4640_v52, %v14475_v7  ;;  %v11823_v52 = vld [vmem:[%s17408_s3 + $0x18] sm:$0xf]  ;;  %v4645_v48 = vpop.f32.mrf.mxu0 }
 0x440   : > { %v5663_v20 = vshll.u32 %v5493_v63, 16  ;;  %v5171_v6 = vmul.f32 %v15126_v50, %v15086_v3  ;;  %vm15135_vm2 = vcmp.eq.f32.partialorder %v5179_v9, 8.507059e+37  ;;  %v5182_v40 = vor.u32 1.1754944e-38, %v5181_v25  ;;  %v6140_v25 = vld [vmem:[#allocation2 + $0x4c] sm:$0xf] }
 0x441   : > { %v4701_v61 = vadd.f32 %v4642_v39, %v14867_v4  ;;  %v5662_v43 = vrot.slane %v5660_v22, 7  ;;  %v6309_v19 = vsel %vm12463_vm6, %v6304_v53, %v6308_v36  ;;  %v6313_v51 = vor.u32 %v6312_v31, %v6308_v36  ;;  %v6139_v36 = vld [vmem:[#allocation2 + $0x48] sm:$0xf] }
 0x442   : > { %v6318_v7 = vrot.slane %v6316_v15, 5  ;;  %v5172_v2 = vsub.f32 1.0, %v5171_v6  ;;  %vm5176_vm1 = vweird.f32 %v15126_v50  ;;  %v5194_v23 = vand.u32 2147483647, %v15119_v42 }
 0x443   : > { %v5196_v4 = vand.u32 2147483648, %v15119_v42  ;;  %v5665_v32 = vor.u32 %v5663_v20, %v5662_v43  ;;  %v5667_v45 = vrot.slane %v5662_v43, 4  ;;  %v6314_v17 = vrot.slane %v6313_v51, 4  ;;  %vm5177_vm15 = vmor %vm5175_vm4, %vm5176_vm1 }
 0x444   : > { %v15150_v44 = vadd.f32 %v14693_v24, %v4700_v49  ;;  %v5173_v34 = vmul.f32 %v15126_v50, %v5172_v2  ;;  %vm5190_vm0 = vweird.f32 %v15119_v42  ;;  %v6572_v18 = vunpack.c.l.b16 %v6309_v19  ;;  %v12107_v49 = vld [vmem:[#allocation2 + $0x18] sm:$0xff] }
 0x445   : > { %v8857_v37 = vsel %vm17415_vm8, %v11823_v52, 0  ;;  %v15159_v9 = vadd.f32 %v15156_v35, %v4701_v61  ;;  %v12234_v56 = vpop.eup %12233  ;;  %v6031_v1 = vld [vmem:[#allocation2 + $0x60] sm:$0x1]  ;;  %v5666_v24 = vsel %vm14332_vm10, %v5658_v13, %v5665_v32  ;;  %v5942_v63 = vsel %vm14340_vm12, %v5667_v45, %v5941_v8  ;;  %v15189_v8 = vpop.f32.mrf.mxu3 }
 0x446   : > { %v6319_v53 = vsel %vm12463_vm6, %v6314_v17, %v6318_v7  ;;  %v11546_v39 = vmul.f32 -1.442695, %v15150_v44  ;;  %8866 = vmatpush.bf16.msra.mxu0 %v8857_v37  ;;  %v6032_v31 = vsel %vm14340_vm12, 0, %v6031_v1  ;;  %5940 = vst.msk [vmem:[#allocation2 + $0x64] sm:$0xf] %vm5875_vm14, %v5666_v24  ;;  %v5174_v15 = vadd.f32 %v15126_v50, %v5173_v34 }
 0x447   : > { %v5186_v13 = vmul.f32 %v12234_v56, %v15119_v42  ;;  %vm15175_vm13 = vcmp.eq.f32.partialorder %v5194_v23, 8.507059e+37  ;;  %v11665_v14 = vrot.slane %v6978_v57, 9  ;;  %6033 = vst [vmem:[#allocation2 + $0x60] sm:$0x1] %v6032_v31  ;;  %v6573_v20 = vunpack.c.l.b16 %v6319_v53 }
 0x448   : > { %12235 = vpow2.f32 %v11546_v39  ;;  %v11547_v6 = vmul.f32 -1.442695, %v15159_v9  ;;  %v7064_v61 = vrot.slane %v6140_v25, 5  ;;  %5943 = vst [vmem:[#allocation2 + $0x68] sm:$0x1] %v5942_v63  ;;  %v5178_v43 = vsel %vm5177_vm15, %v15126_v50, %v5174_v15 }
 0x449   : > { %v5187_v19 = vsub.f32 1.0, %v5186_v13  ;;  %11888 = vmatmul.msk.bf16.vlgmr.msra.gmra.mxu0 %vm6610_vm3, %v12107_v49  ;;  %v7067_v51 = vrot.slane %v15168_v62, 5  ;;  %v6321_v7 = vshrl.u32 %v6139_v36, 16  ;;  %v5183_v52 = vsel %vm15135_vm2, %v5182_v40, %v5178_v43  ;;  %v5944_v43 = vld [vmem:[#allocation2 + $0x6c] sm:$0xf] }
 0x44a   : > { %vm5191_vm7 = vweird.f32 %v12234_v56  ;;  %v6599_v3 = vpack.c.b16 %v6573_v20, %v6572_v18  ;;  %12237 = vpow2.f32 %v11547_v6  ;;  %v5458_v2 = vmul.f32 %v5183_v52, %v15031_v21 }
 0x44b   : > { %v5188_v23 = vmul.f32 %v12234_v56, %v5187_v19  ;;  %v7065_v50 = vsel %vm12457_vm5, %v11665_v14, %v7064_v61  ;;  %v7066_v32 = vrot.slane %v7064_v61, 4  ;;  %v6323_v45 = vrot.slane %v6321_v7, 4  ;;  %vm5192_vm4 = vmor %vm5190_vm0, %vm5191_vm7 }
 0x44c   : > { %11568 = vmatmul.msk.bf16.gmra.mxu1 %vm6610_vm3, %v6599_v3  ;;  %v6324_v17 = vshll.u32 %v6139_v36, 16  ;;  %v6330_v57 = vshll.u32 %v6140_v25, 16  ;;  %v6334_v34 = vshrl.u32 %v6140_v25, 16  ;;  %v5494_v40 = vpack.c.bf16 %v5458_v2, %v5458_v2 }
 0x44d   : > { %v5189_v37 = vadd.f32 %v12234_v56, %v5188_v23  ;;  %v5197_v18 = vor.u32 1.1754944e-38, %v5196_v4  ;;  %v7068_v1 = vsel %vm12457_vm5, %v7066_v32, %v7067_v51  ;;  %v7146_v21 = vunpack.c.l.b16 %v7065_v50  ;;  %v17598_v50 = vld [vmem:[#allocation10_spill] sm:$0xff] }
 0x44e   : > { %v12236_v24 = vpop.eup %12235  ;;  %v7147_v63 = vunpack.c.l.b16 %v7068_v1  ;;  %v6326_v53 = vrot.slane %v6324_v17, 5  ;;  %v6332_v39 = vrot.slane %v6330_v57, 5  ;;  %v5669_v31 = vshrl.u32 %v5494_v40, 16  ;;  %v17601_v17 = vld [vmem:[#allocation18_spill] sm:$0xff] }
 0x44f   : > { %v5193_v36 = vsel %vm5192_vm4, %v12234_v56, %v5189_v37  ;;  %v15200_v15 = vadd.f32 1.0, %v12236_v24  ;;  %v6336_v25 = vrot.slane %v6334_v34, 4  ;;  %v6086_v49 = vld [vmem:[#allocation2 + $0x68] sm:$0x1]  ;;  %v5672_v4 = vshll.u32 %v5494_v40, 16 }
 0x450   : > { %v12238_v13 = vpop.eup %12237  ;;  %v5198_v14 = vsel %vm15175_vm13, %v5197_v18, %v5193_v36  ;;  %v7172_v20 = vpack.c.b16 %v7147_v63, %v7146_v21  ;;  %v6327_v6 = vor.u32 %v6326_v53, %v6323_v45  ;;  %v6087_v42 = vsel %vm14410_vm9, 0, %v6086_v49  ;;  %v17600_v45 = vld [vmem:[#allocation14_spill] sm:$0xff]  ;;  %v12108_v24 = vld [vmem:[#allocation2 + $0x24] sm:$0xff]  ;;  %v4647_v21 = vpop.f32.mrf.mxu0 }
 0x451   : > { %v5671_v61 = vrot.slane %v5669_v31, 7  ;;  %v5459_v19 = vmul.f32 %v5198_v14, %v15074_v12  ;;  %12239 = vrcp.f32 %v15200_v15  ;;  %v15210_v56 = vadd.f32 %v14835_v10, %v15109_v47  ;;  %6088 = vst [vmem:[#allocation2 + $0x68] sm:$0x1] %v6087_v42  ;;  %v17599_v10 = vld [vmem:[#allocation6_spill] sm:$0xff] }
 0x452   : > { %v5211_v51 = vand.u32 2147483648, %v15200_v15  ;;  %v15213_v22 = vadd.f32 1.0, %v12238_v13  ;;  %11682 = vmatmul.msk.bf16.gmra.mxu3 %vm6610_vm3, %v7172_v20  ;;  %v6340_v7 = vshll.u32 %v15168_v62, 16  ;;  %v6328_v2 = vrot.slane %v6327_v6, 4  ;;  %v15231_v62 = vpop.f32.mrf.mxu3  ;;  %v12083_v13 = vld [vmem:[#allocation2 + $0x60] sm:$0xff] }
 0x453   : > { %v5674_v52 = vor.u32 %v5672_v4, %v5671_v61  ;;  %v5495_v3 = vpack.c.bf16 %v5459_v19, %v5459_v19  ;;  %v6337_v23 = vor.u32 %v6336_v25, %v6332_v39  ;;  %v15219_v12 = vadd.f32 %v14880_v59, %v15122_v33  ;;  %v5948_v49 = vld [vmem:[#allocation2 + $0x74] sm:$0x1]  ;;  %11651 = vmatmul.msk.bf16.gmra.mxu2 %vm6610_vm3, %v12083_v13 }
 0x454   : > { %v15223_v47 = vadd.f32 %v17599_v10, %v17598_v50  ;;  %v5209_v32 = vand.u32 2147483647, %v15200_v15  ;;  %12241 = vrcp.f32 %v15213_v22  ;;  %v15229_v57 = vadd.f32 %v17601_v17, %v17600_v45  ;;  %v15268_v10 = vld [vmem:[#allocation2 + $0x5c] sm:$0x1] }
 0x455   : > { %v5675_v34 = vrot.slane %v5671_v61, 4  ;;  %v5945_v40 = vsel %vm14296_vm11, %v5674_v52, %v5944_v43  ;;  %v5677_v59 = vshrl.u32 %v5495_v3, 16  ;;  %v5680_v33 = vshll.u32 %v5495_v3, 16  ;;  %v15257_v3 = vld [vmem:[#allocation2 + $0x58] sm:$0xf] }
 0x456   : > { %5946 = vst [vmem:[#allocation2 + $0x6c] sm:$0xf] %v5945_v40  ;;  %vm5205_vm7 = vweird.f32 %v15200_v15  ;;  %v15236_v37 = vor.u32 1.1754944e-38, %v5211_v51  ;;  %v6333_v18 = vsel %vm12463_vm6, %v6328_v2, %v6332_v39  ;;  %v4702_v1 = vadd.f32 %v4645_v48, %v14985_v41  ;;  %v6979_v48 = vld [vmem:[#allocation2 + $0x54] sm:$0xe] }
 0x457   : > { %v12240_v63 = vpop.eup %12239  ;;  %v5679_v53 = vrot.slane %v5677_v59, 7  ;;  %v5224_v31 = vand.u32 2147483647, %v15213_v22  ;;  %v6338_v36 = vrot.slane %v6337_v23, 4  ;;  %v6342_v25 = vrot.slane %v6340_v7, 5 }
 0x458   : > { %v5201_v4 = vmul.f32 %v12240_v63, %v15200_v15  ;;  %vm15243_vm2 = vcmp.eq.f32.partialorder %v5209_v32, 8.507059e+37  ;;  %v5226_v39 = vand.u32 2147483648, %v15213_v22  ;;  %v6574_v20 = vunpack.c.l.b16 %v6333_v18 }
 0x459   : > { %v15249_v41 = vadd.f32 %v15156_v35, %v4702_v1  ;;  %v5682_v6 = vor.u32 %v5680_v33, %v5679_v53  ;;  %v5684_v42 = vrot.slane %v5679_v53, 4  ;;  %v6343_v61 = vsel %vm12463_vm6, %v6338_v36, %v6342_v25  ;;  %11889 = vmatmul.msk.bf16.gmra.mxu0 %vm6610_vm3, %v12108_v24 }
 0x45a   : > { %v4703_v43 = vadd.f32 %v4647_v21, %v15100_v55  ;;  %v12242_v19 = vpop.eup %12241  ;;  %v5202_v51 = vsub.f32 1.0, %v5201_v4  ;;  %vm5206_vm1 = vweird.f32 %v12240_v63  ;;  %v6575_v7 = vunpack.c.l.b16 %v6343_v61 }
 0x45b   : > { %v11548_v52 = vmul.f32 -1.442695, %v15249_v41  ;;  %v5683_v2 = vsel %vm14332_vm10, %v5675_v34, %v5682_v6  ;;  %v5949_v23 = vsel %vm14340_vm12, %v5684_v42, %v5948_v49  ;;  %v5216_v50 = vmul.f32 %v12242_v19, %v15213_v22  ;;  %v6141_v34 = vld [vmem:[#allocation2 + $0x54] sm:$0xf]  ;;  %vm5207_vm4 = vmor %vm5205_vm7, %vm5206_vm1  ;;  %v15288_v6 = vpop.f32.mrf.mxu2 }
 0x45c   : > { %vm15264_vm0 = vcmp.eq.f32.partialorder %v5224_v31, 8.507059e+37  ;;  %v11666_v32 = vrot.slane %v6979_v48, 9  ;;  %5947 = vst.msk [vmem:[#allocation2 + $0x70] sm:$0xf] %vm5875_vm14, %v5683_v2  ;;  %v5203_v45 = vmul.f32 %v12240_v63, %v5202_v51  ;;  %v6600_v17 = vpack.c.b16 %v6575_v7, %v6574_v20  ;;  %v15281_v31 = vpop.f32.mrf.mxu3  ;;  %v4650_v2 = vpop.f32.mrf.mxu0 }
 0x45d   : > { %12243 = vpow2.f32 %v11548_v52  ;;  %v15272_v40 = vadd.f32 %v15156_v35, %v4703_v43  ;;  %v6034_v59 = vld [vmem:[#allocation2 + $0x6c] sm:$0x1]  ;;  %5950 = vst [vmem:[#allocation2 + $0x74] sm:$0x1] %v5949_v23  ;;  %v5217_v33 = vsub.f32 1.0, %v5216_v50  ;;  %vm5220_vm13 = vweird.f32 %v15213_v22 }
 0x45e   : > { %vm5221_vm15 = vweird.f32 %v12242_v19  ;;  %v7071_v18 = vrot.slane %v15257_v3, 5  ;;  %v6035_v1 = vsel %vm14340_vm12, 0, %v6034_v59  ;;  %v5204_v24 = vadd.f32 %v12240_v63, %v5203_v45  ;;  %11569 = vmatmul.msk.bf16.gmra.mxu1 %vm6610_vm3, %v6600_v17  ;;  %v17606_v59 = vld [vmem:[#allocation7_spill] sm:$0xff] }
 0x45f   : > { %v11549_v21 = vmul.f32 -1.442695, %v15272_v40  ;;  %v7074_v53 = vrot.slane %v15268_v10, 5  ;;  %6036 = vst [vmem:[#allocation2 + $0x6c] sm:$0x1] %v6035_v1  ;;  %v5218_v36 = vmul.f32 %v12242_v19, %v5217_v33  ;;  %v6345_v49 = vshrl.u32 %v6141_v34, 16  ;;  %vm5222_vm7 = vmor %vm5220_vm13, %vm5221_vm15 }
 0x460   : > { %v7072_v25 = vsel %vm12457_vm5, %v11666_v32, %v7071_v18  ;;  %v7073_v13 = vrot.slane %v7071_v18, 4  ;;  %v5208_v4 = vsel %vm5207_vm4, %v12240_v63, %v5204_v24  ;;  %v5227_v20 = vor.u32 1.1754944e-38, %v5226_v39  ;;  %v15303_v32 = vpop.f32.mrf.mxu1  ;;  %v17607_v1 = vld [vmem:[#allocation17_spill] sm:$0xff] }
 0x461   : > { %12245 = vpow2.f32 %v11549_v21  ;;  %v6348_v48 = vshll.u32 %v6141_v34, 16  ;;  %v5213_v42 = vsel %vm15243_vm2, %v15236_v37, %v5208_v4  ;;  %v5219_v61 = vadd.f32 %v12242_v19, %v5218_v36 }
 0x462   : > { %v7075_v15 = vsel %vm12457_vm5, %v7073_v13, %v7074_v53  ;;  %v6347_v43 = vrot.slane %v6345_v49, 4  ;;  %v5460_v7 = vmul.f32 %v5213_v42, %v15150_v44  ;;  %v7148_v63 = vunpack.c.l.b16 %v7072_v25  ;;  %v12109_v13 = vld [vmem:[#allocation2 + $0x30] sm:$0xff] }
 0x463   : > { %v12244_v51 = vpop.eup %12243  ;;  %v7149_v39 = vunpack.c.l.b16 %v7075_v15  ;;  %v6350_v52 = vrot.slane %v6348_v48, 5  ;;  %v5223_v23 = vsel %vm5222_vm7, %v12242_v19, %v5219_v61  ;;  %v6354_v37 = vshll.u32 %v15257_v3, 16  ;;  %v17608_v48 = vld [vmem:[#allocation11_spill] sm:$0xff] }
 0x464   : > { %v15299_v50 = vadd.f32 1.0, %v12244_v51  ;;  %v6358_v14 = vshrl.u32 %v15257_v3, 16  ;;  %v6089_v45 = vld [vmem:[#allocation2 + $0x74] sm:$0x1]  ;;  %v5496_v17 = vpack.c.bf16 %v5460_v7, %v5460_v7  ;;  %v5228_v44 = vsel %vm15264_vm0, %v5227_v20, %v5223_v23  ;;  %v15329_v61 = vpop.f32.mrf.mxu3  ;;  %v5951_v15 = vld [vmem:[#allocation2 + $0x78] sm:$0xf]  ;;  %v6892_v51 = vpop.f32.mrf.mxu2 }
 0x465   : > { %v7173_v22 = vpack.c.b16 %v7149_v39, %v7148_v63  ;;  %v6351_v34 = vor.u32 %v6350_v52, %v6347_v43  ;;  %v15309_v33 = vadd.f32 %v17606_v59, %v15223_v47  ;;  %v6090_v19 = vsel %vm14410_vm9, 0, %v6089_v45  ;;  %v5955_v45 = vld [vmem:[#allocation2 + $0x80] sm:$0x1]  ;;  %v4652_v59 = vpop.f32.mrf.mxu0 }
 0x466   : > { %v5461_v18 = vmul.f32 %v5228_v44, %v15159_v9  ;;  %12247 = vrcp.f32 %v15299_v50  ;;  %v15317_v24 = vadd.f32 %v17607_v1, %v15229_v57  ;;  %6091 = vst [vmem:[#allocation2 + $0x74] sm:$0x1] %v6090_v19  ;;  %v5686_v55 = vshrl.u32 %v5496_v17, 16 }
 0x467   : > { %v12246_v3 = vpop.eup %12245  ;;  %v5689_v21 = vshll.u32 %v5496_v17, 16  ;;  %11683 = vmatmul.msk.bf16.gmra.mxu3 %vm6610_vm3, %v7173_v22  ;;  %v4704_v47 = vadd.f32 %v4650_v2, %v15210_v56  ;;  %v5241_v36 = vand.u32 2147483648, %v15299_v50  ;;  %v6352_v9 = vrot.slane %v6351_v34, 4 }
 0x468   : > { %v5497_v53 = vpack.c.bf16 %v5461_v18, %v5461_v18  ;;  %v15322_v25 = vadd.f32 1.0, %v12246_v3  ;;  %v5688_v49 = vrot.slane %v5686_v55, 7  ;;  %v5239_v4 = vand.u32 2147483647, %v15299_v50  ;;  %v6672_v19 = vpop.f32.mrf.mxu1  ;;  %v12084_v18 = vld [vmem:[#allocation2 + $0x6c] sm:$0xff] }
 0x469   : > { %v6356_v20 = vrot.slane %v6354_v37, 5  ;;  %v6360_v57 = vrot.slane %v6358_v14, 4  ;;  %v15327_v42 = vadd.f32 %v17608_v48, %v14116_v11  ;;  %v6364_v43 = vshll.u32 %v15268_v10, 16  ;;  %11890 = vmatmul.msk.bf16.gmra.mxu0 %vm6610_vm3, %v12109_v13  ;;  %11652 = vmatmul.msk.bf16.gmra.mxu2 %vm6610_vm3, %v12084_v18  ;;  %v15365_v48 = vld [vmem:[#allocation2 + $0x64] sm:$0xf] }
 0x46a   : > { %v5694_v56 = vshrl.u32 %v5497_v53, 16  ;;  %12249 = vrcp.f32 %v15322_v25  ;;  %v5691_v7 = vor.u32 %v5689_v21, %v5688_v49  ;;  %v5697_v63 = vshll.u32 %v5497_v53, 16 }
 0x46b   : > { %vm5235_vm2 = vweird.f32 %v15299_v50  ;;  %v15335_v39 = vor.u32 1.1754944e-38, %v5241_v36  ;;  %v15338_v11 = vadd.f32 %v15156_v35, %v4704_v47  ;;  %v5692_v2 = vrot.slane %v5688_v49, 4 }
 0x46c   : > { %v15340_v52 = vpop.eup %12247  ;;  %v5696_v23 = vrot.slane %v5694_v56, 7  ;;  %v6357_v37 = vsel %vm12463_vm6, %v6352_v9, %v6356_v20  ;;  %v6361_v10 = vor.u32 %v6360_v57, %v6356_v20  ;;  %v5952_v14 = vsel %vm14296_vm11, %v5691_v7, %v5951_v15  ;;  %v6980_v9 = vld [vmem:[#allocation2 + $0x60] sm:$0xe]  ;;  %v15367_v15 = vld [vmem:[#allocation2 + $0x68] sm:$0x1] }
 0x46d   : > { %v5231_v17 = vmul.f32 %v15340_v52, %v15299_v50  ;;  %vm15348_vm1 = vcmp.eq.f32.partialorder %v5239_v4, 8.507059e+37  ;;  %v5254_v22 = vand.u32 2147483647, %v15322_v25  ;;  %v5256_v34 = vand.u32 2147483648, %v15322_v25  ;;  %5953 = vst [vmem:[#allocation2 + $0x78] sm:$0xf] %v5952_v14 }
 0x46e   : > { %v5699_v3 = vor.u32 %v5697_v63, %v5696_v23  ;;  %v5701_v1 = vrot.slane %v5696_v23, 4  ;;  %vm5236_vm0 = vweird.f32 %v15340_v52  ;;  %v6362_v55 = vrot.slane %v6361_v10, 4  ;;  %v6143_v63 = vld [vmem:[#allocation2 + $0x60] sm:$0xf] }
 0x46f   : > { %v5232_v21 = vsub.f32 1.0, %v5231_v17  ;;  %vm5250_vm13 = vweird.f32 %v15322_v25  ;;  %v6366_v47 = vrot.slane %v6364_v43, 5  ;;  %v6576_v53 = vunpack.c.l.b16 %v6357_v37  ;;  %vm5237_vm4 = vmor %vm5235_vm2, %vm5236_vm0 }
 0x470   : > { %v11550_v36 = vmul.f32 -1.442695, %v15338_v11  ;;  %v12250_v13 = vpop.eup %12249  ;;  %v5700_v49 = vsel %vm14332_vm10, %v5692_v2, %v5699_v3  ;;  %v5956_v4 = vsel %vm14340_vm12, %v5701_v1, %v5955_v45  ;;  %v4705_v20 = vadd.f32 %v4652_v59, %v15219_v12  ;;  %v15380_v45 = vpop.f32.mrf.mxu3 }
 0x471   : > { %v15363_v57 = vadd.f32 %v6892_v51, %v6672_v19  ;;  %5954 = vst.msk [vmem:[#allocation2 + $0x7c] sm:$0xf] %vm5875_vm14, %v5700_v49  ;;  %v5233_v56 = vmul.f32 %v15340_v52, %v5232_v21  ;;  %v5246_v43 = vmul.f32 %v12250_v13, %v15322_v25  ;;  %vm5251_vm15 = vweird.f32 %v12250_v13  ;;  %v15387_v19 = vpop.f32.mrf.mxu2 }
 0x472   : > { %v6367_v7 = vsel %vm12463_vm6, %v6362_v55, %v6366_v47  ;;  %5957 = vst [vmem:[#allocation2 + $0x80] sm:$0x1] %v5956_v4  ;;  %12251 = vpow2.f32 %v11550_v36  ;;  %v15375_v12 = vadd.f32 %v15156_v35, %v4705_v20  ;;  %v11667_v51 = vrot.slane %v6980_v9, 9  ;;  %vm5252_vm2 = vmor %vm5250_vm13, %vm5251_vm15 }
 0x473   : > { %v6577_v2 = vunpack.c.l.b16 %v6367_v7  ;;  %v5234_v23 = vadd.f32 %v15340_v52, %v5233_v56  ;;  %v5247_v37 = vsub.f32 1.0, %v5246_v43  ;;  %v7078_v10 = vrot.slane %v15365_v48, 5  ;;  %v15408_v7 = vpop.f32.mrf.mxu0 }
 0x474   : > { %v7081_v14 = vrot.slane %v15367_v15, 5  ;;  %v11551_v59 = vmul.f32 -1.442695, %v15375_v12  ;;  %v6369_v18 = vshrl.u32 %v6143_v63, 16  ;;  %v6372_v3 = vshll.u32 %v6143_v63, 16  ;;  %v12110_v63 = vld [vmem:[#allocation2 + $0x3c] sm:$0xff] }
 0x475   : > { %v6601_v17 = vpack.c.b16 %v6577_v2, %v6576_v53  ;;  %v6037_v1 = vld [vmem:[#allocation2 + $0x78] sm:$0x1]  ;;  %v5238_v55 = vsel %vm5237_vm4, %v15340_v52, %v5234_v23  ;;  %v5248_v21 = vmul.f32 %v12250_v13, %v5247_v37  ;;  %v7079_v47 = vsel %vm12457_vm5, %v11667_v51, %v7078_v10 }
 0x476   : > { %v7080_v36 = vrot.slane %v7078_v10, 4  ;;  %v6038_v9 = vsel %vm14340_vm12, 0, %v6037_v1  ;;  %v5243_v50 = vsel %vm15348_vm1, %v15335_v39, %v5238_v55  ;;  %vm15397_vm7 = vcmp.eq.f32.partialorder %v5254_v22, 8.507059e+37  ;;  %v17613_v1 = vld [vmem:[#allocation9_spill] sm:$0xff] }
 0x477   : > { %11570 = vmatmul.msk.bf16.gmra.mxu1 %vm6610_vm3, %v6601_v17  ;;  %12253 = vpow2.f32 %v11551_v59  ;;  %6039 = vst [vmem:[#allocation2 + $0x78] sm:$0x1] %v6038_v9  ;;  %v5462_v52 = vmul.f32 %v5243_v50, %v15249_v41  ;;  %v5249_v49 = vadd.f32 %v12250_v13, %v5248_v21  ;;  %v6371_v20 = vrot.slane %v6369_v18, 4  ;;  %v15419_v17 = vpop.f32.mrf.mxu1 }
 0x478   : > { %v7082_v4 = vsel %vm12457_vm5, %v7080_v36, %v7081_v14  ;;  %v12252_v56 = vpop.eup %12251  ;;  %v5257_v39 = vor.u32 1.1754944e-38, %v5256_v34  ;;  %v7150_v44 = vunpack.c.l.b16 %v7079_v47  ;;  %v6374_v43 = vrot.slane %v6372_v3, 5  ;;  %v7242_v36 = vpop.f32.mrf.mxu3 }
 0x479   : > { %v7151_v22 = vunpack.c.l.b16 %v7082_v4  ;;  %v6092_v2 = vld [vmem:[#allocation2 + $0x80] sm:$0x1]  ;;  %v5498_v51 = vpack.c.bf16 %v5462_v52, %v5462_v52  ;;  %v5253_v41 = vsel %vm5252_vm2, %v12250_v13, %v5249_v49  ;;  %v15410_v23 = vadd.f32 1.0, %v12252_v56  ;;  %11891 = vmatmul.msk.bf16.gmra.mxu0 %vm6610_vm3, %v12110_v63  ;;  %v6897_v56 = vpop.f32.mrf.mxu2 }
 0x47a   : > { %v6378_v37 = vshll.u32 %v15365_v48, 16  ;;  %v6093_v10 = vsel %vm14410_vm9, 0, %v6092_v2  ;;  %v5258_v25 = vsel %vm15397_vm7, %v5257_v39, %v5253_v41  ;;  %v6382_v14 = vshrl.u32 %v15365_v48, 16 }
 0x47b   : > { %v7174_v34 = vpack.c.b16 %v7151_v22, %v7150_v44  ;;  %6094 = vst [vmem:[#allocation2 + $0x80] sm:$0x1] %v6093_v10  ;;  %v5703_v59 = vshrl.u32 %v5498_v51, 16  ;;  %v5463_v13 = vmul.f32 %v5258_v25, %v15272_v40  ;;  %12255 = vrcp.f32 %v15410_v23 }
 0x47c   : > { %v6375_v18 = vor.u32 %v6374_v43, %v6371_v20  ;;  %v4260_v55 = vadd.f32 %v14927_v58, %v17613_v1  ;;  %v5706_v21 = vshll.u32 %v5498_v51, 16  ;;  %v5271_v47 = vand.u32 2147483648, %v15410_v23  ;;  %v5958_v58 = vld [vmem:[#allocation2 + $0x84] sm:$0xf]  ;;  %v5962_v51 = vld [vmem:[#allocation2 + $0x8c] sm:$0x1] }
 0x47d   : > { %v12254_v3 = vpop.eup %12253  ;;  %11684 = vmatmul.msk.bf16.gmra.mxu3 %vm6610_vm3, %v7174_v34  ;;  %v6388_v48 = vshll.u32 %v15367_v15, 16  ;;  %v5705_v9 = vrot.slane %v5703_v59, 7  ;;  %v5499_v50 = vpack.c.bf16 %v5463_v13, %v5463_v13  ;;  %v6380_v40 = vrot.slane %v6378_v37, 5  ;;  %v17614_v15 = vld [vmem:[#allocation22_spill] sm:$0xff] }
 0x47e   : > { %v15428_v53 = vadd.f32 1.0, %v12254_v3  ;;  %v4261_v52 = vadd.f32 %v14991_v60, %v15309_v33  ;;  %v15434_v49 = vadd.f32 %v15026_v38, %v15317_v24  ;;  %v5269_v4 = vand.u32 2147483647, %v15410_v23  ;;  %v12085_v1 = vld [vmem:[#allocation2 + $0x78] sm:$0xff] }
 0x47f   : > { %v6384_v20 = vrot.slane %v6382_v14, 4  ;;  %v15439_v39 = vadd.f32 %v17614_v15, %v15327_v42  ;;  %v5708_v44 = vor.u32 %v5706_v21, %v5705_v9  ;;  %v5711_v22 = vshrl.u32 %v5499_v50, 16  ;;  %v4657_v14 = vpop.f32.mrf.mxu0  ;;  %11653 = vmatmul.msk.bf16.gmra.mxu2 %vm6610_vm3, %v12085_v1 }
 0x480   : > { %v6376_v43 = vrot.slane %v6375_v18, 4  ;;  %vm5265_vm1 = vweird.f32 %v15410_v23  ;;  %v15442_v63 = vor.u32 1.1754944e-38, %v5271_v47  ;;  %12257 = vrcp.f32 %v15428_v53 }
 0x481   : > { %v6390_v60 = vrot.slane %v6388_v48, 5  ;;  %v15445_v38 = vpop.eup %12255  ;;  %v5959_v33 = vsel %vm14296_vm11, %v5708_v44, %v5958_v58  ;;  %v5713_v24 = vrot.slane %v5711_v22, 7  ;;  %v5714_v2 = vshll.u32 %v5499_v50, 16  ;;  %v15479_v44 = vpop.f32.mrf.mxu3  ;;  %v15481_v22 = vld [vmem:[#allocation2 + $0x70] sm:$0xf] }
 0x482   : > { %v6385_v42 = vor.u32 %v6384_v20, %v6380_v40  ;;  %v5709_v41 = vrot.slane %v5705_v9, 4  ;;  %5960 = vst [vmem:[#allocation2 + $0x84] sm:$0xf] %v5959_v33  ;;  %v5261_v37 = vmul.f32 %v15445_v38, %v15410_v23  ;;  %vm15451_vm0 = vcmp.eq.f32.partialorder %v5269_v4, 8.507059e+37  ;;  %v6677_v9 = vpop.f32.mrf.mxu1  ;;  %v6981_v20 = vld [vmem:[#allocation2 + $0x6c] sm:$0xe] }
 0x483   : > { %v5284_v25 = vand.u32 2147483647, %v15428_v53  ;;  %v5286_v34 = vand.u32 2147483648, %v15428_v53  ;;  %v5716_v59 = vor.u32 %v5714_v2, %v5713_v24  ;;  %v5718_v13 = vrot.slane %v5713_v24, 4  ;;  %v15494_v24 = vld [vmem:[#allocation2 + $0x74] sm:$0x1] }
 0x484   : > { %v6381_v18 = vsel %vm12463_vm6, %v6376_v43, %v6380_v40  ;;  %v6386_v3 = vrot.slane %v6385_v42, 4  ;;  %v5262_v21 = vsub.f32 1.0, %v5261_v37  ;;  %vm5266_vm13 = vweird.f32 %v15445_v38 }
 0x485   : > { %v4706_v47 = vadd.f32 %v15408_v7, %v4260_v55  ;;  %v15462_v48 = vadd.f32 %v7242_v36, %v15363_v57  ;;  %v5717_v50 = vsel %vm14332_vm10, %v5709_v41, %v5716_v59  ;;  %v5963_v58 = vsel %vm14340_vm12, %v5718_v13, %v5962_v51  ;;  %v15498_v41 = vpop.f32.mrf.mxu2  ;;  %vm5267_vm7 = vmor %vm5265_vm1, %vm5266_vm13 }
 0x486   : > { %vm5280_vm15 = vweird.f32 %v15428_v53  ;;  %v6391_v40 = vsel %vm12463_vm6, %v6386_v3, %v6390_v60  ;;  %v4707_v4 = vadd.f32 %v4657_v14, %v4261_v52  ;;  %v15472_v7 = vpop.eup %12257  ;;  %5961 = vst.msk [vmem:[#allocation2 + $0x88] sm:$0xf] %vm5875_vm14, %v5717_v50  ;;  %v5263_v57 = vmul.f32 %v15445_v38, %v5262_v21  ;;  %v6145_v14 = vld [vmem:[#allocation2 + $0x6c] sm:$0xf] }
 0x487   : > { %v6578_v55 = vunpack.c.l.b16 %v6381_v18  ;;  %v6579_v36 = vunpack.c.l.b16 %v6391_v40  ;;  %v15477_v15 = vadd.f32 %v15156_v35, %v4706_v47  ;;  %5964 = vst [vmem:[#allocation2 + $0x8c] sm:$0x1] %v5963_v58  ;;  %v5276_v52 = vmul.f32 %v15472_v7, %v15428_v53 }
 0x488   : > { %vm15485_vm4 = vcmp.eq.f32.partialorder %v5284_v25, 8.507059e+37  ;;  %v15490_v60 = vadd.f32 %v15156_v35, %v4707_v4  ;;  %v15492_v33 = vadd.f32 %v6897_v56, %v6677_v9  ;;  %v5264_v2 = vadd.f32 %v15445_v38, %v5263_v57  ;;  %v12111_v25 = vld [vmem:[#allocation2 + $0x48] sm:$0xff] }
 0x489   : > { %v6602_v51 = vpack.c.b16 %v6579_v36, %v6578_v55  ;;  %v11552_v42 = vmul.f32 -1.442695, %v15477_v15  ;;  %v11668_v37 = vrot.slane %v6981_v20, 9  ;;  %v6040_v59 = vld [vmem:[#allocation2 + $0x84] sm:$0x1]  ;;  %v5277_v56 = vsub.f32 1.0, %v5276_v52  ;;  %11892 = vmatmul.msk.bf16.gmra.mxu0 %vm6610_vm3, %v12111_v25  ;;  %v4660_v36 = vpop.f32.mrf.mxu0 }
 0x48a   : > { %vm5281_vm2 = vweird.f32 %v15472_v7  ;;  %v11553_v13 = vmul.f32 -1.442695, %v15490_v60  ;;  %v7085_v18 = vrot.slane %v15481_v22, 5  ;;  %v6041_v3 = vsel %vm14340_vm12, 0, %v6040_v59  ;;  %v17619_v25 = vld [vmem:[#allocation25_spill] sm:$0xff]  ;;  %v17620_v59 = vld [vmem:[#allocation20_spill] sm:$0xff] }
 0x48b   : > { %v5268_v1 = vsel %vm5267_vm7, %v15445_v38, %v5264_v2  ;;  %11571 = vmatmul.msk.bf16.gmra.mxu1 %vm6610_vm3, %v6602_v51  ;;  %12259 = vpow2.f32 %v11552_v42  ;;  %v7088_v21 = vrot.slane %v15494_v24, 5  ;;  %6042 = vst [vmem:[#allocation2 + $0x84] sm:$0x1] %v6041_v3  ;;  %v5278_v47 = vmul.f32 %v15472_v7, %v5277_v56  ;;  %vm5282_vm1 = vmor %vm5280_vm15, %vm5281_vm2  ;;  %v7247_v3 = vpop.f32.mrf.mxu3 }
 0x48c   : > { %v5273_v23 = vsel %vm15451_vm0, %v15442_v63, %v5268_v1  ;;  %12261 = vpow2.f32 %v11553_v13  ;;  %v7086_v9 = vsel %vm12457_vm5, %v11668_v37, %v7085_v18  ;;  %v5287_v50 = vor.u32 1.1754944e-38, %v5286_v34 }
 0x48d   : > { %v5464_v38 = vmul.f32 %v5273_v23, %v15338_v11  ;;  %v7087_v58 = vrot.slane %v7085_v18, 4  ;;  %v6393_v40 = vshrl.u32 %v6145_v14, 16  ;;  %v5279_v4 = vadd.f32 %v15472_v7, %v5278_v47  ;;  %v15545_v43 = vpop.f32.mrf.mxu2 }
 0x48e   : > { %v7152_v20 = vunpack.c.l.b16 %v7086_v9  ;;  %v6396_v57 = vshll.u32 %v6145_v14, 16  ;;  %v6402_v55 = vshll.u32 %v15481_v22, 16  ;;  %v6095_v10 = vld [vmem:[#allocation2 + $0x8c] sm:$0x1]  ;;  %v6406_v52 = vshrl.u32 %v15481_v22, 16  ;;  %v15537_v22 = vpop.f32.mrf.mxu1 }
 0x48f   : > { %v5500_v63 = vpack.c.bf16 %v5464_v38, %v5464_v38  ;;  %v7089_v11 = vsel %vm12457_vm5, %v7087_v58, %v7088_v21  ;;  %v6395_v34 = vrot.slane %v6393_v40, 4  ;;  %v6096_v2 = vsel %vm14410_vm9, 0, %v6095_v10  ;;  %v17622_v10 = vld [vmem:[#allocation21_spill] sm:$0xff] }
 0x490   : > { %v5283_v51 = vsel %vm5282_vm1, %v15472_v7, %v5279_v4  ;;  %v7153_v42 = vunpack.c.l.b16 %v7089_v11  ;;  %v6398_v37 = vrot.slane %v6396_v57, 5  ;;  %v3210_v56 = vadd.f32 %v17620_v59, %v17619_v25  ;;  %6097 = vst [vmem:[#allocation2 + $0x8c] sm:$0x1] %v6096_v2 }
 0x491   : > { %v12260_v14 = vpop.eup %12259  ;;  %v5720_v53 = vshrl.u32 %v5500_v63, 16  ;;  %v5288_v13 = vsel %vm15485_vm4, %v5287_v50, %v5283_v51  ;;  %v4708_v18 = vadd.f32 %v4660_v36, %v15434_v49  ;;  %v6412_v47 = vshll.u32 %v15494_v24, 16  ;;  %v5965_v50 = vld [vmem:[#allocation2 + $0x90] sm:$0xf]  ;;  %v17621_v36 = vld [vmem:[#allocation15_spill] sm:$0xff] }
 0x492   : > { %v12262_v1 = vpop.eup %12261  ;;  %v5465_v21 = vmul.f32 %v5288_v13, %v15375_v12  ;;  %v15540_v7 = vadd.f32 1.0, %v12260_v14  ;;  %v7175_v23 = vpack.c.b16 %v7153_v42, %v7152_v20  ;;  %v5723_v38 = vshll.u32 %v5500_v63, 16  ;;  %v17623_v63 = vld [vmem:[#allocation19_spill] sm:$0xff] }
 0x493   : > { %v5722_v9 = vrot.slane %v5720_v53, 7  ;;  %v15543_v58 = vadd.f32 1.0, %v12262_v1  ;;  %v6404_v40 = vrot.slane %v6402_v55, 5  ;;  %v6399_v4 = vor.u32 %v6398_v37, %v6395_v34  ;;  %v12112_v1 = vld [vmem:[#allocation2 + $0x54] sm:$0xff] }
 0x494   : > { %v5501_v49 = vpack.c.bf16 %v5465_v21, %v5465_v21  ;;  %12263 = vrcp.f32 %v15540_v7  ;;  %11685 = vmatmul.msk.bf16.gmra.mxu3 %vm6610_vm3, %v7175_v23  ;;  %v6408_v12 = vrot.slane %v6406_v52, 4  ;;  %v4263_v20 = vadd.f32 %v15082_v5, %v15439_v39 }
 0x495   : > { %v5725_v57 = vor.u32 %v5723_v38, %v5722_v9  ;;  %v5301_v24 = vand.u32 2147483648, %v15540_v7  ;;  %12265 = vrcp.f32 %v15543_v58  ;;  %v15554_v55 = vadd.f32 %v17621_v36, %v3210_v56  ;;  %v5969_v56 = vld [vmem:[#allocation2 + $0x98] sm:$0x1] }
 0x496   : > { %v15558_v11 = vadd.f32 %v17623_v63, %v17622_v10  ;;  %v5728_v2 = vshrl.u32 %v5501_v49, 16  ;;  %v6414_v51 = vrot.slane %v6412_v47, 5  ;;  %v5731_v52 = vshll.u32 %v5501_v49, 16 }
 0x497   : > { %v5966_v34 = vsel %vm14296_vm11, %v5725_v57, %v5965_v50  ;;  %v5299_v5 = vand.u32 2147483647, %v15540_v7  ;;  %v5314_v39 = vand.u32 2147483647, %v15543_v58  ;;  %v6400_v37 = vrot.slane %v6399_v4, 4  ;;  %v6682_v57 = vpop.f32.mrf.mxu1 }
 0x498   : > { %5967 = vst [vmem:[#allocation2 + $0x90] sm:$0xf] %v5966_v34  ;;  %v5730_v42 = vrot.slane %v5728_v2, 7  ;;  %v6409_v14 = vor.u32 %v6408_v12, %v6404_v40  ;;  %v15565_v25 = vadd.f32 %v15156_v35, %v4708_v18  ;;  %v5726_v59 = vrot.slane %v5722_v9, 4  ;;  %v4662_v9 = vpop.f32.mrf.mxu0  ;;  %v15589_v12 = vpop.f32.mrf.mxu3  ;;  %v15602_v34 = vld [vmem:[#allocation2 + $0x7c] sm:$0xf] }
 0x499   : > { %vm5295_vm0 = vweird.f32 %v15540_v7  ;;  %v15568_v53 = vor.u32 1.1754944e-38, %v5301_v24  ;;  %v15571_v13 = vadd.f32 %v7247_v3, %v15492_v33  ;;  %vm5310_vm13 = vweird.f32 %v15543_v58  ;;  %v12086_v24 = vld [vmem:[#allocation2 + $0x84] sm:$0xff]  ;;  %11893 = vmatmul.msk.bf16.gmra.mxu0 %vm6610_vm3, %v12112_v1 }
 0x49a   : > { %v15573_v21 = vpop.eup %12263  ;;  %v5733_v23 = vor.u32 %v5731_v52, %v5730_v42  ;;  %v5735_v47 = vrot.slane %v5730_v42, 4  ;;  %v5316_v38 = vand.u32 2147483648, %v15543_v58  ;;  %v6405_v18 = vsel %vm12463_vm6, %v6400_v37, %v6404_v40  ;;  %v6982_v52 = vld [vmem:[#allocation2 + $0x78] sm:$0xe]  ;;  %11654 = vmatmul.msk.bf16.gmra.mxu2 %vm6610_vm3, %v12086_v24 }
 0x49b   : > { %v15579_v50 = vpop.eup %12265  ;;  %v5291_v49 = vmul.f32 %v15573_v21, %v15540_v7  ;;  %vm5296_vm15 = vweird.f32 %v15573_v21  ;;  %vm15584_vm4 = vcmp.eq.f32.partialorder %v5299_v5, 8.507059e+37  ;;  %v6410_v3 = vrot.slane %v6409_v14, 4  ;;  %v15607_v14 = vpop.f32.mrf.mxu2 }
 0x49c   : > { %v11554_v4 = vmul.f32 -1.442695, %v15565_v25  ;;  %v5734_v40 = vsel %vm14332_vm10, %v5726_v59, %v5733_v23  ;;  %v5970_v36 = vsel %vm14340_vm12, %v5735_v47, %v5969_v56  ;;  %v5306_v10 = vmul.f32 %v15579_v50, %v15543_v58  ;;  %v15609_v59 = vld [vmem:[#allocation2 + $0x80] sm:$0x1]  ;;  %vm5297_vm1 = vmor %vm5295_vm0, %vm5296_vm15 }
 0x49d   : > { %vm15598_vm7 = vcmp.eq.f32.partialorder %v5314_v39, 8.507059e+37  ;;  %v6580_v2 = vunpack.c.l.b16 %v6405_v18  ;;  %5968 = vst.msk [vmem:[#allocation2 + $0x94] sm:$0xf] %vm5875_vm14, %v5734_v40  ;;  %v5292_v5 = vsub.f32 1.0, %v5291_v49  ;;  %v6415_v42 = vsel %vm12463_vm6, %v6410_v3, %v6414_v51 }
 0x49e   : > { %12267 = vpow2.f32 %v11554_v4  ;;  %v4709_v37 = vadd.f32 %v4662_v9, %v4263_v20  ;;  %5971 = vst [vmem:[#allocation2 + $0x98] sm:$0x1] %v5970_v36  ;;  %v5307_v39 = vsub.f32 1.0, %v5306_v10  ;;  %vm5311_vm2 = vweird.f32 %v15579_v50  ;;  %v6147_v9 = vld [vmem:[#allocation2 + $0x78] sm:$0xf] }
 0x49f   : > { %v6581_v56 = vunpack.c.l.b16 %v6415_v42  ;;  %v15614_v1 = vadd.f32 %v15545_v43, %v6682_v57  ;;  %v6043_v23 = vld [vmem:[#allocation2 + $0x90] sm:$0x1]  ;;  %v5293_v47 = vmul.f32 %v15573_v21, %v5292_v5  ;;  %v11669_v20 = vrot.slane %v6982_v52, 9  ;;  %vm5312_vm8 = vmor %vm5310_vm13, %vm5311_vm2 }
 0x4a0   : > { %v15618_v51 = vadd.f32 %v15156_v35, %v4709_v37  ;;  %v7092_v18 = vrot.slane %v15602_v34, 5  ;;  %v6044_v49 = vsel %vm14340_vm12, 0, %v6043_v23  ;;  %v5308_v3 = vmul.f32 %v15579_v50, %v5307_v39 }
 0x4a1   : > { %v6603_v4 = vpack.c.b16 %v6581_v56, %v6580_v2  ;;  %v7095_v24 = vrot.slane %v15609_v59, 5  ;;  %6045 = vst [vmem:[#allocation2 + $0x90] sm:$0x1] %v6044_v49  ;;  %v5294_v43 = vadd.f32 %v15573_v21, %v5293_v47  ;;  %v5317_v10 = vor.u32 1.1754944e-38, %v5316_v38  ;;  %v15651_v49 = vpop.f32.mrf.mxu3 }
 0x4a2   : > { %v11555_v57 = vmul.f32 -1.442695, %v15618_v51  ;;  %v7093_v35 = vsel %vm12457_vm5, %v11669_v20, %v7092_v18  ;;  %v7094_v40 = vrot.slane %v7092_v18, 4  ;;  %v5309_v36 = vadd.f32 %v15579_v50, %v5308_v3  ;;  %v15653_v3 = vpop.f32.mrf.mxu1 }
 0x4a3   : > { %11572 = vmatmul.msk.bf16.gmra.mxu1 %vm6610_vm3, %v6603_v4  ;;  %v6417_v2 = vshrl.u32 %v6147_v9, 16  ;;  %v6420_v52 = vshll.u32 %v6147_v9, 16  ;;  %v5298_v42 = vsel %vm5297_vm1, %v15573_v21, %v5294_v43  ;;  %v7154_v37 = vunpack.c.l.b16 %v7093_v35  ;;  %v4665_v21 = vpop.f32.mrf.mxu0  ;;  %v17628_v43 = vld [vmem:[#allocation16_spill] sm:$0xff] }
 0x4a4   : > { %v12268_v5 = vpop.eup %12267  ;;  %12269 = vpow2.f32 %v11555_v57  ;;  %v7096_v7 = vsel %vm12457_vm5, %v7094_v40, %v7095_v24  ;;  %v5303_v38 = vsel %vm15584_vm4, %v15568_v53, %v5298_v42  ;;  %v5313_v39 = vsel %vm5312_vm8, %v15579_v50, %v5309_v36  ;;  %v15661_v24 = vpop.f32.mrf.mxu2 }
 0x4a5   : > { %v15646_v56 = vadd.f32 1.0, %v12268_v5  ;;  %v7155_v23 = vunpack.c.l.b16 %v7096_v7  ;;  %v6098_v47 = vld [vmem:[#allocation2 + $0x98] sm:$0x1]  ;;  %v5466_v20 = vmul.f32 %v5303_v38, %v15477_v15  ;;  %v5318_v58 = vsel %vm15598_vm7, %v5317_v10, %v5313_v39  ;;  %v17629_v10 = vld [vmem:[#allocation24_spill] sm:$0xff] }
 0x4a6   : > { %v6419_v18 = vrot.slane %v6417_v2, 4  ;;  %v6422_v9 = vrot.slane %v6420_v52, 5  ;;  %v6099_v53 = vsel %vm14410_vm9, 0, %v6098_v47  ;;  %v5467_v50 = vmul.f32 %v5318_v58, %v15490_v60  ;;  %v12113_v7 = vld [vmem:[#allocation2 + $0x60] sm:$0xff] }
 0x4a7   : > { %12271 = vrcp.f32 %v15646_v56  ;;  %v6426_v33 = vshll.u32 %v15602_v34, 16  ;;  %6100 = vst [vmem:[#allocation2 + $0x98] sm:$0x1] %v6099_v53  ;;  %v5502_v15 = vpack.c.bf16 %v5466_v20, %v5466_v20  ;;  %v5331_v63 = vand.u32 2147483648, %v15646_v56  ;;  %v5972_v20 = vld [vmem:[#allocation2 + $0x9c] sm:$0xf] }
 0x4a8   : > { %v7176_v4 = vpack.c.b16 %v7155_v23, %v7154_v37  ;;  %v4264_v57 = vadd.f32 %v15131_v16, %v17628_v43  ;;  %v4265_v35 = vadd.f32 %v15189_v8, %v15554_v55  ;;  %v5503_v40 = vpack.c.bf16 %v5467_v50, %v5467_v50  ;;  %v17630_v16 = vld [vmem:[#allocation23_spill] sm:$0xff]  ;;  %v5976_v53 = vld [vmem:[#allocation2 + $0xa4] sm:$0x1] }
 0x4a9   : > { %v6430_v60 = vshrl.u32 %v15602_v34, 16  ;;  %v15670_v2 = vadd.f32 %v17629_v10, %v15558_v11  ;;  %v5737_v52 = vshrl.u32 %v5502_v15, 16  ;;  %v5329_v5 = vand.u32 2147483647, %v15646_v56  ;;  %11894 = vmatmul.msk.bf16.gmra.mxu0 %vm6610_vm3, %v12113_v7 }
 0x4aa   : > { %v12270_v36 = vpop.eup %12269  ;;  %11686 = vmatmul.msk.bf16.gmra.mxu3 %vm6610_vm3, %v7176_v4  ;;  %v6423_v42 = vor.u32 %v6422_v9, %v6419_v18  ;;  %v15676_v37 = vadd.f32 %v17630_v16, %v14162_v0  ;;  %v5745_v8 = vshrl.u32 %v5503_v40, 16  ;;  %v6428_v34 = vrot.slane %v6426_v33, 5  ;;  %v6687_v16 = vpop.f32.mrf.mxu1 }
 0x4ab   : > { %v15678_v55 = vadd.f32 1.0, %v12270_v36  ;;  %v5739_v38 = vrot.slane %v5737_v52, 7  ;;  %v5740_v39 = vshll.u32 %v5502_v15, 16  ;;  %vm5325_vm8 = vweird.f32 %v15646_v56 }
 0x4ac   : > { %v15681_v11 = vor.u32 1.1754944e-38, %v5331_v63  ;;  %v6432_v23 = vrot.slane %v6430_v60, 4  ;;  %v5747_v58 = vrot.slane %v5745_v8, 7  ;;  %v5748_v18 = vshll.u32 %v5503_v40, 16  ;;  %v4667_v40 = vpop.f32.mrf.mxu0  ;;  %v12087_v8 = vld [vmem:[#allocation2 + $0x90] sm:$0xff] }
 0x4ad   : > { %v12272_v47 = vpop.eup %12271  ;;  %12273 = vrcp.f32 %v15678_v55  ;;  %v6436_v0 = vshll.u32 %v15609_v59, 16  ;;  %v5742_v9 = vor.u32 %v5740_v39, %v5739_v38  ;;  %vm15687_vm0 = vcmp.eq.f32.partialorder %v5329_v5, 8.507059e+37  ;;  %v15695_v5 = vpop.f32.mrf.mxu3  ;;  %11655 = vmatmul.msk.bf16.gmra.mxu2 %vm6610_vm3, %v12087_v8 }
 0x4ae   : > { %v5321_v50 = vmul.f32 %v12272_v47, %v15646_v56  ;;  %v6424_v15 = vrot.slane %v6423_v42, 4  ;;  %v4710_v63 = vadd.f32 %v4665_v21, %v4264_v57  ;;  %v5743_v4 = vrot.slane %v5739_v38, 4 }
 0x4af   : > { %v5750_v43 = vor.u32 %v5748_v18, %v5747_v58  ;;  %v5752_v60 = vrot.slane %v5747_v58, 4  ;;  %v5344_v36 = vand.u32 2147483647, %v15678_v55  ;;  %v5973_v10 = vsel %vm14296_vm11, %v5742_v9, %v5972_v20  ;;  %v15705_v20 = vld [vmem:[%s14009_s17] ss:$0 sm:$0xff]  ;;  %v15710_v18 = vpop.f32.mrf.mxu2 }
 0x4b0   : > { %v5322_v59 = vsub.f32 1.0, %v5321_v50  ;;  %v5346_v52 = vand.u32 2147483648, %v15678_v55  ;;  %v6433_v7 = vor.u32 %v6432_v23, %v6428_v34  ;;  %5974 = vst [vmem:[#allocation2 + $0x9c] sm:$0xf] %v5973_v10  ;;  %vm5326_vm13 = vweird.f32 %v12272_v47  ;;  %v15722_v50 = vld [vmem:[#allocation2 + $0x88] sm:$0xf] }
 0x4b1   : > { %v5751_v21 = vsel %vm14332_vm10, %v5743_v4, %v5750_v43  ;;  %v5977_v57 = vsel %vm14340_vm12, %v5752_v60, %v5976_v53  ;;  %v6438_v42 = vrot.slane %v6436_v0, 5  ;;  %v6429_v39 = vsel %vm12463_vm6, %v6424_v15, %v6428_v34  ;;  %v6983_v15 = vld [vmem:[#allocation2 + $0x84] sm:$0xe]  ;;  %vm5327_vm7 = vmor %vm5325_vm8, %vm5326_vm13 }
 0x4b2   : > { %5975 = vst.msk [vmem:[#allocation2 + $0xa0] sm:$0xf] %vm5875_vm14, %v5751_v21  ;;  %v5323_v38 = vmul.f32 %v12272_v47, %v5322_v59  ;;  %v6434_v23 = vrot.slane %v6433_v7, 4  ;;  %v15708_v58 = vadd.f32 %v15705_v20, %v4710_v63  ;;  %vm5340_vm15 = vweird.f32 %v15678_v55  ;;  %v15740_v59 = vld [vmem:[#allocation2 + $0x8c] sm:$0x1] }
 0x4b3   : > { %v15712_v9 = vpop.eup %12273  ;;  %5978 = vst [vmem:[#allocation2 + $0xa4] sm:$0x1] %v5977_v57  ;;  %v15717_v0 = vadd.f32 %v15651_v49, %v15614_v1  ;;  %v4711_v53 = vadd.f32 %v4667_v40, %v4265_v35  ;;  %v15720_v34 = vadd.f32 %v15661_v24, %v6687_v16  ;;  %vm15726_vm4 = vcmp.eq.f32.partialorder %v5344_v36, 8.507059e+37  ;;  %v6149_v57 = vld [vmem:[#allocation2 + $0x84] sm:$0xf] }
 0x4b4   : > { %v5324_v63 = vadd.f32 %v12272_v47, %v5323_v38  ;;  %v5336_v4 = vmul.f32 %v15712_v9, %v15678_v55  ;;  %v5347_v60 = vor.u32 1.1754944e-38, %v5346_v52  ;;  %v6439_v1 = vsel %vm12463_vm6, %v6434_v23, %v6438_v42  ;;  %v12114_v23 = vld [vmem:[#allocation2 + $0x6c] sm:$0xff] }
 0x4b5   : > { %v6582_v49 = vunpack.c.l.b16 %v6429_v39  ;;  %v6583_v24 = vunpack.c.l.b16 %v6439_v1  ;;  %v11556_v35 = vmul.f32 -1.442695, %v15708_v58  ;;  %v15738_v40 = vadd.f32 %v15705_v20, %v4711_v53  ;;  %v15757_v1 = vpop.f32.mrf.mxu3 }
 0x4b6   : > { %v5328_v36 = vsel %vm5327_vm7, %v12272_v47, %v5324_v63  ;;  %v5337_v10 = vsub.f32 1.0, %v5336_v4  ;;  %v11670_v52 = vrot.slane %v6983_v15, 9  ;;  %v7099_v7 = vrot.slane %v15722_v50, 5 }
 0x4b7   : > { %v5333_v16 = vsel %vm15687_vm0, %v15681_v11, %v5328_v36  ;;  %v6604_v56 = vpack.c.b16 %v6583_v24, %v6582_v49  ;;  %12275 = vpow2.f32 %v11556_v35  ;;  %v11557_v21 = vmul.f32 -1.442695, %v15738_v40  ;;  %v6046_v42 = vld [vmem:[#allocation2 + $0x9c] sm:$0x1] }
 0x4b8   : > { %v5468_v8 = vmul.f32 %v5333_v16, %v15565_v25  ;;  %v5338_v47 = vmul.f32 %v15712_v9, %v5337_v10  ;;  %vm5341_vm2 = vweird.f32 %v15712_v9  ;;  %v7100_v38 = vsel %vm12457_vm5, %v11670_v52, %v7099_v7 }
 0x4b9   : > { %v6047_v39 = vsel %vm14340_vm12, 0, %v6046_v42  ;;  %11573 = vmatmul.msk.bf16.gmra.mxu1 %vm6610_vm3, %v6604_v56  ;;  %12277 = vpow2.f32 %v11557_v21  ;;  %v7101_v11 = vrot.slane %v7099_v7, 4  ;;  %v7102_v33 = vrot.slane %v15740_v59, 5  ;;  %vm5342_vm1 = vmor %vm5340_vm15, %vm5341_vm2  ;;  %v4670_v56 = vpop.f32.mrf.mxu0  ;;  %v15770_v21 = vpop.f32.mrf.mxu2  ;;  %11895 = vmatmul.msk.bf16.gmra.mxu0 %vm6610_vm3, %v12114_v23  ;;  %v17635_v23 = vld [vmem:[#allocation30_spill] sm:$0xff] }
 0x4ba   : > { %6048 = vst [vmem:[#allocation2 + $0x9c] sm:$0x1] %v6047_v39  ;;  %v6101_v53 = vld [vmem:[#allocation2 + $0xa4] sm:$0x1]  ;;  %v5504_v25 = vpack.c.bf16 %v5468_v8, %v5468_v8  ;;  %v5339_v15 = vadd.f32 %v15712_v9, %v5338_v47  ;;  %v6441_v63 = vshrl.u32 %v6149_v57, 16  ;;  %v6444_v4 = vshll.u32 %v6149_v57, 16 }
 0x4bb   : > { %v6102_v49 = vsel %vm14410_vm9, 0, %v6101_v53  ;;  %v7103_v24 = vsel %vm12457_vm5, %v7101_v11, %v7102_v33  ;;  %v7156_v35 = vunpack.c.l.b16 %v7100_v38  ;;  %v6450_v36 = vshll.u32 %v15722_v50, 16  ;;  %v15778_v33 = vpop.f32.mrf.mxu1 }
 0x4bc   : > { %6103 = vst [vmem:[#allocation2 + $0xa4] sm:$0x1] %v6102_v49  ;;  %v5754_v10 = vshrl.u32 %v5504_v25, 16  ;;  %v5343_v52 = vsel %vm5342_vm1, %v15712_v9, %v5339_v15  ;;  %v7157_v7 = vunpack.c.l.b16 %v7103_v24  ;;  %v6454_v16 = vshrl.u32 %v15722_v50, 16  ;;  %v17636_v15 = vld [vmem:[#allocation29_spill] sm:$0xff] }
 0x4bd   : > { %v12276_v55 = vpop.eup %12275  ;;  %v5757_v57 = vshll.u32 %v5504_v25, 16  ;;  %v5348_v42 = vsel %vm15726_vm4, %v5347_v60, %v5343_v52  ;;  %v6443_v8 = vrot.slane %v6441_v63, 4  ;;  %v6446_v47 = vrot.slane %v6444_v4, 5  ;;  %v5979_v60 = vld [vmem:[#allocation2 + $0xa8] sm:$0xf] }
 0x4be   : > { %v5756_v38 = vrot.slane %v5754_v10, 7  ;;  %v5469_v39 = vmul.f32 %v5348_v42, %v15618_v51  ;;  %v15776_v11 = vadd.f32 1.0, %v12276_v55  ;;  %v7177_v9 = vpack.c.b16 %v7157_v7, %v7156_v35  ;;  %v5983_v42 = vld [vmem:[#allocation2 + $0xb0] sm:$0x1] }
 0x4bf   : > { %v12278_v50 = vpop.eup %12277  ;;  %v4266_v53 = vadd.f32 %v15231_v62, %v15670_v2  ;;  %v3533_v25 = vadd.f32 %v17635_v23, %v15676_v37  ;;  %v3214_v43 = vadd.f32 %v15303_v32, %v17636_v15  ;;  %v6447_v63 = vor.u32 %v6446_v47, %v6443_v8 }
 0x4c0   : > { %v5759_v4 = vor.u32 %v5757_v57, %v5756_v38  ;;  %v5505_v49 = vpack.c.bf16 %v5469_v39, %v5469_v39  ;;  %12279 = vrcp.f32 %v15776_v11  ;;  %11687 = vmatmul.msk.bf16.gmra.mxu3 %vm6610_vm3, %v7177_v9  ;;  %v6452_v51 = vrot.slane %v6450_v36, 5  ;;  %v15800_v57 = vpop.f32.mrf.mxu3 }
 0x4c1   : > { %v15788_v24 = vadd.f32 1.0, %v12278_v50  ;;  %v6456_v35 = vrot.slane %v6454_v16, 4  ;;  %v6460_v62 = vshll.u32 %v15740_v59, 16  ;;  %v4712_v2 = vadd.f32 %v4670_v56, %v4266_v53  ;;  %v4672_v23 = vpop.f32.mrf.mxu0 }
 0x4c2   : > { %v5980_v37 = vsel %vm14296_vm11, %v5759_v4, %v5979_v60  ;;  %v5762_v10 = vshrl.u32 %v5505_v49, 16  ;;  %v5361_v32 = vand.u32 2147483648, %v15776_v11  ;;  %v6448_v52 = vrot.slane %v6447_v63, 4 }
 0x4c3   : > { %v4267_v7 = vadd.f32 %v15281_v31, %v3533_v25  ;;  %5981 = vst [vmem:[#allocation2 + $0xa8] sm:$0xf] %v5980_v37  ;;  %v5359_v55 = vand.u32 2147483647, %v15776_v11  ;;  %12281 = vrcp.f32 %v15788_v24  ;;  %v15798_v36 = vadd.f32 %v15288_v6, %v3214_v43  ;;  %v15811_v25 = vpop.f32.mrf.mxu2  ;;  %v15830_v37 = vld [vmem:[#allocation2 + $0x94] sm:$0xf] }
 0x4c4   : > { %v5760_v16 = vrot.slane %v5756_v38, 4  ;;  %v5764_v59 = vrot.slane %v5762_v10, 7  ;;  %v5765_v56 = vshll.u32 %v5505_v49, 16  ;;  %vm5355_vm8 = vweird.f32 %v15776_v11  ;;  %v6984_v10 = vld [vmem:[#allocation2 + $0x90] sm:$0xe] }
 0x4c5   : > { %v6453_v8 = vsel %vm12463_vm6, %v6448_v52, %v6452_v51  ;;  %v6457_v31 = vor.u32 %v6456_v35, %v6452_v51  ;;  %v6462_v47 = vrot.slane %v6460_v62, 5  ;;  %v15806_v39 = vadd.f32 %v15705_v20, %v4712_v2  ;;  %v6692_v2 = vpop.f32.mrf.mxu1 }
 0x4c6   : > { %v15808_v9 = vpop.eup %12279  ;;  %v5767_v6 = vor.u32 %v5765_v56, %v5764_v59  ;;  %v5769_v50 = vrot.slane %v5764_v59, 4  ;;  %v5362_v38 = vor.u32 1.1754944e-38, %v5361_v32  ;;  %v5374_v53 = vand.u32 2147483647, %v15788_v24  ;;  %v6151_v32 = vld [vmem:[#allocation2 + $0x90] sm:$0xf] }
 0x4c7   : > { %v5351_v15 = vmul.f32 %v15808_v9, %v15776_v11  ;;  %vm15815_vm0 = vcmp.eq.f32.partialorder %v5359_v55, 8.507059e+37  ;;  %v5376_v60 = vand.u32 2147483648, %v15788_v24  ;;  %v6458_v63 = vrot.slane %v6457_v31, 4  ;;  %v15837_v56 = vld [vmem:[#allocation2 + $0x98] sm:$0x1] }
 0x4c8   : > { %v11558_v4 = vmul.f32 -1.442695, %v15806_v39  ;;  %v5768_v49 = vsel %vm14332_vm10, %v5760_v16, %v5767_v6  ;;  %v5984_v51 = vsel %vm14340_vm12, %v5769_v50, %v5983_v42  ;;  %vm5370_vm13 = vweird.f32 %v15788_v24  ;;  %v12088_v42 = vld [vmem:[#allocation2 + $0x9c] sm:$0xff] }
 0x4c9   : > { %v6584_v35 = vunpack.c.l.b16 %v6453_v8  ;;  %v15828_v62 = vadd.f32 %v15757_v1, %v15720_v34  ;;  %v15832_v52 = vpop.eup %12281  ;;  %5982 = vst.msk [vmem:[#allocation2 + $0xac] sm:$0xf] %vm5875_vm14, %v5768_v49  ;;  %v5352_v55 = vsub.f32 1.0, %v5351_v15  ;;  %v6463_v16 = vsel %vm12463_vm6, %v6458_v63, %v6462_v47  ;;  %v12115_v6 = vld [vmem:[#allocation2 + $0x78] sm:$0xff]  ;;  %11656 = vmatmul.msk.bf16.gmra.mxu2 %vm6610_vm3, %v12088_v42 }
 0x4ca   : > { %12283 = vpow2.f32 %v11558_v4  ;;  %v4713_v59 = vadd.f32 %v4672_v23, %v4267_v7  ;;  %v6049_v34 = vld [vmem:[#allocation2 + $0xa8] sm:$0x1]  ;;  %5985 = vst [vmem:[#allocation2 + $0xb0] sm:$0x1] %v5984_v51  ;;  %vm5356_vm15 = vweird.f32 %v15808_v9  ;;  %v5366_v1 = vmul.f32 %v15832_v52, %v15788_v24  ;;  %11896 = vmatmul.msk.bf16.gmra.mxu0 %vm6610_vm3, %v12115_v6 }
 0x4cb   : > { %vm15842_vm4 = vcmp.eq.f32.partialorder %v5374_v53, 8.507059e+37  ;;  %v6585_v31 = vunpack.c.l.b16 %v6463_v16  ;;  %v6050_v47 = vsel %vm14340_vm12, 0, %v6049_v34  ;;  %v5353_v7 = vmul.f32 %v15808_v9, %v5352_v55  ;;  %vm5357_vm7 = vmor %vm5355_vm8, %vm5356_vm15 }
 0x4cc   : > { %v15850_v50 = vadd.f32 %v15705_v20, %v4713_v59  ;;  %v6913_v23 = vadd.f32 %v15770_v21, %v6692_v2  ;;  %6051 = vst [vmem:[#allocation2 + $0xa8] sm:$0x1] %v6050_v47  ;;  %v5367_v15 = vsub.f32 1.0, %v5366_v1  ;;  %v11671_v63 = vrot.slane %v6984_v10, 9  ;;  %v7262_v10 = vpop.f32.mrf.mxu3 }
 0x4cd   : > { %v6605_v53 = vpack.c.b16 %v6585_v31, %v6584_v35  ;;  %v7106_v4 = vrot.slane %v15830_v37, 5  ;;  %v5354_v49 = vadd.f32 %v15808_v9, %v5353_v7  ;;  %v7109_v55 = vrot.slane %v15837_v56, 5 }
 0x4ce   : > { %v11559_v51 = vmul.f32 -1.442695, %v15850_v50  ;;  %v6465_v16 = vshrl.u32 %v6151_v32, 16  ;;  %v5368_v21 = vmul.f32 %v15832_v52, %v5367_v15  ;;  %vm5371_vm2 = vweird.f32 %v15832_v52 }
 0x4cf   : > { %11574 = vmatmul.msk.bf16.gmra.mxu1 %vm6610_vm3, %v6605_v53  ;;  %v7108_v35 = vrot.slane %v7106_v4, 4  ;;  %v6468_v2 = vshll.u32 %v6151_v32, 16  ;;  %v5358_v42 = vsel %vm5357_vm7, %v15808_v9, %v5354_v49  ;;  %v7107_v34 = vsel %vm12457_vm5, %v11671_v63, %v7106_v4  ;;  %v15876_v32 = vpop.f32.mrf.mxu2  ;;  %vm5372_vm1 = vmor %vm5370_vm13, %vm5371_vm2  ;;  %v4675_v53 = vpop.f32.mrf.mxu0 }
 0x4d0   : > { %v12284_v59 = vpop.eup %12283  ;;  %12285 = vpow2.f32 %v11559_v51  ;;  %v6467_v1 = vrot.slane %v6465_v16, 4  ;;  %v5363_v11 = vsel %vm15815_vm0, %v5362_v38, %v5358_v42  ;;  %v5369_v31 = vadd.f32 %v15832_v52, %v5368_v21  ;;  %v15887_v51 = vpop.f32.mrf.mxu1 }
 0x4d1   : > { %v15872_v6 = vadd.f32 1.0, %v12284_v59  ;;  %v7110_v47 = vsel %vm12457_vm5, %v7108_v35, %v7109_v55  ;;  %v6104_v7 = vld [vmem:[#allocation2 + $0xb0] sm:$0x1]  ;;  %v5470_v9 = vmul.f32 %v5363_v11, %v15708_v58  ;;  %v5377_v15 = vor.u32 1.1754944e-38, %v5376_v60 }
 0x4d2   : > { %v7159_v43 = vunpack.c.l.b16 %v7110_v47  ;;  %v6470_v38 = vrot.slane %v6468_v2, 5  ;;  %v6105_v63 = vsel %vm14410_vm9, 0, %v6104_v7  ;;  %v5373_v4 = vsel %vm5372_vm1, %v15832_v52, %v5369_v31  ;;  %v17641_v2 = vld [vmem:[#allocation26_spill] sm:$0xff] }
 0x4d3   : > { %12287 = vrcp.f32 %v15872_v6  ;;  %v7158_v49 = vunpack.c.l.b16 %v7107_v34  ;;  %6106 = vst [vmem:[#allocation2 + $0xb0] sm:$0x1] %v6105_v63  ;;  %v5506_v58 = vpack.c.bf16 %v5470_v9, %v5470_v9  ;;  %v5378_v24 = vsel %vm15842_vm4, %v5377_v15, %v5373_v4  ;;  %v5986_v9 = vld [vmem:[#allocation2 + $0xb4] sm:$0xf] }
 0x4d4   : > { %v5471_v60 = vmul.f32 %v5378_v24, %v15738_v40  ;;  %v6471_v16 = vor.u32 %v6470_v38, %v6467_v1  ;;  %v6474_v21 = vshll.u32 %v15830_v37, 16  ;;  %v4268_v52 = vadd.f32 %v15329_v61, %v17641_v2 }
 0x4d5   : > { %v7178_v55 = vpack.c.b16 %v7159_v43, %v7158_v49  ;;  %v5771_v59 = vshrl.u32 %v5506_v58, 16  ;;  %v5389_v42 = vand.u32 2147483647, %v15872_v6  ;;  %v4269_v34 = vadd.f32 %v15380_v45, %v15798_v36  ;;  %v15909_v43 = vpop.f32.mrf.mxu3 }
 0x4d6   : > { %v12286_v35 = vpop.eup %12285  ;;  %v5507_v11 = vpack.c.bf16 %v5471_v60, %v5471_v60  ;;  %v5391_v8 = vand.u32 2147483648, %v15872_v6  ;;  %v5774_v1 = vshll.u32 %v5506_v58, 16  ;;  %vm5385_vm8 = vweird.f32 %v15872_v6  ;;  %17642 = vst [vmem:[#allocation27_spill] sm:$0xff] %v15909_v43 }
 0x4d7   : > { %v15899_v31 = vadd.f32 1.0, %v12286_v35  ;;  %11688 = vmatmul.msk.bf16.gmra.mxu3 %vm6610_vm3, %v7178_v55  ;;  %v5773_v40 = vrot.slane %v5771_v59, 7  ;;  %v6478_v47 = vshrl.u32 %v15830_v37, 16  ;;  %v15904_v61 = vadd.f32 %v7262_v10, %v6913_v23  ;;  %v15918_v60 = vpop.f32.mrf.mxu2  ;;  %v12116_v55 = vld [vmem:[#allocation2 + $0x84] sm:$0xff] }
 0x4d8   : > { %v5779_v15 = vshrl.u32 %v5507_v11, 16  ;;  %v6472_v45 = vrot.slane %v6471_v16, 4  ;;  %v6476_v36 = vrot.slane %v6474_v21, 5  ;;  %vm15913_vm0 = vcmp.eq.f32.partialorder %v5389_v42, 8.507059e+37  ;;  %17645 = vst [vmem:[#allocation28_spill] sm:$0xff] %v15918_v60  ;;  %v4677_v42 = vpop.f32.mrf.mxu0 }
 0x4d9   : > { %v15906_v7 = vpop.eup %12287  ;;  %12289 = vrcp.f32 %v15899_v31  ;;  %v5776_v38 = vor.u32 %v5774_v1, %v5773_v40  ;;  %v6484_v37 = vshll.u32 %v15837_v56, 16  ;;  %v4714_v23 = vadd.f32 %v4675_v53, %v4268_v52  ;;  %v5990_v21 = vld [vmem:[#allocation2 + $0xbc] sm:$0x1]  ;;  %v6697_v52 = vpop.f32.mrf.mxu1 }
 0x4da   : > { %v5381_v63 = vmul.f32 %v15906_v7, %v15872_v6  ;;  %v5777_v10 = vrot.slane %v5773_v40, 4  ;;  %v5781_v49 = vrot.slane %v5779_v15, 7  ;;  %v5782_v58 = vshll.u32 %v5507_v11, 16  ;;  %11897 = vmatmul.msk.bf16.gmra.mxu0 %vm6610_vm3, %v12116_v55 }
 0x4db   : > { %v5392_v24 = vor.u32 1.1754944e-38, %v5391_v8  ;;  %v5987_v16 = vsel %vm14296_vm11, %v5776_v38, %v5986_v9  ;;  %v5404_v2 = vand.u32 2147483647, %v15899_v31  ;;  %v6480_v59 = vrot.slane %v6478_v47, 4 }
 0x4dc   : > { %v5382_v35 = vsub.f32 1.0, %v5381_v63  ;;  %5988 = vst [vmem:[#allocation2 + $0xb4] sm:$0xf] %v5987_v16  ;;  %v5784_v1 = vor.u32 %v5782_v58, %v5781_v49  ;;  %v5786_v56 = vrot.slane %v5781_v49, 4  ;;  %vm5386_vm13 = vweird.f32 %v15906_v7  ;;  %v6985_v49 = vld [vmem:[#allocation2 + $0x9c] sm:$0xe] }
 0x4dd   : > { %v6477_v53 = vsel %vm12463_vm6, %v6472_v45, %v6476_v36  ;;  %vm5400_vm15 = vweird.f32 %v15899_v31  ;;  %v6481_v8 = vor.u32 %v6480_v59, %v6476_v36  ;;  %v6486_v40 = vrot.slane %v6484_v37, 5  ;;  %v12089_v58 = vld [vmem:[#allocation2 + $0xa8] sm:$0xff]  ;;  %v15947_v16 = vld [vmem:[#allocation2 + $0xa0] sm:$0xf]  ;;  %vm5387_vm7 = vmor %vm5385_vm8, %vm5386_vm13 }
 0x4de   : > { %v5383_v11 = vmul.f32 %v15906_v7, %v5382_v35  ;;  %v15930_v47 = vadd.f32 %v15705_v20, %v4714_v23  ;;  %v5785_v15 = vsel %vm14332_vm10, %v5777_v10, %v5784_v1  ;;  %v5991_v45 = vsel %vm14340_vm12, %v5786_v56, %v5990_v21  ;;  %11657 = vmatmul.msk.bf16.gmra.mxu2 %vm6610_vm3, %v12089_v58  ;;  %v6153_v56 = vld [vmem:[#allocation2 + $0x9c] sm:$0xf] }
 0x4df   : > { %v15932_v9 = vpop.eup %12289  ;;  %v5406_v38 = vand.u32 2147483648, %v15899_v31  ;;  %v4715_v63 = vadd.f32 %v4677_v42, %v4269_v34  ;;  %5989 = vst.msk [vmem:[#allocation2 + $0xb8] sm:$0xf] %vm5875_vm14, %v5785_v15  ;;  %vm15943_vm4 = vcmp.eq.f32.partialorder %v5404_v2, 8.507059e+37  ;;  %v6482_v10 = vrot.slane %v6481_v8, 4 }
 0x4e0   : > { %v5384_v36 = vadd.f32 %v15906_v7, %v5383_v11  ;;  %v5396_v37 = vmul.f32 %v15932_v9, %v15899_v31  ;;  %v6586_v55 = vunpack.c.l.b16 %v6477_v53  ;;  %5992 = vst [vmem:[#allocation2 + $0xbc] sm:$0x1] %v5991_v45  ;;  %vm5401_vm2 = vweird.f32 %v15932_v9  ;;  %v15961_v2 = vld [vmem:[#allocation2 + $0xa4] sm:$0x1]  ;;  %v16114_v27 = vpop.f32.mrf.mxu0 }
 0x4e1   : > { %v11560_v34 = vmul.f32 -1.442695, %v15930_v47  ;;  %v15956_v21 = vadd.f32 %v15705_v20, %v4715_v63  ;;  %v15959_v35 = vadd.f32 %v15876_v32, %v6697_v52  ;;  %v6487_v6 = vsel %vm12463_vm6, %v6482_v10, %v6486_v40  ;;  %v15970_v52 = vpop.f32.mrf.mxu3  ;;  %v15978_v63 = vpop.f32.mrf.mxu2  ;;  %vm5402_vm1 = vmor %vm5400_vm15, %vm5401_vm2  ;;  %17656 = vst [vmem:[#allocation33_spill] sm:$0xff] %v16114_v27 }
 0x4e2   : > { %v5388_v59 = vsel %vm5387_vm7, %v15906_v7, %v5384_v36  ;;  %v5397_v42 = vsub.f32 1.0, %v5396_v37  ;;  %v11672_v1 = vrot.slane %v6985_v49, 9  ;;  %v6587_v20 = vunpack.c.l.b16 %v6487_v6 }
 0x4e3   : > { %v5393_v53 = vsel %vm15913_vm0, %v5392_v24, %v5388_v59  ;;  %12291 = vpow2.f32 %v11560_v34  ;;  %v11561_v32 = vmul.f32 -1.442695, %v15956_v21  ;;  %v6052_v11 = vld [vmem:[#allocation2 + $0xb4] sm:$0x1]  ;;  %v7113_v15 = vrot.slane %v15947_v16, 5  ;;  %v15988_v59 = vpop.f32.mrf.mxu1 }
 0x4e4   : > { %v5472_v8 = vmul.f32 %v5393_v53, %v15806_v39  ;;  %v5398_v7 = vmul.f32 %v15932_v9, %v5397_v42  ;;  %v7116_v40 = vrot.slane %v15961_v2, 5  ;;  %v6053_v45 = vsel %vm14340_vm12, 0, %v6052_v11  ;;  %17648 = vst [vmem:[#allocation35_spill] sm:$0xff] %v15988_v59 }
 0x4e5   : > { %v6606_v4 = vpack.c.b16 %v6587_v20, %v6586_v55  ;;  %12293 = vpow2.f32 %v11561_v32  ;;  %v6489_v24 = vshrl.u32 %v6153_v56, 16  ;;  %6054 = vst [vmem:[#allocation2 + $0xb4] sm:$0x1] %v6053_v45  ;;  %v7114_v39 = vsel %vm12457_vm5, %v11672_v1, %v7113_v15 }
 0x4e6   : > { %v5508_v49 = vpack.c.bf16 %v5472_v8, %v5472_v8  ;;  %v5399_v58 = vadd.f32 %v15932_v9, %v5398_v7  ;;  %v7115_v36 = vrot.slane %v7113_v15, 4  ;;  %v5407_v37 = vor.u32 1.1754944e-38, %v5406_v38 }
 0x4e7   : > { %11575 = vmatmul.msk.bf16.gmra.mxu1 %vm6610_vm3, %v6606_v4  ;;  %v7160_v10 = vunpack.c.l.b16 %v7114_v39  ;;  %v6491_v55 = vrot.slane %v6489_v24, 4  ;;  %v6492_v34 = vshll.u32 %v6153_v56, 16  ;;  %v6107_v42 = vld [vmem:[#allocation2 + $0xbc] sm:$0x1]  ;;  %v6498_v20 = vshll.u32 %v15947_v16, 16 }
 0x4e8   : > { %v5788_v6 = vshrl.u32 %v5508_v49, 16  ;;  %v5403_v53 = vsel %vm5402_vm1, %v15932_v9, %v5399_v58  ;;  %v7117_v1 = vsel %vm12457_vm5, %v7115_v36, %v7116_v40  ;;  %v6108_v31 = vsel %vm14410_vm9, 0, %v6107_v42  ;;  %v5993_v40 = vld [vmem:[#allocation2 + $0xc0] sm:$0xf]  ;;  %v16159_v54 = vpop.f32.mrf.mxu0 }
 0x4e9   : > { %v12292_v32 = vpop.eup %12291  ;;  %v5408_v38 = vsel %vm15943_vm4, %v5407_v37, %v5403_v53  ;;  %v7161_v11 = vunpack.c.l.b16 %v7117_v1  ;;  %v6494_v56 = vrot.slane %v6492_v34, 5  ;;  %6109 = vst [vmem:[#allocation2 + $0xbc] sm:$0x1] %v6108_v31  ;;  %v5791_v7 = vshll.u32 %v5508_v49, 16  ;;  %v16001_v58 = vpop.f32.mrf.mxu3 }
 0x4ea   : > { %v5790_v8 = vrot.slane %v5788_v6, 7  ;;  %v5473_v15 = vmul.f32 %v5408_v38, %v15850_v50  ;;  %v15999_v9 = vadd.f32 1.0, %v12292_v32  ;;  %17649 = vst [vmem:[#allocation31_spill] sm:$0xff] %v16001_v58  ;;  %v6500_v49 = vrot.slane %v6498_v20, 5  ;;  %v16009_v34 = vpop.f32.mrf.mxu2 }
 0x4eb   : > { %v12294_v45 = vpop.eup %12293  ;;  %v7179_v4 = vpack.c.b16 %v7161_v11, %v7160_v10  ;;  %v6495_v24 = vor.u32 %v6494_v56, %v6491_v55  ;;  %v6502_v50 = vshrl.u32 %v15947_v16, 16  ;;  %17650 = vst [vmem:[#allocation34_spill] sm:$0xff] %v16009_v34  ;;  %v6508_v6 = vshll.u32 %v15961_v2, 16  ;;  %v6702_v32 = vpop.f32.mrf.mxu1  ;;  %v5997_v56 = vld [vmem:[#allocation2 + $0xc8] sm:$0x1] }
 0x4ec   : > { %v5793_v39 = vor.u32 %v5791_v7, %v5790_v8  ;;  %v5509_v36 = vpack.c.bf16 %v5473_v15, %v5473_v15  ;;  %12295 = vrcp.f32 %v15999_v9  ;;  %v5421_v23 = vand.u32 2147483648, %v15999_v9  ;;  %v12090_v31 = vld [vmem:[#allocation2 + $0xb4] sm:$0xff]  ;;  %v6986_v15 = vld [vmem:[#allocation2 + $0xa8] sm:$0xe]  ;;  %17661 = vst [vmem:[#allocation40_spill] sm:$0xff] %v16159_v54 }
 0x4ed   : > { %v16005_v37 = vadd.f32 1.0, %v12294_v45  ;;  %11689 = vmatmul.msk.bf16.gmra.mxu3 %vm6610_vm3, %v7179_v4  ;;  %v6496_v42 = vrot.slane %v6495_v24, 4  ;;  %v5794_v53 = vrot.slane %v5790_v8, 4  ;;  %v5419_v1 = vand.u32 2147483647, %v15999_v9 }
 0x4ee   : > { %v5994_v10 = vsel %vm14296_vm11, %v5793_v39, %v5993_v40  ;;  %v5796_v55 = vshrl.u32 %v5509_v36, 16  ;;  %v5799_v38 = vshll.u32 %v5509_v36, 16  ;;  %vm5415_vm8 = vweird.f32 %v15999_v9  ;;  %11658 = vmatmul.msk.bf16.gmra.mxu2 %vm6610_vm3, %v12090_v31  ;;  %v6156_v36 = vld [vmem:[#allocation2 + $0xac] sm:$0xf] }
 0x4ef   : > { %5995 = vst [vmem:[#allocation2 + $0xc0] sm:$0xf] %v5994_v10  ;;  %12297 = vrcp.f32 %v16005_v37  ;;  %v5436_v16 = vand.u32 2147483648, %v16005_v37  ;;  %v6501_v11 = vsel %vm12463_vm6, %v6496_v42, %v6500_v49  ;;  %v16020_v7 = vor.u32 1.1754944e-38, %v5421_v23  ;;  %v6155_v42 = vld [vmem:[#allocation2 + $0xa8] sm:$0xf] }
 0x4f0   : > { %v5798_v20 = vrot.slane %v5796_v55, 7  ;;  %v6504_v2 = vrot.slane %v6502_v50, 4  ;;  %v16024_v8 = vadd.f32 %v15970_v52, %v15959_v35  ;;  %v5434_v24 = vand.u32 2147483647, %v16005_v37  ;;  %v6174_v55 = vld [vmem:[#allocation2 + $0xb0] sm:$0x1] }
 0x4f1   : > { %v6510_v39 = vrot.slane %v6508_v6, 5  ;;  %vm16029_vm0 = vcmp.eq.f32.partialorder %v5419_v1, 8.507059e+37  ;;  %v16033_v50 = vor.u32 1.1754944e-38, %v5436_v16  ;;  %v6588_v52 = vunpack.c.l.b16 %v6501_v11  ;;  %v7272_v31 = vpop.f32.mrf.mxu3 }
 0x4f2   : > { %17651 = vst [vmem:[#allocation32_spill] sm:$0xff] %v16024_v8  ;;  %v12296_v45 = vpop.eup %12295  ;;  %v5801_v40 = vor.u32 %v5799_v38, %v5798_v20  ;;  %v5803_v4 = vrot.slane %v5798_v20, 4  ;;  %v6505_v35 = vor.u32 %v6504_v2, %v6500_v49  ;;  %vm5430_vm15 = vweird.f32 %v16005_v37  ;;  %v6927_v28 = vpop.f32.mrf.mxu2 }
 0x4f3   : > { %v5411_v10 = vmul.f32 %v12296_v45, %v15999_v9  ;;  %vm5416_vm13 = vweird.f32 %v12296_v45  ;;  %v6923_v1 = vadd.f32 %v15978_v63, %v6702_v32  ;;  %v11673_v11 = vrot.slane %v6986_v15, 9 }
 0x4f4   : > { %v5802_v20 = vsel %vm14332_vm10, %v5794_v53, %v5801_v40  ;;  %v5998_v6 = vsel %vm14340_vm12, %v5803_v4, %v5997_v56  ;;  %v6506_v49 = vrot.slane %v6505_v35, 4  ;;  %v7120_v2 = vrot.slane %v6156_v36, 5  ;;  %v16053_v35 = vpop.f32.mrf.mxu1  ;;  %vm5417_vm2 = vmor %vm5415_vm8, %vm5416_vm13 }
 0x4f5   : > { %v12298_v38 = vpop.eup %12297  ;;  %5996 = vst.msk [vmem:[#allocation2 + $0xc4] sm:$0xf] %vm5875_vm14, %v5802_v20  ;;  %v5412_v16 = vsub.f32 1.0, %v5411_v10  ;;  %vm16043_vm7 = vcmp.eq.f32.partialorder %v5434_v24, 8.507059e+37  ;;  %v7123_v40 = vrot.slane %v6174_v55, 5  ;;  %v6513_v4 = vshrl.u32 %v6155_v42, 16 }
 0x4f6   : > { %v6055_v34 = vld [vmem:[#allocation2 + $0xc0] sm:$0x1]  ;;  %5999 = vst [vmem:[#allocation2 + $0xc8] sm:$0x1] %v5998_v6  ;;  %v5426_v53 = vmul.f32 %v12298_v38, %v16005_v37  ;;  %vm5431_vm4 = vweird.f32 %v12298_v38  ;;  %v6511_v15 = vsel %vm12463_vm6, %v6506_v49, %v6510_v39  ;;  %v7121_v10 = vsel %vm12457_vm5, %v11673_v11, %v7120_v2 }
 0x4f7   : > { %v6056_v63 = vsel %vm14340_vm12, 0, %v6055_v34  ;;  %v5413_v32 = vmul.f32 %v12296_v45, %v5412_v16  ;;  %v6589_v24 = vunpack.c.l.b16 %v6511_v15  ;;  %v7122_v6 = vrot.slane %v7120_v2, 4  ;;  %vm5432_vm1 = vmor %vm5430_vm15, %vm5431_vm4 }
 0x4f8   : > { %6057 = vst [vmem:[#allocation2 + $0xc0] sm:$0x1] %v6056_v63  ;;  %v5427_v20 = vsub.f32 1.0, %v5426_v53  ;;  %v7162_v58 = vunpack.c.l.b16 %v7121_v10  ;;  %v6515_v59 = vrot.slane %v6513_v4, 4  ;;  %v6516_v8 = vshll.u32 %v6155_v42, 16 }
 0x4f9   : > { %v5414_v60 = vadd.f32 %v12296_v45, %v5413_v32  ;;  %v6522_v43 = vshll.u32 %v6156_v36, 16  ;;  %v6607_v39 = vpack.c.b16 %v6589_v24, %v6588_v52  ;;  %v7124_v16 = vsel %vm12457_vm5, %v7122_v6, %v7123_v40  ;;  %v16060_v2 = vpop.f32.mrf.mxu3  ;;  %v12117_v52 = vld [vmem:[#allocation2 + $0x90] sm:$0xff]  ;;  %v6175_v6 = vld [vmem:[#allocation2 + $0xbc] sm:$0x1] }
 0x4fa   : > { %v5428_v34 = vmul.f32 %v12298_v38, %v5427_v20  ;;  %v6526_v49 = vshrl.u32 %v6156_v36, 16  ;;  %v7163_v63 = vunpack.c.l.b16 %v7124_v16  ;;  %v6518_v53 = vrot.slane %v6516_v8, 5  ;;  %v6987_v20 = vld [vmem:[#allocation2 + $0xb4] sm:$0xe]  ;;  %11898 = vmatmul.msk.bf16.gmra.mxu0 %vm6610_vm3, %v12117_v52 }
 0x4fb   : > { %v5418_v11 = vsel %vm5417_vm2, %v12296_v45, %v5414_v60  ;;  %v6524_v15 = vrot.slane %v6522_v43, 5  ;;  %11576 = vmatmul.msk.bf16.gmra.mxu1 %vm6610_vm3, %v6607_v39  ;;  %v6532_v32 = vshll.u32 %v6174_v55, 16  ;;  %v16070_v8 = vadd.f32 %v7272_v31, %v6923_v1  ;;  %v16072_v45 = vpop.f32.mrf.mxu2  ;;  %v6158_v31 = vld [vmem:[#allocation2 + $0xb8] sm:$0xf] }
 0x4fc   : > { %v5423_v42 = vsel %vm16029_vm0, %v16020_v7, %v5418_v11  ;;  %v5429_v4 = vadd.f32 %v12298_v38, %v5428_v34  ;;  %v6528_v9 = vrot.slane %v6526_v49, 4  ;;  %v7180_v43 = vpack.c.b16 %v7163_v63, %v7162_v58  ;;  %v6707_v37 = vpop.f32.mrf.mxu1  ;;  %v6157_v34 = vld [vmem:[#allocation2 + $0xb4] sm:$0xf] }
 0x4fd   : > { %v6110_v10 = vld [vmem:[#allocation2 + $0xc8] sm:$0x1]  ;;  %v5474_v40 = vmul.f32 %v5423_v42, %v15930_v47  ;;  %v6519_v60 = vor.u32 %v6518_v53, %v6515_v59  ;;  %v6534_v55 = vrot.slane %v6532_v32, 5  ;;  %v11674_v11 = vrot.slane %v6987_v20, 9 }
 0x4fe   : > { %v6111_v7 = vsel %vm14410_vm9, 0, %v6110_v10  ;;  %v5433_v36 = vsel %vm5432_vm1, %v12298_v38, %v5429_v4  ;;  %v6529_v23 = vor.u32 %v6528_v9, %v6524_v15  ;;  %11690 = vmatmul.msk.bf16.gmra.mxu3 %vm6610_vm3, %v7180_v43  ;;  %v6928_v38 = vadd.f32 %v6927_v28, %v6707_v37  ;;  %v6000_v28 = vld [vmem:[#allocation2 + $0xcc] sm:$0xf] }
 0x4ff   : > { %6112 = vst [vmem:[#allocation2 + $0xc8] sm:$0x1] %v6111_v7  ;;  %v5510_v47 = vpack.c.bf16 %v5474_v40, %v5474_v40  ;;  %v5438_v58 = vsel %vm16043_vm7, %v16033_v50, %v5433_v36  ;;  %v6520_v59 = vrot.slane %v6519_v60, 4  ;;  %v7127_v53 = vrot.slane %v6158_v31, 5 }
 0x500   : > { %v5475_v1 = vmul.f32 %v5438_v58, %v15956_v21  ;;  %v6530_v24 = vrot.slane %v6529_v23, 4  ;;  %v7130_v9 = vrot.slane %v6175_v6, 5  ;;  %v6537_v21 = vshrl.u32 %v6157_v34, 16 }
 0x501   : > { %v5805_v39 = vshrl.u32 %v5510_v47, 16  ;;  %v5808_v16 = vshll.u32 %v5510_v47, 16  ;;  %v6525_v49 = vsel %vm12463_vm6, %v6520_v59, %v6524_v15  ;;  %v7277_v32 = vpop.f32.mrf.mxu3  ;;  %v7128_v40 = vsel %vm12457_vm5, %v11674_v11, %v7127_v53  ;;  %v16090_v59 = vld [vmem:[#allocation2 + $0x10] sm:$0xf] }
 0x502   : > { %v5511_v63 = vpack.c.bf16 %v5475_v1, %v5475_v1  ;;  %v6535_v50 = vsel %vm12463_vm6, %v6530_v24, %v6534_v55  ;;  %v6590_v56 = vunpack.c.l.b16 %v6525_v49  ;;  %v7129_v43 = vrot.slane %v7127_v53, 4  ;;  %v6004_v1 = vld [vmem:[#allocation2 + $0xd4] sm:$0x1] }
 0x503   : > { %v5807_v42 = vrot.slane %v5805_v39, 7  ;;  %v6591_v4 = vunpack.c.l.b16 %v6535_v50  ;;  %v7164_v36 = vunpack.c.l.b16 %v7128_v40  ;;  %v6932_v23 = vpop.f32.mrf.mxu2  ;;  %v6539_v47 = vrot.slane %v6537_v21, 4 }
 0x504   : > { %v5813_v52 = vshrl.u32 %v5511_v63, 16  ;;  %v5816_v10 = vshll.u32 %v5511_v63, 16  ;;  %v7131_v20 = vsel %vm12457_vm5, %v7129_v43, %v7130_v9  ;;  %v6540_v58 = vshll.u32 %v6157_v34, 16  ;;  %v16094_v11 = vpop.f32.mrf.mxu1  ;;  %v16100_v9 = vld [vmem:[#allocation2 + $0x14] sm:$0x1] }
 0x505   : > { %v5810_v15 = vor.u32 %v5808_v16, %v5807_v42  ;;  %v5811_v60 = vrot.slane %v5807_v42, 4  ;;  %v6608_v7 = vpack.c.b16 %v6591_v4, %v6590_v56  ;;  %v7165_v24 = vunpack.c.l.b16 %v7131_v20  ;;  %v7641_v16 = vld [vmem:[#allocation2 + $0xc] sm:$0xf] }
 0x506   : > { %v5815_v55 = vrot.slane %v5813_v52, 7  ;;  %v6546_v39 = vshll.u32 %v6158_v31, 16  ;;  %v6550_v49 = vshrl.u32 %v6158_v31, 16  ;;  %v6542_v56 = vrot.slane %v6540_v58, 5  ;;  %v11937_v52 = vld [vmem:[%s17408_s3 + $0x20] sm:$0xf] }
 0x507   : > { %v6001_v37 = vsel %vm14296_vm11, %v5810_v15, %v6000_v28  ;;  %v6556_v53 = vshll.u32 %v6175_v6, 16  ;;  %v16098_v4 = vadd.f32 %v7277_v32, %v6928_v38  ;;  %v7181_v21 = vpack.c.b16 %v7165_v24, %v7164_v36  ;;  %v12118_v36 = vld [vmem:[#allocation2 + $0x9c] sm:$0xff] }
 0x508   : > { %6002 = vst [vmem:[#allocation2 + $0xcc] sm:$0xf] %v6001_v37  ;;  %v5818_v63 = vor.u32 %v5816_v10, %v5815_v55  ;;  %v5820_v50 = vrot.slane %v5815_v55, 4  ;;  %v16096_v42 = vrot.slane %v6546_v39, 5  ;;  %v6552_v34 = vrot.slane %v6550_v49, 4 }
 0x509   : > { %v6543_v28 = vor.u32 %v6542_v56, %v6539_v47  ;;  %v7690_v38 = vshrl.u32 %v7641_v16, 16  ;;  %v7693_v32 = vshll.u32 %v7641_v16, 16  ;;  %v7699_v10 = vshll.u32 %v16090_v59, 16  ;;  %v16112_v40 = vpop.f32.mrf.mxu3 }
 0x50a   : > { %v5819_v30 = vsel %vm14332_vm10, %v5811_v60, %v5818_v63  ;;  %v6005_v31 = vsel %vm14340_vm12, %v5820_v50, %v6004_v1  ;;  %v6553_v6 = vor.u32 %v6552_v34, %v16096_v42  ;;  %v6558_v43 = vrot.slane %v6556_v53, 5  ;;  %11899 = vmatmul.msk.bf16.gmra.mxu0 %vm6610_vm3, %v12118_v36  ;;  %v11904_v53 = vld [vmem:[%s17408_s3 + $0x1c] sm:$0xf] }
 0x50b   : > { %6003 = vst.msk [vmem:[#allocation2 + $0xd0] sm:$0xf] %vm5875_vm14, %v5819_v30  ;;  %11577 = vmatmul.msk.bf16.gmra.mxu1 %vm6610_vm3, %v6608_v7  ;;  %v7703_v15 = vshrl.u32 %v16090_v59, 16  ;;  %v7709_v60 = vshll.u32 %v16100_v9, 16  ;;  %v17657_v55 = vmov 0   ;;  %v6544_v20 = vrot.slane %v6543_v28, 4  ;;  %v16121_v1 = vpop.f32.mrf.mxu2 }
 0x50c   : > { %6006 = vst [vmem:[#allocation2 + $0xd4] sm:$0x1] %v6005_v31  ;;  %v7692_v47 = vrot.slane %v7690_v38, 4  ;;  %v7695_v58 = vrot.slane %v7693_v32, 5  ;;  %v7701_v37 = vrot.slane %v7699_v10, 5  ;;  %v6554_v24 = vrot.slane %v6553_v6, 4  ;;  %v6712_v56 = vpop.f32.mrf.mxu1 }
 0x50d   : > { %6125 = vst.msk [vmem:[#allocation2 + $0xd0] sm:$0xf] %vm5875_vm14, %v17657_v55  ;;  %v7705_v39 = vrot.slane %v7703_v15, 4  ;;  %v10500_v7 = vld [vmem:[%s17410_s5] sm:$0x3]  ;;  %v7711_v63 = vrot.slane %v7709_v60, 5  ;;  %v6933_v28 = vadd.f32 %v6932_v23, %v6712_v56 }
 0x50e   : > { %11691 = vmatmul.msk.bf16.gmra.mxu3 %vm6610_vm3, %v7181_v21  ;;  %v7696_v16 = vor.u32 %v7695_v58, %v7692_v47  ;;  %vm17658_vm11 = vcmask 1043456   ;;  %v6559_v30 = vsel %vm12463_vm6, %v6554_v24, %v6558_v43  ;;  %v8295_v6 = vld [vmem:[#allocation2 + $0xc] sm:$0xe]  ;;  %v7644_v21 = vld [vmem:[#allocation2 + $0x18] sm:$0xf]  ;;  %v8361_v32 = vrot.slane %v16090_v59, 5 }
 0x50f   : > { %v6058_v49 = vld [vmem:[#allocation2 + $0xcc] sm:$0x1]  ;;  %v9909_v50 = vsel %vm17658_vm11, %v11937_v52, 0  ;;  %v7706_v31 = vor.u32 %v7705_v39, %v7701_v37  ;;  %v6549_v52 = vsel %vm12463_vm6, %v6544_v20, %v16096_v42  ;;  %v8364_v10 = vrot.slane %v16100_v9, 5  ;;  %v16147_v59 = vld [vmem:[#allocation2 + $0x1c] sm:$0xf] }
 0x510   : > { %v6059_v34 = vsel %vm14340_vm12, 0, %v6058_v49  ;;  %9918 = vmatpush.bf16.msra.mxu2 %v9909_v50  ;;  %v7697_v38 = vrot.slane %v7696_v16, 4  ;;  %vm17659_vm10 = vcmask 1041408   ;;  %vm17660_vm12 = vmmov %vm17658_vm11  ;;  %v6593_v60 = vunpack.c.l.b16 %v6559_v30  ;;  %v7646_v50 = vld [vmem:[#allocation2 + $0x20] sm:$0x1] }
 0x511   : > { %6060 = vst [vmem:[#allocation2 + $0xcc] sm:$0x1] %v6059_v34  ;;  %v7707_v46 = vrot.slane %v7706_v31, 4  ;;  %v10602_v43 = vsel %vm17659_vm10, %v10500_v7, 0  ;;  %v9511_v23 = vsel %vm17660_vm12, %v11904_v53, 0  ;;  %v8363_v47 = vrot.slane %v8361_v32, 4  ;;  %v7282_v42 = vpop.f32.mrf.mxu3 }
 0x512   : > { %6124 = vst.msk [vmem:[#allocation2 + $0xcc] sm:$0xf] %vm5875_vm14, %v17657_v55  ;;  %v7702_v36 = vsel %vm12463_vm6, %v7697_v38, %v7701_v37  ;;  %10611 = vmatpush.bf16.msra.mxu3 %v10602_v43  ;;  %9520 = vmatpush.bf16.msra.mxu1 %v9511_v23  ;;  %v7714_v9 = vshrl.u32 %v7644_v21, 16  ;;  %v6592_v58 = vunpack.c.l.b16 %v6549_v52  ;;  %v11790_v39 = vrot.slane %v8295_v6, 9 }
 0x513   : > { %v6113_v15 = vld [vmem:[#allocation2 + $0xd4] sm:$0x1]  ;;  %v7712_v24 = vsel %vm12463_vm6, %v7707_v46, %v7711_v63  ;;  %v8075_v7 = vunpack.c.l.b16 %v7702_v36  ;;  %v8365_v37 = vsel %vm12457_vm5, %v8363_v47, %v8364_v10  ;;  %v16155_v16 = vadd.f32 %v7282_v42, %v6933_v28  ;;  %v6937_v56 = vpop.f32.mrf.mxu2  ;;  %v12119_v47 = vld [vmem:[#allocation2 + $0xa8] sm:$0xff] }
 0x514   : > { %v6114_v20 = vsel %vm14410_vm9, 0, %v6113_v15  ;;  %v8076_v49 = vunpack.c.l.b16 %v7712_v24  ;;  %v7716_v53 = vrot.slane %v7714_v9, 4  ;;  %v7717_v34 = vshll.u32 %v7644_v21, 16  ;;  %v16165_v28 = vpop.f32.mrf.mxu1 }
 0x515   : > { %6115 = vst [vmem:[#allocation2 + $0xd4] sm:$0x1] %v6114_v20  ;;  %v7723_v63 = vshll.u32 %v16147_v59, 16  ;;  %v7727_v30 = vshrl.u32 %v16147_v59, 16  ;;  %v6609_v31 = vpack.c.b16 %v6593_v60, %v6592_v58  ;;  %v8362_v52 = vsel %vm12457_vm5, %v11790_v39, %v8361_v32  ;;  %v7647_v58 = vld [vmem:[#allocation2 + $0x24] sm:$0xf] }
 0x516   : > { %6126 = vst.msk [vmem:[#allocation2 + $0xd4] sm:$0xf] %vm5875_vm14, %v17657_v55  ;;  %v8107_v6 = vpack.c.b16 %v8076_v49, %v8075_v7  ;;  %v7719_v38 = vrot.slane %v7717_v34, 5  ;;  %v7733_v43 = vshll.u32 %v7646_v50, 16  ;;  %v8474_v55 = vunpack.c.l.b16 %v8365_v37  ;;  %v16176_v39 = vld [vmem:[#allocation2 + $0x28] sm:$0xf]  ;;  %v16178_v7 = vpop.f32.mrf.mxu0 }
 0x517   : > { %v7725_v10 = vrot.slane %v7723_v63, 5  ;;  %v7729_v46 = vrot.slane %v7727_v30, 4  ;;  %v8473_v15 = vunpack.c.l.b16 %v8362_v52  ;;  %v8368_v24 = vrot.slane %v16147_v59, 5  ;;  %17663 = vst [vmem:[#allocation39_spill] sm:$0xff] %v16178_v7 }
 0x518   : > { %11774 = vmatmul.msk.bf16.vlgmr.msrb.gmra.mxu2 %vm6610_vm3, %v8107_v6  ;;  %v7720_v23 = vor.u32 %v7719_v38, %v7716_v53  ;;  %v7735_v60 = vrot.slane %v7733_v43, 5  ;;  %v8371_v53 = vrot.slane %v7646_v50, 5  ;;  %v7738_v34 = vshrl.u32 %v7647_v58, 16  ;;  %v8296_v6 = vld [vmem:[#allocation2 + $0x18] sm:$0xe] }
 0x519   : > { %v7730_v21 = vor.u32 %v7729_v46, %v7725_v10  ;;  %v16168_v36 = vpop.f32.mrf.mxu3  ;;  %v8505_v42 = vpack.c.b16 %v8474_v55, %v8473_v15  ;;  %v7741_v63 = vshll.u32 %v7647_v58, 16  ;;  %v7747_v52 = vshll.u32 %v16176_v39, 16  ;;  %v7649_v15 = vld [vmem:[#allocation2 + $0x2c] sm:$0x1] }
 0x51a   : > { %v7721_v9 = vrot.slane %v7720_v23, 4  ;;  %11900 = vmatmul.msk.bf16.gmra.mxu0 %vm6610_vm3, %v12119_v47  ;;  %v7751_v59 = vshrl.u32 %v16176_v39, 16  ;;  %v8370_v46 = vrot.slane %v8368_v24, 4  ;;  %v7740_v47 = vrot.slane %v7738_v34, 4  ;;  %v9025_v26 = vld [vmem:[#allocation2 + $0xcc] sm:$0xf] }
 0x51b   : > { %11578 = vmatmul.msk.bf16.gmra.mxu1 %vm6610_vm3, %v6609_v31  ;;  %v16171_v32 = vpop.f32.mrf.mxu2  ;;  %v7731_v20 = vrot.slane %v7730_v21, 4  ;;  %v11791_v21 = vrot.slane %v8296_v6, 9  ;;  %v7757_v58 = vshll.u32 %v7649_v15, 16  ;;  %vm17689_vm14 = vcmask 31744  }
 0x51c   : > { %17662 = vst [vmem:[#allocation36_spill] sm:$0xff] %v16171_v32  ;;  %v7726_v30 = vsel %vm12463_vm6, %v7721_v9, %v7725_v10  ;;  %v8372_v50 = vsel %vm12457_vm5, %v8370_v46, %v8371_v53  ;;  %v7743_v10 = vrot.slane %v7741_v63, 5  ;;  %v12120_v63 = vld [vmem:[#allocation2 + $0xb4] sm:$0xff]  ;;  %vm17690_vm9 = vmmov %vm17689_vm14 }
 0x51d   : > { %v7736_v49 = vsel %vm12463_vm6, %v7731_v20, %v7735_v60  ;;  %v8077_v23 = vunpack.c.l.b16 %v7726_v30  ;;  %v8369_v20 = vsel %vm12457_vm5, %v11791_v21, %v8368_v24  ;;  %v12091_v30 = vld [vmem:[#allocation2 + $0xc] sm:$0xff]  ;;  %v7759_v34 = vrot.slane %v7757_v58, 5  ;;  %v16204_v21 = vld [vmem:[#allocation2 + $0x34] sm:$0xf]  ;;  %vm17692_vm8 = vmmov %vm17690_vm9 }
 0x51e   : > { %11807 = vmatmul.msk.bf16.vlgmr.msrb.gmra.mxu3 %vm6610_vm3, %v8505_v42  ;;  %v8078_v38 = vunpack.c.l.b16 %v7736_v49  ;;  %v7753_v42 = vrot.slane %v7751_v59, 4  ;;  %v8476_v49 = vunpack.c.l.b16 %v8372_v50  ;;  %v8475_v53 = vunpack.c.l.b16 %v8369_v20  ;;  %vm17697_vm0 = vmmov %vm17692_vm8 }
 0x51f   : > { %v8378_v20 = vrot.slane %v7649_v15, 5  ;;  %v7771_v58 = vshll.u32 %v16204_v21, 16  ;;  %vm17704_vm13 = vmmov %vm17697_vm0 }
 0x520   : > { %v6717_v37 = vpop.f32.mrf.mxu1  ;;  %v8108_v9 = vpack.c.b16 %v8078_v38, %v8077_v23  ;;  %v7650_v23 = vld [vmem:[#allocation2 + $0x30] sm:$0xf]  ;;  %vm17709_vm15 = vmmov %vm17697_vm0 }
 0x521   : > { %v6938_v31 = vadd.f32 %v6937_v56, %v6717_v37  ;;  %v7287_v43 = vpop.f32.mrf.mxu3  ;;  %v7749_v56 = vrot.slane %v7747_v52, 5  ;;  %v16193_v37 = vpop.f32.mrf.mxu0  ;;  %v8506_v52 = vpack.c.b16 %v8476_v49, %v8475_v53  ;;  %v7775_v49 = vshrl.u32 %v16204_v21, 16  ;;  %vm17713_vm4 = vmmov %vm17697_vm0 }
 0x522   : > { %17664 = vst [vmem:[#allocation37_spill] sm:$0xff] %v16193_v37  ;;  %vm17717_vm7 = vmmov %vm17697_vm0 }
 0x523   : > { %v16186_v55 = vadd.f32 %v7287_v43, %v6938_v31  ;;  %v6942_v60 = vpop.f32.mrf.mxu2  ;;  %v7744_v31 = vor.u32 %v7743_v10, %v7740_v47  ;;  %v7754_v6 = vor.u32 %v7753_v42, %v7749_v56  ;;  %v8375_v47 = vrot.slane %v16176_v39, 5  ;;  %vm17722_vm2 = vmmov %vm17697_vm0 }
 0x524   : > { %v7762_v10 = vshrl.u32 %v7650_v23, 16  ;;  %v7765_v42 = vshll.u32 %v7650_v23, 16  ;;  %v7777_v15 = vrot.slane %v7775_v49, 4  ;;  %vm17726_vm1 = vmmov %vm17697_vm0 }
 0x525   : > { %v7745_v24 = vrot.slane %v7744_v31, 4  ;;  %v7755_v38 = vrot.slane %v7754_v6, 4  ;;  %v8297_v31 = vld [vmem:[#allocation2 + $0x24] sm:$0xe]  ;;  %v8377_v53 = vrot.slane %v8375_v47, 4  ;;  %vm17729_vm11 = vmmov %vm17697_vm0 }
 0x526   : > { %v7767_v39 = vrot.slane %v7765_v42, 5  ;;  %v11792_v37 = vrot.slane %v8297_v31, 9  ;;  %vm17732_vm10 = vmmov %vm17697_vm0 }
 0x527   : > { %v7760_v50 = vsel %vm12463_vm6, %v7755_v38, %v7759_v34  ;;  %v7652_v34 = vld [vmem:[#allocation2 + $0x38] sm:$0x1]  ;;  %v7764_v38 = vrot.slane %v7762_v10, 4  ;;  %v8379_v23 = vsel %vm12457_vm5, %v8377_v53, %v8378_v20  ;;  %v16230_v53 = vld [vmem:[#allocation2 + $0x40] sm:$0xf]  ;;  %vm17734_vm12 = vmmov %vm17697_vm0 }
 0x528   : > { %11775 = vmatmul.msk.bf16.gmra.mxu2 %vm6610_vm3, %v8108_v9  ;;  %v16198_v59 = vpop.f32.mrf.mxu1  ;;  %v7750_v9 = vsel %vm12463_vm6, %v7745_v24, %v7749_v56  ;;  %v7773_v56 = vrot.slane %v7771_v58, 5  ;;  %v7781_v27 = vshll.u32 %v7652_v34, 16  ;;  %v12092_v10 = vld [vmem:[#allocation2 + $0x18] sm:$0xff]  ;;  %v12121_v58 = vld [vmem:[#allocation2 + $0xc0] sm:$0xff] }
 0x529   : > { %v16195_v46 = vpop.f32.mrf.mxu3  ;;  %v16213_v6 = vpop.f32.mrf.mxu0 }
 0x52a   : > { %17665 = vst [vmem:[#allocation38_spill] sm:$0xff] %v16195_v46  ;;  %11901 = vmatmul.msk.bf16.gmra.mxu0 %vm6610_vm3, %v12120_v63  ;;  %v7778_v31 = vor.u32 %v7777_v15, %v7773_v56  ;;  %v7783_v20 = vrot.slane %v7781_v27, 5  ;;  %v7795_v15 = vshll.u32 %v16230_v53, 16 }
 0x52b   : > { %11757 = vmatmul.msk.bf16.vlgmr.msrb.gmra.mxu1 %vm6610_vm3, %v12091_v30  ;;  %v16200_v43 = vpop.f32.mrf.mxu2  ;;  %v8080_v30 = vunpack.c.l.b16 %v7760_v50  ;;  %17667 = vst [vmem:[#allocation41_spill] sm:$0xff] %v16213_v6  ;;  %v8376_v50 = vsel %vm12457_vm5, %v11792_v37, %v8375_v47 }
 0x52c   : > { %17666 = vst [vmem:[#allocation44_spill] sm:$0xff] %v16200_v43  ;;  %v7768_v43 = vor.u32 %v7767_v39, %v7764_v38  ;;  %v8477_v46 = vunpack.c.l.b16 %v8376_v50  ;;  %v7779_v37 = vrot.slane %v7778_v31, 4  ;;  %v8298_v38 = vld [vmem:[#allocation2 + $0x30] sm:$0xe] }
 0x52e   : > { %11808 = vmatmul.msk.bf16.gmra.mxu3 %vm6610_vm3, %v8506_v52  ;;  %v8079_v52 = vunpack.c.l.b16 %v7750_v9  ;;  %v8478_v9 = vunpack.c.l.b16 %v8379_v23  ;;  %v7784_v27 = vsel %vm12463_vm6, %v7779_v37, %v7783_v20 }
 0x530   : > { %v8109_v24 = vpack.c.b16 %v8080_v30, %v8079_v52  ;;  %v8507_v49 = vpack.c.b16 %v8478_v9, %v8477_v46  ;;  %v7653_v30 = vld [vmem:[#allocation2 + $0x3c] sm:$0xf] }
 0x531   : > { %v7292_v63 = vpop.f32.mrf.mxu3  ;;  %v7786_v39 = vshrl.u32 %v7653_v30, 16  ;;  %v7789_v23 = vshll.u32 %v7653_v30, 16 }
 0x533   : > { %v6947_v6 = vpop.f32.mrf.mxu2  ;;  %v7791_v20 = vrot.slane %v7789_v23, 5 }
 0x536   : > { %v6722_v7 = vpop.f32.mrf.mxu1 }
 0x537   : > { %v6943_v54 = vadd.f32 %v6942_v60, %v6722_v7  ;;  %v7769_v7 = vrot.slane %v7768_v43, 4  ;;  %v16223_v60 = vpop.f32.mrf.mxu0  ;;  %v8385_v43 = vrot.slane %v7652_v34, 5  ;;  %v7788_v34 = vrot.slane %v7786_v39, 4 }
 0x538   : > { %11776 = vmatmul.msk.bf16.gmra.mxu2 %vm6610_vm3, %v8109_v24  ;;  %17669 = vst [vmem:[#allocation43_spill] sm:$0xff] %v16223_v60  ;;  %v8082_v24 = vunpack.c.l.b16 %v7784_v27 }
 0x539   : > { %v16220_v42 = vadd.f32 %v7292_v63, %v6943_v54  ;;  %v16225_v47 = vpop.f32.mrf.mxu3  ;;  %v8382_v54 = vrot.slane %v16204_v21, 5  ;;  %v7774_v46 = vsel %vm12463_vm6, %v7769_v7, %v7773_v56  ;;  %v7799_v21 = vshrl.u32 %v16230_v53, 16  ;;  %v7655_v56 = vld [vmem:[#allocation2 + $0x44] sm:$0x1] }
 0x53a   : > { %17670 = vst [vmem:[#allocation45_spill] sm:$0xff] %v16225_v47  ;;  %11902 = vmatmul.msk.bf16.gmra.mxu0 %vm6610_vm3, %v12121_v58  ;;  %v8081_v9 = vunpack.c.l.b16 %v7774_v46  ;;  %v7797_v58 = vrot.slane %v7795_v15, 5  ;;  %v7805_v60 = vshll.u32 %v7655_v56, 16  ;;  %v7792_v46 = vor.u32 %v7791_v20, %v7788_v34 }
 0x53b   : > { %17668 = vst [vmem:[#allocation42_spill] sm:$0xff] %v16220_v42  ;;  %11758 = vmatmul.msk.bf16.gmra.mxu1 %vm6610_vm3, %v12092_v10  ;;  %v16238_v52 = vpop.f32.mrf.mxu2  ;;  %v8384_v50 = vrot.slane %v8382_v54, 4  ;;  %v11793_v10 = vrot.slane %v8298_v38, 9  ;;  %v8389_v34 = vrot.slane %v16230_v53, 5 }
 0x53c   : > { %17672 = vst [vmem:[#allocation48_spill] sm:$0xff] %v16238_v52  ;;  %v8110_v7 = vpack.c.b16 %v8082_v24, %v8081_v9  ;;  %v12093_v52 = vld [vmem:[#allocation2 + $0x24] sm:$0xff]  ;;  %v7807_v39 = vrot.slane %v7805_v60, 5  ;;  %v7793_v24 = vrot.slane %v7792_v46, 4 }
 0x53d   : > { %v8386_v31 = vsel %vm12457_vm5, %v8384_v50, %v8385_v43  ;;  %v8383_v37 = vsel %vm12457_vm5, %v11793_v10, %v8382_v54  ;;  %v7656_v9 = vld [vmem:[#allocation2 + $0x48] sm:$0xf]  ;;  %v16251_v10 = vld [vmem:[#allocation2 + $0x4c] sm:$0xf] }
 0x53e   : > { %11809 = vmatmul.msk.bf16.gmra.mxu3 %vm6610_vm3, %v8507_v49  ;;  %v16236_v63 = vpop.f32.mrf.mxu1  ;;  %v7801_v49 = vrot.slane %v7799_v21, 4  ;;  %v8480_v27 = vunpack.c.l.b16 %v8386_v31  ;;  %v8479_v47 = vunpack.c.l.b16 %v8383_v37  ;;  %v7813_v20 = vshll.u32 %v7656_v9, 16 }
 0x53f   : > { %17671 = vst [vmem:[#allocation47_spill] sm:$0xff] %v16236_v63 }
 0x540   : > { %v7802_v38 = vor.u32 %v7801_v49, %v7797_v58  ;;  %v8508_v21 = vpack.c.b16 %v8480_v27, %v8479_v47  ;;  %v8392_v47 = vrot.slane %v7655_v56, 5  ;;  %v7819_v49 = vshll.u32 %v16251_v10, 16 }
 0x541   : > { %v8391_v27 = vrot.slane %v8389_v34, 4 }
 0x542   : > { %v7803_v50 = vrot.slane %v7802_v38, 4  ;;  %v7658_v38 = vld [vmem:[#allocation2 + $0x50] sm:$0x1] }
 0x543   : > { %v7297_v30 = vpop.f32.mrf.mxu3  ;;  %v6952_v23 = vpop.f32.mrf.mxu2 }
 0x544   : > { %v7808_v31 = vsel %vm12463_vm6, %v7803_v50, %v7807_v39  ;;  %v7815_v39 = vrot.slane %v7813_v20, 5 }
 0x545   : > { %v8084_v37 = vunpack.c.l.b16 %v7808_v31 }
 0x548   : > { %11777 = vmatmul.msk.bf16.gmra.mxu2 %vm6610_vm3, %v8110_v7  ;;  %v7823_v7 = vshrl.u32 %v16251_v10, 16 }
 0x54b   : > { %11759 = vmatmul.msk.bf16.gmra.mxu1 %vm6610_vm3, %v12093_v52  ;;  %v7810_v52 = vshrl.u32 %v7656_v9, 16  ;;  %v16258_v60 = vpop.f32.mrf.mxu3  ;;  %v6954_v53 = vpop.f32.mrf.mxu2  ;;  %v7829_v9 = vshll.u32 %v7658_v38, 16 }
 0x54c   : > { %v6727_v43 = vpop.f32.mrf.mxu1  ;;  %17674 = vst [vmem:[#allocation49_spill] sm:$0xff] %v16258_v60 }
 0x54d   : > { %v6948_v15 = vadd.f32 %v6947_v6, %v6727_v43  ;;  %v7798_v6 = vsel %vm12463_vm6, %v7793_v24, %v7797_v58  ;;  %v7812_v43 = vrot.slane %v7810_v52, 4  ;;  %v7821_v58 = vrot.slane %v7819_v49, 5 }
 0x54e   : > { %11810 = vmatmul.msk.bf16.gmra.mxu3 %vm6610_vm3, %v8508_v21  ;;  %v8083_v46 = vunpack.c.l.b16 %v7798_v6  ;;  %v8393_v21 = vsel %vm12457_vm5, %v8391_v27, %v8392_v47  ;;  %v7825_v24 = vrot.slane %v7823_v7, 4  ;;  %v12094_v6 = vld [vmem:[#allocation2 + $0x30] sm:$0xff]  ;;  %v7831_v47 = vrot.slane %v7829_v9, 5 }
 0x54f   : > { %v16249_v54 = vadd.f32 %v7297_v30, %v6948_v15  ;;  %v8299_v30 = vld [vmem:[#allocation2 + $0x3c] sm:$0xe]  ;;  %v8482_v31 = vunpack.c.l.b16 %v8393_v21  ;;  %v7816_v60 = vor.u32 %v7815_v39, %v7812_v43  ;;  %v7659_v27 = vld [vmem:[#allocation2 + $0x54] sm:$0xf]  ;;  %v8399_v21 = vrot.slane %v7658_v38, 5 }
 0x550   : > { %v11794_v15 = vrot.slane %v8299_v30, 9  ;;  %v8111_v50 = vpack.c.b16 %v8084_v37, %v8083_v46  ;;  %v7826_v52 = vor.u32 %v7825_v24, %v7821_v58  ;;  %v16272_v46 = vld [vmem:[#allocation2 + $0x58] sm:$0xf]  ;;  %v8300_v24 = vld [vmem:[#allocation2 + $0x48] sm:$0xe] }
 0x551   : > { %17673 = vst [vmem:[#allocation46_spill] sm:$0xff] %v16249_v54  ;;  %v7817_v7 = vrot.slane %v7816_v60, 4  ;;  %v7837_v60 = vshll.u32 %v7659_v27, 16  ;;  %v7847_v9 = vshrl.u32 %v16272_v46, 16 }
 0x552   : > { %v8390_v56 = vsel %vm12457_vm5, %v11794_v15, %v8389_v34  ;;  %v7827_v37 = vrot.slane %v7826_v52, 4  ;;  %v8396_v34 = vrot.slane %v16251_v10, 5 }
 0x553   : > { %v8481_v20 = vunpack.c.l.b16 %v8390_v56  ;;  %v16276_v39 = vpop.f32.mrf.mxu2  ;;  %v7822_v15 = vsel %vm12463_vm6, %v7817_v7, %v7821_v58  ;;  %v7843_v56 = vshll.u32 %v16272_v46, 16  ;;  %v7839_v38 = vrot.slane %v7837_v60, 5 }
 0x554   : > { %v16267_v54 = vpop.f32.mrf.mxu1  ;;  %v7832_v43 = vsel %vm12463_vm6, %v7827_v37, %v7831_v47  ;;  %v7661_v37 = vld [vmem:[#allocation2 + $0x5c] sm:$0x1]  ;;  %v7849_v63 = vrot.slane %v7847_v9, 4 }
 0x555   : > { %17675 = vst [vmem:[#allocation50_spill] sm:$0xff] %v16267_v54  ;;  %v8509_v49 = vpack.c.b16 %v8482_v31, %v8481_v20  ;;  %v8086_v10 = vunpack.c.l.b16 %v7832_v43  ;;  %v8398_v31 = vrot.slane %v8396_v34, 4  ;;  %v8085_v20 = vunpack.c.l.b16 %v7822_v15  ;;  %v12095_v15 = vld [vmem:[#allocation2 + $0x3c] sm:$0xff] }
 0x556   : > { %v7845_v7 = vrot.slane %v7843_v56, 5  ;;  %v7853_v32 = vshll.u32 %v7661_v37, 16 }
 0x557   : > { %v8400_v47 = vsel %vm12457_vm5, %v8398_v31, %v8399_v21  ;;  %v8112_v42 = vpack.c.b16 %v8086_v10, %v8085_v20 }
 0x558   : > { %11778 = vmatmul.msk.bf16.gmra.mxu2 %vm6610_vm3, %v8111_v50  ;;  %v7834_v50 = vshrl.u32 %v7659_v27, 16  ;;  %v7850_v31 = vor.u32 %v7849_v63, %v7845_v7  ;;  %v7855_v60 = vrot.slane %v7853_v32, 5 }
 0x55a   : > { %v7302_v30 = vpop.f32.mrf.mxu3  ;;  %v7836_v58 = vrot.slane %v7834_v50, 4  ;;  %v7851_v10 = vrot.slane %v7850_v31, 4 }
 0x55b   : > { %11760 = vmatmul.msk.bf16.gmra.mxu1 %vm6610_vm3, %v12094_v6 }
 0x55c   : > { %v7840_v21 = vor.u32 %v7839_v38, %v7836_v58  ;;  %v7856_v63 = vsel %vm12463_vm6, %v7851_v10, %v7855_v60 }
 0x55e   : > { %11811 = vmatmul.msk.bf16.gmra.mxu3 %vm6610_vm3, %v8509_v49  ;;  %v11795_v49 = vrot.slane %v8300_v24, 9  ;;  %v16289_v24 = vpop.f32.mrf.mxu2  ;;  %v7841_v9 = vrot.slane %v7840_v21, 4 }
 0x560   : > { %v8397_v43 = vsel %vm12457_vm5, %v11795_v49, %v8396_v34  ;;  %v8403_v49 = vrot.slane %v16272_v46, 5  ;;  %v7846_v32 = vsel %vm12463_vm6, %v7841_v9, %v7845_v7 }
 0x561   : > { %v8087_v31 = vunpack.c.l.b16 %v7846_v32 }
 0x562   : > { %v7304_v54 = vpop.f32.mrf.mxu3  ;;  %v8405_v21 = vrot.slane %v8403_v49, 4 }
 0x564   : > { %v6732_v6 = vpop.f32.mrf.mxu1 }
 0x565   : > { %v6953_v52 = vadd.f32 %v6952_v23, %v6732_v6  ;;  %v8484_v23 = vunpack.c.l.b16 %v8400_v47  ;;  %v8483_v6 = vunpack.c.l.b16 %v8397_v43  ;;  %v8088_v43 = vunpack.c.l.b16 %v7856_v63 }
 0x567   : > { %v16284_v27 = vadd.f32 %v7302_v30, %v6953_v52  ;;  %v8510_v56 = vpack.c.b16 %v8484_v23, %v8483_v6  ;;  %v7662_v52 = vld [vmem:[#allocation2 + $0x60] sm:$0xf]  ;;  %v8301_v23 = vld [vmem:[#allocation2 + $0x54] sm:$0xe]  ;;  %v7664_v6 = vld [vmem:[#allocation2 + $0x68] sm:$0x1] }
 0x568   : > { %11779 = vmatmul.msk.bf16.gmra.mxu2 %vm6610_vm3, %v8112_v42  ;;  %v16295_v42 = vld [vmem:[#allocation2 + $0x64] sm:$0xf]  ;;  %v7858_v47 = vshrl.u32 %v7662_v52, 16  ;;  %v7861_v58 = vshll.u32 %v7662_v52, 16  ;;  %v11796_v46 = vrot.slane %v8301_v23, 9  ;;  %v7877_v52 = vshll.u32 %v7664_v6, 16 }
 0x569   : > { %17676 = vst [vmem:[#allocation51_spill] sm:$0xff] %v16284_v27  ;;  %v7867_v38 = vshll.u32 %v16295_v42, 16 }
 0x56a   : > { %v7863_v60 = vrot.slane %v7861_v58, 5  ;;  %v8404_v10 = vsel %vm12457_vm5, %v11796_v46, %v8403_v49  ;;  %v12096_v58 = vld [vmem:[#allocation2 + $0x48] sm:$0xff]  ;;  %v16316_v46 = vld [vmem:[#allocation2 + $0x70] sm:$0xf] }
 0x56b   : > { %11761 = vmatmul.msk.bf16.gmra.mxu1 %vm6610_vm3, %v12095_v15  ;;  %v16304_v15 = vpop.f32.mrf.mxu2  ;;  %v8485_v27 = vunpack.c.l.b16 %v8404_v10  ;;  %v7891_v10 = vshll.u32 %v16316_v46, 16 }
 0x56c   : > { %v6734_v50 = vpop.f32.mrf.mxu1 }
 0x56d   : > { %v6955_v30 = vadd.f32 %v6954_v53, %v6734_v50  ;;  %v8406_v53 = vrot.slane %v7661_v37, 5  ;;  %v7860_v50 = vrot.slane %v7858_v47, 4  ;;  %v8113_v37 = vpack.c.b16 %v8088_v43, %v8087_v31  ;;  %v7665_v31 = vld [vmem:[#allocation2 + $0x6c] sm:$0xf] }
 0x56e   : > { %11812 = vmatmul.msk.bf16.gmra.mxu3 %vm6610_vm3, %v8510_v56  ;;  %v7869_v56 = vrot.slane %v7867_v38, 5  ;;  %v7879_v38 = vrot.slane %v7877_v52, 5  ;;  %v7895_v52 = vshrl.u32 %v16316_v46, 16 }
 0x56f   : > { %v16292_v34 = vadd.f32 %v7304_v54, %v6955_v30  ;;  %v7871_v54 = vshrl.u32 %v16295_v42, 16  ;;  %v8407_v30 = vsel %vm12457_vm5, %v8405_v21, %v8406_v53  ;;  %v7864_v32 = vor.u32 %v7863_v60, %v7860_v50 }
 0x570   : > { %v7307_v20 = vpop.f32.mrf.mxu3  ;;  %v8410_v50 = vrot.slane %v16295_v42, 5 }
 0x571   : > { %17677 = vst [vmem:[#allocation5_spill] sm:$0xff] %v16292_v34  ;;  %v7873_v7 = vrot.slane %v7871_v54, 4  ;;  %v8486_v34 = vunpack.c.l.b16 %v8407_v30  ;;  %v7865_v43 = vrot.slane %v7864_v32, 4  ;;  %v7882_v30 = vshrl.u32 %v7665_v31, 16  ;;  %v8302_v32 = vld [vmem:[#allocation2 + $0x60] sm:$0xe] }
 0x573   : > { %v7874_v23 = vor.u32 %v7873_v7, %v7869_v56  ;;  %v8511_v54 = vpack.c.b16 %v8486_v34, %v8485_v27  ;;  %v6964_v21 = vpop.f32.mrf.mxu2  ;;  %v7885_v7 = vshll.u32 %v7665_v31, 16 }
 0x575   : > { %v7875_v49 = vrot.slane %v7874_v23, 4  ;;  %v7667_v23 = vld [vmem:[#allocation2 + $0x74] sm:$0x1] }
 0x578   : > { %v7309_v9 = vpop.f32.mrf.mxu3  ;;  %v6737_v63 = vpop.f32.mrf.mxu1  ;;  %11780 = vmatmul.msk.bf16.gmra.mxu2 %vm6610_vm3, %v8113_v37  ;;  %v8413_v37 = vrot.slane %v7664_v6, 5 }
 0x579   : > { %v6958_v47 = vadd.f32 %v16276_v39, %v6737_v63  ;;  %v7880_v39 = vsel %vm12463_vm6, %v7875_v49, %v7879_v38  ;;  %v7884_v38 = vrot.slane %v7882_v30, 4  ;;  %v7897_v49 = vrot.slane %v7895_v52, 4 }
 0x57a   : > { %v8090_v63 = vunpack.c.l.b16 %v7880_v39  ;;  %v7901_v39 = vshll.u32 %v7667_v23, 16 }
 0x57b   : > { %11762 = vmatmul.msk.bf16.gmra.mxu1 %vm6610_vm3, %v12096_v58  ;;  %v16313_v53 = vadd.f32 %v7307_v20, %v6958_v47  ;;  %v7870_v20 = vsel %vm12463_vm6, %v7865_v43, %v7869_v56  ;;  %v8412_v58 = vrot.slane %v8410_v50, 4  ;;  %v11797_v56 = vrot.slane %v8302_v32, 9  ;;  %v6967_v31 = vpop.f32.mrf.mxu2 }
 0x57c   : > { %v8089_v42 = vunpack.c.l.b16 %v7870_v20 }
 0x57d   : > { %17678 = vst [vmem:[#allocation8_spill] sm:$0xff] %v16313_v53  ;;  %v8414_v43 = vsel %vm12457_vm5, %v8412_v58, %v8413_v37  ;;  %v7668_v58 = vld [vmem:[#allocation2 + $0x78] sm:$0xf] }
 0x57e   : > { %11813 = vmatmul.msk.bf16.gmra.mxu3 %vm6610_vm3, %v8511_v54  ;;  %v7887_v54 = vrot.slane %v7885_v7, 5  ;;  %v8114_v6 = vpack.c.b16 %v8090_v63, %v8089_v42  ;;  %v12097_v7 = vld [vmem:[#allocation2 + $0x54] sm:$0xff]  ;;  %v16338_v42 = vld [vmem:[#allocation2 + $0x7c] sm:$0xf] }
 0x580   : > { %v6739_v60 = vpop.f32.mrf.mxu1  ;;  %v7888_v20 = vor.u32 %v7887_v54, %v7884_v38 }
 0x581   : > { %v6960_v27 = vadd.f32 %v16289_v24, %v6739_v60  ;;  %v7312_v34 = vpop.f32.mrf.mxu3  ;;  %v7893_v24 = vrot.slane %v7891_v10, 5  ;;  %v8411_v60 = vsel %vm12457_vm5, %v11797_v56, %v8410_v50  ;;  %v7903_v10 = vrot.slane %v7901_v39, 5 }
 0x582   : > { %v7889_v63 = vrot.slane %v7888_v20, 4  ;;  %v7909_v56 = vshll.u32 %v7668_v58, 16  ;;  %v7919_v39 = vshrl.u32 %v16338_v42, 16  ;;  %v8303_v20 = vld [vmem:[#allocation2 + $0x6c] sm:$0xe] }
 0x583   : > { %v16326_v47 = vadd.f32 %v7309_v9, %v6960_v27  ;;  %v8488_v9 = vunpack.c.l.b16 %v8414_v43  ;;  %v7898_v32 = vor.u32 %v7897_v49, %v7893_v24 }
 0x584   : > { %v7894_v54 = vsel %vm12463_vm6, %v7889_v63, %v7893_v24  ;;  %v11798_v24 = vrot.slane %v8303_v20, 9 }
 0x585   : > { %17679 = vst [vmem:[#allocation12_spill] sm:$0xff] %v16326_v47  ;;  %v8487_v47 = vunpack.c.l.b16 %v8411_v60  ;;  %v7899_v50 = vrot.slane %v7898_v32, 4  ;;  %v7915_v60 = vshll.u32 %v16338_v42, 16  ;;  %v7670_v32 = vld [vmem:[#allocation2 + $0x80] sm:$0x1] }
 0x587   : > { %v8512_v52 = vpack.c.b16 %v8488_v9, %v8487_v47  ;;  %v6969_v47 = vpop.f32.mrf.mxu2  ;;  %v7917_v63 = vrot.slane %v7915_v60, 5 }
 0x588   : > { %v6742_v53 = vpop.f32.mrf.mxu1  ;;  %11781 = vmatmul.msk.bf16.gmra.mxu2 %vm6610_vm3, %v8114_v6  ;;  %v8420_v6 = vrot.slane %v7667_v23, 5 }
 0x589   : > { %v6963_v30 = vadd.f32 %v16304_v15, %v6742_v53  ;;  %v7314_v27 = vpop.f32.mrf.mxu3  ;;  %v7904_v15 = vsel %vm12463_vm6, %v7899_v50, %v7903_v10  ;;  %v8417_v53 = vrot.slane %v16316_v46, 5  ;;  %v8091_v46 = vunpack.c.l.b16 %v7894_v54 }
 0x58a   : > { %v8092_v9 = vunpack.c.l.b16 %v7904_v15  ;;  %v7921_v50 = vrot.slane %v7919_v39, 4 }
 0x58b   : > { %11763 = vmatmul.msk.bf16.gmra.mxu1 %vm6610_vm3, %v12097_v7  ;;  %v16335_v37 = vadd.f32 %v7312_v34, %v6963_v30  ;;  %v7906_v34 = vshrl.u32 %v7668_v58, 16  ;;  %v8419_v7 = vrot.slane %v8417_v53, 4  ;;  %v8418_v58 = vsel %vm12457_vm5, %v11798_v24, %v8417_v53  ;;  %v16358_v24 = vld [vmem:[#allocation2 + $0x88] sm:$0xf] }
 0x58c   : > { %v8115_v23 = vpack.c.b16 %v8092_v9, %v8091_v46  ;;  %v8489_v20 = vunpack.c.l.b16 %v8418_v58  ;;  %v7671_v46 = vld [vmem:[#allocation2 + $0x84] sm:$0xf]  ;;  %v8427_v58 = vrot.slane %v7670_v32, 5 }
 0x58d   : > { %v7908_v10 = vrot.slane %v7906_v34, 4 }
 0x58e   : > { %11814 = vmatmul.msk.bf16.gmra.mxu3 %vm6610_vm3, %v8512_v52  ;;  %v7911_v52 = vrot.slane %v7909_v56, 5  ;;  %v7922_v56 = vor.u32 %v7921_v50, %v7917_v63 }
 0x590   : > { %v6744_v38 = vpop.f32.mrf.mxu1  ;;  %v7923_v53 = vrot.slane %v7922_v56, 4 }
 0x591   : > { %v6965_v43 = vadd.f32 %v6964_v21, %v6744_v38  ;;  %v7317_v49 = vpop.f32.mrf.mxu3  ;;  %v8421_v21 = vsel %vm12457_vm5, %v8419_v7, %v8420_v6  ;;  %v7925_v38 = vshll.u32 %v7670_v32, 16 }
 0x593   : > { %v16347_v30 = vadd.f32 %v7314_v27, %v6965_v43  ;;  %v8490_v27 = vunpack.c.l.b16 %v8421_v21  ;;  %v7912_v43 = vor.u32 %v7911_v52, %v7908_v10  ;;  %v7927_v39 = vrot.slane %v7925_v38, 5 }
 0x594   : > { %v8424_v10 = vrot.slane %v16338_v42, 5  ;;  %v7933_v21 = vshll.u32 %v7671_v46, 16  ;;  %v7939_v38 = vshll.u32 %v16358_v24, 16 }
 0x595   : > { %17680 = vst [vmem:[#allocation4_spill] sm:$0xff] %v16347_v30  ;;  %v12098_v30 = vld [vmem:[#allocation2 + $0x60] sm:$0xff]  ;;  %v8513_v9 = vpack.c.b16 %v8490_v27, %v8489_v20  ;;  %v7913_v7 = vrot.slane %v7912_v43, 4  ;;  %v8304_v43 = vld [vmem:[#allocation2 + $0x78] sm:$0xe] }
 0x596   : > { %v8426_v20 = vrot.slane %v8424_v10, 4 }
 0x598   : > { %v6747_v15 = vpop.f32.mrf.mxu1  ;;  %11782 = vmatmul.msk.bf16.gmra.mxu2 %vm6610_vm3, %v8115_v23 }
 0x599   : > { %v6968_v54 = vadd.f32 %v6967_v31, %v6747_v15  ;;  %v7319_v34 = vpop.f32.mrf.mxu3  ;;  %v7928_v31 = vsel %vm12463_vm6, %v7923_v53, %v7927_v39  ;;  %v7943_v15 = vshrl.u32 %v16358_v24, 16  ;;  %v7673_v39 = vld [vmem:[#allocation2 + $0x8c] sm:$0x1]  ;;  %v7935_v53 = vrot.slane %v7933_v21, 5 }
 0x59a   : > { %v8094_v27 = vunpack.c.l.b16 %v7928_v31  ;;  %v7949_v31 = vshll.u32 %v7673_v39, 16 }
 0x59b   : > { %11764 = vmatmul.msk.bf16.gmra.mxu1 %vm6610_vm3, %v12098_v30  ;;  %v16355_v6 = vadd.f32 %v7317_v49, %v6968_v54  ;;  %v8183_v60 = vpop.f32.mrf.mxu2  ;;  %v7918_v49 = vsel %vm12463_vm6, %v7913_v7, %v7917_v63  ;;  %v7930_v30 = vshrl.u32 %v7671_v46, 16  ;;  %v11799_v63 = vrot.slane %v8304_v43, 9 }
 0x59c   : > { %v8093_v42 = vunpack.c.l.b16 %v7918_v49  ;;  %v7941_v7 = vrot.slane %v7939_v38, 5  ;;  %v7945_v32 = vrot.slane %v7943_v15, 4  ;;  %v7951_v15 = vrot.slane %v7949_v31, 5 }
 0x59d   : > { %17681 = vst [vmem:[#allocation3_spill] sm:$0xff] %v16355_v6 }
 0x59e   : > { %11815 = vmatmul.msk.bf16.gmra.mxu3 %vm6610_vm3, %v8513_v9  ;;  %v7932_v9 = vrot.slane %v7930_v30, 4  ;;  %v8116_v46 = vpack.c.b16 %v8094_v27, %v8093_v42  ;;  %v12099_v30 = vld [vmem:[#allocation2 + $0x6c] sm:$0xff]  ;;  %v7946_v43 = vor.u32 %v7945_v32, %v7941_v7 }
 0x5a0   : > { %v6749_v52 = vpop.f32.mrf.mxu1 }
 0x5a1   : > { %v6970_v50 = vadd.f32 %v6969_v47, %v6749_v52  ;;  %v8581_v23 = vpop.f32.mrf.mxu3  ;;  %v8428_v47 = vsel %vm12457_vm5, %v8426_v20, %v8427_v58  ;;  %v8425_v52 = vsel %vm12457_vm5, %v11799_v63, %v8424_v10  ;;  %v6895_v10 = vadd.f32 %v15387_v19, %v15419_v17 }
 0x5a2   : > { %v7947_v63 = vrot.slane %v7946_v43, 4 }
 0x5a3   : > { %v16367_v54 = vadd.f32 %v7319_v34, %v6970_v50  ;;  %v8185_v56 = vpop.f32.mrf.mxu2  ;;  %v8492_v34 = vunpack.c.l.b16 %v8428_v47  ;;  %v7936_v50 = vor.u32 %v7935_v53, %v7932_v9  ;;  %v7674_v9 = vld [vmem:[#allocation2 + $0x90] sm:$0xf]  ;;  %v8431_v53 = vrot.slane %v16358_v24, 5 }
 0x5a4   : > { %v7954_v19 = vshrl.u32 %v7674_v9, 16  ;;  %v7957_v17 = vshll.u32 %v7674_v9, 16 }
 0x5a5   : > { %17682 = vst [vmem:[#allocation13_spill] sm:$0xff] %v16367_v54  ;;  %v8491_v54 = vunpack.c.l.b16 %v8425_v52  ;;  %v7937_v20 = vrot.slane %v7936_v50, 4  ;;  %v8434_v52 = vrot.slane %v7673_v39, 5 }
 0x5a7   : > { %v8514_v27 = vpack.c.b16 %v8492_v34, %v8491_v54  ;;  %v7942_v47 = vsel %vm12463_vm6, %v7937_v20, %v7941_v7 }
 0x5a8   : > { %v7529_v6 = vpop.f32.mrf.mxu1  ;;  %11783 = vmatmul.msk.bf16.gmra.mxu2 %vm6610_vm3, %v8116_v46  ;;  %v8305_v46 = vld [vmem:[#allocation2 + $0x84] sm:$0xe]  ;;  %v8095_v43 = vunpack.c.l.b16 %v7942_v47 }
 0x5a9   : > { %v7609_v49 = vadd.f32 %v7529_v6, %v15462_v48  ;;  %v8583_v21 = vpop.f32.mrf.mxu3  ;;  %v16381_v48 = vld [vmem:[#allocation2 + $0x94] sm:$0xf]  ;;  %v7323_v6 = vadd.f32 %v15479_v44, %v6895_v10  ;;  %v11800_v24 = vrot.slane %v8305_v46, 9 }
 0x5aa   : > { %v7963_v31 = vshll.u32 %v16381_v48, 16  ;;  %v7967_v34 = vshrl.u32 %v16381_v48, 16 }
 0x5ab   : > { %11765 = vmatmul.msk.bf16.gmra.mxu1 %vm6610_vm3, %v12099_v30  ;;  %v8263_v58 = vadd.f32 %v8183_v60, %v7609_v49  ;;  %v8188_v38 = vpop.f32.mrf.mxu2  ;;  %v7952_v60 = vsel %vm12463_vm6, %v7947_v63, %v7951_v15  ;;  %v8433_v30 = vrot.slane %v8431_v53, 4  ;;  %v7956_v15 = vrot.slane %v7954_v19, 4  ;;  %v12100_v19 = vld [vmem:[#allocation2 + $0x78] sm:$0xff] }
 0x5ac   : > { %v8096_v44 = vunpack.c.l.b16 %v7952_v60  ;;  %v7965_v10 = vrot.slane %v7963_v31, 5  ;;  %v7969_v39 = vrot.slane %v7967_v34, 4  ;;  %v8432_v9 = vsel %vm12457_vm5, %v11800_v24, %v8431_v53 }
 0x5ad   : > { %v16378_v42 = vadd.f32 %v8581_v23, %v8263_v58  ;;  %v7676_v58 = vld [vmem:[#allocation2 + $0x98] sm:$0x1]  ;;  %v8435_v20 = vsel %vm12457_vm5, %v8433_v30, %v8434_v52  ;;  %v6900_v53 = vadd.f32 %v15498_v41, %v15537_v22 }
 0x5ae   : > { %11816 = vmatmul.msk.bf16.gmra.mxu3 %vm6610_vm3, %v8514_v27  ;;  %v7959_v27 = vrot.slane %v7957_v17, 5  ;;  %v8117_v63 = vpack.c.b16 %v8096_v44, %v8095_v43  ;;  %v8494_v60 = vunpack.c.l.b16 %v8435_v20  ;;  %v7970_v17 = vor.u32 %v7969_v39, %v7965_v10  ;;  %v7677_v43 = vld [vmem:[#allocation2 + $0x9c] sm:$0xf] }
 0x5af   : > { %v7325_v24 = vadd.f32 %v15589_v12, %v6900_v53  ;;  %v7978_v41 = vshrl.u32 %v7677_v43, 16  ;;  %v7981_v22 = vshll.u32 %v7677_v43, 16 }
 0x5b0   : > { %v7531_v54 = vpop.f32.mrf.mxu1  ;;  %v7971_v30 = vrot.slane %v7970_v17, 4  ;;  %v7679_v17 = vld [vmem:[#allocation2 + $0xa4] sm:$0x1] }
 0x5b1   : > { %v7610_v23 = vadd.f32 %v7531_v54, %v7323_v6  ;;  %v8586_v32 = vpop.f32.mrf.mxu3  ;;  %v7973_v6 = vshll.u32 %v7676_v58, 16  ;;  %v7960_v54 = vor.u32 %v7959_v27, %v7956_v15  ;;  %v8438_v15 = vrot.slane %v16381_v48, 5 }
 0x5b3   : > { %v8264_v50 = vadd.f32 %v8185_v56, %v7610_v23  ;;  %v8190_v49 = vpop.f32.mrf.mxu2  ;;  %v8493_v23 = vunpack.c.l.b16 %v8432_v9  ;;  %v7975_v31 = vrot.slane %v7973_v6, 5  ;;  %v7961_v44 = vrot.slane %v7960_v54, 4 }
 0x5b4   : > { %v8441_v9 = vrot.slane %v7676_v58, 5 }
 0x5b5   : > { %v16391_v7 = vadd.f32 %v8583_v21, %v8264_v50  ;;  %v8515_v34 = vpack.c.b16 %v8494_v60, %v8493_v23  ;;  %v7966_v20 = vsel %vm12463_vm6, %v7961_v44, %v7965_v10  ;;  %v7980_v23 = vrot.slane %v7978_v41, 4 }
 0x5b8   : > { %v7534_v56 = vpop.f32.mrf.mxu1  ;;  %11784 = vmatmul.msk.bf16.gmra.mxu2 %vm6610_vm3, %v8117_v63  ;;  %v8306_v63 = vld [vmem:[#allocation2 + $0x90] sm:$0xe] }
 0x5b9   : > { %v7611_v47 = vadd.f32 %v7534_v56, %v15571_v13  ;;  %v8588_v21 = vpop.f32.mrf.mxu3  ;;  %v16405_v13 = vld [vmem:[#allocation2 + $0xa0] sm:$0xf]  ;;  %v11801_v48 = vrot.slane %v8306_v63, 9 }
 0x5ba   : > { %v7987_v6 = vshll.u32 %v16405_v13, 16  ;;  %v7991_v56 = vshrl.u32 %v16405_v13, 16 }
 0x5bb   : > { %11766 = vmatmul.msk.bf16.gmra.mxu1 %vm6610_vm3, %v12100_v19  ;;  %v8265_v46 = vadd.f32 %v8188_v38, %v7611_v47  ;;  %v8193_v52 = vpop.f32.mrf.mxu2  ;;  %v7976_v38 = vsel %vm12463_vm6, %v7971_v30, %v7975_v31  ;;  %v8440_v47 = vrot.slane %v8438_v15, 4  ;;  %v8097_v19 = vunpack.c.l.b16 %v7966_v20 }
 0x5bc   : > { %v8098_v12 = vunpack.c.l.b16 %v7976_v38  ;;  %v7993_v58 = vrot.slane %v7991_v56, 4  ;;  %v8439_v53 = vsel %vm12457_vm5, %v11801_v48, %v8438_v15  ;;  %v7997_v30 = vshll.u32 %v7679_v17, 16 }
 0x5bd   : > { %v16402_v50 = vadd.f32 %v8586_v32, %v8265_v46  ;;  %v7983_v46 = vrot.slane %v7981_v22, 5  ;;  %v8442_v31 = vsel %vm12457_vm5, %v8440_v47, %v8441_v9  ;;  %v8495_v41 = vunpack.c.l.b16 %v8439_v53 }
 0x5be   : > { %11817 = vmatmul.msk.bf16.gmra.mxu3 %vm6610_vm3, %v8515_v34  ;;  %v7989_v34 = vrot.slane %v7987_v6, 5  ;;  %v8118_v44 = vpack.c.b16 %v8098_v12, %v8097_v19  ;;  %v8496_v43 = vunpack.c.l.b16 %v8442_v31  ;;  %v7999_v63 = vrot.slane %v7997_v30, 5  ;;  %v8307_v31 = vld [vmem:[#allocation2 + $0x9c] sm:$0xe] }
 0x5bf   : > { %v6905_v15 = vadd.f32 %v15607_v14, %v15653_v3  ;;  %v8445_v19 = vrot.slane %v16405_v13, 5  ;;  %v11802_v13 = vrot.slane %v8307_v31, 9 }
 0x5c0   : > { %v7536_v27 = vpop.f32.mrf.mxu1  ;;  %v7994_v20 = vor.u32 %v7993_v58, %v7989_v34  ;;  %v8516_v9 = vpack.c.b16 %v8496_v43, %v8495_v41  ;;  %v8448_v58 = vrot.slane %v7679_v17, 5 }
 0x5c1   : > { %v7612_v32 = vadd.f32 %v7536_v27, %v7325_v24  ;;  %v8591_v39 = vpop.f32.mrf.mxu3  ;;  %v7984_v24 = vor.u32 %v7983_v46, %v7980_v23  ;;  %v12101_v27 = vld [vmem:[#allocation2 + $0x84] sm:$0xff]  ;;  %v7327_v47 = vadd.f32 %v15695_v5, %v6905_v15  ;;  %v8447_v43 = vrot.slane %v8445_v19, 4 }
 0x5c2   : > { %v7995_v12 = vrot.slane %v7994_v20, 4 }
 0x5c3   : > { %v8266_v60 = vadd.f32 %v8190_v49, %v7612_v32  ;;  %v8195_v54 = vpop.f32.mrf.mxu2  ;;  %v7985_v6 = vrot.slane %v7984_v24, 4  ;;  %v8449_v41 = vsel %vm12457_vm5, %v8447_v43, %v8448_v58 }
 0x5c4   : > { %v8498_v15 = vunpack.c.l.b16 %v8449_v41 }
 0x5c5   : > { %v16415_v10 = vadd.f32 %v8588_v21, %v8266_v60  ;;  %v7680_v60 = vld [vmem:[#allocation2 + $0xa8] sm:$0xf]  ;;  %v7990_v23 = vsel %vm12463_vm6, %v7985_v6, %v7989_v34 }
 0x5c6   : > { %v8002_v14 = vshrl.u32 %v7680_v60, 16  ;;  %v8005_v3 = vshll.u32 %v7680_v60, 16  ;;  %v8099_v24 = vunpack.c.l.b16 %v7990_v23 }
 0x5c8   : > { %v7539_v49 = vpop.f32.mrf.mxu1  ;;  %11785 = vmatmul.msk.bf16.gmra.mxu2 %vm6610_vm3, %v8118_v44  ;;  %v8007_v20 = vrot.slane %v8005_v3, 5 }
 0x5c9   : > { %v7613_v38 = vadd.f32 %v7539_v49, %v15717_v0  ;;  %v8593_v21 = vpop.f32.mrf.mxu3  ;;  %v16429_v0 = vld [vmem:[#allocation2 + $0xac] sm:$0xf] }
 0x5ca   : > { %v8011_v44 = vshll.u32 %v16429_v0, 16  ;;  %v8015_v53 = vshrl.u32 %v16429_v0, 16 }
 0x5cb   : > { %11767 = vmatmul.msk.bf16.gmra.mxu1 %vm6610_vm3, %v12101_v27  ;;  %v8267_v22 = vadd.f32 %v8193_v52, %v7613_v38  ;;  %v8198_v32 = vpop.f32.mrf.mxu2  ;;  %v8000_v52 = vsel %vm12463_vm6, %v7995_v12, %v7999_v63  ;;  %v7682_v38 = vld [vmem:[#allocation2 + $0xb0] sm:$0x1]  ;;  %v8004_v27 = vrot.slane %v8002_v14, 4 }
 0x5cc   : > { %v8100_v5 = vunpack.c.l.b16 %v8000_v52  ;;  %v8017_v17 = vrot.slane %v8015_v53, 4  ;;  %v8021_v6 = vshll.u32 %v7682_v38, 16  ;;  %v7683_v53 = vld [vmem:[#allocation2 + $0xb4] sm:$0xf] }
 0x5cd   : > { %v16426_v56 = vadd.f32 %v8591_v39, %v8267_v22  ;;  %v8013_v22 = vrot.slane %v8011_v44, 5  ;;  %v8008_v12 = vor.u32 %v8007_v20, %v8004_v27  ;;  %v8308_v27 = vld [vmem:[#allocation2 + $0xa8] sm:$0xe]  ;;  %v8455_v20 = vrot.slane %v7682_v38, 5 }
 0x5ce   : > { %11818 = vmatmul.msk.bf16.gmra.mxu3 %vm6610_vm3, %v8516_v9  ;;  %v8119_v63 = vpack.c.b16 %v8100_v5, %v8099_v24  ;;  %v8446_v9 = vsel %vm12457_vm5, %v11802_v13, %v8445_v19  ;;  %v8023_v3 = vrot.slane %v8021_v6, 5  ;;  %v6910_v19 = vadd.f32 %v15710_v18, %v15778_v33 }
 0x5cf   : > { %v8018_v52 = vor.u32 %v8017_v17, %v8013_v22  ;;  %v8009_v31 = vrot.slane %v8008_v12, 4  ;;  %v8026_v18 = vshrl.u32 %v7683_v53, 16  ;;  %v8029_v33 = vshll.u32 %v7683_v53, 16 }
 0x5d0   : > { %v7541_v48 = vpop.f32.mrf.mxu1  ;;  %v7329_v5 = vadd.f32 %v15800_v57, %v6910_v19 }
 0x5d1   : > { %v7614_v39 = vadd.f32 %v7541_v48, %v7327_v47  ;;  %v8596_v46 = vpop.f32.mrf.mxu3  ;;  %v12102_v47 = vld [vmem:[#allocation2 + $0x90] sm:$0xff]  ;;  %v8497_v48 = vunpack.c.l.b16 %v8446_v9  ;;  %v8019_v44 = vrot.slane %v8018_v52, 4  ;;  %v8014_v24 = vsel %vm12463_vm6, %v8009_v31, %v8013_v22 }
 0x5d2   : > { %v8028_v12 = vrot.slane %v8026_v18, 4 }
 0x5d3   : > { %v8268_v30 = vadd.f32 %v8195_v54, %v7614_v39  ;;  %v8200_v49 = vpop.f32.mrf.mxu2  ;;  %v8517_v39 = vpack.c.b16 %v8498_v15, %v8497_v48  ;;  %v7685_v15 = vld [vmem:[#allocation2 + $0xbc] sm:$0x1] }
 0x5d5   : > { %v16439_v34 = vadd.f32 %v8593_v21, %v8268_v30  ;;  %v8452_v30 = vrot.slane %v16429_v0, 5  ;;  %v11803_v0 = vrot.slane %v8308_v27, 9 }
 0x5d7   : > { %v8454_v6 = vrot.slane %v8452_v30, 4 }
 0x5d8   : > { %v7544_v54 = vpop.f32.mrf.mxu1  ;;  %11786 = vmatmul.msk.bf16.gmra.mxu2 %vm6610_vm3, %v8119_v63 }
 0x5d9   : > { %v7615_v60 = vadd.f32 %v7544_v54, %v15828_v62  ;;  %v8598_v21 = vpop.f32.mrf.mxu3  ;;  %v16453_v62 = vld [vmem:[#allocation2 + $0xb8] sm:$0xf]  ;;  %v8101_v54 = vunpack.c.l.b16 %v8014_v24 }
 0x5da   : > { %v8035_v41 = vshll.u32 %v16453_v62, 16  ;;  %v8039_v17 = vshrl.u32 %v16453_v62, 16 }
 0x5db   : > { %11768 = vmatmul.msk.bf16.gmra.mxu1 %vm6610_vm3, %v12102_v47  ;;  %v8269_v23 = vadd.f32 %v8198_v32, %v7615_v60  ;;  %v8203_v14 = vpop.f32.mrf.mxu2  ;;  %v8024_v32 = vsel %vm12463_vm6, %v8019_v44, %v8023_v3  ;;  %v8031_v60 = vrot.slane %v8029_v33, 5  ;;  %v8456_v47 = vsel %vm12457_vm5, %v8454_v6, %v8455_v20  ;;  %v12103_v44 = vld [vmem:[#allocation2 + $0x9c] sm:$0xff]  ;;  %v16476_v20 = vld [vmem:[#allocation2 + $0xc4] sm:$0xf] }
 0x5dc   : > { %v8102_v57 = vunpack.c.l.b16 %v8024_v32  ;;  %v8037_v52 = vrot.slane %v8035_v41, 5  ;;  %v8041_v38 = vrot.slane %v8039_v17, 4  ;;  %v8045_v3 = vshll.u32 %v7685_v15, 16  ;;  %v7686_v41 = vld [vmem:[#allocation2 + $0xc0] sm:$0xf]  ;;  %v17683_v17 = vld [vmem:[#allocation27_spill] sm:$0xff] }
 0x5dd   : > { %v16450_v58 = vadd.f32 %v8596_v46, %v8269_v23  ;;  %v8453_v23 = vsel %vm12457_vm5, %v11803_v0, %v8452_v30  ;;  %v8032_v31 = vor.u32 %v8031_v60, %v8028_v12  ;;  %v6915_v30 = vadd.f32 %v15811_v25, %v15887_v51  ;;  %v8309_v0 = vld [vmem:[#allocation2 + $0xb4] sm:$0xe] }
 0x5de   : > { %11819 = vmatmul.msk.bf16.gmra.mxu3 %vm6610_vm3, %v8517_v39  ;;  %v8120_v48 = vpack.c.b16 %v8102_v57, %v8101_v54  ;;  %v8500_v39 = vunpack.c.l.b16 %v8456_v47  ;;  %v8042_v53 = vor.u32 %v8041_v38, %v8037_v52  ;;  %v8047_v24 = vrot.slane %v8045_v3, 5 }
 0x5df   : > { %v8033_v33 = vrot.slane %v8032_v31, 4  ;;  %v7331_v57 = vadd.f32 %v17683_v17, %v6915_v30  ;;  %v8462_v25 = vrot.slane %v7685_v15, 5  ;;  %v8059_v51 = vshll.u32 %v16476_v20, 16  ;;  %v17684_v30 = vld [vmem:[#allocation32_spill] sm:$0xff] }
 0x5e0   : > { %v7546_v43 = vpop.f32.mrf.mxu1  ;;  %v8043_v27 = vrot.slane %v8042_v53, 4  ;;  %v8050_v12 = vshrl.u32 %v7686_v41, 16  ;;  %v8053_v60 = vshll.u32 %v7686_v41, 16  ;;  %v12104_v41 = vld [vmem:[#allocation2 + $0xa8] sm:$0xff] }
 0x5e1   : > { %v7616_v46 = vadd.f32 %v7546_v43, %v7329_v5  ;;  %v8601_v13 = vpop.f32.mrf.mxu3  ;;  %v8499_v5 = vunpack.c.l.b16 %v8453_v23  ;;  %v8038_v6 = vsel %vm12463_vm6, %v8033_v33, %v8037_v52  ;;  %v7688_v52 = vld [vmem:[#allocation2 + $0xc8] sm:$0x1]  ;;  %v8061_v15 = vrot.slane %v8059_v51, 5  ;;  %v16494_v33 = vpop.f32.mrf.mxu0  ;;  %v17685_v51 = vld [vmem:[#allocation35_spill] sm:$0xff] }
 0x5e2   : > { %v8103_v3 = vunpack.c.l.b16 %v8038_v6 }
 0x5e3   : > { %v8270_v63 = vadd.f32 %v8200_v49, %v7616_v46  ;;  %v8205_v9 = vpop.f32.mrf.mxu2  ;;  %v8518_v18 = vpack.c.b16 %v8500_v39, %v8499_v5 }
 0x5e5   : > { %v16463_v22 = vadd.f32 %v8598_v21, %v8270_v63 }
 0x5e8   : > { %v7549_v49 = vpop.f32.mrf.mxu1  ;;  %11787 = vmatmul.msk.bf16.gmra.mxu2 %vm6610_vm3, %v8120_v48 }
 0x5e9   : > { %v7617_v19 = vadd.f32 %v7549_v49, %v15904_v61  ;;  %v8603_v21 = vpop.f32.mrf.mxu3  ;;  %v8459_v61 = vrot.slane %v16453_v62, 5  ;;  %v8063_v62 = vshrl.u32 %v16476_v20, 16  ;;  %v11804_v49 = vrot.slane %v8309_v0, 9 }
 0x5eb   : > { %11769 = vmatmul.msk.bf16.gmra.mxu1 %vm6610_vm3, %v12103_v44  ;;  %v8271_v32 = vadd.f32 %v8203_v14, %v7617_v19  ;;  %v8208_v43 = vpop.f32.mrf.mxu2  ;;  %v8048_v14 = vsel %vm12463_vm6, %v8043_v27, %v8047_v24  ;;  %v8461_v38 = vrot.slane %v8459_v61, 4  ;;  %v8052_v19 = vrot.slane %v8050_v12, 4 }
 0x5ec   : > { %v8104_v47 = vunpack.c.l.b16 %v8048_v14  ;;  %v8055_v44 = vrot.slane %v8053_v60, 5  ;;  %v8065_v53 = vrot.slane %v8063_v62, 4  ;;  %v8069_v24 = vshll.u32 %v7688_v52, 16 }
 0x5ed   : > { %v16474_v46 = vadd.f32 %v8601_v13, %v8271_v32  ;;  %v8463_v39 = vsel %vm12457_vm5, %v8461_v38, %v8462_v25  ;;  %v8460_v32 = vsel %vm12457_vm5, %v11804_v49, %v8459_v61  ;;  %v17687_v38 = vld [vmem:[#allocation31_spill] sm:$0xff]  ;;  %v8469_v49 = vrot.slane %v7688_v52, 5 }
 0x5ee   : > { %11820 = vmatmul.msk.bf16.gmra.mxu3 %vm6610_vm3, %v8518_v18  ;;  %v8121_v5 = vpack.c.b16 %v8104_v47, %v8103_v3  ;;  %v8501_v14 = vunpack.c.l.b16 %v8460_v32  ;;  %v8071_v25 = vrot.slane %v8069_v24, 5  ;;  %v8466_v47 = vrot.slane %v16476_v20, 5  ;;  %v16509_v24 = vpop.f32.mrf.mxu0 }
 0x5f0   : > { %v7551_v63 = vpop.f32.mrf.mxu1  ;;  %v8468_v32 = vrot.slane %v8466_v47, 4 }
 0x5f1   : > { %v7618_v13 = vadd.f32 %v7551_v63, %v7331_v57  ;;  %v8606_v54 = vpop.f32.mrf.mxu3  ;;  %v8066_v57 = vor.u32 %v8065_v53, %v8061_v15  ;;  %v12122_v53 = vld [vmem:[#allocation2 + $0xcc] sm:$0xff] }
 0x5f2   : > { %11903 = vmatmul.msk.bf16.gmra.mxu0 %vm6610_vm3, %v12122_v53  ;;  %v8470_v52 = vsel %vm12457_vm5, %v8468_v32, %v8469_v49 }
 0x5f3   : > { %v8272_v48 = vadd.f32 %v8205_v9, %v7618_v13  ;;  %v8210_v23 = vpop.f32.mrf.mxu2  ;;  %v8502_v9 = vunpack.c.l.b16 %v8463_v39  ;;  %v17686_v13 = vld [vmem:[#allocation28_spill] sm:$0xff]  ;;  %v8067_v62 = vrot.slane %v8066_v57, 4 }
 0x5f4   : > { %v6920_v0 = vadd.f32 %v17686_v13, %v17685_v51  ;;  %v11954_v13 = vld [vmem:[%s12441_s12 + $0x18] sm:$0xf] }
 0x5f5   : > { %v16489_v31 = vadd.f32 %v8603_v21, %v8272_v48  ;;  %v8056_v21 = vor.u32 %v8055_v44, %v8052_v19  ;;  %v8519_v61 = vpack.c.b16 %v8502_v9, %v8501_v14  ;;  %v8072_v3 = vsel %vm12463_vm6, %v8067_v62, %v8071_v25  ;;  %v12105_v14 = vld [vmem:[#allocation2 + $0xb4] sm:$0xff] }
 0x5f6   : > { %v7333_v48 = vadd.f32 %v17687_v38, %v6920_v0  ;;  %v11955_v0 = vld [vmem:[%s12441_s12 + $0x1c] sm:$0xf]  ;;  %v10117_v62 = vshrl.u32 %v11954_v13, 16  ;;  %v10120_v38 = vshll.u32 %v11954_v13, 16 }
 0x5f7   : > { %v8057_v60 = vrot.slane %v8056_v21, 4 }
 0x5f8   : > { %v7554_v18 = vpop.f32.mrf.mxu1  ;;  %11788 = vmatmul.msk.bf16.gmra.mxu2 %vm6610_vm3, %v8121_v5  ;;  %v8106_v5 = vunpack.c.l.b16 %v8072_v3  ;;  %v10122_v53 = vrot.slane %v10120_v38, 5 }
 0x5f9   : > { %v7619_v27 = vadd.f32 %v7554_v18, %v17684_v30  ;;  %v8608_v17 = vpop.f32.mrf.mxu3  ;;  %v8062_v19 = vsel %vm12463_vm6, %v8057_v60, %v8061_v15  ;;  %v11956_v60 = vld [vmem:[%s12441_s12 + $0x20] sm:$0x1] }
 0x5fa   : > { %v8105_v9 = vunpack.c.l.b16 %v8062_v19  ;;  %v10136_v19 = vshll.u32 %v11956_v60, 16 }
 0x5fb   : > { %11770 = vmatmul.msk.bf16.gmra.mxu1 %vm6610_vm3, %v12104_v41  ;;  %v8273_v63 = vadd.f32 %v8208_v43, %v7619_v27  ;;  %v8213_v6 = vpop.f32.mrf.mxu2  ;;  %v16516_v27 = vld [vmem:[#allocation2 + $0x1c] sm:$0xf] }
 0x5fc   : > { %v8122_v41 = vpack.c.b16 %v8106_v5, %v8105_v9  ;;  %v9700_v25 = vrot.slane %v16516_v27, 5 }
 0x5fd   : > { %v16500_v12 = vadd.f32 %v8606_v54, %v8273_v63  ;;  %v8310_v54 = vld [vmem:[#allocation2 + $0xc0] sm:$0xe]  ;;  %v16521_v63 = vld [vmem:[#allocation2 + $0x20] sm:$0x1] }
 0x5fe   : > { %11821 = vmatmul.msk.bf16.gmra.mxu3 %vm6610_vm3, %v8519_v61  ;;  %v11805_v30 = vrot.slane %v8310_v54, 9  ;;  %v9634_v54 = vld [vmem:[#allocation2 + $0x18] sm:$0xe] }
 0x600   : > { %v7556_v43 = vpop.f32.mrf.mxu1  ;;  %v8467_v21 = vsel %vm12457_vm5, %v11805_v30, %v8466_v47  ;;  %v10130_v47 = vshrl.u32 %v11955_v0, 16 }
 0x601   : > { %v7620_v39 = vadd.f32 %v7556_v43, %v7333_v48  ;;  %v8611_v44 = vpop.f32.mrf.mxu3  ;;  %v10126_v48 = vshll.u32 %v11955_v0, 16 }
 0x602   : > { %v10132_v32 = vrot.slane %v10130_v47, 4 }
 0x603   : > { %v8274_v18 = vadd.f32 %v8210_v23, %v7620_v39  ;;  %v8215_v20 = vpop.f32.mrf.mxu2  ;;  %v8504_v23 = vunpack.c.l.b16 %v8470_v52  ;;  %v9703_v39 = vrot.slane %v16521_v63, 5  ;;  %v10128_v5 = vrot.slane %v10126_v48, 5 }
 0x604   : > { %v9702_v52 = vrot.slane %v9700_v25, 4 }
 0x605   : > { %v16514_v15 = vadd.f32 %v8608_v17, %v8274_v18  ;;  %v8503_v17 = vunpack.c.l.b16 %v8467_v21  ;;  %v17688_v18 = vld [vmem:[#allocation34_spill] sm:$0xff]  ;;  %v10133_v21 = vor.u32 %v10132_v32, %v10128_v5 }
 0x606   : > { %v6925_v9 = vadd.f32 %v17688_v18, %v16053_v35 }
 0x607   : > { %v8520_v49 = vpack.c.b16 %v8504_v23, %v8503_v17  ;;  %v10138_v23 = vrot.slane %v10136_v19, 5  ;;  %v10134_v0 = vrot.slane %v10133_v21, 4  ;;  %v9042_v19 = vshrl.u32 %v16516_v27, 16 }
 0x608   : > { %v7559_v57 = vpop.f32.mrf.mxu1  ;;  %11789 = vmatmul.msk.bf16.gmra.mxu2 %vm6610_vm3, %v8122_v41  ;;  %v8980_v41 = vld [vmem:[#allocation2 + $0x18] sm:$0xf] }
 0x609   : > { %v7621_v61 = vadd.f32 %v7559_v57, %v16070_v8  ;;  %v8613_v51 = vpop.f32.mrf.mxu3  ;;  %v10119_v8 = vrot.slane %v10117_v62, 4  ;;  %v7335_v57 = vadd.f32 %v16060_v2, %v6925_v9  ;;  %v9029_v60 = vshrl.u32 %v8980_v41, 16 }
 0x60a   : > { %v9032_v38 = vshll.u32 %v8980_v41, 16  ;;  %v10139_v2 = vsel %vm12463_vm6, %v10134_v0, %v10138_v23  ;;  %v11959_v0 = vld [vmem:[%s12441_s12 + $0x2c] sm:$0x1] }
 0x60b   : > { %11771 = vmatmul.msk.bf16.gmra.mxu1 %vm6610_vm3, %v12105_v14  ;;  %v8275_v3 = vadd.f32 %v8213_v6, %v7621_v61  ;;  %v16529_v43 = vpop.f32.mrf.mxu2  ;;  %v10123_v6 = vor.u32 %v10122_v53, %v10119_v8  ;;  %v11921_v14 = vrot.slane %v9634_v54, 9  ;;  %v9704_v61 = vsel %vm12457_vm5, %v9702_v52, %v9703_v39 }
 0x60c   : > { %v9813_v48 = vunpack.c.l.b16 %v9704_v61  ;;  %v9038_v39 = vshll.u32 %v16516_v27, 16  ;;  %v9031_v8 = vrot.slane %v9029_v60, 4  ;;  %v10506_v32 = vunpack.c.l.b16 %v10139_v2 }
 0x60d   : > { %v16534_v30 = vadd.f32 %v8611_v44, %v8275_v3  ;;  %v10124_v13 = vrot.slane %v10123_v6, 4  ;;  %v9701_v62 = vsel %vm12457_vm5, %v11921_v14, %v9700_v25  ;;  %v9034_v18 = vrot.slane %v9032_v38, 5  ;;  %v12106_v6 = vld [vmem:[#allocation2 + $0xc0] sm:$0xff] }
 0x60e   : > { %11822 = vmatmul.msk.bf16.gmra.mxu3 %vm6610_vm3, %v8520_v49  ;;  %v9812_v54 = vunpack.c.l.b16 %v9701_v62  ;;  %v9044_v52 = vrot.slane %v9042_v19, 4  ;;  %v9048_v27 = vshll.u32 %v16521_v63, 16  ;;  %v10160_v2 = vshll.u32 %v11959_v0, 16 }
 0x60f   : > { %v10129_v47 = vsel %vm12463_vm6, %v10124_v13, %v10128_v5  ;;  %v16552_v5 = vld [vmem:[#allocation2 + $0x28] sm:$0xf]  ;;  %v9035_v61 = vor.u32 %v9034_v18, %v9031_v8 }
 0x610   : > { %v7561_v17 = vpop.f32.mrf.mxu1  ;;  %v10505_v25 = vunpack.c.l.b16 %v10129_v47  ;;  %v9844_v9 = vpack.c.b16 %v9813_v48, %v9812_v54  ;;  %v9707_v21 = vrot.slane %v16552_v5, 5  ;;  %v11958_v13 = vld [vmem:[%s12441_s12 + $0x28] sm:$0xf]  ;;  %v9050_v18 = vrot.slane %v9048_v27, 5 }
 0x611   : > { %v7622_v35 = vadd.f32 %v7561_v17, %v7335_v57  ;;  %v8616_v44 = vpop.f32.mrf.mxu3  ;;  %v11957_v17 = vld [vmem:[%s12441_s12 + $0x24] sm:$0xf]  ;;  %v10150_v62 = vshll.u32 %v11958_v13, 16  ;;  %v10154_v38 = vshrl.u32 %v11958_v13, 16 }
 0x612   : > { %v10537_v14 = vpack.c.b16 %v10506_v32, %v10505_v25  ;;  %v10141_v60 = vshrl.u32 %v11957_v17, 16  ;;  %v6930_v25 = vadd.f32 %v16072_v45, %v16094_v11 }
 0x613   : > { %v8276_v3 = vadd.f32 %v8215_v20, %v7622_v35  ;;  %v16546_v49 = vpop.f32.mrf.mxu2  ;;  %v16554_v20 = vrot.slane %v9038_v39, 5  ;;  %v10144_v35 = vshll.u32 %v11957_v17, 16  ;;  %v10152_v54 = vrot.slane %v10150_v62, 5 }
 0x614   : > { %v10143_v39 = vrot.slane %v10141_v60, 4  ;;  %v10156_v8 = vrot.slane %v10154_v38, 4 }
 0x615   : > { %v16550_v53 = vadd.f32 %v8613_v51, %v8276_v3  ;;  %v16558_v51 = vld [vmem:[#allocation2 + $0x2c] sm:$0x1]  ;;  %v9045_v47 = vor.u32 %v9044_v52, %v16554_v20  ;;  %v9635_v3 = vld [vmem:[#allocation2 + $0x24] sm:$0xe]  ;;  %v10146_v19 = vrot.slane %v10144_v35, 5  ;;  %v9036_v35 = vrot.slane %v9035_v61, 4 }
 0x616   : > { %v10157_v52 = vor.u32 %v10156_v8, %v10152_v54  ;;  %v11922_v13 = vrot.slane %v9635_v3, 9  ;;  %v9062_v3 = vshll.u32 %v16552_v5, 16 }
 0x617   : > { %v9046_v17 = vrot.slane %v9045_v47, 4 }
 0x618   : > { %v7564_v41 = vpop.f32.mrf.mxu1  ;;  %11938 = vmatmul.msk.bf16.vlgmr.msra.gmra.mxu2 %vm6610_vm3, %v9844_v9  ;;  %v9709_v9 = vrot.slane %v9707_v21, 4  ;;  %v10158_v11 = vrot.slane %v10157_v52, 4  ;;  %v9708_v38 = vsel %vm12457_vm5, %v11922_v13, %v9707_v21  ;;  %v9041_v21 = vsel %vm12463_vm6, %v9036_v35, %v16554_v20 }
 0x619   : > { %v7623_v23 = vadd.f32 %v7564_v41, %v16098_v4  ;;  %v8618_v57 = vpop.f32.mrf.mxu3  ;;  %v9710_v4 = vrot.slane %v16558_v51, 5  ;;  %v10147_v41 = vor.u32 %v10146_v19, %v10143_v39  ;;  %v9051_v62 = vsel %vm12463_vm6, %v9046_v17, %v9050_v18 }
 0x61a   : > { %v9066_v39 = vshrl.u32 %v16552_v5, 16  ;;  %v9415_v19 = vunpack.c.l.b16 %v9051_v62  ;;  %v9814_v8 = vunpack.c.l.b16 %v9708_v38  ;;  %v9414_v52 = vunpack.c.l.b16 %v9041_v21 }
 0x61b   : > { %11772 = vmatmul.msk.bf16.gmra.mxu1 %vm6610_vm3, %v12106_v6  ;;  %v8277_v63 = vadd.f32 %v16529_v43, %v7623_v23  ;;  %v16567_v48 = vpop.f32.mrf.mxu2  ;;  %v8983_v43 = vld [vmem:[#allocation2 + $0x24] sm:$0xf]  ;;  %v10162_v6 = vrot.slane %v10160_v2, 5  ;;  %v7337_v23 = vadd.f32 %v16112_v40, %v6930_v25  ;;  %v9711_v0 = vsel %vm12457_vm5, %v9709_v9, %v9710_v4 }
 0x61c   : > { %v10148_v45 = vrot.slane %v10147_v41, 4  ;;  %v9815_v40 = vunpack.c.l.b16 %v9711_v0  ;;  %v16599_v5 = vrot.slane %v9062_v3, 5  ;;  %v9072_v20 = vshll.u32 %v16558_v51, 16  ;;  %v9636_v3 = vld [vmem:[#allocation2 + $0x30] sm:$0xe] }
 0x61d   : > { %v16573_v32 = vadd.f32 %v8616_v44, %v8277_v63  ;;  %v9053_v44 = vshrl.u32 %v8983_v43, 16  ;;  %v9056_v63 = vshll.u32 %v8983_v43, 16  ;;  %v10163_v4 = vsel %vm12463_vm6, %v10158_v11, %v10162_v6  ;;  %v11960_v11 = vld [vmem:[%s12441_s12 + $0x30] sm:$0xf] }
 0x61e   : > { %12002 = vmatmul.msk.bf16.vlgmr.msra.gmra.mxu3 %vm17689_vm14, %v10537_v14  ;;  %v10153_v47 = vsel %vm12463_vm6, %v10148_v45, %v10152_v54  ;;  %v10508_v9 = vunpack.c.l.b16 %v10163_v4  ;;  %v9845_v41 = vpack.c.b16 %v9815_v40, %v9814_v8  ;;  %v9068_v6 = vrot.slane %v9066_v39, 4  ;;  %vm17735_vm14 = vmmov %vm17697_vm0 }
 0x61f   : > { %v9055_v25 = vrot.slane %v9053_v44, 4  ;;  %v10507_v54 = vunpack.c.l.b16 %v10153_v47  ;;  %v9058_v43 = vrot.slane %v9056_v63, 5  ;;  %v9446_v0 = vpack.c.b16 %v9415_v19, %v9414_v52  ;;  %v11961_v44 = vld [vmem:[%s12441_s12 + $0x34] sm:$0xf] }
 0x620   : > { %v7566_v60 = vpop.f32.mrf.mxu1  ;;  %v10165_v62 = vshrl.u32 %v11960_v11, 16  ;;  %v10168_v38 = vshll.u32 %v11960_v11, 16  ;;  %v10174_v63 = vshll.u32 %v11961_v44, 16  ;;  %v10178_v40 = vshrl.u32 %v11961_v44, 16 }
 0x621   : > { %v7624_v27 = vadd.f32 %v7566_v60, %v7337_v23  ;;  %v8621_v14 = vpop.f32.mrf.mxu3  ;;  %v10538_v35 = vpack.c.b16 %v10508_v9, %v10507_v54  ;;  %v9059_v45 = vor.u32 %v9058_v43, %v9055_v25  ;;  %v9069_v4 = vor.u32 %v9068_v6, %v16599_v5 }
 0x622   : > { %v10167_v39 = vrot.slane %v10165_v62, 4  ;;  %v10170_v21 = vrot.slane %v10168_v38, 5  ;;  %v10176_v19 = vrot.slane %v10174_v63, 5  ;;  %v10180_v8 = vrot.slane %v10178_v40, 4 }
 0x623   : > { %v8278_v61 = vadd.f32 %v16546_v49, %v7624_v27  ;;  %v16588_v2 = vpop.f32.mrf.mxu2  ;;  %v16597_v49 = vld [vmem:[#allocation2 + $0x34] sm:$0xf]  ;;  %v11962_v27 = vld [vmem:[%s12441_s12 + $0x38] sm:$0x1]  ;;  %v6935_v25 = vadd.f32 %v16121_v1, %v16165_v28  ;;  %v9074_v9 = vrot.slane %v9072_v20, 5 }
 0x624   : > { %v9714_v17 = vrot.slane %v16597_v49, 5  ;;  %v10181_v52 = vor.u32 %v10180_v8, %v10176_v19 }
 0x625   : > { %v16595_v18 = vadd.f32 %v8618_v57, %v8278_v61  ;;  %v16603_v57 = vld [vmem:[#allocation2 + $0x38] sm:$0x1]  ;;  %v10184_v61 = vshll.u32 %v11962_v27, 16  ;;  %v9060_v27 = vrot.slane %v9059_v45, 4 }
 0x626   : > { %v9716_v43 = vrot.slane %v9714_v17, 4  ;;  %v10182_v28 = vrot.slane %v10181_v52, 4 }
 0x627   : > { %v10186_v6 = vrot.slane %v10184_v61, 5  ;;  %v9090_v61 = vshrl.u32 %v16597_v49, 16 }
 0x628   : > { %v7569_v23 = vpop.f32.mrf.mxu1  ;;  %11939 = vmatmul.msk.bf16.gmra.mxu2 %vm6610_vm3, %v9845_v41  ;;  %v10171_v41 = vor.u32 %v10170_v21, %v10167_v39 }
 0x629   : > { %v7625_v13 = vadd.f32 %v7569_v23, %v16155_v16  ;;  %v8623_v60 = vpop.f32.mrf.mxu3  ;;  %v9717_v16 = vrot.slane %v16603_v57, 5  ;;  %v7339_v23 = vadd.f32 %v16168_v36, %v6935_v25 }
 0x62a   : > { %v10172_v1 = vrot.slane %v10171_v41, 4  ;;  %v9092_v41 = vrot.slane %v9090_v61, 4 }
 0x62b   : > { %11905 = vmatmul.msk.bf16.vlgmr.msra.gmra.mxu1 %vm6610_vm3, %v9446_v0  ;;  %v8279_v51 = vadd.f32 %v16567_v48, %v7625_v13  ;;  %v16612_v47 = vpop.f32.mrf.mxu2  ;;  %v8986_v48 = vld [vmem:[#allocation2 + $0x30] sm:$0xf]  ;;  %v9070_v13 = vrot.slane %v9069_v4, 4  ;;  %v11923_v0 = vrot.slane %v9636_v3, 9  ;;  %v9718_v11 = vsel %vm12457_vm5, %v9716_v43, %v9717_v16 }
 0x62c   : > { %v9080_v63 = vshll.u32 %v8986_v48, 16  ;;  %v9817_v36 = vunpack.c.l.b16 %v9718_v11  ;;  %v10177_v40 = vsel %vm12463_vm6, %v10172_v1, %v10176_v19  ;;  %v9086_v16 = vshll.u32 %v16597_v49, 16  ;;  %v11964_v1 = vld [vmem:[%s12441_s12 + $0x40] sm:$0xf] }
 0x62d   : > { %v16618_v54 = vadd.f32 %v8621_v14, %v8279_v51  ;;  %v9077_v14 = vshrl.u32 %v8986_v48, 16  ;;  %v9075_v62 = vsel %vm12463_vm6, %v9070_v13, %v9074_v9  ;;  %v9715_v38 = vsel %vm12457_vm5, %v11923_v0, %v9714_v17 }
 0x62e   : > { %12003 = vmatmul.msk.bf16.gmra.mxu3 %vm17690_vm9, %v10538_v35  ;;  %v10187_v51 = vsel %vm12463_vm6, %v10182_v28, %v10186_v6  ;;  %v9065_v17 = vsel %vm12463_vm6, %v9060_v27, %v16599_v5  ;;  %v9417_v3 = vunpack.c.l.b16 %v9075_v62  ;;  %v9816_v39 = vunpack.c.l.b16 %v9715_v38  ;;  %v11963_v27 = vld [vmem:[%s12441_s12 + $0x3c] sm:$0xf]  ;;  %v11965_v28 = vld [vmem:[%s12441_s12 + $0x44] sm:$0x1]  ;;  %vm17737_vm9 = vmmov %vm17697_vm0 }
 0x62f   : > { %v9079_v21 = vrot.slane %v9077_v14, 4  ;;  %v10509_v19 = vunpack.c.l.b16 %v10177_v40  ;;  %v10510_v25 = vunpack.c.l.b16 %v10187_v51  ;;  %v9082_v9 = vrot.slane %v9080_v63, 5  ;;  %v9637_v51 = vld [vmem:[#allocation2 + $0x3c] sm:$0xe] }
 0x630   : > { %v7571_v44 = vpop.f32.mrf.mxu1  ;;  %v9846_v43 = vpack.c.b16 %v9817_v36, %v9816_v39  ;;  %v9416_v48 = vunpack.c.l.b16 %v9065_v17  ;;  %v16644_v49 = vrot.slane %v9086_v16, 5  ;;  %v9096_v5 = vshll.u32 %v16603_v57, 16 }
 0x631   : > { %v7626_v20 = vadd.f32 %v7571_v44, %v7339_v23  ;;  %v8626_v35 = vpop.f32.mrf.mxu3  ;;  %v10539_v11 = vpack.c.b16 %v10510_v25, %v10509_v19  ;;  %v9083_v44 = vor.u32 %v9082_v9, %v9079_v21  ;;  %v10189_v14 = vshrl.u32 %v11963_v27, 16 }
 0x632   : > { %v9447_v13 = vpack.c.b16 %v9417_v3, %v9416_v48  ;;  %v10198_v62 = vshll.u32 %v11964_v1, 16  ;;  %v10202_v38 = vshrl.u32 %v11964_v1, 16  ;;  %v9093_v36 = vor.u32 %v9092_v41, %v16644_v49  ;;  %v17691_v3 = vld [vmem:[#allocation36_spill] sm:$0xff]  ;;  %v17693_v41 = vld [vmem:[#allocation38_spill] sm:$0xff] }
 0x633   : > { %v8280_v45 = vadd.f32 %v16588_v2, %v7626_v20  ;;  %v16633_v4 = vpop.f32.mrf.mxu2  ;;  %v16642_v2 = vld [vmem:[#allocation2 + $0x40] sm:$0xf]  ;;  %v10192_v20 = vshll.u32 %v11963_v27, 16  ;;  %v10208_v40 = vshll.u32 %v11965_v28, 16  ;;  %v6940_v39 = vadd.f32 %v17691_v3, %v16198_v59 }
 0x634   : > { %v9721_v6 = vrot.slane %v16642_v2, 5  ;;  %v10200_v61 = vrot.slane %v10198_v62, 5  ;;  %v10204_v17 = vrot.slane %v10202_v38, 4  ;;  %v9098_v19 = vrot.slane %v9096_v5, 5 }
 0x635   : > { %v16640_v8 = vadd.f32 %v8623_v60, %v8280_v45  ;;  %v16648_v60 = vld [vmem:[#allocation2 + $0x44] sm:$0x1]  ;;  %v10191_v45 = vrot.slane %v10189_v14, 4  ;;  %v10194_v16 = vrot.slane %v10192_v20, 5  ;;  %v10210_v48 = vrot.slane %v10208_v40, 5 }
 0x636   : > { %v9723_v25 = vrot.slane %v9721_v6, 4  ;;  %v9084_v28 = vrot.slane %v9083_v44, 4 }
 0x637   : > { %v10195_v9 = vor.u32 %v10194_v16, %v10191_v45  ;;  %v9114_v45 = vshrl.u32 %v16642_v2, 16 }
 0x638   : > { %v7574_v52 = vpop.f32.mrf.mxu1  ;;  %11940 = vmatmul.msk.bf16.gmra.mxu2 %vm6610_vm3, %v9846_v43  ;;  %v10205_v43 = vor.u32 %v10204_v17, %v10200_v61 }
 0x639   : > { %v7627_v23 = vadd.f32 %v7574_v52, %v16186_v55  ;;  %v8628_v0 = vpop.f32.mrf.mxu3  ;;  %v9724_v55 = vrot.slane %v16648_v60, 5  ;;  %v7341_v52 = vadd.f32 %v17693_v41, %v6940_v39  ;;  %v10196_v59 = vrot.slane %v10195_v9, 4 }
 0x63b   : > { %11906 = vmatmul.msk.bf16.gmra.mxu1 %vm6610_vm3, %v9447_v13  ;;  %v8281_v57 = vadd.f32 %v16612_v47, %v7627_v23  ;;  %v16657_v63 = vpop.f32.mrf.mxu2  ;;  %v8989_v47 = vld [vmem:[#allocation2 + $0x3c] sm:$0xf]  ;;  %v9094_v23 = vrot.slane %v9093_v36, 4  ;;  %v11924_v13 = vrot.slane %v9637_v51, 9  ;;  %v9725_v27 = vsel %vm12457_vm5, %v9723_v25, %v9724_v55 }
 0x63c   : > { %v9101_v14 = vshrl.u32 %v8989_v47, 16  ;;  %v9104_v38 = vshll.u32 %v8989_v47, 16  ;;  %v10201_v36 = vsel %vm12463_vm6, %v10196_v59, %v10200_v61  ;;  %v9110_v51 = vshll.u32 %v16642_v2, 16  ;;  %v11966_v59 = vld [vmem:[%s12441_s12 + $0x48] sm:$0xf] }
 0x63d   : > { %v16663_v21 = vadd.f32 %v8626_v35, %v8281_v57  ;;  %v10206_v35 = vrot.slane %v10205_v43, 4  ;;  %v9099_v20 = vsel %vm12463_vm6, %v9094_v23, %v9098_v19  ;;  %v9722_v62 = vsel %vm12457_vm5, %v11924_v13, %v9721_v6 }
 0x63e   : > { %12004 = vmatmul.msk.bf16.gmra.mxu3 %vm17692_vm8, %v10539_v11  ;;  %v9819_v57 = vunpack.c.l.b16 %v9725_v27  ;;  %v9089_v6 = vsel %vm12463_vm6, %v9084_v28, %v16644_v49  ;;  %v9419_v16 = vunpack.c.l.b16 %v9099_v20  ;;  %v9818_v17 = vunpack.c.l.b16 %v9722_v62 }
 0x63f   : > { %v10211_v55 = vsel %vm12463_vm6, %v10206_v35, %v10210_v48  ;;  %v9103_v3 = vrot.slane %v9101_v14, 4  ;;  %v10511_v61 = vunpack.c.l.b16 %v10201_v36  ;;  %v9106_v25 = vrot.slane %v9104_v38, 5  ;;  %v11967_v35 = vld [vmem:[%s12441_s12 + $0x4c] sm:$0xf]  ;;  %v11968_v14 = vld [vmem:[%s12441_s12 + $0x50] sm:$0x1] }
 0x640   : > { %v7576_v1 = vpop.f32.mrf.mxu1  ;;  %v10512_v19 = vunpack.c.l.b16 %v10211_v55  ;;  %v9847_v47 = vpack.c.b16 %v9819_v57, %v9818_v17  ;;  %v9418_v9 = vunpack.c.l.b16 %v9089_v6  ;;  %v16689_v2 = vrot.slane %v9110_v51, 5  ;;  %v9638_v51 = vld [vmem:[#allocation2 + $0x48] sm:$0xe] }
 0x641   : > { %v7628_v5 = vadd.f32 %v7576_v1, %v7341_v52  ;;  %v8631_v11 = vpop.f32.mrf.mxu3  ;;  %v9116_v43 = vrot.slane %v9114_v45, 4  ;;  %v9120_v49 = vshll.u32 %v16648_v60, 16  ;;  %v17694_v52 = vld [vmem:[#allocation42_spill] sm:$0xff]  ;;  %v9107_v28 = vor.u32 %v9106_v25, %v9103_v3  ;;  %v17695_v3 = vld [vmem:[#allocation47_spill] sm:$0xff] }
 0x642   : > { %v9448_v13 = vpack.c.b16 %v9419_v16, %v9418_v9  ;;  %v10540_v1 = vpack.c.b16 %v10512_v19, %v10511_v61  ;;  %v10216_v20 = vshll.u32 %v11966_v59, 16  ;;  %v10222_v62 = vshll.u32 %v11967_v35, 16  ;;  %v17696_v61 = vld [vmem:[#allocation44_spill] sm:$0xff] }
 0x643   : > { %v8282_v44 = vadd.f32 %v16633_v4, %v7628_v5  ;;  %v16678_v40 = vpop.f32.mrf.mxu2  ;;  %v16687_v4 = vld [vmem:[#allocation2 + $0x4c] sm:$0xf]  ;;  %v10213_v5 = vshrl.u32 %v11966_v59, 16  ;;  %v10226_v38 = vshrl.u32 %v11967_v35, 16  ;;  %v9117_v36 = vor.u32 %v9116_v43, %v16689_v2 }
 0x644   : > { %v9728_v41 = vrot.slane %v16687_v4, 5  ;;  %v10218_v6 = vrot.slane %v10216_v20, 5  ;;  %v10224_v16 = vrot.slane %v10222_v62, 5  ;;  %v6945_v19 = vadd.f32 %v17696_v61, %v17695_v3 }
 0x645   : > { %v16685_v39 = vadd.f32 %v8628_v0, %v8282_v44  ;;  %v16693_v0 = vld [vmem:[#allocation2 + $0x50] sm:$0x1]  ;;  %v10232_v44 = vshll.u32 %v11968_v14, 16  ;;  %v10215_v45 = vrot.slane %v10213_v5, 4  ;;  %v10228_v17 = vrot.slane %v10226_v38, 4 }
 0x646   : > { %v9731_v55 = vrot.slane %v16693_v0, 5  ;;  %v9730_v9 = vrot.slane %v9728_v41, 4  ;;  %v9118_v59 = vrot.slane %v9117_v36, 4  ;;  %v11925_v35 = vrot.slane %v9638_v51, 9 }
 0x647   : > { %v10229_v43 = vor.u32 %v10228_v17, %v10224_v16  ;;  %v9108_v20 = vrot.slane %v9107_v28, 4  ;;  %v9134_v17 = vshll.u32 %v16687_v4, 16  ;;  %v9138_v3 = vshrl.u32 %v16687_v4, 16 }
 0x648   : > { %v7579_v48 = vpop.f32.mrf.mxu1  ;;  %11941 = vmatmul.msk.bf16.gmra.mxu2 %vm6610_vm3, %v9847_v47  ;;  %v9122_v47 = vrot.slane %v9120_v49, 5  ;;  %v9732_v14 = vsel %vm12457_vm5, %v9730_v9, %v9731_v55 }
 0x649   : > { %v7629_v23 = vadd.f32 %v7579_v48, %v17694_v52  ;;  %v8633_v27 = vpop.f32.mrf.mxu3  ;;  %v10219_v48 = vor.u32 %v10218_v6, %v10215_v45  ;;  %v10234_v52 = vrot.slane %v10232_v44, 5  ;;  %v9729_v44 = vsel %vm12457_vm5, %v11925_v35, %v9728_v41  ;;  %v17700_v35 = vld [vmem:[#allocation46_spill] sm:$0xff] }
 0x64a   : > { %v9821_v6 = vunpack.c.l.b16 %v9732_v14  ;;  %v9113_v41 = vsel %vm12463_vm6, %v9108_v20, %v16689_v2  ;;  %v16734_v4 = vrot.slane %v9134_v17, 5  ;;  %v9144_v2 = vshll.u32 %v16693_v0, 16 }
 0x64b   : > { %11907 = vmatmul.msk.bf16.gmra.mxu1 %vm6610_vm3, %v9448_v13  ;;  %v8283_v60 = vadd.f32 %v16657_v63, %v7629_v23  ;;  %v16702_v57 = vpop.f32.mrf.mxu2  ;;  %v8992_v63 = vld [vmem:[#allocation2 + $0x48] sm:$0xf]  ;;  %v10220_v62 = vrot.slane %v10219_v48, 4 }
 0x64c   : > { %v17698_v23 = vld [vmem:[#allocation45_spill] sm:$0xff]  ;;  %v9125_v38 = vshrl.u32 %v8992_v63, 16  ;;  %v9128_v45 = vshll.u32 %v8992_v63, 16 }
 0x64d   : > { %v16708_v25 = vadd.f32 %v8631_v11, %v8283_v60  ;;  %v7343_v13 = vadd.f32 %v17698_v23, %v6945_v19  ;;  %v10230_v11 = vrot.slane %v10229_v43, 4  ;;  %v9123_v60 = vsel %vm12463_vm6, %v9118_v59, %v9122_v47 }
 0x64e   : > { %12005 = vmatmul.msk.bf16.gmra.mxu3 %vm17697_vm0, %v10540_v1  ;;  %v10225_v36 = vsel %vm12463_vm6, %v10220_v62, %v10224_v16  ;;  %v9421_v61 = vunpack.c.l.b16 %v9123_v60  ;;  %v9820_v19 = vunpack.c.l.b16 %v9729_v44  ;;  %v9127_v47 = vrot.slane %v9125_v38, 4  ;;  %v11969_v38 = vld [vmem:[%s12441_s12 + $0x54] sm:$0xf]  ;;  %v11971_v60 = vld [vmem:[%s12441_s12 + $0x5c] sm:$0x1] }
 0x64f   : > { %v10235_v55 = vsel %vm12463_vm6, %v10230_v11, %v10234_v52  ;;  %v10513_v16 = vunpack.c.l.b16 %v10225_v36  ;;  %v9130_v48 = vrot.slane %v9128_v45, 5  ;;  %v9420_v52 = vunpack.c.l.b16 %v9113_v41  ;;  %v9639_v41 = vld [vmem:[#allocation2 + $0x54] sm:$0xe] }
 0x650   : > { %v7581_v5 = vpop.f32.mrf.mxu1  ;;  %v10514_v63 = vunpack.c.l.b16 %v10235_v55  ;;  %v9848_v43 = vpack.c.b16 %v9821_v6, %v9820_v19  ;;  %v9140_v23 = vrot.slane %v9138_v3, 4  ;;  %v10237_v44 = vshrl.u32 %v11969_v38, 16 }
 0x651   : > { %v7630_v49 = vadd.f32 %v7581_v5, %v7343_v13  ;;  %v8636_v1 = vpop.f32.mrf.mxu3  ;;  %v9449_v5 = vpack.c.b16 %v9421_v61, %v9420_v52  ;;  %v9131_v11 = vor.u32 %v9130_v48, %v9127_v47  ;;  %v10240_v45 = vshll.u32 %v11969_v38, 16  ;;  %v17702_v48 = vld [vmem:[#allocation48_spill] sm:$0xff]  ;;  %v17705_v38 = vld [vmem:[#allocation49_spill] sm:$0xff] }
 0x652   : > { %v10541_v62 = vpack.c.b16 %v10514_v63, %v10513_v16  ;;  %v10256_v3 = vshll.u32 %v11971_v60, 16  ;;  %v10239_v61 = vrot.slane %v10237_v44, 4  ;;  %v17701_v63 = vld [vmem:[#allocation50_spill] sm:$0xff]  ;;  %v11926_v44 = vrot.slane %v9639_v41, 9 }
 0x653   : > { %v8284_v28 = vadd.f32 %v16678_v40, %v7630_v49  ;;  %v16723_v51 = vpop.f32.mrf.mxu2  ;;  %v16732_v40 = vld [vmem:[#allocation2 + $0x58] sm:$0xf]  ;;  %v10242_v19 = vrot.slane %v10240_v45, 5 }
 0x654   : > { %v9735_v59 = vrot.slane %v16732_v40, 5  ;;  %v11970_v49 = vld [vmem:[%s12441_s12 + $0x58] sm:$0xf] }
 0x655   : > { %v16730_v9 = vadd.f32 %v8633_v27, %v8284_v28  ;;  %v16738_v27 = vld [vmem:[#allocation2 + $0x5c] sm:$0x1]  ;;  %v10246_v6 = vshll.u32 %v11970_v49, 16  ;;  %v10250_v36 = vshrl.u32 %v11970_v49, 16  ;;  %v9141_v28 = vor.u32 %v9140_v23, %v16734_v4 }
 0x656   : > { %v9738_v17 = vrot.slane %v16738_v27, 5 }
 0x657   : > { %17699 = vst [vmem:[#allocation10_spill] sm:$0xff] %v16730_v9  ;;  %v10248_v47 = vrot.slane %v10246_v6, 5  ;;  %v10252_v16 = vrot.slane %v10250_v36, 4  ;;  %v9142_v60 = vrot.slane %v9141_v28, 4  ;;  %v9132_v36 = vrot.slane %v9131_v11, 4 }
 0x658   : > { %v7584_v13 = vpop.f32.mrf.mxu1  ;;  %11942 = vmatmul.msk.bf16.gmra.mxu2 %vm6610_vm3, %v9848_v43  ;;  %v6950_v43 = vadd.f32 %v17702_v48, %v17701_v63 }
 0x659   : > { %v7631_v14 = vadd.f32 %v7584_v13, %v17700_v35  ;;  %v8638_v20 = vpop.f32.mrf.mxu3  ;;  %v9146_v13 = vrot.slane %v9144_v2, 5  ;;  %v9737_v35 = vrot.slane %v9735_v59, 4  ;;  %v10253_v23 = vor.u32 %v10252_v16, %v10248_v47 }
 0x65a   : > { %v7345_v49 = vadd.f32 %v17705_v38, %v6950_v43  ;;  %v9158_v16 = vshll.u32 %v16732_v40, 16  ;;  %v9162_v43 = vshrl.u32 %v16732_v40, 16 }
 0x65b   : > { %11908 = vmatmul.msk.bf16.gmra.mxu1 %vm6610_vm3, %v9449_v5  ;;  %v8285_v0 = vadd.f32 %v16702_v57, %v7631_v14  ;;  %v16747_v55 = vpop.f32.mrf.mxu2  ;;  %v8995_v57 = vld [vmem:[#allocation2 + $0x54] sm:$0xf]  ;;  %v10243_v14 = vor.u32 %v10242_v19, %v10239_v61  ;;  %v10258_v5 = vrot.slane %v10256_v3, 5  ;;  %v9739_v45 = vsel %vm12457_vm5, %v9737_v35, %v9738_v17 }
 0x65c   : > { %v9147_v48 = vsel %vm12463_vm6, %v9142_v60, %v9146_v13  ;;  %v9736_v3 = vsel %vm12457_vm5, %v11926_v44, %v9735_v59  ;;  %v9152_v61 = vshll.u32 %v8995_v57, 16  ;;  %v9823_v19 = vunpack.c.l.b16 %v9739_v45 }
 0x65d   : > { %v16753_v52 = vadd.f32 %v8636_v1, %v8285_v0  ;;  %v10244_v63 = vrot.slane %v10243_v14, 4  ;;  %v10254_v1 = vrot.slane %v10253_v23, 4  ;;  %v9149_v0 = vshrl.u32 %v8995_v57, 16 }
 0x65e   : > { %12006 = vmatmul.msk.bf16.gmra.mxu3 %vm17704_vm13, %v10541_v62  ;;  %v9137_v59 = vsel %vm12463_vm6, %v9132_v36, %v16734_v4  ;;  %v9423_v13 = vunpack.c.l.b16 %v9147_v48  ;;  %v9822_v35 = vunpack.c.l.b16 %v9736_v3  ;;  %v16779_v40 = vrot.slane %v9158_v16, 5  ;;  %v11972_v48 = vld [vmem:[%s12441_s12 + $0x60] sm:$0xf]  ;;  %v11973_v3 = vld [vmem:[%s12441_s12 + $0x64] sm:$0xf] }
 0x65f   : > { %17703 = vst [vmem:[#allocation6_spill] sm:$0xff] %v16753_v52  ;;  %v10249_v28 = vsel %vm12463_vm6, %v10244_v63, %v10248_v47  ;;  %v10259_v17 = vsel %vm12463_vm6, %v10254_v1, %v10258_v5  ;;  %v9151_v57 = vrot.slane %v9149_v0, 4  ;;  %v9154_v5 = vrot.slane %v9152_v61, 5  ;;  %v11974_v61 = vld [vmem:[%s12441_s12 + $0x68] sm:$0x1] }
 0x660   : > { %v7586_v6 = vpop.f32.mrf.mxu1  ;;  %v10515_v47 = vunpack.c.l.b16 %v10249_v28  ;;  %v10516_v23 = vunpack.c.l.b16 %v10259_v17  ;;  %v9849_v38 = vpack.c.b16 %v9823_v19, %v9822_v35  ;;  %v9164_v60 = vrot.slane %v9162_v43, 4 }
 0x661   : > { %v7632_v2 = vadd.f32 %v7586_v6, %v7345_v49  ;;  %v8641_v62 = vpop.f32.mrf.mxu3  ;;  %v9422_v49 = vunpack.c.l.b16 %v9137_v59  ;;  %v9168_v4 = vshll.u32 %v16738_v27, 16  ;;  %v17707_v6 = vld [vmem:[#allocation51_spill] sm:$0xff]  ;;  %v10261_v19 = vshrl.u32 %v11972_v48, 16  ;;  %v9640_v59 = vld [vmem:[#allocation2 + $0x60] sm:$0xe] }
 0x662   : > { %v10542_v0 = vpack.c.b16 %v10516_v23, %v10515_v47  ;;  %v10264_v28 = vshll.u32 %v11972_v48, 16  ;;  %v10270_v17 = vshll.u32 %v11973_v3, 16  ;;  %v9165_v43 = vor.u32 %v9164_v60, %v16779_v40 }
 0x663   : > { %v8286_v11 = vadd.f32 %v16723_v51, %v7632_v2  ;;  %v16768_v41 = vpop.f32.mrf.mxu2  ;;  %v16777_v51 = vld [vmem:[#allocation2 + $0x64] sm:$0xf]  ;;  %v9450_v63 = vpack.c.b16 %v9423_v13, %v9422_v49  ;;  %v9155_v2 = vor.u32 %v9154_v5, %v9151_v57  ;;  %v10280_v35 = vshll.u32 %v11974_v61, 16 }
 0x664   : > { %v9742_v45 = vrot.slane %v16777_v51, 5  ;;  %v10263_v57 = vrot.slane %v10261_v19, 4  ;;  %v10266_v47 = vrot.slane %v10264_v28, 5  ;;  %v10272_v23 = vrot.slane %v10270_v17, 5 }
 0x665   : > { %v16775_v14 = vadd.f32 %v8638_v20, %v8286_v11  ;;  %v16783_v20 = vld [vmem:[#allocation2 + $0x68] sm:$0x1]  ;;  %v10274_v11 = vshrl.u32 %v11973_v3, 16  ;;  %v10282_v48 = vrot.slane %v10280_v35, 5  ;;  %v9156_v60 = vrot.slane %v9155_v2, 4 }
 0x666   : > { %v9745_v13 = vrot.slane %v16783_v20, 5  ;;  %v9166_v3 = vrot.slane %v9165_v43, 4  ;;  %v9186_v43 = vshrl.u32 %v16777_v51, 16 }
 0x667   : > { %17706 = vst [vmem:[#allocation14_spill] sm:$0xff] %v16775_v14  ;;  %v10276_v5 = vrot.slane %v10274_v11, 4 }
 0x668   : > { %v7589_v44 = vpop.f32.mrf.mxu1  ;;  %11943 = vmatmul.msk.bf16.gmra.mxu2 %vm6610_vm3, %v9849_v38  ;;  %v8998_v38 = vld [vmem:[#allocation2 + $0x60] sm:$0xf] }
 0x669   : > { %v7633_v36 = vadd.f32 %v7589_v44, %v17707_v6  ;;  %v8643_v1 = vpop.f32.mrf.mxu3  ;;  %v9170_v44 = vrot.slane %v9168_v4, 5  ;;  %v9744_v6 = vrot.slane %v9742_v45, 4  ;;  %v9173_v19 = vshrl.u32 %v8998_v38, 16  ;;  %v17710_v4 = vld [vmem:[#allocation5_spill] sm:$0xff] }
 0x66a   : > { %v9176_v14 = vshll.u32 %v8998_v38, 16  ;;  %v9161_v38 = vsel %vm12463_vm6, %v9156_v60, %v16779_v40  ;;  %v16824_v60 = vld [vmem:[#allocation2 + $0x74] sm:$0x1] }
 0x66b   : > { %11909 = vmatmul.msk.bf16.gmra.mxu1 %vm6610_vm3, %v9450_v63  ;;  %v8287_v27 = vadd.f32 %v16747_v55, %v7633_v36  ;;  %v16792_v16 = vpop.f32.mrf.mxu2  ;;  %v11927_v55 = vrot.slane %v9640_v59, 9  ;;  %v10267_v36 = vor.u32 %v10266_v47, %v10263_v57  ;;  %v10277_v63 = vor.u32 %v10276_v5, %v10272_v23 }
 0x66c   : > { %v9746_v61 = vsel %vm12457_vm5, %v9744_v6, %v9745_v13 }
 0x66d   : > { %v16796_v49 = vadd.f32 %v8641_v62, %v8287_v27  ;;  %v10268_v17 = vrot.slane %v10267_v36, 4  ;;  %v10278_v11 = vrot.slane %v10277_v63, 4  ;;  %v9182_v62 = vshll.u32 %v16777_v51, 16 }
 0x66e   : > { %12007 = vmatmul.msk.bf16.gmra.mxu3 %vm17709_vm15, %v10542_v0  ;;  %v9171_v0 = vsel %vm12463_vm6, %v9166_v3, %v9170_v44  ;;  %v9743_v2 = vsel %vm12457_vm5, %v11927_v55, %v9742_v45  ;;  %v9825_v35 = vunpack.c.l.b16 %v9746_v61  ;;  %v9175_v44 = vrot.slane %v9173_v19, 4 }
 0x66f   : > { %17708 = vst [vmem:[#allocation18_spill] sm:$0xff] %v16796_v49  ;;  %v10273_v13 = vsel %vm12463_vm6, %v10268_v17, %v10272_v23  ;;  %v10283_v57 = vsel %vm12463_vm6, %v10278_v11, %v10282_v48  ;;  %v9425_v6 = vunpack.c.l.b16 %v9171_v0  ;;  %v9824_v45 = vunpack.c.l.b16 %v9743_v2  ;;  %v9002_v48 = vld [vmem:[#allocation2 + $0x70] sm:$0xf]  ;;  %v17712_v11 = vld [vmem:[#allocation8_spill] sm:$0xff] }
 0x670   : > { %v7591_v28 = vpop.f32.mrf.mxu1  ;;  %v9178_v55 = vrot.slane %v9176_v14, 5  ;;  %v16818_v51 = vrot.slane %v9182_v62, 5  ;;  %v10517_v23 = vunpack.c.l.b16 %v10273_v13  ;;  %v10518_v63 = vunpack.c.l.b16 %v10283_v57  ;;  %v11976_v13 = vld [vmem:[%s12441_s12 + $0x70] sm:$0xf] }
 0x671   : > { %v7634_v27 = vadd.f32 %v7591_v28, %v17710_v4  ;;  %v8646_v59 = vpop.f32.mrf.mxu3  ;;  %v9188_v3 = vrot.slane %v9186_v43, 4  ;;  %v9424_v61 = vunpack.c.l.b16 %v9161_v38  ;;  %v9850_v28 = vpack.c.b16 %v9825_v35, %v9824_v45  ;;  %v11975_v43 = vld [vmem:[%s12441_s12 + $0x6c] sm:$0xf]  ;;  %v11977_v35 = vld [vmem:[%s12441_s12 + $0x74] sm:$0x1] }
 0x672   : > { %v9192_v14 = vshll.u32 %v16783_v20, 16  ;;  %v9179_v0 = vor.u32 %v9178_v55, %v9175_v44  ;;  %v10285_v57 = vshrl.u32 %v11975_v43, 16  ;;  %v10294_v38 = vshll.u32 %v11976_v13, 16  ;;  %v9641_v44 = vld [vmem:[#allocation2 + $0x6c] sm:$0xe] }
 0x673   : > { %v8288_v47 = vadd.f32 %v16768_v41, %v7634_v27  ;;  %v16813_v5 = vpop.f32.mrf.mxu2  ;;  %v9001_v41 = vld [vmem:[#allocation2 + $0x6c] sm:$0xf]  ;;  %v9451_v40 = vpack.c.b16 %v9425_v6, %v9424_v61  ;;  %v10543_v27 = vpack.c.b16 %v10518_v63, %v10517_v23  ;;  %v9189_v2 = vor.u32 %v9188_v3, %v16818_v51 }
 0x674   : > { %v9197_v19 = vshrl.u32 %v9001_v41, 16  ;;  %v10298_v6 = vshrl.u32 %v11976_v13, 16  ;;  %v9752_v61 = vrot.slane %v16824_v60, 5  ;;  %v9200_v23 = vshll.u32 %v9001_v41, 16 }
 0x675   : > { %v16820_v36 = vadd.f32 %v8643_v1, %v8288_v47  ;;  %v9749_v1 = vrot.slane %v9002_v48, 5  ;;  %v10288_v47 = vshll.u32 %v11975_v43, 16  ;;  %v10287_v55 = vrot.slane %v10285_v57, 4 }
 0x676   : > { %v10296_v3 = vrot.slane %v10294_v38, 5  ;;  %v9180_v43 = vrot.slane %v9179_v0, 4  ;;  %v9210_v49 = vshrl.u32 %v9002_v48, 16  ;;  %v9190_v52 = vrot.slane %v9189_v2, 4  ;;  %v17714_v0 = vld [vmem:[#allocation12_spill] sm:$0xff] }
 0x677   : > { %17711 = vst [vmem:[#allocation7_spill] sm:$0xff] %v16820_v36  ;;  %v10290_v63 = vrot.slane %v10288_v47, 5  ;;  %v9194_v36 = vrot.slane %v9192_v14, 5  ;;  %v9751_v13 = vrot.slane %v9749_v1, 4  ;;  %v11928_v9 = vrot.slane %v9641_v44, 9 }
 0x678   : > { %v7594_v17 = vpop.f32.mrf.mxu1  ;;  %11944 = vmatmul.msk.bf16.gmra.mxu2 %vm6610_vm3, %v9850_v28  ;;  %v10304_v28 = vshll.u32 %v11977_v35, 16  ;;  %v9185_v2 = vsel %vm12463_vm6, %v9180_v43, %v16818_v51  ;;  %v9212_v44 = vrot.slane %v9210_v49, 4  ;;  %v9216_v51 = vshll.u32 %v16824_v60, 16  ;;  %v9642_v43 = vld [vmem:[#allocation2 + $0x78] sm:$0xe] }
 0x679   : > { %v7635_v62 = vadd.f32 %v7594_v17, %v17712_v11  ;;  %v8648_v4 = vpop.f32.mrf.mxu3  ;;  %v10300_v17 = vrot.slane %v10298_v6, 4  ;;  %v9753_v41 = vsel %vm12457_vm5, %v9751_v13, %v9752_v61  ;;  %v9202_v6 = vrot.slane %v9200_v23, 5 }
 0x67a   : > { %v10306_v35 = vrot.slane %v10304_v28, 5  ;;  %v9827_v61 = vunpack.c.l.b16 %v9753_v41  ;;  %v9426_v49 = vunpack.c.l.b16 %v9185_v2  ;;  %v9004_v41 = vld [vmem:[#allocation2 + $0x78] sm:$0xf] }
 0x67b   : > { %11910 = vmatmul.msk.bf16.gmra.mxu1 %vm6610_vm3, %v9451_v40  ;;  %v8289_v20 = vadd.f32 %v16792_v16, %v7635_v62  ;;  %v16833_v45 = vpop.f32.mrf.mxu2  ;;  %v10291_v40 = vor.u32 %v10290_v63, %v10287_v55  ;;  %v10301_v16 = vor.u32 %v10300_v17, %v10296_v3  ;;  %v9206_v62 = vshll.u32 %v9002_v48, 16  ;;  %v16851_v55 = vld [vmem:[#allocation2 + $0x7c] sm:$0xf] }
 0x67c   : > { %v9750_v48 = vsel %vm12457_vm5, %v11928_v9, %v9749_v1  ;;  %v9756_v13 = vrot.slane %v16851_v55, 5  ;;  %v9224_v2 = vshll.u32 %v9004_v41, 16 }
 0x67d   : > { %v16836_v11 = vadd.f32 %v8646_v59, %v8289_v20  ;;  %v10292_v47 = vrot.slane %v10291_v40, 4  ;;  %v10302_v38 = vrot.slane %v10301_v16, 4  ;;  %v9199_v59 = vrot.slane %v9197_v19, 4 }
 0x67e   : > { %12008 = vmatmul.msk.bf16.gmra.mxu3 %vm17713_vm4, %v10543_v27  ;;  %v9195_v27 = vsel %vm12463_vm6, %v9190_v52, %v9194_v36  ;;  %v16849_v28 = vrot.slane %v9206_v62, 5  ;;  %v9826_v1 = vunpack.c.l.b16 %v9750_v48 }
 0x67f   : > { %v10297_v52 = vsel %vm12463_vm6, %v10292_v47, %v10296_v3  ;;  %v10307_v9 = vsel %vm12463_vm6, %v10302_v38, %v10306_v35  ;;  %v9427_v36 = vunpack.c.l.b16 %v9195_v27  ;;  %v9203_v63 = vor.u32 %v9202_v6, %v9199_v59  ;;  %v16865_v3 = vld [vmem:[#allocation2 + $0x80] sm:$0x1] }
 0x680   : > { %v7596_v57 = vpop.f32.mrf.mxu1  ;;  %v10519_v40 = vunpack.c.l.b16 %v10297_v52  ;;  %v10520_v16 = vunpack.c.l.b16 %v10307_v9  ;;  %v9213_v62 = vor.u32 %v9212_v44, %v16849_v28  ;;  %v11929_v47 = vrot.slane %v9642_v43, 9  ;;  %v11978_v52 = vld [vmem:[%s12441_s12 + $0x78] sm:$0xf]  ;;  %v11979_v9 = vld [vmem:[%s12441_s12 + $0x7c] sm:$0xf] }
 0x681   : > { %v7636_v14 = vadd.f32 %v7596_v57, %v17714_v0  ;;  %v8651_v20 = vpop.f32.mrf.mxu3  ;;  %v9452_v57 = vpack.c.b16 %v9427_v36, %v9426_v49  ;;  %v9204_v60 = vrot.slane %v9203_v63, 4  ;;  %v9758_v6 = vrot.slane %v9756_v13, 4  ;;  %v11980_v36 = vld [vmem:[%s12441_s12 + $0x80] sm:$0x1] }
 0x682   : > { %v9759_v0 = vrot.slane %v16865_v3, 5  ;;  %v10544_v27 = vpack.c.b16 %v10520_v16, %v10519_v40  ;;  %v9214_v48 = vrot.slane %v9213_v62, 4  ;;  %v10318_v63 = vshll.u32 %v11979_v9, 16 }
 0x683   : > { %v8290_v19 = vadd.f32 %v16813_v5, %v7636_v14  ;;  %v16854_v23 = vpop.f32.mrf.mxu2  ;;  %v9851_v5 = vpack.c.b16 %v9827_v61, %v9826_v1  ;;  %v9221_v14 = vshrl.u32 %v9004_v41, 16  ;;  %v9230_v61 = vshll.u32 %v16851_v55, 16 }
 0x684   : > { %v10312_v1 = vshll.u32 %v11978_v52, 16  ;;  %v9760_v43 = vsel %vm12457_vm5, %v9758_v6, %v9759_v0  ;;  %v9234_v40 = vshrl.u32 %v16851_v55, 16  ;;  %v10320_v62 = vrot.slane %v10318_v63, 5 }
 0x685   : > { %v16861_v17 = vadd.f32 %v8648_v4, %v8290_v19  ;;  %v9218_v4 = vrot.slane %v9216_v51, 5  ;;  %v10322_v51 = vshrl.u32 %v11979_v9, 16  ;;  %v9829_v9 = vunpack.c.l.b16 %v9760_v43 }
 0x686   : > { %v10314_v16 = vrot.slane %v10312_v1, 5 }
 0x687   : > { %17715 = vst [vmem:[#allocation17_spill] sm:$0xff] %v16861_v17  ;;  %v10324_v41 = vrot.slane %v10322_v51, 4  ;;  %v16892_v51 = vrot.slane %v9230_v61, 5 }
 0x688   : > { %v7599_v35 = vpop.f32.mrf.mxu1  ;;  %11945 = vmatmul.msk.bf16.gmra.mxu2 %vm6610_vm3, %v9851_v5  ;;  %v10328_v5 = vshll.u32 %v11980_v36, 16  ;;  %v9223_v36 = vrot.slane %v9221_v14, 4  ;;  %v9240_v14 = vshll.u32 %v16865_v3, 16 }
 0x689   : > { %v7637_v38 = vadd.f32 %v7599_v35, %v16335_v37  ;;  %v8653_v59 = vpop.f32.mrf.mxu3  ;;  %v10309_v37 = vshrl.u32 %v11978_v52, 16  ;;  %v9209_v35 = vsel %vm12463_vm6, %v9204_v60, %v16849_v28  ;;  %v10325_v0 = vor.u32 %v10324_v41, %v10320_v62 }
 0x68a   : > { %v10330_v55 = vrot.slane %v10328_v5, 5  ;;  %v9236_v28 = vrot.slane %v9234_v40, 4  ;;  %v9428_v61 = vunpack.c.l.b16 %v9209_v35  ;;  %v9242_v3 = vrot.slane %v9240_v14, 5  ;;  %v17720_v35 = vld [vmem:[#allocation3_spill] sm:$0xff] }
 0x68b   : > { %11911 = vmatmul.msk.bf16.gmra.mxu1 %vm6610_vm3, %v9452_v57  ;;  %v8291_v44 = vadd.f32 %v16833_v45, %v7637_v38  ;;  %v16873_v19 = vpop.f32.mrf.mxu2  ;;  %v10311_v45 = vrot.slane %v10309_v37, 4  ;;  %v9219_v38 = vsel %vm12463_vm6, %v9214_v48, %v9218_v4  ;;  %v9226_v37 = vrot.slane %v9224_v2, 5  ;;  %v9008_v4 = vld [vmem:[#allocation2 + $0x88] sm:$0xf] }
 0x68c   : > { %v10326_v63 = vrot.slane %v10325_v0, 4  ;;  %v9429_v48 = vunpack.c.l.b16 %v9219_v38  ;;  %v9007_v38 = vld [vmem:[#allocation2 + $0x84] sm:$0xf] }
 0x68d   : > { %v16878_v49 = vadd.f32 %v8651_v20, %v8291_v44  ;;  %v9757_v20 = vsel %vm12457_vm5, %v11929_v47, %v9756_v13  ;;  %v10315_v6 = vor.u32 %v10314_v16, %v10311_v45  ;;  %v17718_v44 = vld [vmem:[#allocation4_spill] sm:$0xff]  ;;  %v9227_v40 = vor.u32 %v9226_v37, %v9223_v36 }
 0x68e   : > { %12009 = vmatmul.msk.bf16.gmra.mxu3 %vm17717_vm7, %v10544_v27  ;;  %v9828_v47 = vunpack.c.l.b16 %v9757_v20  ;;  %v10331_v43 = vsel %vm12463_vm6, %v10326_v63, %v10330_v55  ;;  %v9643_v16 = vld [vmem:[#allocation2 + $0x84] sm:$0xe]  ;;  %v9237_v20 = vor.u32 %v9236_v28, %v16892_v51  ;;  %v9453_v0 = vpack.c.b16 %v9429_v48, %v9428_v61 }
 0x68f   : > { %17716 = vst [vmem:[#allocation11_spill] sm:$0xff] %v16878_v49  ;;  %v10316_v1 = vrot.slane %v10315_v6, 4  ;;  %v10522_v41 = vunpack.c.l.b16 %v10331_v43  ;;  %v16905_v6 = vld [vmem:[#allocation2 + $0x8c] sm:$0x1]  ;;  %v9248_v36 = vshll.u32 %v9007_v38, 16 }
 0x690   : > { %v7601_v57 = vpop.f32.mrf.mxu1  ;;  %v9852_v45 = vpack.c.b16 %v9829_v9, %v9828_v47  ;;  %v9245_v9 = vshrl.u32 %v9007_v38, 16  ;;  %v9766_v28 = vrot.slane %v16905_v6, 5  ;;  %v11981_v48 = vld [vmem:[%s12441_s12 + $0x84] sm:$0xf]  ;;  %v11983_v43 = vld [vmem:[%s12441_s12 + $0x8c] sm:$0x1] }
 0x691   : > { %v7638_v27 = vadd.f32 %v7601_v57, %v17718_v44  ;;  %v8656_v52 = vpop.f32.mrf.mxu3  ;;  %v10321_v5 = vsel %vm12463_vm6, %v10316_v1, %v10320_v62  ;;  %v9763_v57 = vrot.slane %v9008_v4, 5  ;;  %v9238_v1 = vrot.slane %v9237_v20, 4 }
 0x692   : > { %v10333_v14 = vshrl.u32 %v11981_v48, 16  ;;  %v10336_v61 = vshll.u32 %v11981_v48, 16  ;;  %v9258_v20 = vshrl.u32 %v9008_v4, 16 }
 0x693   : > { %v8292_v13 = vadd.f32 %v16854_v23, %v7638_v27  ;;  %v16895_v60 = vpop.f32.mrf.mxu2  ;;  %v10521_v23 = vunpack.c.l.b16 %v10321_v5  ;;  %v9228_v27 = vrot.slane %v9227_v40, 4  ;;  %v9765_v63 = vrot.slane %v9763_v57, 4  ;;  %v11982_v5 = vld [vmem:[%s12441_s12 + $0x88] sm:$0xf] }
 0x694   : > { %v10346_v40 = vshrl.u32 %v11982_v5, 16  ;;  %v10335_v38 = vrot.slane %v10333_v14, 4 }
 0x695   : > { %v16902_v2 = vadd.f32 %v8653_v59, %v8292_v13  ;;  %v11930_v59 = vrot.slane %v9643_v16, 9  ;;  %v10545_v37 = vpack.c.b16 %v10522_v41, %v10521_v23  ;;  %v10352_v23 = vshll.u32 %v11983_v43, 16 }
 0x696   : > { %v9254_v41 = vshll.u32 %v9008_v4, 16  ;;  %v9767_v48 = vsel %vm12457_vm5, %v9765_v63, %v9766_v28  ;;  %v9247_v4 = vrot.slane %v9245_v9, 4  ;;  %v9264_v9 = vshll.u32 %v16905_v6, 16 }
 0x697   : > { %17719 = vst [vmem:[#allocation9_spill] sm:$0xff] %v16902_v2  ;;  %v10354_v43 = vrot.slane %v10352_v23, 5  ;;  %v16936_v23 = vld [vmem:[#allocation2 + $0x94] sm:$0xf] }
 0x698   : > { %v7604_v62 = vpop.f32.mrf.mxu1  ;;  %11946 = vmatmul.msk.bf16.gmra.mxu2 %vm6610_vm3, %v9852_v45  ;;  %v10342_v45 = vshll.u32 %v11982_v5, 16 }
 0x699   : > { %v7639_v55 = vadd.f32 %v7604_v62, %v17720_v35  ;;  %v8658_v44 = vpop.f32.mrf.mxu3  ;;  %v10338_v62 = vrot.slane %v10336_v61, 5  ;;  %v9243_v35 = vsel %vm12463_vm6, %v9238_v1, %v9242_v3  ;;  %v9250_v61 = vrot.slane %v9248_v36, 5 }
 0x69a   : > { %v9233_v3 = vsel %vm12463_vm6, %v9228_v27, %v16892_v51 }
 0x69b   : > { %11912 = vmatmul.msk.bf16.gmra.mxu1 %vm6610_vm3, %v9453_v0  ;;  %v8293_v13 = vadd.f32 %v16873_v19, %v7639_v55  ;;  %v16912_v47 = vpop.f32.mrf.mxu2  ;;  %v10344_v0 = vrot.slane %v10342_v45, 5  ;;  %v10348_v19 = vrot.slane %v10346_v40, 4  ;;  %v9764_v55 = vsel %vm12457_vm5, %v11930_v59, %v9763_v57 }
 0x69c   : > { %v16927_v45 = vrot.slane %v9254_v41, 5  ;;  %v9260_v40 = vrot.slane %v9258_v20, 4  ;;  %v9831_v57 = vunpack.c.l.b16 %v9767_v48  ;;  %v9830_v36 = vunpack.c.l.b16 %v9764_v55  ;;  %v17725_v55 = vld [vmem:[#allocation33_spill] sm:$0xff] }
 0x69d   : > { %v16917_v16 = vadd.f32 %v8656_v52, %v8293_v13  ;;  %v10339_v13 = vor.u32 %v10338_v62, %v10335_v38  ;;  %v10349_v5 = vor.u32 %v10348_v19, %v10344_v0  ;;  %v9430_v27 = vunpack.c.l.b16 %v9233_v3  ;;  %v9644_v62 = vld [vmem:[#allocation2 + $0x90] sm:$0xe] }
 0x69e   : > { %12010 = vmatmul.msk.bf16.gmra.mxu3 %vm17722_vm2, %v10545_v37  ;;  %v9251_v38 = vor.u32 %v9250_v61, %v9247_v4  ;;  %v9853_v19 = vpack.c.b16 %v9831_v57, %v9830_v36 }
 0x69f   : > { %17721 = vst [vmem:[#allocation22_spill] sm:$0xff] %v16917_v16  ;;  %v17723_v16 = vld [vmem:[#allocation13_spill] sm:$0xff]  ;;  %v10340_v59 = vrot.slane %v10339_v13, 4  ;;  %v10350_v1 = vrot.slane %v10349_v5, 4  ;;  %v16953_v13 = vrot.slane %v9264_v9, 5 }
 0x6a0   : > { %v7606_v52 = vpop.f32.mrf.mxu1  ;;  %v16955_v5 = vld [vmem:[#allocation2 + $0x98] sm:$0x1]  ;;  %v9252_v3 = vrot.slane %v9251_v38, 4  ;;  %v11984_v38 = vld [vmem:[%s12441_s12 + $0x90] sm:$0xf] }
 0x6a1   : > { %v7640_v37 = vadd.f32 %v7606_v52, %v17723_v16  ;;  %v10613_v14 = vpop.f32.mrf.mxu3  ;;  %v9431_v16 = vunpack.c.l.b16 %v9243_v35  ;;  %v10345_v41 = vsel %vm12463_vm6, %v10340_v59, %v10344_v0  ;;  %v10355_v20 = vsel %vm12463_vm6, %v10350_v1, %v10354_v43  ;;  %v9010_v35 = vld [vmem:[#allocation2 + $0x90] sm:$0xf] }
 0x6a2   : > { %v10523_v48 = vunpack.c.l.b16 %v10345_v41  ;;  %v10524_v6 = vunpack.c.l.b16 %v10355_v20  ;;  %v9770_v52 = vrot.slane %v16936_v23, 5  ;;  %v8948_v0 = vadd.f32 %v17725_v55, %v16378_v42  ;;  %v16961_v42 = vld [vmem:[%s17409_s4] ss:$0 sm:$0xff] }
 0x6a3   : > { %v8294_v63 = vadd.f32 %v16895_v60, %v7640_v37  ;;  %v16933_v28 = vpop.f32.mrf.mxu2  ;;  %v9261_v60 = vor.u32 %v9260_v40, %v16927_v45  ;;  %v9454_v4 = vpack.c.b16 %v9431_v16, %v9430_v27  ;;  %v11931_v37 = vrot.slane %v9644_v62, 9  ;;  %v11986_v62 = vld [vmem:[%s12441_s12 + $0x98] sm:$0x1] }
 0x6a4   : > { %v9269_v59 = vshrl.u32 %v9010_v35, 16  ;;  %v10546_v1 = vpack.c.b16 %v10524_v6, %v10523_v48  ;;  %v9773_v9 = vrot.slane %v16955_v5, 5  ;;  %v9272_v16 = vshll.u32 %v9010_v35, 16 }
 0x6a5   : > { %v16942_v51 = vadd.f32 %v8658_v44, %v8294_v63  ;;  %v16951_v44 = vld [vmem:[%s17411_s6] ss:$0 sm:$0xff]  ;;  %v9262_v57 = vrot.slane %v9261_v60, 4  ;;  %v9772_v63 = vrot.slane %v9770_v52, 4  ;;  %v11985_v60 = vld [vmem:[%s12441_s12 + $0x94] sm:$0xf] }
 0x6a6   : > { %v10614_v41 = vadd.f32 %v16951_v44, %v10613_v14  ;;  %v10360_v48 = vshll.u32 %v11984_v38, 16  ;;  %v10366_v6 = vshll.u32 %v11985_v60, 16  ;;  %v10370_v55 = vshrl.u32 %v11985_v60, 16 }
 0x6a7   : > { %17724 = vst [vmem:[#allocation25_spill] sm:$0xff] %v16942_v51  ;;  %v9267_v27 = vsel %vm12463_vm6, %v9262_v57, %v16953_v13  ;;  %v9282_v14 = vshrl.u32 %v16936_v23, 16  ;;  %v9771_v60 = vsel %vm12457_vm5, %v11931_v37, %v9770_v52  ;;  %v9271_v17 = vrot.slane %v9269_v59, 4 }
 0x6a8   : > { %v9522_v43 = vpop.f32.mrf.mxu1  ;;  %11947 = vmatmul.msk.bf16.gmra.mxu2 %vm6610_vm3, %v9853_v19  ;;  %v10357_v19 = vshrl.u32 %v11984_v38, 16 }
 0x6a9   : > { %v9602_v61 = vadd.f32 %v9522_v43, %v8948_v0  ;;  %v10615_v40 = vpop.f32.mrf.mxu3  ;;  %v9278_v0 = vshll.u32 %v16936_v23, 16  ;;  %v10362_v43 = vrot.slane %v10360_v48, 5  ;;  %v9774_v23 = vsel %vm12457_vm5, %v9772_v63, %v9773_v9 }
 0x6aa   : > { %v10359_v13 = vrot.slane %v10357_v19, 4  ;;  %v9274_v48 = vrot.slane %v9272_v16, 5  ;;  %v9833_v52 = vunpack.c.l.b16 %v9774_v23  ;;  %v9433_v16 = vunpack.c.l.b16 %v9267_v27 }
 0x6ab   : > { %v10000_v36 = vadd.f32 %v16912_v47, %v9602_v61  ;;  %11913 = vmatmul.msk.bf16.gmra.mxu1 %vm6610_vm3, %v9454_v4  ;;  %v16968_v20 = vpop.f32.mrf.mxu2  ;;  %v10376_v47 = vshll.u32 %v11986_v62, 16  ;;  %v10368_v4 = vrot.slane %v10366_v6, 5  ;;  %v10372_v61 = vrot.slane %v10370_v55, 4 }
 0x6ac   : > { %v10363_v51 = vor.u32 %v10362_v43, %v10359_v13  ;;  %v9284_v6 = vrot.slane %v9282_v14, 4  ;;  %v10616_v55 = vadd.f32 %v16951_v44, %v10615_v40 }
 0x6ad   : > { %v10036_v35 = vadd.f32 %v16961_v42, %v10000_v36  ;;  %v17727_v36 = vld [vmem:[#allocation40_spill] sm:$0xff]  ;;  %v10373_v2 = vor.u32 %v10372_v61, %v10368_v4  ;;  %v10378_v49 = vrot.slane %v10376_v47, 5  ;;  %v9013_v61 = vld [vmem:[#allocation2 + $0x9c] sm:$0xf] }
 0x6ae   : > { %12011 = vmatmul.msk.bf16.gmra.mxu3 %vm17726_vm1, %v10546_v1  ;;  %v8949_v38 = vadd.f32 %v17727_v36, %v16391_v7  ;;  %v9257_v7 = vsel %vm12463_vm6, %v9252_v3, %v16927_v45  ;;  %v10364_v37 = vrot.slane %v10363_v51, 4  ;;  %v17003_v47 = vld [vmem:[#allocation2 + $0xa0] sm:$0xf]  ;;  %v9645_v3 = vld [vmem:[#allocation2 + $0x9c] sm:$0xe] }
 0x6af   : > { %v10693_v57 = vadd.f32 %v10614_v41, %v10036_v35  ;;  %v16993_v41 = vrot.slane %v9278_v0, 5  ;;  %v10374_v63 = vrot.slane %v10373_v2, 4  ;;  %v9288_v35 = vshll.u32 %v16955_v5, 16 }
 0x6b0   : > { %v9524_v62 = vpop.f32.mrf.mxu1  ;;  %v9832_v0 = vunpack.c.l.b16 %v9771_v60  ;;  %v10369_v14 = vsel %vm12463_vm6, %v10364_v37, %v10368_v4  ;;  %v9432_v51 = vunpack.c.l.b16 %v9257_v7  ;;  %v9777_v27 = vrot.slane %v17003_v47, 5  ;;  %v17728_v4 = vld [vmem:[#allocation39_spill] sm:$0xff]  ;;  %v17018_v60 = vpop.f32.mrf.mxu0 }
 0x6b1   : > { %10725 = vst.msk [vmem:[%s16982_s20] sm:$0xff] %vm6610_vm3, %v10693_v57  ;;  %v9603_v1 = vadd.f32 %v9524_v62, %v8949_v38  ;;  %v10618_v19 = vpop.f32.mrf.mxu3  ;;  %v10379_v45 = vsel %vm12463_vm6, %v10374_v63, %v10378_v49  ;;  %v9285_v40 = vor.u32 %v9284_v6, %v16993_v41  ;;  %v10525_v5 = vunpack.c.l.b16 %v10369_v14  ;;  %v17016_v49 = vld [vmem:[#allocation2 + $0xa4] sm:$0x1]  ;;  %v11987_v14 = vld [vmem:[%s12441_s12 + $0x9c] sm:$0xf] }
 0x6b2   : > { %v9854_v13 = vpack.c.b16 %v9833_v52, %v9832_v0  ;;  %v10526_v43 = vunpack.c.l.b16 %v10379_v45  ;;  %v8950_v36 = vadd.f32 %v17728_v4, %v16402_v50  ;;  %v17014_v38 = vrot.slane %v9288_v35, 5  ;;  %v11988_v45 = vld [vmem:[%s12441_s12 + $0xa0] sm:$0xf] }
 0x6b3   : > { %v10001_v9 = vadd.f32 %v16933_v28, %v9603_v1  ;;  %v17000_v59 = vpop.f32.mrf.mxu2  ;;  %v9275_v28 = vor.u32 %v9274_v48, %v9271_v17  ;;  %v9455_v23 = vpack.c.b16 %v9433_v16, %v9432_v51  ;;  %v11932_v62 = vrot.slane %v9645_v3, 9 }
 0x6b4   : > { %v9286_v50 = vrot.slane %v9285_v40, 4  ;;  %v9293_v7 = vshrl.u32 %v9013_v61, 16  ;;  %v10547_v52 = vpack.c.b16 %v10526_v43, %v10525_v5  ;;  %v9779_v37 = vrot.slane %v9777_v27, 4 }
 0x6b5   : > { %v10037_v2 = vadd.f32 %v16961_v42, %v10001_v9  ;;  %v9276_v6 = vrot.slane %v9275_v28, 4  ;;  %v9780_v63 = vrot.slane %v17016_v49, 5  ;;  %v9296_v9 = vshll.u32 %v9013_v61, 16 }
 0x6b6   : > { %v10619_v35 = vadd.f32 %v16951_v44, %v10618_v19  ;;  %v9291_v0 = vsel %vm12463_vm6, %v9286_v50, %v17014_v38  ;;  %v10381_v51 = vshrl.u32 %v11987_v14, 16  ;;  %v10384_v28 = vshll.u32 %v11987_v14, 16  ;;  %v17730_v38 = vld [vmem:[#allocation37_spill] sm:$0xff] }
 0x6b7   : > { %v10694_v57 = vadd.f32 %v10616_v55, %v10037_v2  ;;  %v11989_v2 = vld [vmem:[%s12441_s12 + $0xa4] sm:$0x1]  ;;  %v10390_v40 = vshll.u32 %v11988_v45, 16  ;;  %v10394_v3 = vshrl.u32 %v11988_v45, 16  ;;  %v9302_v5 = vshll.u32 %v17003_v47, 16 }
 0x6b8   : > { %v9527_v17 = vpop.f32.mrf.mxu1  ;;  %11948 = vmatmul.msk.bf16.gmra.mxu2 %vm6610_vm3, %v9854_v13  ;;  %v9306_v19 = vshrl.u32 %v17003_v47, 16  ;;  %v10383_v43 = vrot.slane %v10381_v51, 4  ;;  %v10386_v61 = vrot.slane %v10384_v28, 5  ;;  %v9295_v45 = vrot.slane %v9293_v7, 4 }
 0x6b9   : > { %10726 = vst.msk [vmem:[%s16982_s20 + $0x8] sm:$0xff] %vm6610_vm3, %v10694_v57  ;;  %v9604_v1 = vadd.f32 %v9527_v17, %v8950_v36  ;;  %v10620_v48 = vpop.f32.mrf.mxu3  ;;  %v10392_v57 = vrot.slane %v10390_v40, 5  ;;  %v10396_v4 = vrot.slane %v10394_v3, 4  ;;  %v8951_v17 = vadd.f32 %v17730_v38, %v16415_v10  ;;  %v17049_v10 = vpop.f32.mrf.mxu0  ;;  %v9016_v38 = vld [vmem:[#allocation2 + $0xa8] sm:$0xf] }
 0x6ba   : > { %v9298_v51 = vrot.slane %v9296_v9, 5  ;;  %v9308_v28 = vrot.slane %v9306_v19, 4  ;;  %v10621_v7 = vadd.f32 %v16951_v44, %v10620_v48  ;;  %v9312_v9 = vshll.u32 %v17016_v49, 16 }
 0x6bb   : > { %v10002_v55 = vadd.f32 %v16968_v20, %v9604_v1  ;;  %11914 = vmatmul.msk.bf16.gmra.mxu1 %vm6610_vm3, %v9455_v23  ;;  %v17027_v16 = vpop.f32.mrf.mxu2  ;;  %v10400_v20 = vshll.u32 %v11989_v2, 16  ;;  %v9778_v23 = vsel %vm12457_vm5, %v11932_v62, %v9777_v27  ;;  %v9781_v1 = vsel %vm12457_vm5, %v9779_v37, %v9780_v63 }
 0x6bc   : > { %v10397_v14 = vor.u32 %v10396_v4, %v10392_v57  ;;  %v9281_v27 = vsel %vm12463_vm6, %v9276_v6, %v16993_v41  ;;  %v9835_v62 = vunpack.c.l.b16 %v9781_v1  ;;  %v9314_v1 = vrot.slane %v9312_v9, 5 }
 0x6bd   : > { %v10038_v13 = vadd.f32 %v16961_v42, %v10002_v55  ;;  %v10387_v55 = vor.u32 %v10386_v61, %v10383_v43  ;;  %v10402_v47 = vrot.slane %v10400_v20, 5  ;;  %v9435_v20 = vunpack.c.l.b16 %v9291_v0  ;;  %v9646_v61 = vld [vmem:[#allocation2 + $0xa8] sm:$0xe] }
 0x6be   : > { %12012 = vmatmul.msk.bf16.gmra.mxu3 %vm17729_vm11, %v10547_v52  ;;  %v10398_v63 = vrot.slane %v10397_v14, 4  ;;  %v9434_v43 = vunpack.c.l.b16 %v9281_v27  ;;  %v9317_v27 = vshrl.u32 %v9016_v38, 16 }
 0x6bf   : > { %v10695_v36 = vadd.f32 %v10619_v35, %v10038_v13  ;;  %v17047_v35 = vrot.slane %v9302_v5, 5  ;;  %v10388_v37 = vrot.slane %v10387_v55, 4  ;;  %v17059_v13 = vld [vmem:[#allocation2 + $0xac] sm:$0xf]  ;;  %v9834_v5 = vunpack.c.l.b16 %v9778_v23 }
 0x6c0   : > { %v9529_v50 = vpop.f32.mrf.mxu1  ;;  %v10403_v41 = vsel %vm12463_vm6, %v10398_v63, %v10402_v47  ;;  %v9784_v0 = vrot.slane %v17059_v13, 5  ;;  %v9456_v14 = vpack.c.b16 %v9435_v20, %v9434_v43  ;;  %v11933_v47 = vrot.slane %v9646_v61, 9 }
 0x6c1   : > { %10727 = vst.msk [vmem:[%s16982_s20 + $0x10] sm:$0xff] %vm6610_vm3, %v10695_v36  ;;  %v9605_v52 = vadd.f32 %v9529_v50, %v8951_v17  ;;  %v10623_v2 = vpop.f32.mrf.mxu3  ;;  %v10393_v19 = vsel %vm12463_vm6, %v10388_v37, %v10392_v57  ;;  %v9309_v48 = vor.u32 %v9308_v28, %v17047_v35  ;;  %v9855_v4 = vpack.c.b16 %v9835_v62, %v9834_v5  ;;  %v17731_v57 = vld [vmem:[#allocation41_spill] sm:$0xff]  ;;  %v17070_v50 = vld [vmem:[#allocation2 + $0xb0] sm:$0x1] }
 0x6c2   : > { %v10527_v49 = vunpack.c.l.b16 %v10393_v19  ;;  %v10528_v36 = vunpack.c.l.b16 %v10403_v41  ;;  %v8952_v23 = vadd.f32 %v17731_v57, %v16426_v56  ;;  %v9786_v56 = vrot.slane %v9784_v0, 4  ;;  %v11990_v5 = vld [vmem:[%s12441_s12 + $0xa8] sm:$0xf]  ;;  %v11991_v19 = vld [vmem:[%s12441_s12 + $0xac] sm:$0xf] }
 0x6c3   : > { %v10003_v40 = vadd.f32 %v17000_v59, %v9605_v52  ;;  %v17056_v3 = vpop.f32.mrf.mxu2  ;;  %v9299_v59 = vor.u32 %v9298_v51, %v9295_v45  ;;  %v9310_v28 = vrot.slane %v9309_v48, 4  ;;  %v9787_v37 = vrot.slane %v17070_v50, 5  ;;  %v11992_v41 = vld [vmem:[%s12441_s12 + $0xb0] sm:$0x1] }
 0x6c4   : > { %v10548_v62 = vpack.c.b16 %v10528_v36, %v10527_v49  ;;  %v9320_v63 = vshll.u32 %v9016_v38, 16  ;;  %v10405_v43 = vshrl.u32 %v11990_v5, 16  ;;  %v10414_v48 = vshll.u32 %v11991_v19, 16 }
 0x6c5   : > { %v10039_v6 = vadd.f32 %v16961_v42, %v10003_v40  ;;  %v9300_v51 = vrot.slane %v9299_v59, 4  ;;  %v9315_v20 = vsel %vm12463_vm6, %v9310_v28, %v9314_v1  ;;  %v10408_v59 = vshll.u32 %v11990_v5, 16  ;;  %v17733_v1 = vld [vmem:[#allocation43_spill] sm:$0xff] }
 0x6c6   : > { %v10418_v61 = vshrl.u32 %v11991_v19, 16  ;;  %v9326_v49 = vshll.u32 %v17059_v13, 16  ;;  %v10407_v36 = vrot.slane %v10405_v43, 4  ;;  %v9319_v19 = vrot.slane %v9317_v27, 4 }
 0x6c7   : > { %v10696_v17 = vadd.f32 %v10621_v7, %v10039_v6  ;;  %v10624_v7 = vadd.f32 %v16951_v44, %v10623_v2  ;;  %v17086_v6 = vpop.f32.mrf.mxu0  ;;  %v9330_v2 = vshrl.u32 %v17059_v13, 16  ;;  %v10410_v38 = vrot.slane %v10408_v59, 5 }
 0x6c8   : > { %v9532_v55 = vpop.f32.mrf.mxu1  ;;  %11949 = vmatmul.msk.bf16.gmra.mxu2 %vm6610_vm3, %v9855_v4  ;;  %v10424_v4 = vshll.u32 %v11992_v41, 16  ;;  %v10420_v57 = vrot.slane %v10418_v61, 4  ;;  %v9322_v43 = vrot.slane %v9320_v63, 5  ;;  %v9336_v61 = vshll.u32 %v17070_v50, 16 }
 0x6c9   : > { %10728 = vst.msk [vmem:[%s16982_s20 + $0x18] sm:$0xff] %vm6610_vm3, %v10696_v17  ;;  %v9606_v45 = vadd.f32 %v9532_v55, %v8952_v23  ;;  %v10625_v52 = vpop.f32.mrf.mxu3  ;;  %v10416_v17 = vrot.slane %v10414_v48, 5  ;;  %v8953_v55 = vadd.f32 %v17733_v1, %v16439_v34  ;;  %v9332_v59 = vrot.slane %v9330_v2, 4  ;;  %v9019_v1 = vld [vmem:[#allocation2 + $0xb4] sm:$0xf] }
 0x6ca   : > { %v10426_v13 = vrot.slane %v10424_v4, 5  ;;  %v9305_v34 = vsel %vm12463_vm6, %v9300_v51, %v17047_v35  ;;  %v10626_v48 = vadd.f32 %v16951_v44, %v10625_v52  ;;  %v9437_v63 = vunpack.c.l.b16 %v9315_v20 }
 0x6cb   : > { %v10004_v40 = vadd.f32 %v17027_v16, %v9606_v45  ;;  %11915 = vmatmul.msk.bf16.gmra.mxu1 %vm6610_vm3, %v9456_v14  ;;  %v17079_v9 = vpop.f32.mrf.mxu2  ;;  %v9785_v14 = vsel %vm12457_vm5, %v11933_v47, %v9784_v0  ;;  %v9788_v45 = vsel %vm12457_vm5, %v9786_v56, %v9787_v37  ;;  %v10421_v5 = vor.u32 %v10420_v57, %v10416_v17 }
 0x6cc   : > { %v9837_v0 = vunpack.c.l.b16 %v9788_v45  ;;  %v9836_v4 = vunpack.c.l.b16 %v9785_v14  ;;  %v9436_v2 = vunpack.c.l.b16 %v9305_v34  ;;  %v9338_v14 = vrot.slane %v9336_v61, 5  ;;  %v17123_v45 = vld [vmem:[#allocation2 + $0xbc] sm:$0x1]  ;;  %v11993_v61 = vld [vmem:[%s12441_s12 + $0xb4] sm:$0xf] }
 0x6cd   : > { %v10040_v16 = vadd.f32 %v16961_v42, %v10004_v40  ;;  %v10411_v40 = vor.u32 %v10410_v38, %v10407_v36  ;;  %v10422_v56 = vrot.slane %v10421_v5, 4  ;;  %v9647_v36 = vld [vmem:[#allocation2 + $0xb4] sm:$0xe] }
 0x6ce   : > { %12013 = vmatmul.msk.bf16.gmra.mxu3 %vm17732_vm10, %v10548_v62  ;;  %v9856_v50 = vpack.c.b16 %v9837_v0, %v9836_v4  ;;  %v11934_v5 = vrot.slane %v9647_v36, 9  ;;  %v9344_v0 = vshll.u32 %v9019_v1, 16  ;;  %v11995_v4 = vld [vmem:[%s12441_s12 + $0xbc] sm:$0x1] }
 0x6cf   : > { %v10697_v23 = vadd.f32 %v10624_v7, %v10040_v16  ;;  %v17100_v7 = vrot.slane %v9326_v49, 5  ;;  %v10412_v47 = vrot.slane %v10411_v40, 4  ;;  %v17110_v16 = vld [vmem:[#allocation2 + $0xb8] sm:$0xf]  ;;  %v10427_v35 = vsel %vm12463_vm6, %v10422_v56, %v10426_v13  ;;  %v17118_v38 = vpop.f32.mrf.mxu0 }
 0x6d0   : > { %v9534_v28 = vpop.f32.mrf.mxu1  ;;  %v10530_v20 = vunpack.c.l.b16 %v10427_v35  ;;  %v9457_v40 = vpack.c.b16 %v9437_v63, %v9436_v2  ;;  %v11994_v63 = vld [vmem:[%s12441_s12 + $0xb8] sm:$0xf]  ;;  %v10432_v35 = vshll.u32 %v11993_v61, 16  ;;  %v9354_v36 = vshrl.u32 %v17110_v16, 16 }
 0x6d1   : > { %10729 = vst.msk [vmem:[%s16982_s20 + $0x20] sm:$0xff] %vm6610_vm3, %v10697_v23  ;;  %v9607_v62 = vadd.f32 %v9534_v28, %v8953_v55  ;;  %v10628_v41 = vpop.f32.mrf.mxu3  ;;  %v10417_v49 = vsel %vm12463_vm6, %v10412_v47, %v10416_v17  ;;  %v9333_v52 = vor.u32 %v9332_v59, %v17100_v7  ;;  %v9791_v23 = vrot.slane %v17110_v16, 5 }
 0x6d2   : > { %v10529_v57 = vunpack.c.l.b16 %v10417_v49  ;;  %v8954_v55 = vadd.f32 %v16494_v33, %v16450_v58  ;;  %v9341_v59 = vshrl.u32 %v9019_v1, 16  ;;  %v9794_v33 = vrot.slane %v17123_v45, 5 }
 0x6d3   : > { %v10005_v37 = vadd.f32 %v17056_v3, %v9607_v62  ;;  %v17107_v27 = vpop.f32.mrf.mxu2  ;;  %v9323_v3 = vor.u32 %v9322_v43, %v9319_v19  ;;  %v9334_v43 = vrot.slane %v9333_v52, 4  ;;  %v9793_v58 = vrot.slane %v9791_v23, 4 }
 0x6d4   : > { %v10549_v34 = vpack.c.b16 %v10530_v20, %v10529_v57  ;;  %v10629_v56 = vadd.f32 %v16951_v44, %v10628_v41  ;;  %v10429_v49 = vshrl.u32 %v11993_v61, 16  ;;  %v10442_v2 = vshrl.u32 %v11994_v63, 16 }
 0x6d5   : > { %v10041_v51 = vadd.f32 %v16961_v42, %v10005_v37  ;;  %v9324_v62 = vrot.slane %v9323_v3, 4  ;;  %v10448_v52 = vshll.u32 %v11995_v4, 16 }
 0x6d6   : > { %v10431_v41 = vrot.slane %v10429_v49, 4  ;;  %v10444_v20 = vrot.slane %v10442_v2, 4 }
 0x6d7   : > { %v10698_v17 = vadd.f32 %v10626_v48, %v10041_v51  ;;  %v9339_v48 = vsel %vm12463_vm6, %v9334_v43, %v9338_v14  ;;  %v10438_v51 = vshll.u32 %v11994_v63, 16  ;;  %v9343_v14 = vrot.slane %v9341_v59, 4 }
 0x6d8   : > { %v9537_v28 = vpop.f32.mrf.mxu1  ;;  %11950 = vmatmul.msk.bf16.gmra.mxu2 %vm6610_vm3, %v9856_v50  ;;  %v10434_v50 = vrot.slane %v10432_v35, 5  ;;  %v10450_v43 = vrot.slane %v10448_v52, 5  ;;  %v9439_v35 = vunpack.c.l.b16 %v9339_v48  ;;  %v9648_v52 = vld [vmem:[#allocation2 + $0xc0] sm:$0xe] }
 0x6d9   : > { %10730 = vst.msk [vmem:[%s16982_s20 + $0x28] sm:$0xff] %vm6610_vm3, %v10698_v17  ;;  %v9608_v13 = vadd.f32 %v9537_v28, %v8954_v55  ;;  %v10630_v19 = vpop.f32.mrf.mxu3  ;;  %v10440_v57 = vrot.slane %v10438_v51, 5  ;;  %v8955_v17 = vadd.f32 %v16509_v24, %v16463_v22  ;;  %v9795_v55 = vsel %vm12457_vm5, %v9793_v58, %v9794_v33  ;;  %v17147_v28 = vpop.f32.mrf.mxu0 }
 0x6da   : > { %v9356_v22 = vrot.slane %v9354_v36, 4  ;;  %v9329_v24 = vsel %vm12463_vm6, %v9324_v62, %v17100_v7  ;;  %v9839_v59 = vunpack.c.l.b16 %v9795_v55  ;;  %v17171_v36 = vld [vmem:[#allocation2 + $0xc8] sm:$0x1] }
 0x6db   : > { %v10006_v47 = vadd.f32 %v17079_v9, %v9608_v13  ;;  %11916 = vmatmul.msk.bf16.gmra.mxu1 %vm6610_vm3, %v9457_v40  ;;  %v17132_v37 = vpop.f32.mrf.mxu2  ;;  %v9350_v9 = vshll.u32 %v17110_v16, 16  ;;  %v10435_v13 = vor.u32 %v10434_v50, %v10431_v41  ;;  %v10445_v16 = vor.u32 %v10444_v20, %v10440_v57  ;;  %v9022_v50 = vld [vmem:[#allocation2 + $0xc0] sm:$0xf] }
 0x6dc   : > { %v8956_v20 = vadd.f32 %v17018_v60, %v16474_v46 }
 0x6dd   : > { %v10042_v3 = vadd.f32 %v16961_v42, %v10006_v47  ;;  %v9346_v47 = vrot.slane %v9344_v0, 5  ;;  %v17153_v63 = vrot.slane %v9350_v9, 5  ;;  %v10436_v58 = vrot.slane %v10435_v13, 4 }
 0x6de   : > { %12014 = vmatmul.msk.bf16.gmra.mxu3 %vm17734_vm12, %v10549_v34  ;;  %v10446_v33 = vrot.slane %v10445_v16, 4  ;;  %v10631_v0 = vadd.f32 %v16951_v44, %v10630_v19 }
 0x6df   : > { %v10699_v1 = vadd.f32 %v10629_v56, %v10042_v3  ;;  %v9792_v56 = vsel %vm12457_vm5, %v11934_v5, %v9791_v23  ;;  %v9360_v23 = vshll.u32 %v17123_v45, 16  ;;  %v17163_v5 = vld [vmem:[#allocation2 + $0xc4] sm:$0xf]  ;;  %v10441_v2 = vsel %vm12463_vm6, %v10436_v58, %v10440_v57 }
 0x6e0   : > { %v9539_v40 = vpop.f32.mrf.mxu1  ;;  %v9838_v51 = vunpack.c.l.b16 %v9792_v56  ;;  %v10451_v7 = vsel %vm12463_vm6, %v10446_v33, %v10450_v43  ;;  %v9347_v62 = vor.u32 %v9346_v47, %v9343_v14  ;;  %v9357_v19 = vor.u32 %v9356_v22, %v17153_v63 }
 0x6e1   : > { %10731 = vst.msk [vmem:[%s16982_s20 + $0x30] sm:$0xff] %vm6610_vm3, %v10699_v1  ;;  %v9609_v34 = vadd.f32 %v9539_v40, %v8955_v17  ;;  %v10633_v61 = vpop.f32.mrf.mxu3  ;;  %v10531_v9 = vunpack.c.l.b16 %v10441_v2  ;;  %v10532_v45 = vunpack.c.l.b16 %v10451_v7  ;;  %v9798_v41 = vrot.slane %v17163_v5, 5  ;;  %v17182_v46 = vpop.f32.mrf.mxu0 }
 0x6e2   : > { %v9857_v48 = vpack.c.b16 %v9839_v59, %v9838_v51  ;;  %v9362_v1 = vrot.slane %v9360_v23, 5  ;;  %v17177_v14 = vrot.slane %v9347_v62, 4  ;;  %v11935_v40 = vrot.slane %v9648_v52, 9  ;;  %v11998_v23 = vld [vmem:[%s12441_s12 + $0xc8] sm:$0x1] }
 0x6e3   : > { %v10007_v4 = vadd.f32 %v17107_v27, %v9609_v34  ;;  %v17160_v49 = vpop.f32.mrf.mxu2  ;;  %v9438_v27 = vunpack.c.l.b16 %v9329_v24  ;;  %v9358_v43 = vrot.slane %v9357_v19, 4  ;;  %v9801_v47 = vrot.slane %v17171_v36, 5 }
 0x6e4   : > { %v9365_v34 = vshrl.u32 %v9022_v50, 16  ;;  %v10550_v60 = vpack.c.b16 %v10532_v45, %v10531_v9  ;;  %v9800_v56 = vrot.slane %v9798_v41, 4  ;;  %v9368_v22 = vshll.u32 %v9022_v50, 16 }
 0x6e5   : > { %v10043_v3 = vadd.f32 %v16961_v42, %v10007_v4  ;;  %v9458_v55 = vpack.c.b16 %v9439_v35, %v9438_v27  ;;  %v9374_v24 = vshll.u32 %v17163_v5, 16  ;;  %v10634_v58 = vadd.f32 %v16951_v44, %v10633_v61  ;;  %v11997_v35 = vld [vmem:[%s12441_s12 + $0xc4] sm:$0xf] }
 0x6e6   : > { %v9363_v4 = vsel %vm12463_vm6, %v9358_v43, %v9362_v1  ;;  %v10462_v7 = vshll.u32 %v11997_v35, 16  ;;  %v10466_v62 = vshrl.u32 %v11997_v35, 16  ;;  %v10472_v27 = vshll.u32 %v11998_v23, 16 }
 0x6e7   : > { %v10700_v57 = vadd.f32 %v10631_v0, %v10043_v3  ;;  %v11996_v0 = vld [vmem:[%s12441_s12 + $0xc0] sm:$0xf]  ;;  %v9378_v61 = vshrl.u32 %v17163_v5, 16  ;;  %v8957_v50 = vadd.f32 %v17049_v10, %v16489_v31  ;;  %v9370_v43 = vrot.slane %v9368_v22, 5 }
 0x6e8   : > { %v9542_v17 = vpop.f32.mrf.mxu1  ;;  %11951 = vmatmul.msk.bf16.gmra.mxu2 %vm6610_vm3, %v9857_v48  ;;  %v10453_v51 = vshrl.u32 %v11996_v0, 16  ;;  %v10456_v2 = vshll.u32 %v11996_v0, 16  ;;  %v10464_v48 = vrot.slane %v10462_v7, 5  ;;  %v10468_v9 = vrot.slane %v10466_v62, 4 }
 0x6e9   : > { %10732 = vst.msk [vmem:[%s16982_s20 + $0x38] sm:$0xff] %vm6610_vm3, %v10700_v57  ;;  %v9610_v13 = vadd.f32 %v9542_v17, %v8956_v20  ;;  %v10635_v16 = vpop.f32.mrf.mxu3  ;;  %v9799_v57 = vsel %vm12457_vm5, %v11935_v40, %v9798_v41  ;;  %v9367_v20 = vrot.slane %v9365_v34, 4  ;;  %v9353_v31 = vsel %vm12463_vm6, %v17177_v14, %v17153_v63  ;;  %v9649_v40 = vld [vmem:[#allocation2 + $0xcc] sm:$0xe] }
 0x6ea   : > { %v10455_v19 = vrot.slane %v10453_v51, 4  ;;  %v10458_v52 = vrot.slane %v10456_v2, 5  ;;  %v10636_v0 = vadd.f32 %v16951_v44, %v10635_v16  ;;  %v9840_v23 = vunpack.c.l.b16 %v9799_v57  ;;  %v17219_v51 = vld [vmem:[#allocation2 + $0xd4] sm:$0x1]  ;;  %v17221_v2 = vpop.f32.mrf.mxu0 }
 0x6eb   : > { %v10008_v59 = vadd.f32 %v17132_v37, %v9610_v13  ;;  %11917 = vmatmul.msk.bf16.gmra.mxu1 %vm6610_vm3, %v9458_v55  ;;  %v17188_v33 = vpop.f32.mrf.mxu2  ;;  %v9802_v37 = vsel %vm12457_vm5, %v9800_v56, %v9801_v47  ;;  %v10469_v55 = vor.u32 %v10468_v9, %v10464_v48  ;;  %v10474_v13 = vrot.slane %v10472_v27, 5 }
 0x6ec   : > { %v10459_v17 = vor.u32 %v10458_v52, %v10455_v19  ;;  %v9841_v47 = vunpack.c.l.b16 %v9802_v37  ;;  %v17206_v56 = vrot.slane %v9374_v24, 5  ;;  %v9441_v24 = vunpack.c.l.b16 %v9363_v4 }
 0x6ed   : > { %v10044_v3 = vadd.f32 %v16961_v42, %v10008_v59  ;;  %v9380_v59 = vrot.slane %v9378_v61, 4  ;;  %v10470_v41 = vrot.slane %v10469_v55, 4  ;;  %v9371_v7 = vor.u32 %v9370_v43, %v9367_v20 }
 0x6ee   : > { %12015 = vmatmul.msk.bf16.gmra.mxu3 %vm17735_vm14, %v10550_v60  ;;  %v10460_v10 = vrot.slane %v10459_v17, 4  ;;  %v9858_v62 = vpack.c.b16 %v9841_v47, %v9840_v23  ;;  %v9808_v19 = vrot.slane %v17219_v51, 5  ;;  %v9440_v9 = vunpack.c.l.b16 %v9353_v31  ;;  %v12000_v31 = vld [vmem:[%s12441_s12 + $0xd0] sm:$0xf] }
 0x6ef   : > { %v10701_v45 = vadd.f32 %v10634_v58, %v10044_v3  ;;  %v17208_v58 = vld [vmem:[#allocation2 + $0xd0] sm:$0xf]  ;;  %v10475_v14 = vsel %vm12463_vm6, %v10470_v41, %v10474_v13  ;;  %v9381_v4 = vor.u32 %v9380_v59, %v17206_v56  ;;  %v11936_v3 = vrot.slane %v9649_v40, 9  ;;  %v11999_v59 = vld [vmem:[%s12441_s12 + $0xcc] sm:$0xf] }
 0x6f0   : > { %v9544_v1 = vpop.f32.mrf.mxu1  ;;  %v9805_v34 = vrot.slane %v17208_v58, 5  ;;  %v10465_v63 = vsel %vm12463_vm6, %v10460_v10, %v10464_v48  ;;  %v10534_v27 = vunpack.c.l.b16 %v10475_v14  ;;  %v8958_v48 = vadd.f32 %v17086_v6, %v16500_v12  ;;  %v12001_v10 = vld [vmem:[%s12441_s12 + $0xd4] sm:$0x1] }
 0x6f1   : > { %10733 = vst.msk [vmem:[%s16982_s20 + $0x40] sm:$0xff] %vm6610_vm3, %v10701_v45  ;;  %v9611_v5 = vadd.f32 %v9544_v1, %v8957_v50  ;;  %v10638_v60 = vpop.f32.mrf.mxu3  ;;  %v10533_v37 = vunpack.c.l.b16 %v10465_v63  ;;  %v9459_v50 = vpack.c.b16 %v9441_v24, %v9440_v9  ;;  %v9372_v20 = vrot.slane %v9371_v7, 4 }
 0x6f2   : > { %v9807_v61 = vrot.slane %v9805_v34, 4  ;;  %v9382_v55 = vrot.slane %v9381_v4, 4  ;;  %v9806_v13 = vsel %vm12457_vm5, %v11936_v3, %v9805_v34  ;;  %v10639_v43 = vadd.f32 %v16951_v44, %v10638_v60  ;;  %v17251_v60 = vpop.f32.mrf.mxu0 }
 0x6f3   : > { %v10009_v22 = vadd.f32 %v17160_v49, %v9611_v5  ;;  %v17217_v35 = vpop.f32.mrf.mxu2  ;;  %v9384_v49 = vshll.u32 %v17171_v36, 16  ;;  %v10551_v17 = vpack.c.b16 %v10534_v27, %v10533_v37  ;;  %v8959_v47 = vadd.f32 %v17118_v38, %v16514_v15 }
 0x6f4   : > { %v9809_v12 = vsel %vm12457_vm5, %v9807_v61, %v9808_v19  ;;  %v10477_v41 = vshrl.u32 %v11999_v59, 16  ;;  %v10480_v40 = vshll.u32 %v11999_v59, 16  ;;  %v10486_v34 = vshll.u32 %v12000_v31, 16  ;;  %vm17736_vm5 = vmmov %vm17697_vm0 }
 0x6f5   : > { %v10045_v16 = vadd.f32 %v16961_v42, %v10009_v22  ;;  %v9386_v1 = vrot.slane %v9384_v49, 5  ;;  %v10490_v22 = vshrl.u32 %v12000_v31, 16  ;;  %v9843_v24 = vunpack.c.l.b16 %v9809_v12 }
 0x6f6   : > { %v10496_v23 = vshll.u32 %v12001_v10, 16  ;;  %v10479_v63 = vrot.slane %v10477_v41, 4  ;;  %v10482_v15 = vrot.slane %v10480_v40, 5  ;;  %v10488_v38 = vrot.slane %v10486_v34, 5 }
 0x6f7   : > { %v10702_v52 = vadd.f32 %v10636_v0, %v10045_v16  ;;  %v10492_v14 = vrot.slane %v10490_v22, 4  ;;  %v9389_v16 = vshrl.u32 %v9025_v26, 16  ;;  %v9398_v27 = vshll.u32 %v17208_v58, 16 }
 0x6f8   : > { %v9547_v45 = vpop.f32.mrf.mxu1  ;;  %11952 = vmatmul.msk.bf16.gmra.mxu2 %vm6610_vm3, %v9858_v62  ;;  %v10498_v49 = vrot.slane %v10496_v23, 5  ;;  %v9392_v62 = vshll.u32 %v9025_v26, 16  ;;  %v10483_v3 = vor.u32 %v10482_v15, %v10479_v63  ;;  %v9402_v61 = vshrl.u32 %v17208_v58, 16 }
 0x6f9   : > { %10734 = vst.msk [vmem:[%s16982_s20 + $0x48] sm:$0xff] %vm6610_vm3, %v10702_v52  ;;  %v9612_v36 = vadd.f32 %v9547_v45, %v8958_v48  ;;  %v10640_v57 = vpop.f32.mrf.mxu3  ;;  %v10493_v37 = vor.u32 %v10492_v14, %v10488_v38  ;;  %v9377_v52 = vsel %vm12463_vm6, %v9372_v20, %v17206_v56  ;;  %v9387_v9 = vsel %vm12463_vm6, %v9382_v55, %v9386_v1 }
 0x6fa   : > { %v9391_v58 = vrot.slane %v9389_v16, 4  ;;  %v9400_v20 = vrot.slane %v9398_v27, 5  ;;  %v9443_v55 = vunpack.c.l.b16 %v9387_v9  ;;  %v9442_v10 = vunpack.c.l.b16 %v9377_v52  ;;  %v8908_v41 = vpop.f32.mrf.mxu0 }
 0x6fb   : > { %v10010_v6 = vadd.f32 %v17188_v33, %v9612_v36  ;;  %11918 = vmatmul.msk.bf16.gmra.mxu1 %vm6610_vm3, %v9459_v50  ;;  %v17243_v5 = vpop.f32.mrf.mxu2  ;;  %v9842_v33 = vunpack.c.l.b16 %v9806_v13  ;;  %v10484_v36 = vrot.slane %v10483_v3, 4  ;;  %v10494_v50 = vrot.slane %v10493_v37, 4 }
 0x6fc   : > { %v10641_v13 = vadd.f32 %v16951_v44, %v10640_v57  ;;  %v8960_v57 = vadd.f32 %v17147_v28, %v16534_v30  ;;  %v9408_v26 = vshll.u32 %v17219_v51, 16  ;;  %v8962_v29 = vadd.f32 %v17221_v2, %v16573_v32 }
 0x6fd   : > { %v10046_v0 = vadd.f32 %v16961_v42, %v10010_v6  ;;  %v9859_v45 = vpack.c.b16 %v9843_v24, %v9842_v33  ;;  %v9394_v6 = vrot.slane %v9392_v62, 5  ;;  %v10499_v56 = vsel %vm12463_vm6, %v10494_v50, %v10498_v49 }
 0x6fe   : > { %12016 = vmatmul.msk.bf16.gmra.mxu3 %vm17736_vm5, %v10551_v17  ;;  %v10536_v31 = vunpack.c.l.b16 %v10499_v56  ;;  %v9460_v33 = vpack.c.b16 %v9443_v55, %v9442_v10  ;;  %v9410_v14 = vrot.slane %v9408_v26, 5  ;;  %v8961_v49 = vadd.f32 %v17182_v46, %v16550_v53 }
 0x6ff   : > { %v10703_v7 = vadd.f32 %v10639_v43, %v10046_v0  ;;  %v10489_v43 = vsel %vm12463_vm6, %v10484_v36, %v10488_v38  ;;  %v9395_v34 = vor.u32 %v9394_v6, %v9391_v58  ;;  %v8963_v32 = vadd.f32 %v17251_v60, %v16595_v18 }
 0x700   : > { %v9549_v4 = vpop.f32.mrf.mxu1  ;;  %v10535_v59 = vunpack.c.l.b16 %v10489_v43 }
 0x701   : > { %10735 = vst.msk [vmem:[%s16982_s20 + $0x50] sm:$0xff] %vm6610_vm3, %v10703_v7  ;;  %v9613_v19 = vadd.f32 %v9549_v4, %v8959_v47  ;;  %v10643_v48 = vpop.f32.mrf.mxu3  ;;  %v9404_v47 = vrot.slane %v9402_v61, 4  ;;  %v9396_v15 = vrot.slane %v9395_v34, 4 }
 0x702   : > { %v10552_v23 = vpack.c.b16 %v10536_v31, %v10535_v59  ;;  %v10644_v30 = vadd.f32 %v16951_v44, %v10643_v48  ;;  %v8910_v37 = vpop.f32.mrf.mxu0  ;;  %v8964_v31 = vadd.f32 %v8908_v41, %v16618_v54 }
 0x703   : > { %v10011_v17 = vadd.f32 %v17217_v35, %v9613_v19  ;;  %v9952_v12 = vpop.f32.mrf.mxu2  ;;  %v9405_v22 = vor.u32 %v9404_v47, %v9400_v20 }
 0x705   : > { %v10047_v1 = vadd.f32 %v16961_v42, %v10011_v17  ;;  %v9406_v38 = vrot.slane %v9405_v22, 4 }
 0x707   : > { %v10704_v35 = vadd.f32 %v10641_v13, %v10047_v1  ;;  %v9411_v62 = vsel %vm12463_vm6, %v9406_v38, %v9410_v14  ;;  %v17305_v1 = vld [vmem:[%s17411_s6] ss:$0 sm:$0xff] }
 0x708   : > { %v9552_v40 = vpop.f32.mrf.mxu1  ;;  %11953 = vmatmul.msk.bf16.gmra.mxu2 %vm6610_vm3, %v9859_v45  ;;  %v9445_v48 = vunpack.c.l.b16 %v9411_v62 }
 0x709   : > { %10736 = vst.msk [vmem:[%s16982_s20 + $0x58] sm:$0xff] %vm6610_vm3, %v10704_v35  ;;  %v9614_v0 = vadd.f32 %v9552_v40, %v8960_v57  ;;  %v10645_v24 = vpop.f32.mrf.mxu3 }
 0x70a   : > { %v10646_v61 = vadd.f32 %v16951_v44, %v10645_v24  ;;  %v8913_v58 = vpop.f32.mrf.mxu0 }
 0x70b   : > { %v10012_v63 = vadd.f32 %v17243_v5, %v9614_v0  ;;  %11919 = vmatmul.msk.bf16.gmra.mxu1 %vm6610_vm3, %v9460_v33  ;;  %v9955_v28 = vpop.f32.mrf.mxu2  ;;  %v9401_v5 = vsel %vm12463_vm6, %v9396_v15, %v9400_v20  ;;  %v8965_v33 = vadd.f32 %v8910_v37, %v16640_v8  ;;  %v8966_v14 = vadd.f32 %v8913_v58, %v16663_v21 }
 0x70c   : > { %v9444_v52 = vunpack.c.l.b16 %v9401_v5 }
 0x70d   : > { %v10048_v7 = vadd.f32 %v16961_v42, %v10012_v63 }
 0x70e   : > { %12017 = vmatmul.msk.bf16.gmra.mxu3 %vm17737_vm9, %v10552_v23  ;;  %v9461_v9 = vpack.c.b16 %v9445_v48, %v9444_v52 }
 0x70f   : > { %v10705_v51 = vadd.f32 %v10644_v30, %v10048_v7 }
 0x710   : > { %v9554_v16 = vpop.f32.mrf.mxu1 }
 0x711   : > { %10737 = vst.msk [vmem:[%s16982_s20 + $0x60] sm:$0xff] %vm6610_vm3, %v10705_v51  ;;  %v9615_v4 = vadd.f32 %v9554_v16, %v8961_v49  ;;  %v10648_v3 = vpop.f32.mrf.mxu3 }
 0x712   : > { %v10649_v13 = vadd.f32 %v16951_v44, %v10648_v3  ;;  %v8915_v60 = vpop.f32.mrf.mxu0 }
 0x713   : > { %v10013_v27 = vadd.f32 %v9952_v12, %v9615_v4  ;;  %v9957_v19 = vpop.f32.mrf.mxu2  ;;  %v8967_v37 = vadd.f32 %v8915_v60, %v16685_v39  ;;  %v17739_v60 = vld [vmem:[#allocation6_spill] sm:$0xff] }
 0x715   : > { %v10049_v53 = vadd.f32 %v16961_v42, %v10013_v27 }
 0x717   : > { %v10706_v46 = vadd.f32 %v10646_v61, %v10049_v53 }
 0x718   : > { %v9557_v45 = vpop.f32.mrf.mxu1 }
 0x719   : > { %10738 = vst.msk [vmem:[%s16982_s20 + $0x68] sm:$0xff] %vm6610_vm3, %v10706_v46  ;;  %v9616_v36 = vadd.f32 %v9557_v45, %v8962_v29  ;;  %v10650_v50 = vpop.f32.mrf.mxu3 }
 0x71a   : > { %v10651_v44 = vadd.f32 %v17305_v1, %v10650_v50  ;;  %v8918_v24 = vpop.f32.mrf.mxu0 }
 0x71b   : > { %v10014_v17 = vadd.f32 %v9955_v28, %v9616_v36  ;;  %11920 = vmatmul.msk.bf16.gmra.mxu1 %vm6610_vm3, %v9461_v9  ;;  %v9960_v12 = vpop.f32.mrf.mxu2  ;;  %v8968_v9 = vadd.f32 %v8918_v24, %v16708_v25 }
 0x71d   : > { %v10050_v6 = vadd.f32 %v16961_v42, %v10014_v17  ;;  %v17311_v42 = vld [vmem:[%s17409_s4] ss:$0 sm:$0xff] }
 0x71f   : > { %v10707_v43 = vadd.f32 %v10649_v13, %v10050_v6 }
 0x720   : > { %v9559_v2 = vpop.f32.mrf.mxu1 }
 0x721   : > { %10739 = vst.msk [vmem:[%s16982_s20 + $0x70] sm:$0xff] %vm6610_vm3, %v10707_v43  ;;  %v9617_v56 = vadd.f32 %v9559_v2, %v8963_v32  ;;  %v10653_v20 = vpop.f32.mrf.mxu3  ;;  %v17738_v43 = vld [vmem:[#allocation10_spill] sm:$0xff] }
 0x722   : > { %v10654_v34 = vadd.f32 %v17305_v1, %v10653_v20  ;;  %v8920_v49 = vpop.f32.mrf.mxu0 }
 0x723   : > { %v10015_v47 = vadd.f32 %v9957_v19, %v9617_v56  ;;  %v9962_v55 = vpop.f32.mrf.mxu2  ;;  %v8969_v32 = vadd.f32 %v8920_v49, %v17738_v43 }
 0x725   : > { %v10051_v18 = vadd.f32 %v17311_v42, %v10015_v47 }
 0x727   : > { %v10708_v59 = vadd.f32 %v10651_v44, %v10051_v18 }
 0x728   : > { %v9562_v35 = vpop.f32.mrf.mxu1 }
 0x729   : > { %10740 = vst.msk [vmem:[%s16982_s20 + $0x78] sm:$0xff] %vm6610_vm3, %v10708_v59  ;;  %v9618_v57 = vadd.f32 %v9562_v35, %v8964_v31  ;;  %v10655_v10 = vpop.f32.mrf.mxu3 }
 0x72a   : > { %v10656_v30 = vadd.f32 %v17305_v1, %v10655_v10  ;;  %v8923_v53 = vpop.f32.mrf.mxu0 }
 0x72b   : > { %v10016_v40 = vadd.f32 %v9960_v12, %v9618_v57  ;;  %v9965_v22 = vpop.f32.mrf.mxu2  ;;  %v8970_v59 = vadd.f32 %v8923_v53, %v17739_v60 }
 0x72d   : > { %v10052_v26 = vadd.f32 %v17311_v42, %v10016_v40 }
 0x72f   : > { %v10709_v0 = vadd.f32 %v10654_v34, %v10052_v26 }
 0x730   : > { %v9564_v23 = vpop.f32.mrf.mxu1 }
 0x731   : > { %10741 = vst.msk [vmem:[%s16982_s20 + $0x80] sm:$0xff] %vm6610_vm3, %v10709_v0  ;;  %v9619_v54 = vadd.f32 %v9564_v23, %v8965_v33  ;;  %v10658_v41 = vpop.f32.mrf.mxu3  ;;  %v17740_v33 = vld [vmem:[#allocation14_spill] sm:$0xff] }
 0x732   : > { %v10659_v5 = vadd.f32 %v17305_v1, %v10658_v41  ;;  %v8925_v58 = vpop.f32.mrf.mxu0 }
 0x733   : > { %v10017_v63 = vadd.f32 %v9962_v55, %v9619_v54  ;;  %v9967_v28 = vpop.f32.mrf.mxu2  ;;  %v8971_v24 = vadd.f32 %v8925_v58, %v17740_v33  ;;  %v17745_v33 = vld [vmem:[#allocation9_spill] sm:$0xff] }
 0x735   : > { %v10053_v15 = vadd.f32 %v17311_v42, %v10017_v63 }
 0x737   : > { %v10710_v38 = vadd.f32 %v10656_v30, %v10053_v15 }
 0x738   : > { %v9567_v7 = vpop.f32.mrf.mxu1 }
 0x739   : > { %10742 = vst.msk [vmem:[%s16982_s20 + $0x88] sm:$0xff] %vm6610_vm3, %v10710_v38  ;;  %v9620_v8 = vadd.f32 %v9567_v7, %v8966_v14  ;;  %v10660_v51 = vpop.f32.mrf.mxu3  ;;  %v17741_v14 = vld [vmem:[#allocation18_spill] sm:$0xff] }
 0x73a   : > { %v10661_v52 = vadd.f32 %v17305_v1, %v10660_v51  ;;  %v8928_v31 = vpop.f32.mrf.mxu0 }
 0x73b   : > { %v10018_v16 = vadd.f32 %v9965_v22, %v9620_v8  ;;  %v9970_v62 = vpop.f32.mrf.mxu2  ;;  %v8972_v7 = vadd.f32 %v8928_v31, %v17741_v14  ;;  %v17746_v14 = vld [vmem:[#allocation22_spill] sm:$0xff] }
 0x73d   : > { %v10054_v4 = vadd.f32 %v17311_v42, %v10018_v16 }
 0x73f   : > { %v10711_v3 = vadd.f32 %v10659_v5, %v10054_v4 }
 0x740   : > { %v9569_v27 = vpop.f32.mrf.mxu1 }
 0x741   : > { %10743 = vst.msk [vmem:[%s16982_s20 + $0x90] sm:$0xff] %vm6610_vm3, %v10711_v3  ;;  %v9621_v21 = vadd.f32 %v9569_v27, %v8967_v37  ;;  %v10663_v61 = vpop.f32.mrf.mxu3  ;;  %v17742_v27 = vld [vmem:[#allocation7_spill] sm:$0xff] }
 0x742   : > { %v10664_v17 = vadd.f32 %v17305_v1, %v10663_v61  ;;  %v8930_v63 = vpop.f32.mrf.mxu0 }
 0x743   : > { %v10019_v19 = vadd.f32 %v9967_v28, %v9621_v21  ;;  %v9972_v48 = vpop.f32.mrf.mxu2  ;;  %v8973_v21 = vadd.f32 %v8930_v63, %v17742_v27 }
 0x745   : > { %v10055_v46 = vadd.f32 %v17311_v42, %v10019_v19 }
 0x747   : > { %v10712_v29 = vadd.f32 %v10661_v52, %v10055_v46 }
 0x748   : > { %v9572_v45 = vpop.f32.mrf.mxu1 }
 0x749   : > { %10744 = vst.msk [vmem:[%s16982_s20 + $0x98] sm:$0xff] %vm6610_vm3, %v10712_v29  ;;  %v9622_v39 = vadd.f32 %v9572_v45, %v8968_v9  ;;  %v10665_v36 = vpop.f32.mrf.mxu3 }
 0x74a   : > { %v10666_v47 = vadd.f32 %v17305_v1, %v10665_v36  ;;  %v8933_v4 = vpop.f32.mrf.mxu0 }
 0x74b   : > { %v10020_v50 = vadd.f32 %v9970_v62, %v9622_v39  ;;  %v9975_v13 = vpop.f32.mrf.mxu2  ;;  %v8974_v39 = vadd.f32 %v8933_v4, %v16836_v11 }
 0x74d   : > { %v10056_v12 = vadd.f32 %v17311_v42, %v10020_v50 }
 0x74f   : > { %v10713_v6 = vadd.f32 %v10664_v17, %v10056_v12 }
 0x750   : > { %v9574_v2 = vpop.f32.mrf.mxu1 }
 0x751   : > { %10745 = vst.msk [vmem:[%s16982_s20 + $0xa0] sm:$0xff] %vm6610_vm3, %v10713_v6  ;;  %v9623_v25 = vadd.f32 %v9574_v2, %v8969_v32  ;;  %v10668_v56 = vpop.f32.mrf.mxu3  ;;  %v17743_v32 = vld [vmem:[#allocation17_spill] sm:$0xff] }
 0x752   : > { %v10669_v34 = vadd.f32 %v17305_v1, %v10668_v56  ;;  %v8935_v9 = vpop.f32.mrf.mxu0 }
 0x753   : > { %v10021_v20 = vadd.f32 %v9972_v48, %v9623_v25  ;;  %v9977_v44 = vpop.f32.mrf.mxu2  ;;  %v8975_v2 = vadd.f32 %v8935_v9, %v17743_v32 }
 0x755   : > { %v10057_v55 = vadd.f32 %v17311_v42, %v10021_v20 }
 0x757   : > { %v10714_v18 = vadd.f32 %v10666_v47, %v10057_v55 }
 0x758   : > { %v9577_v35 = vpop.f32.mrf.mxu1 }
 0x759   : > { %10746 = vst.msk [vmem:[%s16982_s20 + $0xa8] sm:$0xff] %vm6610_vm3, %v10714_v18  ;;  %v9624_v57 = vadd.f32 %v9577_v35, %v8970_v59  ;;  %v10670_v10 = vpop.f32.mrf.mxu3  ;;  %v17744_v59 = vld [vmem:[#allocation11_spill] sm:$0xff] }
 0x75a   : > { %v10671_v28 = vadd.f32 %v17305_v1, %v10670_v10  ;;  %v8938_v25 = vpop.f32.mrf.mxu0 }
 0x75b   : > { %v10022_v40 = vadd.f32 %v9975_v13, %v9624_v57  ;;  %v9980_v26 = vpop.f32.mrf.mxu2  ;;  %v8976_v31 = vadd.f32 %v8938_v25, %v17744_v59 }
 0x75d   : > { %v10058_v22 = vadd.f32 %v17311_v42, %v10022_v40 }
 0x75f   : > { %v10715_v0 = vadd.f32 %v10669_v34, %v10058_v22 }
 0x760   : > { %v9579_v23 = vpop.f32.mrf.mxu1 }
 0x761   : > { %10747 = vst.msk [vmem:[%s16982_s20 + $0xb0] sm:$0xff] %vm6610_vm3, %v10715_v0  ;;  %v9625_v54 = vadd.f32 %v9579_v23, %v8971_v24  ;;  %v10673_v41 = vpop.f32.mrf.mxu3 }
 0x762   : > { %v10674_v62 = vadd.f32 %v17305_v1, %v10673_v41  ;;  %v8940_v10 = vpop.f32.mrf.mxu0 }
 0x763   : > { %v10023_v30 = vadd.f32 %v9977_v44, %v9625_v54  ;;  %v9982_v8 = vpop.f32.mrf.mxu2  ;;  %v8977_v24 = vadd.f32 %v8940_v10, %v17745_v33 }
 0x765   : > { %v10059_v15 = vadd.f32 %v17311_v42, %v10023_v30 }
 0x767   : > { %v10716_v38 = vadd.f32 %v10671_v28, %v10059_v15 }
 0x768   : > { %v9582_v51 = vpop.f32.mrf.mxu1 }
 0x769   : > { %10748 = vst.msk [vmem:[%s16982_s20 + $0xb8] sm:$0xff] %vm6610_vm3, %v10716_v38  ;;  %v9626_v49 = vadd.f32 %v9582_v51, %v8972_v7  ;;  %v10675_v16 = vpop.f32.mrf.mxu3 }
 0x76a   : > { %v10676_v46 = vadd.f32 %v17305_v1, %v10675_v16  ;;  %v8943_v63 = vpop.f32.mrf.mxu0 }
 0x76b   : > { %v10024_v5 = vadd.f32 %v9980_v26, %v9626_v49  ;;  %v9985_v48 = vpop.f32.mrf.mxu2  ;;  %v8978_v7 = vadd.f32 %v8943_v63, %v17746_v14 }
 0x76d   : > { %v10060_v3 = vadd.f32 %v17311_v42, %v10024_v5 }
 0x76f   : > { %v10717_v37 = vadd.f32 %v10674_v62, %v10060_v3 }
 0x770   : > { %v9584_v61 = vpop.f32.mrf.mxu1 }
 0x771   : > { %10749 = vst.msk [vmem:[%s16982_s20 + $0xc0] sm:$0xff] %vm6610_vm3, %v10717_v37  ;;  %v9627_v19 = vadd.f32 %v9584_v61, %v8973_v21  ;;  %v10678_v52 = vpop.f32.mrf.mxu3  ;;  %v17747_v37 = vld [vmem:[#allocation25_spill] sm:$0xff] }
 0x772   : > { %v10679_v12 = vadd.f32 %v17305_v1, %v10678_v52  ;;  %v8945_v4 = vpop.f32.mrf.mxu0 }
 0x773   : > { %v10025_v53 = vadd.f32 %v9982_v8, %v9627_v19  ;;  %v9987_v58 = vpop.f32.mrf.mxu2  ;;  %v8979_v27 = vadd.f32 %v8945_v4, %v17747_v37 }
 0x775   : > { %v10061_v29 = vadd.f32 %v17311_v42, %v10025_v53 }
 0x777   : > { %v10718_v45 = vadd.f32 %v10676_v46, %v10061_v29 }
 0x778   : > { %v9587_v36 = vpop.f32.mrf.mxu1 }
 0x779   : > { %10750 = vst.msk [vmem:[%s16982_s20 + $0xc8] sm:$0xff] %vm6610_vm3, %v10718_v45  ;;  %v9628_v50 = vadd.f32 %v9587_v36, %v8974_v39  ;;  %v10680_v17 = vpop.f32.mrf.mxu3 }
 0x77a   : > { %v10681_v44 = vadd.f32 %v17305_v1, %v10680_v17 }
 0x77b   : > { %v10026_v13 = vadd.f32 %v9985_v48, %v9628_v50  ;;  %v9990_v18 = vpop.f32.mrf.mxu2 }
 0x77d   : > { %v10062_v6 = vadd.f32 %v17311_v42, %v10026_v13 }
 0x77f   : > { %v10719_v43 = vadd.f32 %v10679_v12, %v10062_v6 }
 0x780   : > { %v9589_v56 = vpop.f32.mrf.mxu1 }
 0x781   : > { %10751 = vst.msk [vmem:[%s16982_s20 + $0xd0] sm:$0xff] %vm6610_vm3, %v10719_v43  ;;  %v9629_v11 = vadd.f32 %v9589_v56, %v8975_v2  ;;  %v10683_v20 = vpop.f32.mrf.mxu3 }
 0x782   : > { %v10684_v34 = vadd.f32 %v17305_v1, %v10683_v20 }
 0x783   : > { %v10027_v47 = vadd.f32 %v9987_v58, %v9629_v11  ;;  %v9992_v23 = vpop.f32.mrf.mxu2 }
 0x785   : > { %v10063_v55 = vadd.f32 %v17311_v42, %v10027_v47 }
 0x787   : > { %v10720_v60 = vadd.f32 %v10681_v44, %v10063_v55 }
 0x788   : > { %v9592_v35 = vpop.f32.mrf.mxu1 }
 0x789   : > { %10752 = vst.msk [vmem:[%s16982_s20 + $0xd8] sm:$0xff] %vm6610_vm3, %v10720_v60  ;;  %v9630_v57 = vadd.f32 %v9592_v35, %v8976_v31  ;;  %v10685_v22 = vpop.f32.mrf.mxu3 }
 0x78a   : > { %v10686_v28 = vadd.f32 %v17305_v1, %v10685_v22 }
 0x78b   : > { %v10028_v40 = vadd.f32 %v9990_v18, %v9630_v57  ;;  %v9995_v51 = vpop.f32.mrf.mxu2 }
 0x78d   : > { %v10064_v26 = vadd.f32 %v17311_v42, %v10028_v40 }
 0x78f   : > { %v10721_v0 = vadd.f32 %v10684_v34, %v10064_v26 }
 0x790   : > { %v9594_v54 = vpop.f32.mrf.mxu1 }
 0x791   : > { %10753 = vst.msk [vmem:[%s16982_s20 + $0xe0] sm:$0xff] %vm6610_vm3, %v10721_v0  ;;  %v9631_v41 = vadd.f32 %v9594_v54, %v8977_v24  ;;  %v10688_v38 = vpop.f32.mrf.mxu3 }
 0x792   : > { %v10689_v62 = vadd.f32 %v17305_v1, %v10688_v38 }
 0x793   : > { %v10029_v30 = vadd.f32 %v9992_v23, %v9631_v41  ;;  %v9997_v48 = vpop.f32.mrf.mxu2 }
 0x795   : > { %v10065_v15 = vadd.f32 %v17311_v42, %v10029_v30 }
 0x797   : > { %v10722_v8 = vadd.f32 %v10686_v28, %v10065_v15 }
 0x798   : > { %v9597_v49 = vpop.f32.mrf.mxu1 }
 0x799   : > { %10754 = vst.msk [vmem:[%s16982_s20 + $0xe8] sm:$0xff] %vm6610_vm3, %v10722_v8  ;;  %v9632_v16 = vadd.f32 %v9597_v49, %v8978_v7  ;;  %v10690_v19 = vpop.f32.mrf.mxu3 }
 0x79a   : > { %v10691_v46 = vadd.f32 %v17305_v1, %v10690_v19 }
 0x79b   : > { %v10030_v5 = vadd.f32 %v9995_v51, %v9632_v16 }
 0x79d   : > { %v10066_v3 = vadd.f32 %v17311_v42, %v10030_v5 }
 0x79f   : > { %v10723_v21 = vadd.f32 %v10689_v62, %v10066_v3 }
 0x7a0   : > { %v9599_v61 = vpop.f32.mrf.mxu1 }
 0x7a1   : > { %10755 = vst.msk [vmem:[%s16982_s20 + $0xf0] sm:$0xff] %vm6610_vm3, %v10723_v21  ;;  %v9633_v52 = vadd.f32 %v9599_v61, %v8979_v27 }
 0x7a3   : > { %v10031_v53 = vadd.f32 %v9997_v48, %v9633_v52 }
 0x7a5   : > { %v10067_v29 = vadd.f32 %v17311_v42, %v10031_v53 }
 0x7a7   : > { %v10724_v9 = vadd.f32 %v10691_v46, %v10067_v29 }
 0x7a9   : > { %10756 = vst.msk [vmem:[%s16982_s20 + $0xf8] sm:$0xff] %vm6610_vm3, %v10724_v9 }
 0x7aa PF: > { %s17_s26 = sadd.s32 1, %s12366_s26   ;;  %s17748_s24 = smov %s12362_s25 }
 0x7ab   : > { %p14_p5 = scmp.ge.s32.totalorder %s17_s26, 4   ;;  %s17749_s25 = smov %s17751_s27 }
 0x7ad   :  { %16 = sbr.rel (!%p14_p5) target bundleno = 2 (0x2), region = 106 }

</bundles_post_ra>
